<compile_context>
chip_gen: v7x
topology: tpu7x:2x2x1
jax: 0.10.0
libtpu: 0.0.40
codegen_flags: <defaults>
</compile_context>

<pallas_src>
import jax
import jax.numpy as jnp
import numpy as np
from jax import lax
from jax.experimental import pallas as pl
from jax.experimental.pallas import tpu as pltpu

# ----------------------------- configuration --------------------------------
B = 2              # logical batch size
T = 8              # sequence length
D = 768            # BERT hidden size (fixed by the module: nn.LSTM(768, ...))
HIDDEN_DIM = 256   # small stand-in for the module default 768 (must be even)
HH = HIDDEN_DIM // 2   # per-direction hidden size
C = 4              # class_num
VOCAB = 64         # synthetic vocab for the BERT stand-in

BP = 8             # batch padded to the f32 sublane tile (8); M=2 and M=8 cost
                   # the same per step, and every per-step slice is tile-aligned
OUT_PAD = 128      # lane-dense classifier output width (sliced back to C)


# ------------------------------- Pallas kernel ------------------------------
def lstm_fc_kernel(x_ref,      # (T*BP, D)     bf16  time-major flattened embeddings
                   wih_ref,    # (D, 8*HH)     bf16  [W_ih_fwd | W_ih_bwd]
                   b_ref,      # (1, 8*HH)     f32   [b_fwd | b_bwd]  (b_ih + b_hh)
                   whh_ref,    # (2*HH, 8*HH)  bf16  block-diag [W_hh_fwd ; W_hh_bwd]
                   hc0_ref,    # (4, BP, HH)   f32   [h0_f, h0_b, c0_f, c0_b]
                   wfcb_ref,   # (2*HH+1, 128) f32   [W_fc ; b_fc], zero-padded lanes
                   out_ref,    # (T*BP, 128)   f32
                   gx_ref,     # scratch (T*BP, 8*HH) f32  precomputed input gates
                   hseq_ref):  # scratch (T*BP, 2*HH) f32  [h_fwd | h_bwd]
    # ---- 1) Input projection: ONE big MXU matmul, biases folded in ----------
    gx_ref[...] = (
        jnp.dot(x_ref[...], wih_ref[...], preferred_element_type=jnp.float32)
        + b_ref[...])

    def sigmoid(x):
        # one EUP tanh per gate instead of exp + divide on the serial chain
        return 0.5 * jnp.tanh(0.5 * x) + 0.5

    def gate_math(gates, c_prev):
        # PyTorch gate order: i, f, g, o (slices land on 128-lane boundaries)
        i = sigmoid(gates[:, 0 * HH:1 * HH])
        f = sigmoid(gates[:, 1 * HH:2 * HH])
        g = jnp.tanh(gates[:, 2 * HH:3 * HH])
        o = sigmoid(gates[:, 3 * HH:4 * HH])
        c_new = f * c_prev + i * g
        h_new = o * jnp.tanh(c_new)
        return h_new, c_new

    # ---- 2) Fused, fully-unrolled bidirectional recurrence -------------------
    # One block-diagonal matmul per step computes both directions' recurrent
    # contributions; the RHS is read from VMEM inside the dot (no vreg hoist).
    def step(s, carry):
        hf, cf, hb, cb = carry
        tf = s * BP              # fwd walks t = 0 .. T-1  (sublane-aligned)
        tb = (T - 1 - s) * BP    # bwd walks t = T-1 .. 0  (sublane-aligned)

        lhs = jnp.concatenate([hf, hb], axis=1).astype(jnp.bfloat16)  # (BP, 2*HH)
        rec = jnp.dot(lhs, whh_ref[...], preferred_element_type=jnp.float32)

        gates_f = gx_ref[pl.ds(tf, BP), 0:4 * HH] + rec[:, 0:4 * HH]
        gates_b = gx_ref[pl.ds(tb, BP), 4 * HH:8 * HH] + rec[:, 4 * HH:8 * HH]

        hf, cf = gate_math(gates_f, cf)
        hb, cb = gate_math(gates_b, cb)

        hseq_ref[pl.ds(tf, BP), 0:HH] = hf
        hseq_ref[pl.ds(tb, BP), HH:2 * HH] = hb
        return hf, cf, hb, cb

    lax.fori_loop(0, T, step,
                  (hc0_ref[0], hc0_ref[2], hc0_ref[1], hc0_ref[3]),
                  unroll=True)

    # ---- 3) Final Linear: ONE matmul + one lane-dense (128-wide) store -------
    out_ref[...] = (
        jnp.dot(hseq_ref[...], wfcb_ref[0:2 * HH, :],
                preferred_element_type=jnp.float32)
        + wfcb_ref[2 * HH:2 * HH + 1, :])


def lstm_cls_pallas(embeds, params, h0, c0):
    """embeds: (B, T, D) batch_first, like the PyTorch module. Returns (B, T, C)."""
    # layout: time-major, batch padded to BP, flattened (T*BP, D); bf16 MXU operands.
    x_tm = jnp.transpose(embeds, (1, 0, 2))                       # (T, B, D)
    x_pad = jnp.zeros((T, BP, D), jnp.float32).at[:, :B, :].set(x_tm)
    x2d = x_pad.reshape(T * BP, D).astype(jnp.bfloat16)

    wih = jnp.concatenate([params["wih_f"], params["wih_b"]],
                          axis=1).astype(jnp.bfloat16)            # (D, 8*HH)
    b = jnp.concatenate([params["b_f"], params["b_b"]], axis=1)   # (1, 8*HH) f32

    # Block-diagonal recurrent weight: [W_hh_fwd 0 ; 0 W_hh_bwd].
    whh_cat = jnp.zeros((2 * HH, 8 * HH), jnp.float32)
    whh_cat = whh_cat.at[:HH, :4 * HH].set(params["whh_f"])
    whh_cat = whh_cat.at[HH:, 4 * HH:].set(params["whh_b"])
    whh_cat = whh_cat.astype(jnp.bfloat16)

    # Stack (and batch-pad) the initial states: rows = [h0_f, h0_b, c0_f, c0_b].
    hc0 = jnp.zeros((4, BP, HH), jnp.float32)
    hc0 = hc0.at[0:2, :B, :].set(h0)
    hc0 = hc0.at[2:4, :B, :].set(c0)

    # FC weight + bias packed, zero-padded to 128 lanes (lane-dense output).
    wfcb = jnp.zeros((2 * HH + 1, OUT_PAD), jnp.float32)
    wfcb = wfcb.at[:HH, :C].set(params["wfc_f"])
    wfcb = wfcb.at[HH:2 * HH, :C].set(params["wfc_b"])
    wfcb = wfcb.at[2 * HH, :C].set(params["bfc"][0])

    vmem = pltpu.MemorySpace.VMEM
    out2d = pl.pallas_call(
        lstm_fc_kernel,
        out_shape=jax.ShapeDtypeStruct((T * BP, OUT_PAD), jnp.float32),
        in_specs=[pl.BlockSpec(memory_space=vmem)] * 6,
        out_specs=pl.BlockSpec(memory_space=vmem),
        scratch_shapes=[pltpu.VMEM((T * BP, 8 * HH), jnp.float32),
                        pltpu.VMEM((T * BP, 2 * HH), jnp.float32)],
    )(x2d, wih, b, whh_cat, hc0, wfcb)

    out = out2d.reshape(T, BP, OUT_PAD)[:, :B, :C]                # (T, B, C)
    return jnp.transpose(out, (1, 0, 2))                          # (B, T, C)


# ------------------------------ pure-JAX reference ---------------------------
def lstm_cls_reference(embeds, params, h0, c0):
    def run_dir(wih, whh, b, h, c, reverse):
        hs = [None] * T
        order = range(T - 1, -1, -1) if reverse else range(T)
        for t in order:
            x_t = embeds[:, t, :]
            gates = x_t @ wih + h @ whh + b
            i = jax.nn.sigmoid(gates[:, 0 * HH:1 * HH])
            f = jax.nn.sigmoid(gates[:, 1 * HH:2 * HH])
            g = jnp.tanh(gates[:, 2 * HH:3 * HH])
            o = jax.nn.sigmoid(gates[:, 3 * HH:4 * HH])
            c = f * c + i * g
            h = o * jnp.tanh(c)
            hs[t] = h
        return jnp.stack(hs, axis=1)  # (B, T, HH)

    h_f = run_dir(params["wih_f"], params["whh_f"], params["b_f"], h0[0], c0[0], False)
    h_b = run_dir(params["wih_b"], params["whh_b"], params["b_b"], h0[1], c0[1], True)
    lstm_out = jnp.concatenate([h_f, h_b], axis=-1)               # (B, T, HIDDEN_DIM)
    wfc = jnp.concatenate([params["wfc_f"], params["wfc_b"]], axis=0)  # (HIDDEN_DIM, C)
    return lstm_out @ wfc + params["bfc"]                          # (B, T, C)


# --------------------------------- main --------------------------------------
if __name__ == "__main__":
    key = jax.random.PRNGKey(0)
    keys = jax.random.split(key, 16)

    # Deterministic parameter init (shapes follow nn.LSTM(768, HH, bidirectional)
    # and nn.Linear(HIDDEN_DIM, C)); PyTorch weights are stored (4HH, D) etc.,
    # we keep them pre-transposed for row-major matmuls.
    s = 0.05
    params = {
        "wih_f": jax.random.normal(keys[0], (D, 4 * HH), jnp.float32) * s,
        "whh_f": jax.random.normal(keys[1], (HH, 4 * HH), jnp.float32) * s,
        "b_f":   jax.random.normal(keys[2], (1, 4 * HH), jnp.float32) * s,  # b_ih + b_hh combined
        "wih_b": jax.random.normal(keys[3], (D, 4 * HH), jnp.float32) * s,
        "whh_b": jax.random.normal(keys[4], (HH, 4 * HH), jnp.float32) * s,
        "b_b":   jax.random.normal(keys[5], (1, 4 * HH), jnp.float32) * s,
        "wfc_f": jax.random.normal(keys[6], (HH, C), jnp.float32) * s,  # fc weight, fwd half
        "wfc_b": jax.random.normal(keys[7], (HH, C), jnp.float32) * s,  # fc weight, bwd half
        "bfc":   jax.random.normal(keys[8], (1, C), jnp.float32) * s,
    }

    # init_hidden(batch_size) -> randn(2, B, HH) twice (h0, c0)
    h0 = jax.random.normal(keys[9], (2, B, HH), jnp.float32)
    c0 = jax.random.normal(keys[10], (2, B, HH), jnp.float32)

    # Synthetic "BERT" inputs: token ids + attention mask.
    ids = jax.random.randint(keys[11], (B, T), 0, VOCAB)
    mask = jnp.ones((B, T), jnp.float32)

    # TODO(synk): Bio_ClinicalBERT encoder has no Pallas equivalent; replaced by a
    # deterministic embedding-table lookup masked by the attention mask (glue).
    embed_table = jax.random.normal(keys[12], (VOCAB, D), jnp.float32) * 0.1
    embeds = embed_table[ids] * mask[..., None]                   # (B, T, 768)

    out = lstm_cls_pallas(embeds, params, h0, c0)
    out = jax.block_until_ready(out)

    ref = lstm_cls_reference(embeds, params, h0, c0)
    # Kernel runs MXU matmuls with bf16 operands (f32 accumulation), reference
    # is pure f32 -> tolerance reflects bf16 operand rounding.
    np.testing.assert_allclose(np.asarray(out), np.asarray(ref), rtol=2e-2, atol=2e-2)

    print("KERNEL_OK")
</pallas_src>

<mosaic_0001>
module attributes {stable_mosaic.version = 11 : i64} {
  func.func @lstm_fc_kernel(%arg0: memref<64x768xbf16, #tpu.memory_space<vmem>>, %arg1: memref<768x1024xbf16, #tpu.memory_space<vmem>>, %arg2: memref<1x1024xf32, #tpu.memory_space<vmem>>, %arg3: memref<256x1024xbf16, #tpu.memory_space<vmem>>, %arg4: memref<4x8x128xf32, #tpu.memory_space<vmem>>, %arg5: memref<257x128xf32, #tpu.memory_space<vmem>>, %arg6: memref<64x128xf32, #tpu.memory_space<vmem>>, %arg7: memref<64x1024xf32, #tpu.memory_space<vmem>>, %arg8: memref<64x256xf32, #tpu.memory_space<vmem>>) attributes {dimension_semantics = [], scalar_prefetch = 0 : i64, scratch_operands = 2 : i64, tpu.core_type = #tpu.core_type<tc>} {
    %c0 = arith.constant 0 : index
    %c0_0 = arith.constant 0 : index
    %0 = vector.load %arg0[%c0, %c0_0] : memref<64x768xbf16, #tpu.memory_space<vmem>>, vector<64x768xbf16>
    %c0_1 = arith.constant 0 : index
    %c0_2 = arith.constant 0 : index
    %1 = vector.load %arg1[%c0_1, %c0_2] : memref<768x1024xbf16, #tpu.memory_space<vmem>>, vector<768x1024xbf16>
    %cst = arith.constant dense<0.000000e+00> : vector<64x1024xf32>
    %2 = tpu.matmul %0, %1, %cst {dimension_numbers = #tpu.dot_dimension_numbers<[1], [0], [0], [1], [0, 0, 1, 1], [], []>} : vector<64x768xbf16>, vector<768x1024xbf16>, vector<64x1024xf32> -> vector<64x1024xf32>
    %c0_3 = arith.constant 0 : index
    %c0_4 = arith.constant 0 : index
    %3 = vector.load %arg2[%c0_3, %c0_4] : memref<1x1024xf32, #tpu.memory_space<vmem>>, vector<1x1024xf32>
    %4 = vector.broadcast %3 : vector<1x1024xf32> to vector<64x1024xf32>
    %5 = arith.addf %2, %4 : vector<64x1024xf32>
    %c0_5 = arith.constant 0 : index
    %c0_6 = arith.constant 0 : index
    %6 = vector.load %arg7[%c0_5, %c0_6] : memref<64x1024xf32, #tpu.memory_space<vmem>>, vector<64x1024xf32>
    tpu.vector_store %arg7[%c0_5, %c0_6], %5 {strides = array<i32>} : memref<64x1024xf32, #tpu.memory_space<vmem>>, vector<64x1024xf32>,
    %c0_7 = arith.constant 0 : index
    %c0_8 = arith.constant 0 : index
    %c0_9 = arith.constant 0 : index
    %7 = vector.load %arg4[%c0_7, %c0_8, %c0_9] : memref<4x8x128xf32, #tpu.memory_space<vmem>>, vector<1x8x128xf32>
    %8 = vector.shape_cast %7 : vector<1x8x128xf32> to vector<8x128xf32>
    %c2 = arith.constant 2 : index
    %c0_10 = arith.constant 0 : index
    %c0_11 = arith.constant 0 : index
    %9 = vector.load %arg4[%c2, %c0_10, %c0_11] : memref<4x8x128xf32, #tpu.memory_space<vmem>>, vector<1x8x128xf32>
    %10 = vector.shape_cast %9 : vector<1x8x128xf32> to vector<8x128xf32>
    %c1 = arith.constant 1 : index
    %c0_12 = arith.constant 0 : index
    %c0_13 = arith.constant 0 : index
    %11 = vector.load %arg4[%c1, %c0_12, %c0_13] : memref<4x8x128xf32, #tpu.memory_space<vmem>>, vector<1x8x128xf32>
    %12 = vector.shape_cast %11 : vector<1x8x128xf32> to vector<8x128xf32>
    %c3 = arith.constant 3 : index
    %c0_14 = arith.constant 0 : index
    %c0_15 = arith.constant 0 : index
    %13 = vector.load %arg4[%c3, %c0_14, %c0_15] : memref<4x8x128xf32, #tpu.memory_space<vmem>>, vector<1x8x128xf32>
    %14 = vector.shape_cast %13 : vector<1x8x128xf32> to vector<8x128xf32>
    %c0_i32 = arith.constant 0 : i32
    %c8_i32 = arith.constant 8 : i32
    %15 = arith.muli %c0_i32, %c8_i32 : i32
    %c7_i32 = arith.constant 7 : i32
    %16 = arith.subi %c7_i32, %c0_i32 : i32
    %c8_i32_16 = arith.constant 8 : i32
    %17 = arith.muli %16, %c8_i32_16 : i32
    %18 = tpu.concatenate %8, %12 in 1 : vector<8x128xf32>, vector<8x128xf32> -> vector<8x256xf32>
    %19 = arith.truncf %18 : vector<8x256xf32> to vector<8x256xbf16>
    %c0_17 = arith.constant 0 : index
    %c0_18 = arith.constant 0 : index
    %20 = vector.load %arg3[%c0_17, %c0_18] : memref<256x1024xbf16, #tpu.memory_space<vmem>>, vector<256x1024xbf16>
    %cst_19 = arith.constant dense<0.000000e+00> : vector<8x1024xf32>
    %21 = tpu.matmul %19, %20, %cst_19 {dimension_numbers = #tpu.dot_dimension_numbers<[1], [0], [0], [1], [0, 0, 1, 1], [], []>} : vector<8x256xbf16>, vector<256x1024xbf16>, vector<8x1024xf32> -> vector<8x1024xf32>
    %22 = arith.index_cast %15 : i32 to index
    %c0_20 = arith.constant 0 : index
    %23 = vector.load %arg7[%22, %c0_20] : memref<64x1024xf32, #tpu.memory_space<vmem>>, vector<8x512xf32>
    %24 = vector.extract_strided_slice %21 {offsets = [0, 0], sizes = [8, 512], strides = [1, 1]} : vector<8x1024xf32> to vector<8x512xf32>
    %25 = arith.addf %23, %24 : vector<8x512xf32>
    %26 = arith.index_cast %17 : i32 to index
    %c512 = arith.constant 512 : index
    %27 = vector.load %arg7[%26, %c512] : memref<64x1024xf32, #tpu.memory_space<vmem>>, vector<8x512xf32>
    %28 = vector.extract_strided_slice %21 {offsets = [0, 512], sizes = [8, 512], strides = [1, 1]} : vector<8x1024xf32> to vector<8x512xf32>
    %29 = arith.addf %27, %28 : vector<8x512xf32>
    %30 = vector.extract_strided_slice %25 {offsets = [0, 0], sizes = [8, 128], strides = [1, 1]} : vector<8x512xf32> to vector<8x128xf32>
    %cst_21 = arith.constant 5.000000e-01 : f32
    %31 = vector.broadcast %cst_21 : f32 to vector<8x128xf32>
    %32 = arith.mulf %31, %30 : vector<8x128xf32>
    %33 = math.tanh %32 : vector<8x128xf32>
    %cst_22 = arith.constant 5.000000e-01 : f32
    %34 = vector.broadcast %cst_22 : f32 to vector<8x128xf32>
    %35 = arith.mulf %34, %33 : vector<8x128xf32>
    %cst_23 = arith.constant 5.000000e-01 : f32
    %36 = vector.broadcast %cst_23 : f32 to vector<8x128xf32>
    %37 = arith.addf %35, %36 : vector<8x128xf32>
    %38 = vector.extract_strided_slice %25 {offsets = [0, 128], sizes = [8, 128], strides = [1, 1]} : vector<8x512xf32> to vector<8x128xf32>
    %cst_24 = arith.constant 5.000000e-01 : f32
    %39 = vector.broadcast %cst_24 : f32 to vector<8x128xf32>
    %40 = arith.mulf %39, %38 : vector<8x128xf32>
    %41 = math.tanh %40 : vector<8x128xf32>
    %cst_25 = arith.constant 5.000000e-01 : f32
    %42 = vector.broadcast %cst_25 : f32 to vector<8x128xf32>
    %43 = arith.mulf %42, %41 : vector<8x128xf32>
    %cst_26 = arith.constant 5.000000e-01 : f32
    %44 = vector.broadcast %cst_26 : f32 to vector<8x128xf32>
    %45 = arith.addf %43, %44 : vector<8x128xf32>
    %46 = vector.extract_strided_slice %25 {offsets = [0, 256], sizes = [8, 128], strides = [1, 1]} : vector<8x512xf32> to vector<8x128xf32>
    %47 = math.tanh %46 : vector<8x128xf32>
    %48 = vector.extract_strided_slice %25 {offsets = [0, 384], sizes = [8, 128], strides = [1, 1]} : vector<8x512xf32> to vector<8x128xf32>
    %cst_27 = arith.constant 5.000000e-01 : f32
    %49 = vector.broadcast %cst_27 : f32 to vector<8x128xf32>
    %50 = arith.mulf %49, %48 : vector<8x128xf32>
    %51 = math.tanh %50 : vector<8x128xf32>
    %cst_28 = arith.constant 5.000000e-01 : f32
    %52 = vector.broadcast %cst_28 : f32 to vector<8x128xf32>
    %53 = arith.mulf %52, %51 : vector<8x128xf32>
    %cst_29 = arith.constant 5.000000e-01 : f32
    %54 = vector.broadcast %cst_29 : f32 to vector<8x128xf32>
    %55 = arith.addf %53, %54 : vector<8x128xf32>
    %56 = arith.mulf %45, %10 : vector<8x128xf32>
    %57 = arith.mulf %37, %47 : vector<8x128xf32>
    %58 = arith.addf %56, %57 : vector<8x128xf32>
    %59 = math.tanh %58 : vector<8x128xf32>
    %60 = arith.mulf %55, %59 : vector<8x128xf32>
    %61 = vector.extract_strided_slice %29 {offsets = [0, 0], sizes = [8, 128], strides = [1, 1]} : vector<8x512xf32> to vector<8x128xf32>
    %cst_30 = arith.constant 5.000000e-01 : f32
    %62 = vector.broadcast %cst_30 : f32 to vector<8x128xf32>
    %63 = arith.mulf %62, %61 : vector<8x128xf32>
    %64 = math.tanh %63 : vector<8x128xf32>
    %cst_31 = arith.constant 5.000000e-01 : f32
    %65 = vector.broadcast %cst_31 : f32 to vector<8x128xf32>
    %66 = arith.mulf %65, %64 : vector<8x128xf32>
    %cst_32 = arith.constant 5.000000e-01 : f32
    %67 = vector.broadcast %cst_32 : f32 to vector<8x128xf32>
    %68 = arith.addf %66, %67 : vector<8x128xf32>
    %69 = vector.extract_strided_slice %29 {offsets = [0, 128], sizes = [8, 128], strides = [1, 1]} : vector<8x512xf32> to vector<8x128xf32>
    %cst_33 = arith.constant 5.000000e-01 : f32
    %70 = vector.broadcast %cst_33 : f32 to vector<8x128xf32>
    %71 = arith.mulf %70, %69 : vector<8x128xf32>
    %72 = math.tanh %71 : vector<8x128xf32>
    %cst_34 = arith.constant 5.000000e-01 : f32
    %73 = vector.broadcast %cst_34 : f32 to vector<8x128xf32>
    %74 = arith.mulf %73, %72 : vector<8x128xf32>
    %cst_35 = arith.constant 5.000000e-01 : f32
    %75 = vector.broadcast %cst_35 : f32 to vector<8x128xf32>
    %76 = arith.addf %74, %75 : vector<8x128xf32>
    %77 = vector.extract_strided_slice %29 {offsets = [0, 256], sizes = [8, 128], strides = [1, 1]} : vector<8x512xf32> to vector<8x128xf32>
    %78 = math.tanh %77 : vector<8x128xf32>
    %79 = vector.extract_strided_slice %29 {offsets = [0, 384], sizes = [8, 128], strides = [1, 1]} : vector<8x512xf32> to vector<8x128xf32>
    %cst_36 = arith.constant 5.000000e-01 : f32
    %80 = vector.broadcast %cst_36 : f32 to vector<8x128xf32>
    %81 = arith.mulf %80, %79 : vector<8x128xf32>
    %82 = math.tanh %81 : vector<8x128xf32>
    %cst_37 = arith.constant 5.000000e-01 : f32
    %83 = vector.broadcast %cst_37 : f32 to vector<8x128xf32>
    %84 = arith.mulf %83, %82 : vector<8x128xf32>
    %cst_38 = arith.constant 5.000000e-01 : f32
    %85 = vector.broadcast %cst_38 : f32 to vector<8x128xf32>
    %86 = arith.addf %84, %85 : vector<8x128xf32>
    %87 = arith.mulf %76, %14 : vector<8x128xf32>
    %88 = arith.mulf %68, %78 : vector<8x128xf32>
    %89 = arith.addf %87, %88 : vector<8x128xf32>
    %90 = math.tanh %89 : vector<8x128xf32>
    %91 = arith.mulf %86, %90 : vector<8x128xf32>
    %92 = arith.index_cast %15 : i32 to index
    %c0_39 = arith.constant 0 : index
    %93 = vector.load %arg8[%92, %c0_39] : memref<64x256xf32, #tpu.memory_space<vmem>>, vector<8x128xf32>
    tpu.vector_store %arg8[%92, %c0_39], %60 {strides = array<i32>} : memref<64x256xf32, #tpu.memory_space<vmem>>, vector<8x128xf32>,
    %94 = arith.index_cast %17 : i32 to index
    %c128 = arith.constant 128 : index
    %95 = vector.load %arg8[%94, %c128] : memref<64x256xf32, #tpu.memory_space<vmem>>, vector<8x128xf32>
    tpu.vector_store %arg8[%94, %c128], %91 {strides = array<i32>} : memref<64x256xf32, #tpu.memory_space<vmem>>, vector<8x128xf32>,
    %c1_i32 = arith.constant 1 : i32
    %c8_i32_40 = arith.constant 8 : i32
    %96 = arith.muli %c1_i32, %c8_i32_40 : i32
    %c7_i32_41 = arith.constant 7 : i32
    %97 = arith.subi %c7_i32_41, %c1_i32 : i32
    %c8_i32_42 = arith.constant 8 : i32
    %98 = arith.muli %97, %c8_i32_42 : i32
    %99 = tpu.concatenate %60, %91 in 1 : vector<8x128xf32>, vector<8x128xf32> -> vector<8x256xf32>
    %100 = arith.truncf %99 : vector<8x256xf32> to vector<8x256xbf16>
    %c0_43 = arith.constant 0 : index
    %c0_44 = arith.constant 0 : index
    %101 = vector.load %arg3[%c0_43, %c0_44] : memref<256x1024xbf16, #tpu.memory_space<vmem>>, vector<256x1024xbf16>
    %cst_45 = arith.constant dense<0.000000e+00> : vector<8x1024xf32>
    %102 = tpu.matmul %100, %101, %cst_45 {dimension_numbers = #tpu.dot_dimension_numbers<[1], [0], [0], [1], [0, 0, 1, 1], [], []>} : vector<8x256xbf16>, vector<256x1024xbf16>, vector<8x1024xf32> -> vector<8x1024xf32>
    %103 = arith.index_cast %96 : i32 to index
    %c0_46 = arith.constant 0 : index
    %104 = vector.load %arg7[%103, %c0_46] : memref<64x1024xf32, #tpu.memory_space<vmem>>, vector<8x512xf32>
    %105 = vector.extract_strided_slice %102 {offsets = [0, 0], sizes = [8, 512], strides = [1, 1]} : vector<8x1024xf32> to vector<8x512xf32>
    %106 = arith.addf %104, %105 : vector<8x512xf32>
    %107 = arith.index_cast %98 : i32 to index
    %c512_47 = arith.constant 512 : index
    %108 = vector.load %arg7[%107, %c512_47] : memref<64x1024xf32, #tpu.memory_space<vmem>>, vector<8x512xf32>
    %109 = vector.extract_strided_slice %102 {offsets = [0, 512], sizes = [8, 512], strides = [1, 1]} : vector<8x1024xf32> to vector<8x512xf32>
    %110 = arith.addf %108, %109 : vector<8x512xf32>
    %111 = vector.extract_strided_slice %106 {offsets = [0, 0], sizes = [8, 128], strides = [1, 1]} : vector<8x512xf32> to vector<8x128xf32>
    %cst_48 = arith.constant 5.000000e-01 : f32
    %112 = vector.broadcast %cst_48 : f32 to vector<8x128xf32>
    %113 = arith.mulf %112, %111 : vector<8x128xf32>
    %114 = math.tanh %113 : vector<8x128xf32>
    %cst_49 = arith.constant 5.000000e-01 : f32
    %115 = vector.broadcast %cst_49 : f32 to vector<8x128xf32>
    %116 = arith.mulf %115, %114 : vector<8x128xf32>
    %cst_50 = arith.constant 5.000000e-01 : f32
    %117 = vector.broadcast %cst_50 : f32 to vector<8x128xf32>
    %118 = arith.addf %116, %117 : vector<8x128xf32>
    %119 = vector.extract_strided_slice %106 {offsets = [0, 128], sizes = [8, 128], strides = [1, 1]} : vector<8x512xf32> to vector<8x128xf32>
    %cst_51 = arith.constant 5.000000e-01 : f32
    %120 = vector.broadcast %cst_51 : f32 to vector<8x128xf32>
    %121 = arith.mulf %120, %119 : vector<8x128xf32>
    %122 = math.tanh %121 : vector<8x128xf32>
    %cst_52 = arith.constant 5.000000e-01 : f32
    %123 = vector.broadcast %cst_52 : f32 to vector<8x128xf32>
    %124 = arith.mulf %123, %122 : vector<8x128xf32>
    %cst_53 = arith.constant 5.000000e-01 : f32
    %125 = vector.broadcast %cst_53 : f32 to vector<8x128xf32>
    %126 = arith.addf %124, %125 : vector<8x128xf32>
    %127 = vector.extract_strided_slice %106 {offsets = [0, 256], sizes = [8, 128], strides = [1, 1]} : vector<8x512xf32> to vector<8x128xf32>
    %128 = math.tanh %127 : vector<8x128xf32>
    %129 = vector.extract_strided_slice %106 {offsets = [0, 384], sizes = [8, 128], strides = [1, 1]} : vector<8x512xf32> to vector<8x128xf32>
    %cst_54 = arith.constant 5.000000e-01 : f32
    %130 = vector.broadcast %cst_54 : f32 to vector<8x128xf32>
    %131 = arith.mulf %130, %129 : vector<8x128xf32>
    %132 = math.tanh %131 : vector<8x128xf32>
    %cst_55 = arith.constant 5.000000e-01 : f32
    %133 = vector.broadcast %cst_55 : f32 to vector<8x128xf32>
    %134 = arith.mulf %133, %132 : vector<8x128xf32>
    %cst_56 = arith.constant 5.000000e-01 : f32
    %135 = vector.broadcast %cst_56 : f32 to vector<8x128xf32>
    %136 = arith.addf %134, %135 : vector<8x128xf32>
    %137 = arith.mulf %126, %58 : vector<8x128xf32>
    %138 = arith.mulf %118, %128 : vector<8x128xf32>
    %139 = arith.addf %137, %138 : vector<8x128xf32>
    %140 = math.tanh %139 : vector<8x128xf32>
    %141 = arith.mulf %136, %140 : vector<8x128xf32>
    %142 = vector.extract_strided_slice %110 {offsets = [0, 0], sizes = [8, 128], strides = [1, 1]} : vector<8x512xf32> to vector<8x128xf32>
    %cst_57 = arith.constant 5.000000e-01 : f32
    %143 = vector.broadcast %cst_57 : f32 to vector<8x128xf32>
    %144 = arith.mulf %143, %142 : vector<8x128xf32>
    %145 = math.tanh %144 : vector<8x128xf32>
    %cst_58 = arith.constant 5.000000e-01 : f32
    %146 = vector.broadcast %cst_58 : f32 to vector<8x128xf32>
    %147 = arith.mulf %146, %145 : vector<8x128xf32>
    %cst_59 = arith.constant 5.000000e-01 : f32
    %148 = vector.broadcast %cst_59 : f32 to vector<8x128xf32>
    %149 = arith.addf %147, %148 : vector<8x128xf32>
    %150 = vector.extract_strided_slice %110 {offsets = [0, 128], sizes = [8, 128], strides = [1, 1]} : vector<8x512xf32> to vector<8x128xf32>
    %cst_60 = arith.constant 5.000000e-01 : f32
    %151 = vector.broadcast %cst_60 : f32 to vector<8x128xf32>
    %152 = arith.mulf %151, %150 : vector<8x128xf32>
    %153 = math.tanh %152 : vector<8x128xf32>
    %cst_61 = arith.constant 5.000000e-01 : f32
    %154 = vector.broadcast %cst_61 : f32 to vector<8x128xf32>
    %155 = arith.mulf %154, %153 : vector<8x128xf32>
    %cst_62 = arith.constant 5.000000e-01 : f32
    %156 = vector.broadcast %cst_62 : f32 to vector<8x128xf32>
    %157 = arith.addf %155, %156 : vector<8x128xf32>
    %158 = vector.extract_strided_slice %110 {offsets = [0, 256], sizes = [8, 128], strides = [1, 1]} : vector<8x512xf32> to vector<8x128xf32>
    %159 = math.tanh %158 : vector<8x128xf32>
    %160 = vector.extract_strided_slice %110 {offsets = [0, 384], sizes = [8, 128], strides = [1, 1]} : vector<8x512xf32> to vector<8x128xf32>
    %cst_63 = arith.constant 5.000000e-01 : f32
    %161 = vector.broadcast %cst_63 : f32 to vector<8x128xf32>
    %162 = arith.mulf %161, %160 : vector<8x128xf32>
    %163 = math.tanh %162 : vector<8x128xf32>
    %cst_64 = arith.constant 5.000000e-01 : f32
    %164 = vector.broadcast %cst_64 : f32 to vector<8x128xf32>
    %165 = arith.mulf %164, %163 : vector<8x128xf32>
    %cst_65 = arith.constant 5.000000e-01 : f32
    %166 = vector.broadcast %cst_65 : f32 to vector<8x128xf32>
    %167 = arith.addf %165, %166 : vector<8x128xf32>
    %168 = arith.mulf %157, %89 : vector<8x128xf32>
    %169 = arith.mulf %149, %159 : vector<8x128xf32>
    %170 = arith.addf %168, %169 : vector<8x128xf32>
    %171 = math.tanh %170 : vector<8x128xf32>
    %172 = arith.mulf %167, %171 : vector<8x128xf32>
    %173 = arith.index_cast %96 : i32 to index
    %c0_66 = arith.constant 0 : index
    %174 = vector.load %arg8[%173, %c0_66] : memref<64x256xf32, #tpu.memory_space<vmem>>, vector<8x128xf32>
    tpu.vector_store %arg8[%173, %c0_66], %141 {strides = array<i32>} : memref<64x256xf32, #tpu.memory_space<vmem>>, vector<8x128xf32>,
    %175 = arith.index_cast %98 : i32 to index
    %c128_67 = arith.constant 128 : index
    %176 = vector.load %arg8[%175, %c128_67] : memref<64x256xf32, #tpu.memory_space<vmem>>, vector<8x128xf32>
    tpu.vector_store %arg8[%175, %c128_67], %172 {strides = array<i32>} : memref<64x256xf32, #tpu.memory_space<vmem>>, vector<8x128xf32>,
    %c2_i32 = arith.constant 2 : i32
    %c8_i32_68 = arith.constant 8 : i32
    %177 = arith.muli %c2_i32, %c8_i32_68 : i32
    %c7_i32_69 = arith.constant 7 : i32
    %178 = arith.subi %c7_i32_69, %c2_i32 : i32
    %c8_i32_70 = arith.constant 8 : i32
    %179 = arith.muli %178, %c8_i32_70 : i32
    %180 = tpu.concatenate %141, %172 in 1 : vector<8x128xf32>, vector<8x128xf32> -> vector<8x256xf32>
    %181 = arith.truncf %180 : vector<8x256xf32> to vector<8x256xbf16>
    %c0_71 = arith.constant 0 : index
    %c0_72 = arith.constant 0 : index
    %182 = vector.load %arg3[%c0_71, %c0_72] : memref<256x1024xbf16, #tpu.memory_space<vmem>>, vector<256x1024xbf16>
    %cst_73 = arith.constant dense<0.000000e+00> : vector<8x1024xf32>
    %183 = tpu.matmul %181, %182, %cst_73 {dimension_numbers = #tpu.dot_dimension_numbers<[1], [0], [0], [1], [0, 0, 1, 1], [], []>} : vector<8x256xbf16>, vector<256x1024xbf16>, vector<8x1024xf32> -> vector<8x1024xf32>
    %184 = arith.index_cast %177 : i32 to index
    %c0_74 = arith.constant 0 : index
    %185 = vector.load %arg7[%184, %c0_74] : memref<64x1024xf32, #tpu.memory_space<vmem>>, vector<8x512xf32>
    %186 = vector.extract_strided_slice %183 {offsets = [0, 0], sizes = [8, 512], strides = [1, 1]} : vector<8x1024xf32> to vector<8x512xf32>
    %187 = arith.addf %185, %186 : vector<8x512xf32>
    %188 = arith.index_cast %179 : i32 to index
    %c512_75 = arith.constant 512 : index
    %189 = vector.load %arg7[%188, %c512_75] : memref<64x1024xf32, #tpu.memory_space<vmem>>, vector<8x512xf32>
    %190 = vector.extract_strided_slice %183 {offsets = [0, 512], sizes = [8, 512], strides = [1, 1]} : vector<8x1024xf32> to vector<8x512xf32>
    %191 = arith.addf %189, %190 : vector<8x512xf32>
    %192 = vector.extract_strided_slice %187 {offsets = [0, 0], sizes = [8, 128], strides = [1, 1]} : vector<8x512xf32> to vector<8x128xf32>
    %cst_76 = arith.constant 5.000000e-01 : f32
    %193 = vector.broadcast %cst_76 : f32 to vector<8x128xf32>
    %194 = arith.mulf %193, %192 : vector<8x128xf32>
    %195 = math.tanh %194 : vector<8x128xf32>
    %cst_77 = arith.constant 5.000000e-01 : f32
    %196 = vector.broadcast %cst_77 : f32 to vector<8x128xf32>
    %197 = arith.mulf %196, %195 : vector<8x128xf32>
    %cst_78 = arith.constant 5.000000e-01 : f32
    %198 = vector.broadcast %cst_78 : f32 to vector<8x128xf32>
    %199 = arith.addf %197, %198 : vector<8x128xf32>
    %200 = vector.extract_strided_slice %187 {offsets = [0, 128], sizes = [8, 128], strides = [1, 1]} : vector<8x512xf32> to vector<8x128xf32>
    %cst_79 = arith.constant 5.000000e-01 : f32
    %201 = vector.broadcast %cst_79 : f32 to vector<8x128xf32>
    %202 = arith.mulf %201, %200 : vector<8x128xf32>
    %203 = math.tanh %202 : vector<8x128xf32>
    %cst_80 = arith.constant 5.000000e-01 : f32
    %204 = vector.broadcast %cst_80 : f32 to vector<8x128xf32>
    %205 = arith.mulf %204, %203 : vector<8x128xf32>
    %cst_81 = arith.constant 5.000000e-01 : f32
    %206 = vector.broadcast %cst_81 : f32 to vector<8x128xf32>
    %207 = arith.addf %205, %206 : vector<8x128xf32>
    %208 = vector.extract_strided_slice %187 {offsets = [0, 256], sizes = [8, 128], strides = [1, 1]} : vector<8x512xf32> to vector<8x128xf32>
    %209 = math.tanh %208 : vector<8x128xf32>
    %210 = vector.extract_strided_slice %187 {offsets = [0, 384], sizes = [8, 128], strides = [1, 1]} : vector<8x512xf32> to vector<8x128xf32>
    %cst_82 = arith.constant 5.000000e-01 : f32
    %211 = vector.broadcast %cst_82 : f32 to vector<8x128xf32>
    %212 = arith.mulf %211, %210 : vector<8x128xf32>
    %213 = math.tanh %212 : vector<8x128xf32>
    %cst_83 = arith.constant 5.000000e-01 : f32
    %214 = vector.broadcast %cst_83 : f32 to vector<8x128xf32>
    %215 = arith.mulf %214, %213 : vector<8x128xf32>
    %cst_84 = arith.constant 5.000000e-01 : f32
    %216 = vector.broadcast %cst_84 : f32 to vector<8x128xf32>
    %217 = arith.addf %215, %216 : vector<8x128xf32>
    %218 = arith.mulf %207, %139 : vector<8x128xf32>
    %219 = arith.mulf %199, %209 : vector<8x128xf32>
    %220 = arith.addf %218, %219 : vector<8x128xf32>
    %221 = math.tanh %220 : vector<8x128xf32>
    %222 = arith.mulf %217, %221 : vector<8x128xf32>
    %223 = vector.extract_strided_slice %191 {offsets = [0, 0], sizes = [8, 128], strides = [1, 1]} : vector<8x512xf32> to vector<8x128xf32>
    %cst_85 = arith.constant 5.000000e-01 : f32
    %224 = vector.broadcast %cst_85 : f32 to vector<8x128xf32>
    %225 = arith.mulf %224, %223 : vector<8x128xf32>
    %226 = math.tanh %225 : vector<8x128xf32>
    %cst_86 = arith.constant 5.000000e-01 : f32
    %227 = vector.broadcast %cst_86 : f32 to vector<8x128xf32>
    %228 = arith.mulf %227, %226 : vector<8x128xf32>
    %cst_87 = arith.constant 5.000000e-01 : f32
    %229 = vector.broadcast %cst_87 : f32 to vector<8x128xf32>
    %230 = arith.addf %228, %229 : vector<8x128xf32>
    %231 = vector.extract_strided_slice %191 {offsets = [0, 128], sizes = [8, 128], strides = [1, 1]} : vector<8x512xf32> to vector<8x128xf32>
    %cst_88 = arith.constant 5.000000e-01 : f32
    %232 = vector.broadcast %cst_88 : f32 to vector<8x128xf32>
    %233 = arith.mulf %232, %231 : vector<8x128xf32>
    %234 = math.tanh %233 : vector<8x128xf32>
    %cst_89 = arith.constant 5.000000e-01 : f32
    %235 = vector.broadcast %cst_89 : f32 to vector<8x128xf32>
    %236 = arith.mulf %235, %234 : vector<8x128xf32>
    %cst_90 = arith.constant 5.000000e-01 : f32
    %237 = vector.broadcast %cst_90 : f32 to vector<8x128xf32>
    %238 = arith.addf %236, %237 : vector<8x128xf32>
    %239 = vector.extract_strided_slice %191 {offsets = [0, 256], sizes = [8, 128], strides = [1, 1]} : vector<8x512xf32> to vector<8x128xf32>
    %240 = math.tanh %239 : vector<8x128xf32>
    %241 = vector.extract_strided_slice %191 {offsets = [0, 384], sizes = [8, 128], strides = [1, 1]} : vector<8x512xf32> to vector<8x128xf32>
    %cst_91 = arith.constant 5.000000e-01 : f32
    %242 = vector.broadcast %cst_91 : f32 to vector<8x128xf32>
    %243 = arith.mulf %242, %241 : vector<8x128xf32>
    %244 = math.tanh %243 : vector<8x128xf32>
    %cst_92 = arith.constant 5.000000e-01 : f32
    %245 = vector.broadcast %cst_92 : f32 to vector<8x128xf32>
    %246 = arith.mulf %245, %244 : vector<8x128xf32>
    %cst_93 = arith.constant 5.000000e-01 : f32
    %247 = vector.broadcast %cst_93 : f32 to vector<8x128xf32>
    %248 = arith.addf %246, %247 : vector<8x128xf32>
    %249 = arith.mulf %238, %170 : vector<8x128xf32>
    %250 = arith.mulf %230, %240 : vector<8x128xf32>
    %251 = arith.addf %249, %250 : vector<8x128xf32>
    %252 = math.tanh %251 : vector<8x128xf32>
    %253 = arith.mulf %248, %252 : vector<8x128xf32>
    %254 = arith.index_cast %177 : i32 to index
    %c0_94 = arith.constant 0 : index
    %255 = vector.load %arg8[%254, %c0_94] : memref<64x256xf32, #tpu.memory_space<vmem>>, vector<8x128xf32>
    tpu.vector_store %arg8[%254, %c0_94], %222 {strides = array<i32>} : memref<64x256xf32, #tpu.memory_space<vmem>>, vector<8x128xf32>,
    %256 = arith.index_cast %179 : i32 to index
    %c128_95 = arith.constant 128 : index
    %257 = vector.load %arg8[%256, %c128_95] : memref<64x256xf32, #tpu.memory_space<vmem>>, vector<8x128xf32>
    tpu.vector_store %arg8[%256, %c128_95], %253 {strides = array<i32>} : memref<64x256xf32, #tpu.memory_space<vmem>>, vector<8x128xf32>,
    %c3_i32 = arith.constant 3 : i32
    %c8_i32_96 = arith.constant 8 : i32
    %258 = arith.muli %c3_i32, %c8_i32_96 : i32
    %c7_i32_97 = arith.constant 7 : i32
    %259 = arith.subi %c7_i32_97, %c3_i32 : i32
    %c8_i32_98 = arith.constant 8 : i32
    %260 = arith.muli %259, %c8_i32_98 : i32
    %261 = tpu.concatenate %222, %253 in 1 : vector<8x128xf32>, vector<8x128xf32> -> vector<8x256xf32>
    %262 = arith.truncf %261 : vector<8x256xf32> to vector<8x256xbf16>
    %c0_99 = arith.constant 0 : index
    %c0_100 = arith.constant 0 : index
    %263 = vector.load %arg3[%c0_99, %c0_100] : memref<256x1024xbf16, #tpu.memory_space<vmem>>, vector<256x1024xbf16>
    %cst_101 = arith.constant dense<0.000000e+00> : vector<8x1024xf32>
    %264 = tpu.matmul %262, %263, %cst_101 {dimension_numbers = #tpu.dot_dimension_numbers<[1], [0], [0], [1], [0, 0, 1, 1], [], []>} : vector<8x256xbf16>, vector<256x1024xbf16>, vector<8x1024xf32> -> vector<8x1024xf32>
    %265 = arith.index_cast %258 : i32 to index
    %c0_102 = arith.constant 0 : index
    %266 = vector.load %arg7[%265, %c0_102] : memref<64x1024xf32, #tpu.memory_space<vmem>>, vector<8x512xf32>
    %267 = vector.extract_strided_slice %264 {offsets = [0, 0], sizes = [8, 512], strides = [1, 1]} : vector<8x1024xf32> to vector<8x512xf32>
    %268 = arith.addf %266, %267 : vector<8x512xf32>
    %269 = arith.index_cast %260 : i32 to index
    %c512_103 = arith.constant 512 : index
    %270 = vector.load %arg7[%269, %c512_103] : memref<64x1024xf32, #tpu.memory_space<vmem>>, vector<8x512xf32>
    %271 = vector.extract_strided_slice %264 {offsets = [0, 512], sizes = [8, 512], strides = [1, 1]} : vector<8x1024xf32> to vector<8x512xf32>
    %272 = arith.addf %270, %271 : vector<8x512xf32>
    %273 = vector.extract_strided_slice %268 {offsets = [0, 0], sizes = [8, 128], strides = [1, 1]} : vector<8x512xf32> to vector<8x128xf32>
    %cst_104 = arith.constant 5.000000e-01 : f32
    %274 = vector.broadcast %cst_104 : f32 to vector<8x128xf32>
    %275 = arith.mulf %274, %273 : vector<8x128xf32>
    %276 = math.tanh %275 : vector<8x128xf32>
    %cst_105 = arith.constant 5.000000e-01 : f32
    %277 = vector.broadcast %cst_105 : f32 to vector<8x128xf32>
    %278 = arith.mulf %277, %276 : vector<8x128xf32>
    %cst_106 = arith.constant 5.000000e-01 : f32
    %279 = vector.broadcast %cst_106 : f32 to vector<8x128xf32>
    %280 = arith.addf %278, %279 : vector<8x128xf32>
    %281 = vector.extract_strided_slice %268 {offsets = [0, 128], sizes = [8, 128], strides = [1, 1]} : vector<8x512xf32> to vector<8x128xf32>
    %cst_107 = arith.constant 5.000000e-01 : f32
    %282 = vector.broadcast %cst_107 : f32 to vector<8x128xf32>
    %283 = arith.mulf %282, %281 : vector<8x128xf32>
    %284 = math.tanh %283 : vector<8x128xf32>
    %cst_108 = arith.constant 5.000000e-01 : f32
    %285 = vector.broadcast %cst_108 : f32 to vector<8x128xf32>
    %286 = arith.mulf %285, %284 : vector<8x128xf32>
    %cst_109 = arith.constant 5.000000e-01 : f32
    %287 = vector.broadcast %cst_109 : f32 to vector<8x128xf32>
    %288 = arith.addf %286, %287 : vector<8x128xf32>
    %289 = vector.extract_strided_slice %268 {offsets = [0, 256], sizes = [8, 128], strides = [1, 1]} : vector<8x512xf32> to vector<8x128xf32>
    %290 = math.tanh %289 : vector<8x128xf32>
    %291 = vector.extract_strided_slice %268 {offsets = [0, 384], sizes = [8, 128], strides = [1, 1]} : vector<8x512xf32> to vector<8x128xf32>
    %cst_110 = arith.constant 5.000000e-01 : f32
    %292 = vector.broadcast %cst_110 : f32 to vector<8x128xf32>
    %293 = arith.mulf %292, %291 : vector<8x128xf32>
    %294 = math.tanh %293 : vector<8x128xf32>
    %cst_111 = arith.constant 5.000000e-01 : f32
    %295 = vector.broadcast %cst_111 : f32 to vector<8x128xf32>
    %296 = arith.mulf %295, %294 : vector<8x128xf32>
    %cst_112 = arith.constant 5.000000e-01 : f32
    %297 = vector.broadcast %cst_112 : f32 to vector<8x128xf32>
    %298 = arith.addf %296, %297 : vector<8x128xf32>
    %299 = arith.mulf %288, %220 : vector<8x128xf32>
    %300 = arith.mulf %280, %290 : vector<8x128xf32>
    %301 = arith.addf %299, %300 : vector<8x128xf32>
    %302 = math.tanh %301 : vector<8x128xf32>
    %303 = arith.mulf %298, %302 : vector<8x128xf32>
    %304 = vector.extract_strided_slice %272 {offsets = [0, 0], sizes = [8, 128], strides = [1, 1]} : vector<8x512xf32> to vector<8x128xf32>
    %cst_113 = arith.constant 5.000000e-01 : f32
    %305 = vector.broadcast %cst_113 : f32 to vector<8x128xf32>
    %306 = arith.mulf %305, %304 : vector<8x128xf32>
    %307 = math.tanh %306 : vector<8x128xf32>
    %cst_114 = arith.constant 5.000000e-01 : f32
    %308 = vector.broadcast %cst_114 : f32 to vector<8x128xf32>
    %309 = arith.mulf %308, %307 : vector<8x128xf32>
    %cst_115 = arith.constant 5.000000e-01 : f32
    %310 = vector.broadcast %cst_115 : f32 to vector<8x128xf32>
    %311 = arith.addf %309, %310 : vector<8x128xf32>
    %312 = vector.extract_strided_slice %272 {offsets = [0, 128], sizes = [8, 128], strides = [1, 1]} : vector<8x512xf32> to vector<8x128xf32>
    %cst_116 = arith.constant 5.000000e-01 : f32
    %313 = vector.broadcast %cst_116 : f32 to vector<8x128xf32>
    %314 = arith.mulf %313, %312 : vector<8x128xf32>
    %315 = math.tanh %314 : vector<8x128xf32>
    %cst_117 = arith.constant 5.000000e-01 : f32
    %316 = vector.broadcast %cst_117 : f32 to vector<8x128xf32>
    %317 = arith.mulf %316, %315 : vector<8x128xf32>
    %cst_118 = arith.constant 5.000000e-01 : f32
    %318 = vector.broadcast %cst_118 : f32 to vector<8x128xf32>
    %319 = arith.addf %317, %318 : vector<8x128xf32>
    %320 = vector.extract_strided_slice %272 {offsets = [0, 256], sizes = [8, 128], strides = [1, 1]} : vector<8x512xf32> to vector<8x128xf32>
    %321 = math.tanh %320 : vector<8x128xf32>
    %322 = vector.extract_strided_slice %272 {offsets = [0, 384], sizes = [8, 128], strides = [1, 1]} : vector<8x512xf32> to vector<8x128xf32>
    %cst_119 = arith.constant 5.000000e-01 : f32
    %323 = vector.broadcast %cst_119 : f32 to vector<8x128xf32>
    %324 = arith.mulf %323, %322 : vector<8x128xf32>
    %325 = math.tanh %324 : vector<8x128xf32>
    %cst_120 = arith.constant 5.000000e-01 : f32
    %326 = vector.broadcast %cst_120 : f32 to vector<8x128xf32>
    %327 = arith.mulf %326, %325 : vector<8x128xf32>
    %cst_121 = arith.constant 5.000000e-01 : f32
    %328 = vector.broadcast %cst_121 : f32 to vector<8x128xf32>
    %329 = arith.addf %327, %328 : vector<8x128xf32>
    %330 = arith.mulf %319, %251 : vector<8x128xf32>
    %331 = arith.mulf %311, %321 : vector<8x128xf32>
    %332 = arith.addf %330, %331 : vector<8x128xf32>
    %333 = math.tanh %332 : vector<8x128xf32>
    %334 = arith.mulf %329, %333 : vector<8x128xf32>
    %335 = arith.index_cast %258 : i32 to index
    %c0_122 = arith.constant 0 : index
    %336 = vector.load %arg8[%335, %c0_122] : memref<64x256xf32, #tpu.memory_space<vmem>>, vector<8x128xf32>
    tpu.vector_store %arg8[%335, %c0_122], %303 {strides = array<i32>} : memref<64x256xf32, #tpu.memory_space<vmem>>, vector<8x128xf32>,
    %337 = arith.index_cast %260 : i32 to index
    %c128_123 = arith.constant 128 : index
    %338 = vector.load %arg8[%337, %c128_123] : memref<64x256xf32, #tpu.memory_space<vmem>>, vector<8x128xf32>
    tpu.vector_store %arg8[%337, %c128_123], %334 {strides = array<i32>} : memref<64x256xf32, #tpu.memory_space<vmem>>, vector<8x128xf32>,
    %c4_i32 = arith.constant 4 : i32
    %c8_i32_124 = arith.constant 8 : i32
    %339 = arith.muli %c4_i32, %c8_i32_124 : i32
    %c7_i32_125 = arith.constant 7 : i32
    %340 = arith.subi %c7_i32_125, %c4_i32 : i32
    %c8_i32_126 = arith.constant 8 : i32
    %341 = arith.muli %340, %c8_i32_126 : i32
    %342 = tpu.concatenate %303, %334 in 1 : vector<8x128xf32>, vector<8x128xf32> -> vector<8x256xf32>
    %343 = arith.truncf %342 : vector<8x256xf32> to vector<8x256xbf16>
    %c0_127 = arith.constant 0 : index
    %c0_128 = arith.constant 0 : index
    %344 = vector.load %arg3[%c0_127, %c0_128] : memref<256x1024xbf16, #tpu.memory_space<vmem>>, vector<256x1024xbf16>
    %cst_129 = arith.constant dense<0.000000e+00> : vector<8x1024xf32>
    %345 = tpu.matmul %343, %344, %cst_129 {dimension_numbers = #tpu.dot_dimension_numbers<[1], [0], [0], [1], [0, 0, 1, 1], [], []>} : vector<8x256xbf16>, vector<256x1024xbf16>, vector<8x1024xf32> -> vector<8x1024xf32>
    %346 = arith.index_cast %339 : i32 to index
    %c0_130 = arith.constant 0 : index
    %347 = vector.load %arg7[%346, %c0_130] : memref<64x1024xf32, #tpu.memory_space<vmem>>, vector<8x512xf32>
    %348 = vector.extract_strided_slice %345 {offsets = [0, 0], sizes = [8, 512], strides = [1, 1]} : vector<8x1024xf32> to vector<8x512xf32>
    %349 = arith.addf %347, %348 : vector<8x512xf32>
    %350 = arith.index_cast %341 : i32 to index
    %c512_131 = arith.constant 512 : index
    %351 = vector.load %arg7[%350, %c512_131] : memref<64x1024xf32, #tpu.memory_space<vmem>>, vector<8x512xf32>
    %352 = vector.extract_strided_slice %345 {offsets = [0, 512], sizes = [8, 512], strides = [1, 1]} : vector<8x1024xf32> to vector<8x512xf32>
    %353 = arith.addf %351, %352 : vector<8x512xf32>
    %354 = vector.extract_strided_slice %349 {offsets = [0, 0], sizes = [8, 128], strides = [1, 1]} : vector<8x512xf32> to vector<8x128xf32>
    %cst_132 = arith.constant 5.000000e-01 : f32
    %355 = vector.broadcast %cst_132 : f32 to vector<8x128xf32>
    %356 = arith.mulf %355, %354 : vector<8x128xf32>
    %357 = math.tanh %356 : vector<8x128xf32>
    %cst_133 = arith.constant 5.000000e-01 : f32
    %358 = vector.broadcast %cst_133 : f32 to vector<8x128xf32>
    %359 = arith.mulf %358, %357 : vector<8x128xf32>
    %cst_134 = arith.constant 5.000000e-01 : f32
    %360 = vector.broadcast %cst_134 : f32 to vector<8x128xf32>
    %361 = arith.addf %359, %360 : vector<8x128xf32>
    %362 = vector.extract_strided_slice %349 {offsets = [0, 128], sizes = [8, 128], strides = [1, 1]} : vector<8x512xf32> to vector<8x128xf32>
    %cst_135 = arith.constant 5.000000e-01 : f32
    %363 = vector.broadcast %cst_135 : f32 to vector<8x128xf32>
    %364 = arith.mulf %363, %362 : vector<8x128xf32>
    %365 = math.tanh %364 : vector<8x128xf32>
    %cst_136 = arith.constant 5.000000e-01 : f32
    %366 = vector.broadcast %cst_136 : f32 to vector<8x128xf32>
    %367 = arith.mulf %366, %365 : vector<8x128xf32>
    %cst_137 = arith.constant 5.000000e-01 : f32
    %368 = vector.broadcast %cst_137 : f32 to vector<8x128xf32>
    %369 = arith.addf %367, %368 : vector<8x128xf32>
    %370 = vector.extract_strided_slice %349 {offsets = [0, 256], sizes = [8, 128], strides = [1, 1]} : vector<8x512xf32> to vector<8x128xf32>
    %371 = math.tanh %370 : vector<8x128xf32>
    %372 = vector.extract_strided_slice %349 {offsets = [0, 384], sizes = [8, 128], strides = [1, 1]} : vector<8x512xf32> to vector<8x128xf32>
    %cst_138 = arith.constant 5.000000e-01 : f32
    %373 = vector.broadcast %cst_138 : f32 to vector<8x128xf32>
    %374 = arith.mulf %373, %372 : vector<8x128xf32>
    %375 = math.tanh %374 : vector<8x128xf32>
    %cst_139 = arith.constant 5.000000e-01 : f32
    %376 = vector.broadcast %cst_139 : f32 to vector<8x128xf32>
    %377 = arith.mulf %376, %375 : vector<8x128xf32>
    %cst_140 = arith.constant 5.000000e-01 : f32
    %378 = vector.broadcast %cst_140 : f32 to vector<8x128xf32>
    %379 = arith.addf %377, %378 : vector<8x128xf32>
    %380 = arith.mulf %369, %301 : vector<8x128xf32>
    %381 = arith.mulf %361, %371 : vector<8x128xf32>
    %382 = arith.addf %380, %381 : vector<8x128xf32>
    %383 = math.tanh %382 : vector<8x128xf32>
    %384 = arith.mulf %379, %383 : vector<8x128xf32>
    %385 = vector.extract_strided_slice %353 {offsets = [0, 0], sizes = [8, 128], strides = [1, 1]} : vector<8x512xf32> to vector<8x128xf32>
    %cst_141 = arith.constant 5.000000e-01 : f32
    %386 = vector.broadcast %cst_141 : f32 to vector<8x128xf32>
    %387 = arith.mulf %386, %385 : vector<8x128xf32>
    %388 = math.tanh %387 : vector<8x128xf32>
    %cst_142 = arith.constant 5.000000e-01 : f32
    %389 = vector.broadcast %cst_142 : f32 to vector<8x128xf32>
    %390 = arith.mulf %389, %388 : vector<8x128xf32>
    %cst_143 = arith.constant 5.000000e-01 : f32
    %391 = vector.broadcast %cst_143 : f32 to vector<8x128xf32>
    %392 = arith.addf %390, %391 : vector<8x128xf32>
    %393 = vector.extract_strided_slice %353 {offsets = [0, 128], sizes = [8, 128], strides = [1, 1]} : vector<8x512xf32> to vector<8x128xf32>
    %cst_144 = arith.constant 5.000000e-01 : f32
    %394 = vector.broadcast %cst_144 : f32 to vector<8x128xf32>
    %395 = arith.mulf %394, %393 : vector<8x128xf32>
    %396 = math.tanh %395 : vector<8x128xf32>
    %cst_145 = arith.constant 5.000000e-01 : f32
    %397 = vector.broadcast %cst_145 : f32 to vector<8x128xf32>
    %398 = arith.mulf %397, %396 : vector<8x128xf32>
    %cst_146 = arith.constant 5.000000e-01 : f32
    %399 = vector.broadcast %cst_146 : f32 to vector<8x128xf32>
    %400 = arith.addf %398, %399 : vector<8x128xf32>
    %401 = vector.extract_strided_slice %353 {offsets = [0, 256], sizes = [8, 128], strides = [1, 1]} : vector<8x512xf32> to vector<8x128xf32>
    %402 = math.tanh %401 : vector<8x128xf32>
    %403 = vector.extract_strided_slice %353 {offsets = [0, 384], sizes = [8, 128], strides = [1, 1]} : vector<8x512xf32> to vector<8x128xf32>
    %cst_147 = arith.constant 5.000000e-01 : f32
    %404 = vector.broadcast %cst_147 : f32 to vector<8x128xf32>
    %405 = arith.mulf %404, %403 : vector<8x128xf32>
    %406 = math.tanh %405 : vector<8x128xf32>
    %cst_148 = arith.constant 5.000000e-01 : f32
    %407 = vector.broadcast %cst_148 : f32 to vector<8x128xf32>
    %408 = arith.mulf %407, %406 : vector<8x128xf32>
    %cst_149 = arith.constant 5.000000e-01 : f32
    %409 = vector.broadcast %cst_149 : f32 to vector<8x128xf32>
    %410 = arith.addf %408, %409 : vector<8x128xf32>
    %411 = arith.mulf %400, %332 : vector<8x128xf32>
    %412 = arith.mulf %392, %402 : vector<8x128xf32>
    %413 = arith.addf %411, %412 : vector<8x128xf32>
    %414 = math.tanh %413 : vector<8x128xf32>
    %415 = arith.mulf %410, %414 : vector<8x128xf32>
    %416 = arith.index_cast %339 : i32 to index
    %c0_150 = arith.constant 0 : index
    %417 = vector.load %arg8[%416, %c0_150] : memref<64x256xf32, #tpu.memory_space<vmem>>, vector<8x128xf32>
    tpu.vector_store %arg8[%416, %c0_150], %384 {strides = array<i32>} : memref<64x256xf32, #tpu.memory_space<vmem>>, vector<8x128xf32>,
    %418 = arith.index_cast %341 : i32 to index
    %c128_151 = arith.constant 128 : index
    %419 = vector.load %arg8[%418, %c128_151] : memref<64x256xf32, #tpu.memory_space<vmem>>, vector<8x128xf32>
    tpu.vector_store %arg8[%418, %c128_151], %415 {strides = array<i32>} : memref<64x256xf32, #tpu.memory_space<vmem>>, vector<8x128xf32>,
    %c5_i32 = arith.constant 5 : i32
    %c8_i32_152 = arith.constant 8 : i32
    %420 = arith.muli %c5_i32, %c8_i32_152 : i32
    %c7_i32_153 = arith.constant 7 : i32
    %421 = arith.subi %c7_i32_153, %c5_i32 : i32
    %c8_i32_154 = arith.constant 8 : i32
    %422 = arith.muli %421, %c8_i32_154 : i32
    %423 = tpu.concatenate %384, %415 in 1 : vector<8x128xf32>, vector<8x128xf32> -> vector<8x256xf32>
    %424 = arith.truncf %423 : vector<8x256xf32> to vector<8x256xbf16>
    %c0_155 = arith.constant 0 : index
    %c0_156 = arith.constant 0 : index
    %425 = vector.load %arg3[%c0_155, %c0_156] : memref<256x1024xbf16, #tpu.memory_space<vmem>>, vector<256x1024xbf16>
    %cst_157 = arith.constant dense<0.000000e+00> : vector<8x1024xf32>
    %426 = tpu.matmul %424, %425, %cst_157 {dimension_numbers = #tpu.dot_dimension_numbers<[1], [0], [0], [1], [0, 0, 1, 1], [], []>} : vector<8x256xbf16>, vector<256x1024xbf16>, vector<8x1024xf32> -> vector<8x1024xf32>
    %427 = arith.index_cast %420 : i32 to index
    %c0_158 = arith.constant 0 : index
    %428 = vector.load %arg7[%427, %c0_158] : memref<64x1024xf32, #tpu.memory_space<vmem>>, vector<8x512xf32>
    %429 = vector.extract_strided_slice %426 {offsets = [0, 0], sizes = [8, 512], strides = [1, 1]} : vector<8x1024xf32> to vector<8x512xf32>
    %430 = arith.addf %428, %429 : vector<8x512xf32>
    %431 = arith.index_cast %422 : i32 to index
    %c512_159 = arith.constant 512 : index
    %432 = vector.load %arg7[%431, %c512_159] : memref<64x1024xf32, #tpu.memory_space<vmem>>, vector<8x512xf32>
    %433 = vector.extract_strided_slice %426 {offsets = [0, 512], sizes = [8, 512], strides = [1, 1]} : vector<8x1024xf32> to vector<8x512xf32>
    %434 = arith.addf %432, %433 : vector<8x512xf32>
    %435 = vector.extract_strided_slice %430 {offsets = [0, 0], sizes = [8, 128], strides = [1, 1]} : vector<8x512xf32> to vector<8x128xf32>
    %cst_160 = arith.constant 5.000000e-01 : f32
    %436 = vector.broadcast %cst_160 : f32 to vector<8x128xf32>
    %437 = arith.mulf %436, %435 : vector<8x128xf32>
    %438 = math.tanh %437 : vector<8x128xf32>
    %cst_161 = arith.constant 5.000000e-01 : f32
    %439 = vector.broadcast %cst_161 : f32 to vector<8x128xf32>
    %440 = arith.mulf %439, %438 : vector<8x128xf32>
    %cst_162 = arith.constant 5.000000e-01 : f32
    %441 = vector.broadcast %cst_162 : f32 to vector<8x128xf32>
    %442 = arith.addf %440, %441 : vector<8x128xf32>
    %443 = vector.extract_strided_slice %430 {offsets = [0, 128], sizes = [8, 128], strides = [1, 1]} : vector<8x512xf32> to vector<8x128xf32>
    %cst_163 = arith.constant 5.000000e-01 : f32
    %444 = vector.broadcast %cst_163 : f32 to vector<8x128xf32>
    %445 = arith.mulf %444, %443 : vector<8x128xf32>
    %446 = math.tanh %445 : vector<8x128xf32>
    %cst_164 = arith.constant 5.000000e-01 : f32
    %447 = vector.broadcast %cst_164 : f32 to vector<8x128xf32>
    %448 = arith.mulf %447, %446 : vector<8x128xf32>
    %cst_165 = arith.constant 5.000000e-01 : f32
    %449 = vector.broadcast %cst_165 : f32 to vector<8x128xf32>
    %450 = arith.addf %448, %449 : vector<8x128xf32>
    %451 = vector.extract_strided_slice %430 {offsets = [0, 256], sizes = [8, 128], strides = [1, 1]} : vector<8x512xf32> to vector<8x128xf32>
    %452 = math.tanh %451 : vector<8x128xf32>
    %453 = vector.extract_strided_slice %430 {offsets = [0, 384], sizes = [8, 128], strides = [1, 1]} : vector<8x512xf32> to vector<8x128xf32>
    %cst_166 = arith.constant 5.000000e-01 : f32
    %454 = vector.broadcast %cst_166 : f32 to vector<8x128xf32>
    %455 = arith.mulf %454, %453 : vector<8x128xf32>
    %456 = math.tanh %455 : vector<8x128xf32>
    %cst_167 = arith.constant 5.000000e-01 : f32
    %457 = vector.broadcast %cst_167 : f32 to vector<8x128xf32>
    %458 = arith.mulf %457, %456 : vector<8x128xf32>
    %cst_168 = arith.constant 5.000000e-01 : f32
    %459 = vector.broadcast %cst_168 : f32 to vector<8x128xf32>
    %460 = arith.addf %458, %459 : vector<8x128xf32>
    %461 = arith.mulf %450, %382 : vector<8x128xf32>
    %462 = arith.mulf %442, %452 : vector<8x128xf32>
    %463 = arith.addf %461, %462 : vector<8x128xf32>
    %464 = math.tanh %463 : vector<8x128xf32>
    %465 = arith.mulf %460, %464 : vector<8x128xf32>
    %466 = vector.extract_strided_slice %434 {offsets = [0, 0], sizes = [8, 128], strides = [1, 1]} : vector<8x512xf32> to vector<8x128xf32>
    %cst_169 = arith.constant 5.000000e-01 : f32
    %467 = vector.broadcast %cst_169 : f32 to vector<8x128xf32>
    %468 = arith.mulf %467, %466 : vector<8x128xf32>
    %469 = math.tanh %468 : vector<8x128xf32>
    %cst_170 = arith.constant 5.000000e-01 : f32
    %470 = vector.broadcast %cst_170 : f32 to vector<8x128xf32>
    %471 = arith.mulf %470, %469 : vector<8x128xf32>
    %cst_171 = arith.constant 5.000000e-01 : f32
    %472 = vector.broadcast %cst_171 : f32 to vector<8x128xf32>
    %473 = arith.addf %471, %472 : vector<8x128xf32>
    %474 = vector.extract_strided_slice %434 {offsets = [0, 128], sizes = [8, 128], strides = [1, 1]} : vector<8x512xf32> to vector<8x128xf32>
    %cst_172 = arith.constant 5.000000e-01 : f32
    %475 = vector.broadcast %cst_172 : f32 to vector<8x128xf32>
    %476 = arith.mulf %475, %474 : vector<8x128xf32>
    %477 = math.tanh %476 : vector<8x128xf32>
    %cst_173 = arith.constant 5.000000e-01 : f32
    %478 = vector.broadcast %cst_173 : f32 to vector<8x128xf32>
    %479 = arith.mulf %478, %477 : vector<8x128xf32>
    %cst_174 = arith.constant 5.000000e-01 : f32
    %480 = vector.broadcast %cst_174 : f32 to vector<8x128xf32>
    %481 = arith.addf %479, %480 : vector<8x128xf32>
    %482 = vector.extract_strided_slice %434 {offsets = [0, 256], sizes = [8, 128], strides = [1, 1]} : vector<8x512xf32> to vector<8x128xf32>
    %483 = math.tanh %482 : vector<8x128xf32>
    %484 = vector.extract_strided_slice %434 {offsets = [0, 384], sizes = [8, 128], strides = [1, 1]} : vector<8x512xf32> to vector<8x128xf32>
    %cst_175 = arith.constant 5.000000e-01 : f32
    %485 = vector.broadcast %cst_175 : f32 to vector<8x128xf32>
    %486 = arith.mulf %485, %484 : vector<8x128xf32>
    %487 = math.tanh %486 : vector<8x128xf32>
    %cst_176 = arith.constant 5.000000e-01 : f32
    %488 = vector.broadcast %cst_176 : f32 to vector<8x128xf32>
    %489 = arith.mulf %488, %487 : vector<8x128xf32>
    %cst_177 = arith.constant 5.000000e-01 : f32
    %490 = vector.broadcast %cst_177 : f32 to vector<8x128xf32>
    %491 = arith.addf %489, %490 : vector<8x128xf32>
    %492 = arith.mulf %481, %413 : vector<8x128xf32>
    %493 = arith.mulf %473, %483 : vector<8x128xf32>
    %494 = arith.addf %492, %493 : vector<8x128xf32>
    %495 = math.tanh %494 : vector<8x128xf32>
    %496 = arith.mulf %491, %495 : vector<8x128xf32>
    %497 = arith.index_cast %420 : i32 to index
    %c0_178 = arith.constant 0 : index
    %498 = vector.load %arg8[%497, %c0_178] : memref<64x256xf32, #tpu.memory_space<vmem>>, vector<8x128xf32>
    tpu.vector_store %arg8[%497, %c0_178], %465 {strides = array<i32>} : memref<64x256xf32, #tpu.memory_space<vmem>>, vector<8x128xf32>,
    %499 = arith.index_cast %422 : i32 to index
    %c128_179 = arith.constant 128 : index
    %500 = vector.load %arg8[%499, %c128_179] : memref<64x256xf32, #tpu.memory_space<vmem>>, vector<8x128xf32>
    tpu.vector_store %arg8[%499, %c128_179], %496 {strides = array<i32>} : memref<64x256xf32, #tpu.memory_space<vmem>>, vector<8x128xf32>,
    %c6_i32 = arith.constant 6 : i32
    %c8_i32_180 = arith.constant 8 : i32
    %501 = arith.muli %c6_i32, %c8_i32_180 : i32
    %c7_i32_181 = arith.constant 7 : i32
    %502 = arith.subi %c7_i32_181, %c6_i32 : i32
    %c8_i32_182 = arith.constant 8 : i32
    %503 = arith.muli %502, %c8_i32_182 : i32
    %504 = tpu.concatenate %465, %496 in 1 : vector<8x128xf32>, vector<8x128xf32> -> vector<8x256xf32>
    %505 = arith.truncf %504 : vector<8x256xf32> to vector<8x256xbf16>
    %c0_183 = arith.constant 0 : index
    %c0_184 = arith.constant 0 : index
    %506 = vector.load %arg3[%c0_183, %c0_184] : memref<256x1024xbf16, #tpu.memory_space<vmem>>, vector<256x1024xbf16>
    %cst_185 = arith.constant dense<0.000000e+00> : vector<8x1024xf32>
    %507 = tpu.matmul %505, %506, %cst_185 {dimension_numbers = #tpu.dot_dimension_numbers<[1], [0], [0], [1], [0, 0, 1, 1], [], []>} : vector<8x256xbf16>, vector<256x1024xbf16>, vector<8x1024xf32> -> vector<8x1024xf32>
    %508 = arith.index_cast %501 : i32 to index
    %c0_186 = arith.constant 0 : index
    %509 = vector.load %arg7[%508, %c0_186] : memref<64x1024xf32, #tpu.memory_space<vmem>>, vector<8x512xf32>
    %510 = vector.extract_strided_slice %507 {offsets = [0, 0], sizes = [8, 512], strides = [1, 1]} : vector<8x1024xf32> to vector<8x512xf32>
    %511 = arith.addf %509, %510 : vector<8x512xf32>
    %512 = arith.index_cast %503 : i32 to index
    %c512_187 = arith.constant 512 : index
    %513 = vector.load %arg7[%512, %c512_187] : memref<64x1024xf32, #tpu.memory_space<vmem>>, vector<8x512xf32>
    %514 = vector.extract_strided_slice %507 {offsets = [0, 512], sizes = [8, 512], strides = [1, 1]} : vector<8x1024xf32> to vector<8x512xf32>
    %515 = arith.addf %513, %514 : vector<8x512xf32>
    %516 = vector.extract_strided_slice %511 {offsets = [0, 0], sizes = [8, 128], strides = [1, 1]} : vector<8x512xf32> to vector<8x128xf32>
    %cst_188 = arith.constant 5.000000e-01 : f32
    %517 = vector.broadcast %cst_188 : f32 to vector<8x128xf32>
    %518 = arith.mulf %517, %516 : vector<8x128xf32>
    %519 = math.tanh %518 : vector<8x128xf32>
    %cst_189 = arith.constant 5.000000e-01 : f32
    %520 = vector.broadcast %cst_189 : f32 to vector<8x128xf32>
    %521 = arith.mulf %520, %519 : vector<8x128xf32>
    %cst_190 = arith.constant 5.000000e-01 : f32
    %522 = vector.broadcast %cst_190 : f32 to vector<8x128xf32>
    %523 = arith.addf %521, %522 : vector<8x128xf32>
    %524 = vector.extract_strided_slice %511 {offsets = [0, 128], sizes = [8, 128], strides = [1, 1]} : vector<8x512xf32> to vector<8x128xf32>
    %cst_191 = arith.constant 5.000000e-01 : f32
    %525 = vector.broadcast %cst_191 : f32 to vector<8x128xf32>
    %526 = arith.mulf %525, %524 : vector<8x128xf32>
    %527 = math.tanh %526 : vector<8x128xf32>
    %cst_192 = arith.constant 5.000000e-01 : f32
    %528 = vector.broadcast %cst_192 : f32 to vector<8x128xf32>
    %529 = arith.mulf %528, %527 : vector<8x128xf32>
    %cst_193 = arith.constant 5.000000e-01 : f32
    %530 = vector.broadcast %cst_193 : f32 to vector<8x128xf32>
    %531 = arith.addf %529, %530 : vector<8x128xf32>
    %532 = vector.extract_strided_slice %511 {offsets = [0, 256], sizes = [8, 128], strides = [1, 1]} : vector<8x512xf32> to vector<8x128xf32>
    %533 = math.tanh %532 : vector<8x128xf32>
    %534 = vector.extract_strided_slice %511 {offsets = [0, 384], sizes = [8, 128], strides = [1, 1]} : vector<8x512xf32> to vector<8x128xf32>
    %cst_194 = arith.constant 5.000000e-01 : f32
    %535 = vector.broadcast %cst_194 : f32 to vector<8x128xf32>
    %536 = arith.mulf %535, %534 : vector<8x128xf32>
    %537 = math.tanh %536 : vector<8x128xf32>
    %cst_195 = arith.constant 5.000000e-01 : f32
    %538 = vector.broadcast %cst_195 : f32 to vector<8x128xf32>
    %539 = arith.mulf %538, %537 : vector<8x128xf32>
    %cst_196 = arith.constant 5.000000e-01 : f32
    %540 = vector.broadcast %cst_196 : f32 to vector<8x128xf32>
    %541 = arith.addf %539, %540 : vector<8x128xf32>
    %542 = arith.mulf %531, %463 : vector<8x128xf32>
    %543 = arith.mulf %523, %533 : vector<8x128xf32>
    %544 = arith.addf %542, %543 : vector<8x128xf32>
    %545 = math.tanh %544 : vector<8x128xf32>
    %546 = arith.mulf %541, %545 : vector<8x128xf32>
    %547 = vector.extract_strided_slice %515 {offsets = [0, 0], sizes = [8, 128], strides = [1, 1]} : vector<8x512xf32> to vector<8x128xf32>
    %cst_197 = arith.constant 5.000000e-01 : f32
    %548 = vector.broadcast %cst_197 : f32 to vector<8x128xf32>
    %549 = arith.mulf %548, %547 : vector<8x128xf32>
    %550 = math.tanh %549 : vector<8x128xf32>
    %cst_198 = arith.constant 5.000000e-01 : f32
    %551 = vector.broadcast %cst_198 : f32 to vector<8x128xf32>
    %552 = arith.mulf %551, %550 : vector<8x128xf32>
    %cst_199 = arith.constant 5.000000e-01 : f32
    %553 = vector.broadcast %cst_199 : f32 to vector<8x128xf32>
    %554 = arith.addf %552, %553 : vector<8x128xf32>
    %555 = vector.extract_strided_slice %515 {offsets = [0, 128], sizes = [8, 128], strides = [1, 1]} : vector<8x512xf32> to vector<8x128xf32>
    %cst_200 = arith.constant 5.000000e-01 : f32
    %556 = vector.broadcast %cst_200 : f32 to vector<8x128xf32>
    %557 = arith.mulf %556, %555 : vector<8x128xf32>
    %558 = math.tanh %557 : vector<8x128xf32>
    %cst_201 = arith.constant 5.000000e-01 : f32
    %559 = vector.broadcast %cst_201 : f32 to vector<8x128xf32>
    %560 = arith.mulf %559, %558 : vector<8x128xf32>
    %cst_202 = arith.constant 5.000000e-01 : f32
    %561 = vector.broadcast %cst_202 : f32 to vector<8x128xf32>
    %562 = arith.addf %560, %561 : vector<8x128xf32>
    %563 = vector.extract_strided_slice %515 {offsets = [0, 256], sizes = [8, 128], strides = [1, 1]} : vector<8x512xf32> to vector<8x128xf32>
    %564 = math.tanh %563 : vector<8x128xf32>
    %565 = vector.extract_strided_slice %515 {offsets = [0, 384], sizes = [8, 128], strides = [1, 1]} : vector<8x512xf32> to vector<8x128xf32>
    %cst_203 = arith.constant 5.000000e-01 : f32
    %566 = vector.broadcast %cst_203 : f32 to vector<8x128xf32>
    %567 = arith.mulf %566, %565 : vector<8x128xf32>
    %568 = math.tanh %567 : vector<8x128xf32>
    %cst_204 = arith.constant 5.000000e-01 : f32
    %569 = vector.broadcast %cst_204 : f32 to vector<8x128xf32>
    %570 = arith.mulf %569, %568 : vector<8x128xf32>
    %cst_205 = arith.constant 5.000000e-01 : f32
    %571 = vector.broadcast %cst_205 : f32 to vector<8x128xf32>
    %572 = arith.addf %570, %571 : vector<8x128xf32>
    %573 = arith.mulf %562, %494 : vector<8x128xf32>
    %574 = arith.mulf %554, %564 : vector<8x128xf32>
    %575 = arith.addf %573, %574 : vector<8x128xf32>
    %576 = math.tanh %575 : vector<8x128xf32>
    %577 = arith.mulf %572, %576 : vector<8x128xf32>
    %578 = arith.index_cast %501 : i32 to index
    %c0_206 = arith.constant 0 : index
    %579 = vector.load %arg8[%578, %c0_206] : memref<64x256xf32, #tpu.memory_space<vmem>>, vector<8x128xf32>
    tpu.vector_store %arg8[%578, %c0_206], %546 {strides = array<i32>} : memref<64x256xf32, #tpu.memory_space<vmem>>, vector<8x128xf32>,
    %580 = arith.index_cast %503 : i32 to index
    %c128_207 = arith.constant 128 : index
    %581 = vector.load %arg8[%580, %c128_207] : memref<64x256xf32, #tpu.memory_space<vmem>>, vector<8x128xf32>
    tpu.vector_store %arg8[%580, %c128_207], %577 {strides = array<i32>} : memref<64x256xf32, #tpu.memory_space<vmem>>, vector<8x128xf32>,
    %c7_i32_208 = arith.constant 7 : i32
    %c8_i32_209 = arith.constant 8 : i32
    %582 = arith.muli %c7_i32_208, %c8_i32_209 : i32
    %c7_i32_210 = arith.constant 7 : i32
    %583 = arith.subi %c7_i32_210, %c7_i32_208 : i32
    %c8_i32_211 = arith.constant 8 : i32
    %584 = arith.muli %583, %c8_i32_211 : i32
    %585 = tpu.concatenate %546, %577 in 1 : vector<8x128xf32>, vector<8x128xf32> -> vector<8x256xf32>
    %586 = arith.truncf %585 : vector<8x256xf32> to vector<8x256xbf16>
    %c0_212 = arith.constant 0 : index
    %c0_213 = arith.constant 0 : index
    %587 = vector.load %arg3[%c0_212, %c0_213] : memref<256x1024xbf16, #tpu.memory_space<vmem>>, vector<256x1024xbf16>
    %cst_214 = arith.constant dense<0.000000e+00> : vector<8x1024xf32>
    %588 = tpu.matmul %586, %587, %cst_214 {dimension_numbers = #tpu.dot_dimension_numbers<[1], [0], [0], [1], [0, 0, 1, 1], [], []>} : vector<8x256xbf16>, vector<256x1024xbf16>, vector<8x1024xf32> -> vector<8x1024xf32>
    %589 = arith.index_cast %582 : i32 to index
    %c0_215 = arith.constant 0 : index
    %590 = vector.load %arg7[%589, %c0_215] : memref<64x1024xf32, #tpu.memory_space<vmem>>, vector<8x512xf32>
    %591 = vector.extract_strided_slice %588 {offsets = [0, 0], sizes = [8, 512], strides = [1, 1]} : vector<8x1024xf32> to vector<8x512xf32>
    %592 = arith.addf %590, %591 : vector<8x512xf32>
    %593 = arith.index_cast %584 : i32 to index
    %c512_216 = arith.constant 512 : index
    %594 = vector.load %arg7[%593, %c512_216] : memref<64x1024xf32, #tpu.memory_space<vmem>>, vector<8x512xf32>
    %595 = vector.extract_strided_slice %588 {offsets = [0, 512], sizes = [8, 512], strides = [1, 1]} : vector<8x1024xf32> to vector<8x512xf32>
    %596 = arith.addf %594, %595 : vector<8x512xf32>
    %597 = vector.extract_strided_slice %592 {offsets = [0, 0], sizes = [8, 128], strides = [1, 1]} : vector<8x512xf32> to vector<8x128xf32>
    %cst_217 = arith.constant 5.000000e-01 : f32
    %598 = vector.broadcast %cst_217 : f32 to vector<8x128xf32>
    %599 = arith.mulf %598, %597 : vector<8x128xf32>
    %600 = math.tanh %599 : vector<8x128xf32>
    %cst_218 = arith.constant 5.000000e-01 : f32
    %601 = vector.broadcast %cst_218 : f32 to vector<8x128xf32>
    %602 = arith.mulf %601, %600 : vector<8x128xf32>
    %cst_219 = arith.constant 5.000000e-01 : f32
    %603 = vector.broadcast %cst_219 : f32 to vector<8x128xf32>
    %604 = arith.addf %602, %603 : vector<8x128xf32>
    %605 = vector.extract_strided_slice %592 {offsets = [0, 128], sizes = [8, 128], strides = [1, 1]} : vector<8x512xf32> to vector<8x128xf32>
    %cst_220 = arith.constant 5.000000e-01 : f32
    %606 = vector.broadcast %cst_220 : f32 to vector<8x128xf32>
    %607 = arith.mulf %606, %605 : vector<8x128xf32>
    %608 = math.tanh %607 : vector<8x128xf32>
    %cst_221 = arith.constant 5.000000e-01 : f32
    %609 = vector.broadcast %cst_221 : f32 to vector<8x128xf32>
    %610 = arith.mulf %609, %608 : vector<8x128xf32>
    %cst_222 = arith.constant 5.000000e-01 : f32
    %611 = vector.broadcast %cst_222 : f32 to vector<8x128xf32>
    %612 = arith.addf %610, %611 : vector<8x128xf32>
    %613 = vector.extract_strided_slice %592 {offsets = [0, 256], sizes = [8, 128], strides = [1, 1]} : vector<8x512xf32> to vector<8x128xf32>
    %614 = math.tanh %613 : vector<8x128xf32>
    %615 = vector.extract_strided_slice %592 {offsets = [0, 384], sizes = [8, 128], strides = [1, 1]} : vector<8x512xf32> to vector<8x128xf32>
    %cst_223 = arith.constant 5.000000e-01 : f32
    %616 = vector.broadcast %cst_223 : f32 to vector<8x128xf32>
    %617 = arith.mulf %616, %615 : vector<8x128xf32>
    %618 = math.tanh %617 : vector<8x128xf32>
    %cst_224 = arith.constant 5.000000e-01 : f32
    %619 = vector.broadcast %cst_224 : f32 to vector<8x128xf32>
    %620 = arith.mulf %619, %618 : vector<8x128xf32>
    %cst_225 = arith.constant 5.000000e-01 : f32
    %621 = vector.broadcast %cst_225 : f32 to vector<8x128xf32>
    %622 = arith.addf %620, %621 : vector<8x128xf32>
    %623 = arith.mulf %612, %544 : vector<8x128xf32>
    %624 = arith.mulf %604, %614 : vector<8x128xf32>
    %625 = arith.addf %623, %624 : vector<8x128xf32>
    %626 = math.tanh %625 : vector<8x128xf32>
    %627 = arith.mulf %622, %626 : vector<8x128xf32>
    %628 = vector.extract_strided_slice %596 {offsets = [0, 0], sizes = [8, 128], strides = [1, 1]} : vector<8x512xf32> to vector<8x128xf32>
    %cst_226 = arith.constant 5.000000e-01 : f32
    %629 = vector.broadcast %cst_226 : f32 to vector<8x128xf32>
    %630 = arith.mulf %629, %628 : vector<8x128xf32>
    %631 = math.tanh %630 : vector<8x128xf32>
    %cst_227 = arith.constant 5.000000e-01 : f32
    %632 = vector.broadcast %cst_227 : f32 to vector<8x128xf32>
    %633 = arith.mulf %632, %631 : vector<8x128xf32>
    %cst_228 = arith.constant 5.000000e-01 : f32
    %634 = vector.broadcast %cst_228 : f32 to vector<8x128xf32>
    %635 = arith.addf %633, %634 : vector<8x128xf32>
    %636 = vector.extract_strided_slice %596 {offsets = [0, 128], sizes = [8, 128], strides = [1, 1]} : vector<8x512xf32> to vector<8x128xf32>
    %cst_229 = arith.constant 5.000000e-01 : f32
    %637 = vector.broadcast %cst_229 : f32 to vector<8x128xf32>
    %638 = arith.mulf %637, %636 : vector<8x128xf32>
    %639 = math.tanh %638 : vector<8x128xf32>
    %cst_230 = arith.constant 5.000000e-01 : f32
    %640 = vector.broadcast %cst_230 : f32 to vector<8x128xf32>
    %641 = arith.mulf %640, %639 : vector<8x128xf32>
    %cst_231 = arith.constant 5.000000e-01 : f32
    %642 = vector.broadcast %cst_231 : f32 to vector<8x128xf32>
    %643 = arith.addf %641, %642 : vector<8x128xf32>
    %644 = vector.extract_strided_slice %596 {offsets = [0, 256], sizes = [8, 128], strides = [1, 1]} : vector<8x512xf32> to vector<8x128xf32>
    %645 = math.tanh %644 : vector<8x128xf32>
    %646 = vector.extract_strided_slice %596 {offsets = [0, 384], sizes = [8, 128], strides = [1, 1]} : vector<8x512xf32> to vector<8x128xf32>
    %cst_232 = arith.constant 5.000000e-01 : f32
    %647 = vector.broadcast %cst_232 : f32 to vector<8x128xf32>
    %648 = arith.mulf %647, %646 : vector<8x128xf32>
    %649 = math.tanh %648 : vector<8x128xf32>
    %cst_233 = arith.constant 5.000000e-01 : f32
    %650 = vector.broadcast %cst_233 : f32 to vector<8x128xf32>
    %651 = arith.mulf %650, %649 : vector<8x128xf32>
    %cst_234 = arith.constant 5.000000e-01 : f32
    %652 = vector.broadcast %cst_234 : f32 to vector<8x128xf32>
    %653 = arith.addf %651, %652 : vector<8x128xf32>
    %654 = arith.mulf %643, %575 : vector<8x128xf32>
    %655 = arith.mulf %635, %645 : vector<8x128xf32>
    %656 = arith.addf %654, %655 : vector<8x128xf32>
    %657 = math.tanh %656 : vector<8x128xf32>
    %658 = arith.mulf %653, %657 : vector<8x128xf32>
    %659 = arith.index_cast %582 : i32 to index
    %c0_235 = arith.constant 0 : index
    %660 = vector.load %arg8[%659, %c0_235] : memref<64x256xf32, #tpu.memory_space<vmem>>, vector<8x128xf32>
    tpu.vector_store %arg8[%659, %c0_235], %627 {strides = array<i32>} : memref<64x256xf32, #tpu.memory_space<vmem>>, vector<8x128xf32>,
    %661 = arith.index_cast %584 : i32 to index
    %c128_236 = arith.constant 128 : index
    %662 = vector.load %arg8[%661, %c128_236] : memref<64x256xf32, #tpu.memory_space<vmem>>, vector<8x128xf32>
    tpu.vector_store %arg8[%661, %c128_236], %658 {strides = array<i32>} : memref<64x256xf32, #tpu.memory_space<vmem>>, vector<8x128xf32>,
    %c8_i32_237 = arith.constant 8 : i32
    %c0_238 = arith.constant 0 : index
    %c0_239 = arith.constant 0 : index
    %663 = vector.load %arg8[%c0_238, %c0_239] : memref<64x256xf32, #tpu.memory_space<vmem>>, vector<64x256xf32>
    %c0_240 = arith.constant 0 : index
    %c0_241 = arith.constant 0 : index
    %664 = vector.load %arg5[%c0_240, %c0_241] : memref<257x128xf32, #tpu.memory_space<vmem>>, vector<256x128xf32>
    %cst_242 = arith.constant dense<0.000000e+00> : vector<64x128xf32>
    %665 = tpu.matmul %663, %664, %cst_242 {dimension_numbers = #tpu.dot_dimension_numbers<[1], [0], [0], [1], [0, 0, 1, 1], [], []>} : vector<64x256xf32>, vector<256x128xf32>, vector<64x128xf32> -> vector<64x128xf32>
    %c256 = arith.constant 256 : index
    %c0_243 = arith.constant 0 : index
    %666 = vector.load %arg5[%c256, %c0_243] : memref<257x128xf32, #tpu.memory_space<vmem>>, vector<1x128xf32>
    %667 = vector.broadcast %666 : vector<1x128xf32> to vector<64x128xf32>
    %668 = arith.addf %665, %667 : vector<64x128xf32>
    %c0_244 = arith.constant 0 : index
    %c0_245 = arith.constant 0 : index
    %669 = vector.load %arg6[%c0_244, %c0_245] : memref<64x128xf32, #tpu.memory_space<vmem>>, vector<64x128xf32>
    tpu.vector_store %arg6[%c0_244, %c0_245], %668 {strides = array<i32>} : memref<64x128xf32, #tpu.memory_space<vmem>>, vector<64x128xf32>,
    return
  }
}

</mosaic_0001>

<bundles_post_ra>
// kernel: tpu_custom_call.1
= control target key start
LH: loop header
LB: loop body
LE: loop exit
PB: predicated region body
PF: predicated region fallthrough
CT: control target
= control target key end

     0   :  { %11 = vsyncpa [#allocation5], 0  ;;  %s15928_s0 = inlined_call_operand.hbm [shape: bf16[64,768], index: 0, kind: input, shape index: {}]   ;;  %s15929_s1 = inlined_call_operand.hbm [shape: bf16[768,1024], index: 1, kind: input, shape index: {}]   ;;  %s15930_s2 = inlined_call_operand.hbm [shape: f32[1,1024], index: 2, kind: input, shape index: {}]   ;;  %s15931_s3 = inlined_call_operand.hbm [shape: bf16[256,1024], index: 3, kind: input, shape index: {}]   ;;  %s15932_s4 = inlined_call_operand.hbm [shape: f32[4,8,128], index: 4, kind: input, shape index: {}]   ;;  %s15933_s5 = inlined_call_operand.hbm [shape: f32[257,128], index: 5, kind: input, shape index: {}]   ;;  %s15934_s6 = inlined_call_operand.hbm [shape: f32[64,128], index: 6, kind: output, shape index: {}]  }
   0x1   :  { %12 = vsyncpa [#allocation8], 0 }
   0x2   :  { %13 = vsyncpa [#allocation11], 0 }
   0x3   :  { %14 = vsyncpa [#allocation14], 0 }
   0x4   :  { %15 = vsyncpa [#allocation6], 0  ;;  %s13757_s21 = smov [#allocation7]   ;;  %s13593_s25 = scalar_lea.hbm %s15929_s1, 49152 }
   0x5   :  { %s33_s22 = sshll.u32 %s13757_s21, 4  ;;  %p13594_p0 = scmp.ne.s32.totalorder %s15929_s1, %s13593_s25  ;;  %s34_s22 = int_to_ptr.vmem [resolvable:$true] %s33_s22 }
   0x6   :  { %p13597_p1 = scmp.lt.u32.totalorder %s13593_s25, %s15929_s1 }
   0x8   :  { %p13599_p2 = pnand %p13597_p1, %p13594_p0 }
   0xa   :  { %13602 = shalt.err (!%p13599_p2)
}
   0xb   :  { %s13603_s30 = scalar_lea.vmem %s34_s22, 49152  ;;  %p13608_p4 = scmp.lt.s32.totalorder %s34_s22, %s34_s22 }
   0xc   :  { %p13604_p3 = scmp.ne.s32.totalorder %s34_s22, %s13603_s30  ;;  %p13609_p5 = scmp.lt.s32.totalorder %s13603_s30, %s13603_s30 }
   0xe   :  { %p13610_p6 = por %p13609_p5, %p13608_p4 }
  0x10   :  { %p13611_p7 = pnand %p13610_p6, %p13604_p3 }
  0x12   :  { %13614 = shalt.err (!%p13611_p7)
}
  0x13   :  { %s13758_s7 = smov 512   ;;  %s13759_s8 = smov 32  }
  0x14   :  { %39 = dma.hbm_to_vmem [thread:$0]  %s15929_s1, 49152, %s34_s22, [#allocation8], %s13758_s7, %s13758_s7, %s13759_s8  }
  0x15   :  { %s13760_s11 = smov [#allocation10]   ;;  %s13761_s13 = smov [#allocation4]  }
  0x16   :  { %s55_s12 = sshll.u32 %s13760_s11, 4  ;;  %s21_s14 = sshll.u32 %s13761_s13, 4  ;;  %s56_s12 = int_to_ptr.vmem [resolvable:$true] %s55_s12  ;;  %s22_s14 = int_to_ptr.vmem [resolvable:$true] %s21_s14 }
  0x17   :  { %s13615_s17 = scalar_lea.hbm %s15931_s3, 16384 }
  0x18   :  { %p13616_p8 = scmp.ne.s32.totalorder %s15931_s3, %s13615_s17  ;;  %p13619_p9 = scmp.lt.u32.totalorder %s13615_s17, %s15931_s3 }
  0x1a   :  { %p13621_p10 = pnand %p13619_p9, %p13616_p8 }
  0x1c   :  { %13624 = shalt.err (!%p13621_p10)
}
  0x1d   :  { %s13625_s1 = scalar_lea.vmem %s56_s12, 16384  ;;  %p13630_p12 = scmp.lt.s32.totalorder %s56_s12, %s56_s12 }
  0x1e   :  { %p13626_p11 = scmp.ne.s32.totalorder %s56_s12, %s13625_s1  ;;  %p13631_p13 = scmp.lt.s32.totalorder %s13625_s1, %s13625_s1 }
  0x20   :  { %p13632_p0 = por %p13631_p13, %p13630_p12 }
  0x22   :  { %p13633_p1 = pnand %p13632_p0, %p13626_p11 }
  0x24   :  { %13636 = shalt.err (!%p13633_p1)
}
  0x25   :  { %61 = dma.hbm_to_vmem [thread:$0]  %s15931_s3, 16384, %s56_s12, [#allocation11], %s13758_s7, %s13758_s7, %s13759_s8  }
  0x26   :  { %s13637_s26 = scalar_lea.hbm %s15928_s0, 3072 }
  0x27   :  { %p13638_p2 = scmp.ne.s32.totalorder %s15928_s0, %s13637_s26  ;;  %p13641_p3 = scmp.lt.u32.totalorder %s13637_s26, %s15928_s0 }
  0x29   :  { %p13643_p4 = pnand %p13641_p3, %p13638_p2 }
  0x2b   :  { %13646 = shalt.err (!%p13643_p4)
}
  0x2c   :  { %s13647_s9 = scalar_lea.vmem %s22_s14, 3072  ;;  %p13652_p6 = scmp.lt.s32.totalorder %s22_s14, %s22_s14 }
  0x2d   :  { %p13648_p5 = scmp.ne.s32.totalorder %s22_s14, %s13647_s9  ;;  %p13653_p7 = scmp.lt.s32.totalorder %s13647_s9, %s13647_s9 }
  0x2f   :  { %p13654_p8 = por %p13653_p7, %p13652_p6 }
  0x31   :  { %p13655_p9 = pnand %p13654_p8, %p13648_p5 }
  0x33   :  { %13658 = shalt.err (!%p13655_p9)
}
  0x34   :  { %s13762_s3 = smov 384   ;;  %s13763_s7 = smov 24  }
  0x35   :  { %27 = dma.hbm_to_vmem [thread:$0]  %s15928_s0, 3072, %s22_s14, [#allocation5], %s13762_s3, %s13762_s3, %s13763_s7  }
  0x36   :  { %s13764_s11 = smov [#allocation9]   ;;  %s13765_s13 = smov [#allocation12]  }
  0x37   :  { %s46_s12 = sshll.u32 %s13764_s11, 4  ;;  %s67_s15 = sshll.u32 %s13765_s13, 4  ;;  %s47_s12 = int_to_ptr.vmem [resolvable:$true] %s46_s12  ;;  %s68_s15 = int_to_ptr.vmem [resolvable:$true] %s67_s15 }
  0x38   :  { %s13659_s18 = scalar_lea.hbm %s15930_s2, 128 }
  0x39   :  { %p13660_p10 = scmp.ne.s32.totalorder %s15930_s2, %s13659_s18  ;;  %p13663_p11 = scmp.lt.u32.totalorder %s13659_s18, %s15930_s2 }
  0x3b   :  { %p13665_p12 = pnand %p13663_p11, %p13660_p10 }
  0x3d   :  { %13668 = shalt.err (!%p13665_p12)
}
  0x3e   :  { %s13669_s0 = scalar_lea.vmem %s47_s12, 128  ;;  %p13674_p0 = scmp.lt.s32.totalorder %s47_s12, %s47_s12 }
  0x3f   :  { %p13670_p13 = scmp.ne.s32.totalorder %s47_s12, %s13669_s0  ;;  %p13675_p1 = scmp.lt.s32.totalorder %s13669_s0, %s13669_s0 }
  0x41   :  { %p13676_p2 = por %p13675_p1, %p13674_p0 }
  0x43   :  { %p13677_p3 = pnand %p13676_p2, %p13670_p13 }
  0x45   :  { %13680 = shalt.err (!%p13677_p3)
}
  0x46   :  { %49 = dma.hbm_to_vmem [thread:$0]  %s15930_s2, 128, %s47_s12, [#allocation8]  }
  0x47   :  { %s13681_s25 = scalar_lea.hbm %s15932_s4, 512 }
  0x48   :  { %p13682_p4 = scmp.ne.s32.totalorder %s15932_s4, %s13681_s25  ;;  %p13685_p5 = scmp.lt.u32.totalorder %s13681_s25, %s15932_s4 }
  0x4a   :  { %p13687_p6 = pnand %p13685_p5, %p13682_p4 }
  0x4c   :  { %13690 = shalt.err (!%p13687_p6)
}
  0x4d   :  { %s13691_s30 = scalar_lea.vmem %s68_s15, 512  ;;  %p13696_p8 = scmp.lt.s32.totalorder %s68_s15, %s68_s15 }
  0x4e   :  { %p13692_p7 = scmp.ne.s32.totalorder %s68_s15, %s13691_s30  ;;  %p13697_p9 = scmp.lt.s32.totalorder %s13691_s30, %s13691_s30 }
  0x50   :  { %p13698_p10 = por %p13697_p9, %p13696_p8 }
  0x52   :  { %p13699_p11 = pnand %p13698_p10, %p13692_p7 }
  0x54   :  { %13702 = shalt.err (!%p13699_p11)
}
  0x55   :  { %s13766_s2 = smov 128   ;;  %s13767_s9 = smov 8  }
  0x56   :  { %73 = dma.hbm_to_vmem [thread:$0]  %s15932_s4, 512, %s68_s15, [#allocation11], %s13766_s2, %s13766_s2, %s13767_s9  }
  0x57   :  { %s13768_s8 = smov [#allocation13]   ;;  %s13703_s13 = scalar_lea.hbm %s15933_s5, 4224 }
  0x58   :  { %s79_s10 = sshll.u32 %s13768_s8, 4  ;;  %p13704_p12 = scmp.ne.s32.totalorder %s15933_s5, %s13703_s13  ;;  %s80_s10 = int_to_ptr.vmem [resolvable:$true] %s79_s10 }
  0x59   :  { %p13707_p13 = scmp.lt.u32.totalorder %s13703_s13, %s15933_s5 }
  0x5b   :  { %p13709_p0 = pnand %p13707_p13, %p13704_p12 }
  0x5d   :  { %13712 = shalt.err (!%p13709_p0)
}
  0x5e   :  { %s13713_s20 = scalar_lea.vmem %s80_s10, 4224  ;;  %p13718_p2 = scmp.lt.s32.totalorder %s80_s10, %s80_s10 }
  0x5f   :  { %p13714_p1 = scmp.ne.s32.totalorder %s80_s10, %s13713_s20  ;;  %p13719_p3 = scmp.lt.s32.totalorder %s13713_s20, %s13713_s20 }
  0x61   :  { %p13720_p4 = por %p13719_p3, %p13718_p2 }
  0x63   :  { %p13721_p5 = pnand %p13720_p4, %p13714_p1 }
  0x65   :  { %13724 = shalt.err (!%p13721_p5)
}
  0x66   :  { %85 = dma.hbm_to_vmem [thread:$0]  %s15933_s5, 4224, %s80_s10, [#allocation14], %s13766_s2, %s13766_s2, %s13767_s9  }
  0x67   :  { %13747 = dma.done.wait [#allocation5], 3072  }
  0x68   :  { %13748 = vsyncadd [#allocation5], 4294964224 }
  0x69   :  { %13749 = dma.done.wait [#allocation8], 49280  }
  0x6a   :  { %13750 = vsyncadd [#allocation8], 4294918016 }
  0x6b   :  { %13751 = dma.done.wait [#allocation11], 16896  }
  0x6c   :  { %13752 = vsyncadd [#allocation11], 4294950400 }
  0x6d   :  { %13753 = dma.done.wait [#allocation14], 4224  }
  0x6e   :  { %13754 = vsyncadd [#allocation14], 4294963072  ;;  %v128_v0 = vld [vmem:[#allocation7] sm:$0xff]  ;;  %v129_v2 = vld [vmem:[#allocation7 + $0x8] sm:$0xff]  ;;  %s13769_s5 = smov [#allocation15]  }
  0x6f   :  { %v132_v1 = vld [vmem:[#allocation7 + $0x20] sm:$0xff]  ;;  %v133_v4 = vld [vmem:[#allocation7 + $0x28] sm:$0xff]  ;;  %s11616_s21 = sshll.u32 %s13769_s5, 4  ;;  %s11617_s21 = int_to_ptr.vmem [resolvable:$true] %s11616_s21 }
  0x70   :  { %v11656_v3 = vcombine.high %v128_v0, %v132_v1  ;;  %v11655_v5 = vcombine.low %v128_v0, %v132_v1  ;;  %v136_v6 = vld [vmem:[#allocation7 + $0x40] sm:$0xff]  ;;  %v11658_v8 = vcombine.high %v129_v2, %v133_v4  ;;  %v11657_v9 = vcombine.low %v129_v2, %v133_v4  ;;  %v137_v11 = vld [vmem:[#allocation7 + $0x48] sm:$0xff]  ;;  %s13725_s1 = scalar_lea.vmem %s11617_s21, 1024  ;;  %p13730_p7 = scmp.lt.s32.totalorder %s11617_s21, %s11617_s21 }
  0x71   :  { %v140_v7 = vld [vmem:[#allocation7 + $0x60] sm:$0xff]  ;;  %v141_v12 = vld [vmem:[#allocation7 + $0x68] sm:$0xff]  ;;  %p13726_p6 = scmp.ne.s32.totalorder %s11617_s21, %s13725_s1  ;;  %p13731_p8 = scmp.lt.s32.totalorder %s13725_s1, %s13725_s1 }
  0x72   :  { %v11664_v10 = vcombine.high %v136_v6, %v140_v7  ;;  %v144_v13 = vld [vmem:[#allocation7 + $0x80] sm:$0xff]  ;;  %2594 = vmatprep.subr.bf16.mxu0 %v11656_v3  ;;  %v11666_v14 = vcombine.high %v137_v11, %v141_v12  ;;  %v145_v16 = vld [vmem:[#allocation7 + $0x88] sm:$0xff]  ;;  %2813 = vmatprep.subr.bf16.mxu1 %v11658_v8  ;;  %v11663_v18 = vcombine.low %v136_v6, %v140_v7 }
  0x73   :  { %v148_v15 = vld [vmem:[#allocation7 + $0xa0] sm:$0xff]  ;;  %v149_v17 = vld [vmem:[#allocation7 + $0xa8] sm:$0xff]  ;;  %2595 = vmatpush1.bf16.msra.mxu0 %v11655_v5  ;;  %2814 = vmatpush1.bf16.msra.mxu1 %v11657_v9  ;;  %v11665_v19 = vcombine.low %v137_v11, %v141_v12  ;;  %p13732_p9 = por %p13731_p8, %p13730_p7 }
  0x74   :  { %2596 = vmatprep.subr.bf16.mxu0 %v11664_v10  ;;  %v11672_v20 = vcombine.high %v144_v13, %v148_v15  ;;  %2815 = vmatprep.subr.bf16.mxu1 %v11666_v14  ;;  %v11674_v21 = vcombine.high %v145_v16, %v149_v17  ;;  %v152_v22 = vld [vmem:[#allocation7 + $0xc0] sm:$0xff]  ;;  %v153_v24 = vld [vmem:[#allocation7 + $0xc8] sm:$0xff]  ;;  %v11671_v26 = vcombine.low %v144_v13, %v148_v15 }
  0x75   :  { %v156_v23 = vld [vmem:[#allocation7 + $0xe0] sm:$0xff]  ;;  %v157_v25 = vld [vmem:[#allocation7 + $0xe8] sm:$0xff]  ;;  %v11673_v27 = vcombine.low %v145_v16, %v149_v17  ;;  %p13733_p10 = pnand %p13732_p9, %p13726_p6 }
  0x76   :  { %v11680_v28 = vcombine.high %v152_v22, %v156_v23  ;;  %v11682_v29 = vcombine.high %v153_v24, %v157_v25  ;;  %v160_v30 = vld [vmem:[#allocation7 + $0x100] sm:$0xff]  ;;  %v161_v32 = vld [vmem:[#allocation7 + $0x108] sm:$0xff]  ;;  %v11679_v34 = vcombine.low %v152_v22, %v156_v23  ;;  %v11681_v35 = vcombine.low %v153_v24, %v157_v25 }
  0x77   :  { %2597 = vmatpush1.bf16.msra.mxu0 %v11663_v18  ;;  %2816 = vmatpush1.bf16.msra.mxu1 %v11665_v19  ;;  %v164_v31 = vld [vmem:[#allocation7 + $0x120] sm:$0xff]  ;;  %v165_v33 = vld [vmem:[#allocation7 + $0x128] sm:$0xff] }
  0x78   :  { %2598 = vmatprep.subr.bf16.mxu0 %v11672_v20  ;;  %2817 = vmatprep.subr.bf16.mxu1 %v11674_v21  ;;  %v11688_v36 = vcombine.high %v160_v30, %v164_v31  ;;  %v11690_v37 = vcombine.high %v161_v32, %v165_v33  ;;  %v168_v38 = vld [vmem:[#allocation7 + $0x140] sm:$0xff]  ;;  %v169_v40 = vld [vmem:[#allocation7 + $0x148] sm:$0xff]  ;;  %v11687_v42 = vcombine.low %v160_v30, %v164_v31 }
  0x79   :  { %v172_v39 = vld [vmem:[#allocation7 + $0x160] sm:$0xff]  ;;  %v173_v41 = vld [vmem:[#allocation7 + $0x168] sm:$0xff]  ;;  %v11689_v43 = vcombine.low %v161_v32, %v165_v33 }
  0x7a   :  { %v11696_v44 = vcombine.high %v168_v38, %v172_v39  ;;  %v11698_v45 = vcombine.high %v169_v40, %v173_v41  ;;  %v176_v46 = vld [vmem:[#allocation7 + $0x180] sm:$0xff]  ;;  %v177_v48 = vld [vmem:[#allocation7 + $0x188] sm:$0xff]  ;;  %v11695_v50 = vcombine.low %v168_v38, %v172_v39  ;;  %v11697_v51 = vcombine.low %v169_v40, %v173_v41 }
  0x7b   :  { %2599 = vmatpush1.bf16.msra.mxu0 %v11671_v26  ;;  %2818 = vmatpush1.bf16.msra.mxu1 %v11673_v27  ;;  %v180_v47 = vld [vmem:[#allocation7 + $0x1a0] sm:$0xff]  ;;  %v181_v49 = vld [vmem:[#allocation7 + $0x1a8] sm:$0xff] }
  0x7c   :  { %2600 = vmatprep.subr.bf16.mxu0 %v11680_v28  ;;  %2819 = vmatprep.subr.bf16.mxu1 %v11682_v29  ;;  %v11704_v52 = vcombine.high %v176_v46, %v180_v47  ;;  %v11706_v53 = vcombine.high %v177_v48, %v181_v49  ;;  %v184_v54 = vld [vmem:[#allocation7 + $0x1c0] sm:$0xff]  ;;  %v185_v57 = vld [vmem:[#allocation7 + $0x1c8] sm:$0xff]  ;;  %v11703_v59 = vcombine.low %v176_v46, %v180_v47 }
  0x7d   :  { %v188_v55 = vld [vmem:[#allocation7 + $0x1e0] sm:$0xff]  ;;  %v189_v58 = vld [vmem:[#allocation7 + $0x1e8] sm:$0xff]  ;;  %v11705_v60 = vcombine.low %v177_v48, %v181_v49 }
  0x7e   :  { %v13373_v56 = vld [vmem:[#allocation4 + $0x4] ss:$24 sps:$4 sm:$0xff]   ;;  %v11712_v61 = vcombine.high %v184_v54, %v188_v55  ;;  %v11714_v62 = vcombine.high %v185_v57, %v189_v58  ;;  %v193_v1 = vld [vmem:[#allocation7 + $0x208] sm:$0xff]  ;;  %v11711_v3 = vcombine.low %v184_v54, %v188_v55  ;;  %v11713_v4 = vcombine.low %v185_v57, %v189_v58 }
  0x7f   :  { %2601 = vmatpush1.bf16.msra.mxu0 %v11679_v34  ;;  %2820 = vmatpush1.bf16.msra.mxu1 %v11681_v35  ;;  %v192_v63 = vld [vmem:[#allocation7 + $0x200] sm:$0xff]  ;;  %v197_v2 = vld [vmem:[#allocation7 + $0x228] sm:$0xff] }
  0x80   :  { %2602 = vmatprep.subr.bf16.mxu0 %v11688_v36  ;;  %2821 = vmatprep.subr.bf16.mxu1 %v11690_v37  ;;  %v196_v0 = vld [vmem:[#allocation7 + $0x220] sm:$0xff]  ;;  %v11722_v6 = vcombine.high %v193_v1, %v197_v2  ;;  %v201_v9 = vld [vmem:[#allocation7 + $0x248] sm:$0xff]  ;;  %v11721_v12 = vcombine.low %v193_v1, %v197_v2 }
  0x81   :  { %2626 = vmatprep.mubr.bf16.mxu0 %v13373_v56  ;;  %2845 = vmatprep.mubr.bf16.mxu1 %v13373_v56  ;;  %v11720_v5 = vcombine.high %v192_v63, %v196_v0  ;;  %v200_v7 = vld [vmem:[#allocation7 + $0x240] sm:$0xff]  ;;  %v205_v10 = vld [vmem:[#allocation7 + $0x268] sm:$0xff]  ;;  %v11719_v11 = vcombine.low %v192_v63, %v196_v0 }
  0x82   :  { %v204_v8 = vld [vmem:[#allocation7 + $0x260] sm:$0xff]  ;;  %v11730_v14 = vcombine.high %v201_v9, %v205_v10  ;;  %v209_v17 = vld [vmem:[#allocation7 + $0x288] sm:$0xff]  ;;  %v11729_v20 = vcombine.low %v201_v9, %v205_v10 }
  0x83   :  { %2603 = vmatpush1.bf16.msra.mxu0 %v11687_v42  ;;  %2822 = vmatpush1.bf16.msra.mxu1 %v11689_v43  ;;  %v11728_v13 = vcombine.high %v200_v7, %v204_v8  ;;  %v208_v15 = vld [vmem:[#allocation7 + $0x280] sm:$0xff]  ;;  %v213_v18 = vld [vmem:[#allocation7 + $0x2a8] sm:$0xff]  ;;  %v11727_v19 = vcombine.low %v200_v7, %v204_v8 }
  0x84   :  { %2604 = vmatprep.subr.bf16.mxu0 %v11696_v44  ;;  %2823 = vmatprep.subr.bf16.mxu1 %v11698_v45  ;;  %v212_v16 = vld [vmem:[#allocation7 + $0x2a0] sm:$0xff]  ;;  %v11738_v22 = vcombine.high %v209_v17, %v213_v18  ;;  %v217_v25 = vld [vmem:[#allocation7 + $0x2c8] sm:$0xff]  ;;  %v11737_v28 = vcombine.low %v209_v17, %v213_v18 }
  0x85   :  { %v11736_v21 = vcombine.high %v208_v15, %v212_v16  ;;  %v216_v23 = vld [vmem:[#allocation7 + $0x2c0] sm:$0xff]  ;;  %v221_v26 = vld [vmem:[#allocation7 + $0x2e8] sm:$0xff]  ;;  %v11735_v27 = vcombine.low %v208_v15, %v212_v16 }
  0x86   :  { %v220_v24 = vld [vmem:[#allocation7 + $0x2e0] sm:$0xff]  ;;  %v11746_v30 = vcombine.high %v217_v25, %v221_v26  ;;  %v225_v33 = vld [vmem:[#allocation7 + $0x308] sm:$0xff]  ;;  %v11745_v36 = vcombine.low %v217_v25, %v221_v26 }
  0x87   :  { %2605 = vmatpush1.bf16.msra.mxu0 %v11695_v50  ;;  %2824 = vmatpush1.bf16.msra.mxu1 %v11697_v51  ;;  %v11744_v29 = vcombine.high %v216_v23, %v220_v24  ;;  %v224_v31 = vld [vmem:[#allocation7 + $0x300] sm:$0xff]  ;;  %v229_v34 = vld [vmem:[#allocation7 + $0x328] sm:$0xff]  ;;  %v11743_v35 = vcombine.low %v216_v23, %v220_v24 }
  0x88   :  { %2606 = vmatprep.subr.bf16.mxu0 %v11704_v52  ;;  %2825 = vmatprep.subr.bf16.mxu1 %v11706_v53  ;;  %v228_v32 = vld [vmem:[#allocation7 + $0x320] sm:$0xff]  ;;  %v11754_v38 = vcombine.high %v225_v33, %v229_v34  ;;  %v233_v41 = vld [vmem:[#allocation7 + $0x348] sm:$0xff]  ;;  %v11753_v44 = vcombine.low %v225_v33, %v229_v34 }
  0x89   :  { %v11752_v37 = vcombine.high %v224_v31, %v228_v32  ;;  %v232_v39 = vld [vmem:[#allocation7 + $0x340] sm:$0xff]  ;;  %v237_v42 = vld [vmem:[#allocation7 + $0x368] sm:$0xff]  ;;  %v11751_v43 = vcombine.low %v224_v31, %v228_v32 }
  0x8a   :  { %v236_v40 = vld [vmem:[#allocation7 + $0x360] sm:$0xff]  ;;  %v11762_v46 = vcombine.high %v233_v41, %v237_v42  ;;  %v241_v49 = vld [vmem:[#allocation7 + $0x388] sm:$0xff]  ;;  %v11761_v52 = vcombine.low %v233_v41, %v237_v42 }
  0x8b   :  { %2607 = vmatpush1.bf16.msra.mxu0 %v11703_v59  ;;  %2826 = vmatpush1.bf16.msra.mxu1 %v11705_v60  ;;  %v11760_v45 = vcombine.high %v232_v39, %v236_v40  ;;  %v240_v47 = vld [vmem:[#allocation7 + $0x380] sm:$0xff]  ;;  %v245_v50 = vld [vmem:[#allocation7 + $0x3a8] sm:$0xff]  ;;  %v11759_v51 = vcombine.low %v232_v39, %v236_v40 }
  0x8c   :  { %2608 = vmatprep.subr.bf16.mxu0 %v11712_v61  ;;  %2827 = vmatprep.subr.bf16.mxu1 %v11714_v62  ;;  %v244_v48 = vld [vmem:[#allocation7 + $0x3a0] sm:$0xff]  ;;  %v11770_v54 = vcombine.high %v241_v49, %v245_v50  ;;  %v249_v57 = vld [vmem:[#allocation7 + $0x3c8] sm:$0xff]  ;;  %v11769_v60 = vcombine.low %v241_v49, %v245_v50 }
  0x8d   :  { %v11768_v53 = vcombine.high %v240_v47, %v244_v48  ;;  %v248_v55 = vld [vmem:[#allocation7 + $0x3c0] sm:$0xff]  ;;  %v253_v58 = vld [vmem:[#allocation7 + $0x3e8] sm:$0xff]  ;;  %v11767_v59 = vcombine.low %v240_v47, %v244_v48 }
  0x8e   :  { %v252_v56 = vld [vmem:[#allocation7 + $0x3e0] sm:$0xff]  ;;  %v11778_v62 = vcombine.high %v249_v57, %v253_v58  ;;  %v257_v1 = vld [vmem:[#allocation7 + $0x408] sm:$0xff] }
  0x8f   :  { %2609 = vmatpush1.bf16.msra.mxu0 %v11711_v3  ;;  %2828 = vmatpush1.bf16.msra.mxu1 %v11713_v4  ;;  %v11776_v61 = vcombine.high %v248_v55, %v252_v56  ;;  %v256_v63 = vld [vmem:[#allocation7 + $0x400] sm:$0xff]  ;;  %v261_v2 = vld [vmem:[#allocation7 + $0x428] sm:$0xff]  ;;  %v11775_v3 = vcombine.low %v248_v55, %v252_v56  ;;  %v11777_v4 = vcombine.low %v249_v57, %v253_v58 }
  0x90   :  { %2610 = vmatprep.subr.bf16.mxu0 %v11720_v5  ;;  %2829 = vmatprep.subr.bf16.mxu1 %v11722_v6  ;;  %v260_v0 = vld [vmem:[#allocation7 + $0x420] sm:$0xff]  ;;  %v11786_v7 = vcombine.high %v257_v1, %v261_v2  ;;  %v265_v10 = vld [vmem:[#allocation7 + $0x448] sm:$0xff] }
  0x91   :  { %v11784_v5 = vcombine.high %v256_v63, %v260_v0  ;;  %v13375_v6 = vld [vmem:[#allocation4] ss:$24 sps:$4 sm:$0xff]   ;;  %v13376_v18 = vld [vmem:[#allocation4 + $0x34] ss:$24 sps:$4 sm:$0xff]  }
  0x92   :  { %v264_v8 = vld [vmem:[#allocation7 + $0x440] sm:$0xff]  ;;  %v305_v55 = vld [vmem:[#allocation7 + $0x588] sm:$0xff] }
  0x93   :  { %2611 = vmatpush1.bf16.msra.mxu0 %v11719_v11  ;;  %2830 = vmatpush1.bf16.msra.mxu1 %v11721_v12  ;;  %v268_v9 = vld [vmem:[#allocation7 + $0x460] sm:$0xff]  ;;  %v269_v11 = vld [vmem:[#allocation7 + $0x468] sm:$0xff]  ;;  %v11783_v12 = vcombine.low %v256_v63, %v260_v0 }
  0x94   :  { %2612 = vmatprep.subr.bf16.mxu0 %v11728_v13  ;;  %2831 = vmatprep.subr.bf16.mxu1 %v11730_v14  ;;  %v11785_v13 = vcombine.low %v257_v1, %v261_v2  ;;  %v11792_v14 = vcombine.high %v264_v8, %v268_v9  ;;  %v272_v15 = vld [vmem:[#allocation7 + $0x480] sm:$0xff]  ;;  %v11794_v16 = vcombine.high %v265_v10, %v269_v11  ;;  %v309_v56 = vld [vmem:[#allocation7 + $0x5a8] sm:$0xff] }
  0x95   :  { %v276_v17 = vld [vmem:[#allocation7 + $0x4a0] sm:$0xff]  ;;  %v313_v63 = vld [vmem:[#allocation7 + $0x5c8] sm:$0xff] }
  0x96   :  { %v11800_v23 = vcombine.high %v272_v15, %v276_v17  ;;  %v280_v24 = vld [vmem:[#allocation7 + $0x4c0] sm:$0xff]  ;;  %v317_v0 = vld [vmem:[#allocation7 + $0x5e8] sm:$0xff] }
  0x97   :  { %2613 = vmatpush1.bf16.msra.mxu0 %v11727_v19  ;;  %2832 = vmatpush1.bf16.msra.mxu1 %v11729_v20  ;;  %v273_v19 = vld [vmem:[#allocation7 + $0x488] sm:$0xff]  ;;  %v284_v26 = vld [vmem:[#allocation7 + $0x4e0] sm:$0xff] }
  0x98   :  { %2614 = vmatprep.subr.bf16.mxu0 %v11736_v21  ;;  %2833 = vmatprep.subr.bf16.mxu1 %v11738_v22  ;;  %v277_v20 = vld [vmem:[#allocation7 + $0x4a8] sm:$0xff]  ;;  %v11791_v21 = vcombine.low %v264_v8, %v268_v9  ;;  %v11793_v22 = vcombine.low %v265_v10, %v269_v11  ;;  %v11808_v32 = vcombine.high %v280_v24, %v284_v26  ;;  %v288_v33 = vld [vmem:[#allocation7 + $0x500] sm:$0xff] }
  0x99   :  { %v11802_v25 = vcombine.high %v273_v19, %v277_v20  ;;  %v11801_v31 = vcombine.low %v273_v19, %v277_v20  ;;  %v11807_v39 = vcombine.low %v280_v24, %v284_v26  ;;  %v296_v42 = vld [vmem:[#allocation7 + $0x540] sm:$0xff]  ;;  %v13384_v1 = vld [vmem:[#allocation4 + $0x90] ss:$24 sps:$4 sm:$0xff]  }
  0x9a   :  { %v13381_v47 = vld [vmem:[#allocation4 + $0x60] ss:$24 sps:$4 sm:$0xff]   ;;  %v13387_v8 = vld [vmem:[#allocation4 + $0xc] ss:$24 sps:$4 sm:$0xff]  }
  0x9b   :  { %2615 = vmatpush1.bf16.msra.mxu0 %v11735_v27  ;;  %2834 = vmatpush1.bf16.msra.mxu1 %v11737_v28  ;;  %v281_v27 = vld [vmem:[#allocation7 + $0x4c8] sm:$0xff]  ;;  %v340_v24 = vld [vmem:[#allocation7 + $0x6a0] sm:$0xff] }
  0x9c   :  { %2616 = vmatprep.subr.bf16.mxu0 %v11744_v29  ;;  %2835 = vmatprep.subr.bf16.mxu1 %v11746_v30  ;;  %v285_v28 = vld [vmem:[#allocation7 + $0x4e8] sm:$0xff]  ;;  %v11799_v30 = vcombine.low %v272_v15, %v276_v17  ;;  %v328_v15 = vld [vmem:[#allocation7 + $0x640] sm:$0xff] }
  0x9d   :  { %v13378_v29 = vld [vmem:[#allocation4 + $0x30] ss:$24 sps:$4 sm:$0xff]   ;;  %v11810_v34 = vcombine.high %v281_v27, %v285_v28  ;;  %v11809_v40 = vcombine.low %v281_v27, %v285_v28 }
  0x9e   :  { %v321_v9 = vld [vmem:[#allocation7 + $0x608] sm:$0xff] }
  0x9f   :  { %2617 = vmatpush1.bf16.msra.mxu0 %v11743_v35  ;;  %2836 = vmatpush1.bf16.msra.mxu1 %v11745_v36  ;;  %v292_v35 = vld [vmem:[#allocation7 + $0x520] sm:$0xff]  ;;  %v325_v10 = vld [vmem:[#allocation7 + $0x628] sm:$0xff] }
  0xa0   :  { %2618 = vmatprep.subr.bf16.mxu0 %v11752_v37  ;;  %2837 = vmatprep.subr.bf16.mxu1 %v11754_v38  ;;  %v13379_v36 = vld [vmem:[#allocation4 + $0x64] ss:$24 sps:$4 sm:$0xff]   ;;  %v289_v37 = vld [vmem:[#allocation7 + $0x508] sm:$0xff]  ;;  %v11816_v41 = vcombine.high %v288_v33, %v292_v35  ;;  %v11815_v48 = vcombine.low %v288_v33, %v292_v35  ;;  %v11849_v20 = vcombine.low %v321_v9, %v325_v10 }
  0xa1   :  { %v293_v38 = vld [vmem:[#allocation7 + $0x528] sm:$0xff] }
  0xa2   :  { %v11817_v49 = vcombine.low %v289_v37, %v293_v38  ;;  %v329_v17 = vld [vmem:[#allocation7 + $0x648] sm:$0xff] }
  0xa3   :  { %2619 = vmatpush1.bf16.msra.mxu0 %v11751_v43  ;;  %2838 = vmatpush1.bf16.msra.mxu1 %v11753_v44  ;;  %v11818_v43 = vcombine.high %v289_v37, %v293_v38  ;;  %v300_v44 = vld [vmem:[#allocation7 + $0x560] sm:$0xff]  ;;  %v341_v26 = vld [vmem:[#allocation7 + $0x6a8] sm:$0xff] }
  0xa4   :  { %2620 = vmatprep.subr.bf16.mxu0 %v11760_v45  ;;  %2839 = vmatprep.subr.bf16.mxu1 %v11762_v46  ;;  %v297_v45 = vld [vmem:[#allocation7 + $0x548] sm:$0xff]  ;;  %v11824_v50 = vcombine.high %v296_v42, %v300_v44  ;;  %v11823_v57 = vcombine.low %v296_v42, %v300_v44 }
  0xa5   :  { %v301_v46 = vld [vmem:[#allocation7 + $0x568] sm:$0xff] }
  0xa6   :  { %v11825_v58 = vcombine.low %v297_v45, %v301_v46  ;;  %v345_v33 = vld [vmem:[#allocation7 + $0x6c8] sm:$0xff] }
  0xa7   :  { %2621 = vmatpush1.bf16.msra.mxu0 %v11759_v51  ;;  %2840 = vmatpush1.bf16.msra.mxu1 %v11761_v52  ;;  %v304_v51 = vld [vmem:[#allocation7 + $0x580] sm:$0xff]  ;;  %v11826_v52 = vcombine.high %v297_v45, %v301_v46  ;;  %v357_v42 = vld [vmem:[#allocation7 + $0x728] sm:$0xff] }
  0xa8   :  { %2622 = vmatprep.subr.bf16.mxu0 %v11768_v53  ;;  %2841 = vmatprep.subr.bf16.mxu1 %v11770_v54  ;;  %v308_v53 = vld [vmem:[#allocation7 + $0x5a0] sm:$0xff]  ;;  %v13382_v54 = vld [vmem:[#allocation4 + $0x94] ss:$24 sps:$4 sm:$0xff]  }
  0xa9   :  { %v11831_v2 = vcombine.low %v304_v51, %v308_v53 }
  0xab   :  { %2623 = vmatpush1.bf16.msra.mxu0 %v11767_v59  ;;  %2842 = vmatpush1.bf16.msra.mxu1 %v11769_v60  ;;  %v11832_v59 = vcombine.high %v304_v51, %v308_v53  ;;  %v312_v60 = vld [vmem:[#allocation7 + $0x5c0] sm:$0xff] }
  0xac   :  { %2624 = vmatprep.subr.bf16.mxu0 %v11776_v61  ;;  %2843 = vmatprep.subr.bf16.mxu1 %v11778_v62  ;;  %v11834_v61 = vcombine.high %v305_v55, %v309_v56  ;;  %v316_v62 = vld [vmem:[#allocation7 + $0x5e0] sm:$0xff] }
  0xad   :  { %v11839_v11 = vcombine.low %v312_v60, %v316_v62 }
  0xaf   :  { %2625 = vmatpush1.bf16.msra.mxu0 %v11775_v3  ;;  %2844 = vmatpush1.bf16.msra.mxu1 %v11777_v4  ;;  %v11833_v3 = vcombine.low %v305_v55, %v309_v56  ;;  %v11840_v4 = vcombine.high %v312_v60, %v316_v62  ;;  %v368_v55 = vld [vmem:[#allocation7 + $0x780] sm:$0xff] }
  0xb0   :  { %2667 = vmatprep.subr.bf16.mxu0 %v11784_v5  ;;  %2886 = vmatprep.subr.bf16.mxu1 %v11786_v7  ;;  %v11842_v5 = vcombine.high %v313_v63, %v317_v0  ;;  %v324_v7 = vld [vmem:[#allocation7 + $0x620] sm:$0xff] }
  0xb1   :  { %v372_v56 = vld [vmem:[#allocation7 + $0x7a0] sm:$0xff] }
  0xb2   :  { %2627 = vmatmul.mubr.bf16.vlgmr.msra.gmra.mrb[0].mxu0 %v13375_v6  ;;  %2846 = vmatmul.mubr.bf16.vlgmr.msra.gmra.mrb[0].mxu1 %v13375_v6  ;;  %v320_v6 = vld [vmem:[#allocation7 + $0x600] sm:$0xff] }
  0xb3   :  { %2668 = vmatpush1.bf16.msra.mxu0 %v11783_v12  ;;  %2887 = vmatpush1.bf16.msra.mxu1 %v11785_v13  ;;  %v11841_v12 = vcombine.low %v313_v63, %v317_v0  ;;  %v11848_v13 = vcombine.high %v320_v6, %v324_v7  ;;  %v11847_v19 = vcombine.low %v320_v6, %v324_v7  ;;  %v376_v63 = vld [vmem:[#allocation7 + $0x7c0] sm:$0xff] }
  0xb4   :  { %2669 = vmatprep.subr.bf16.mxu0 %v11792_v14  ;;  %2888 = vmatprep.subr.bf16.mxu1 %v11794_v16  ;;  %v11850_v14 = vcombine.high %v321_v9, %v325_v10  ;;  %v332_v16 = vld [vmem:[#allocation7 + $0x660] sm:$0xff]  ;;  %v385_v9 = vld [vmem:[#allocation7 + $0x808] sm:$0xff] }
  0xb5   :  { %2636 = vmatprep.mubr.bf16.mxu0 %v13376_v18  ;;  %2855 = vmatprep.mubr.bf16.mxu1 %v13376_v18  ;;  %v333_v18 = vld [vmem:[#allocation7 + $0x668] sm:$0xff]  ;;  %v11855_v27 = vcombine.low %v328_v15, %v332_v16  ;;  %v380_v0 = vld [vmem:[#allocation7 + $0x7e0] sm:$0xff] }
  0xb6   :  { %v11857_v28 = vcombine.low %v329_v17, %v333_v18  ;;  %v384_v7 = vld [vmem:[#allocation7 + $0x800] sm:$0xff]  ;;  %v389_v10 = vld [vmem:[#allocation7 + $0x828] sm:$0xff] }
  0xb7   :  { %2670 = vmatpush1.bf16.msra.mxu0 %v11791_v21  ;;  %2889 = vmatpush1.bf16.msra.mxu1 %v11793_v22  ;;  %v11856_v21 = vcombine.high %v328_v15, %v332_v16  ;;  %v11858_v22 = vcombine.high %v329_v17, %v333_v18  ;;  %v392_v15 = vld [vmem:[#allocation7 + $0x840] sm:$0xff]  ;;  %v393_v18 = vld [vmem:[#allocation7 + $0x848] sm:$0xff] }
  0xb8   :  { %2671 = vmatprep.subr.bf16.mxu0 %v11800_v23  ;;  %2890 = vmatprep.subr.bf16.mxu1 %v11802_v25  ;;  %v336_v23 = vld [vmem:[#allocation7 + $0x680] sm:$0xff]  ;;  %v337_v25 = vld [vmem:[#allocation7 + $0x688] sm:$0xff] }
  0xb9   :  { %v11863_v35 = vcombine.low %v336_v23, %v340_v24  ;;  %v396_v16 = vld [vmem:[#allocation7 + $0x860] sm:$0xff] }
  0xba   :  { %2637 = vmatmul.mubr.bf16.gmra.mrb[4].mxu0 %v13378_v29  ;;  %2856 = vmatmul.mubr.bf16.gmra.mrb[4].mxu1 %v13378_v29  ;;  %v11864_v29 = vcombine.high %v336_v23, %v340_v24  ;;  %v13385_v17 = vld [vmem:[#allocation4 + $0x8] ss:$24 sps:$4 sm:$0xff]  }
  0xbb   :  { %2672 = vmatpush1.bf16.msra.mxu0 %v11799_v30  ;;  %2891 = vmatpush1.bf16.msra.mxu1 %v11801_v31  ;;  %v11866_v30 = vcombine.high %v337_v25, %v341_v26  ;;  %v344_v31 = vld [vmem:[#allocation7 + $0x6c0] sm:$0xff] }
  0xbc   :  { %2673 = vmatprep.subr.bf16.mxu0 %v11808_v32  ;;  %2892 = vmatprep.subr.bf16.mxu1 %v11810_v34  ;;  %v348_v32 = vld [vmem:[#allocation7 + $0x6e0] sm:$0xff]  ;;  %v349_v34 = vld [vmem:[#allocation7 + $0x6e8] sm:$0xff] }
  0xbd   :  { %2646 = vmatprep.mubr.bf16.mxu0 %v13379_v36  ;;  %2865 = vmatprep.mubr.bf16.mxu1 %v13379_v36  ;;  %v11865_v36 = vcombine.low %v337_v25, %v341_v26  ;;  %v11872_v37 = vcombine.high %v344_v31, %v348_v32  ;;  %v11874_v38 = vcombine.high %v345_v33, %v349_v34  ;;  %v400_v24 = vld [vmem:[#allocation7 + $0x880] sm:$0xff]  ;;  %v13388_v26 = vld [vmem:[#allocation4 + $0x3c] ss:$24 sps:$4 sm:$0xff]  }
  0xbe   :  { %v11873_v44 = vcombine.low %v345_v33, %v349_v34  ;;  %v404_v25 = vld [vmem:[#allocation7 + $0x8a0] sm:$0xff] }
  0xbf   :  { %2674 = vmatpush1.bf16.msra.mxu0 %v11807_v39  ;;  %2893 = vmatpush1.bf16.msra.mxu1 %v11809_v40  ;;  %v352_v39 = vld [vmem:[#allocation7 + $0x700] sm:$0xff] }
  0xc0   :  { %2675 = vmatprep.subr.bf16.mxu0 %v11816_v41  ;;  %2894 = vmatprep.subr.bf16.mxu1 %v11818_v43  ;;  %v356_v40 = vld [vmem:[#allocation7 + $0x720] sm:$0xff]  ;;  %v353_v41 = vld [vmem:[#allocation7 + $0x708] sm:$0xff]  ;;  %v11871_v43 = vcombine.low %v344_v31, %v348_v32  ;;  %v11928_v31 = vcombine.high %v400_v24, %v404_v25 }
  0xc1   :  { %v11880_v45 = vcombine.high %v352_v39, %v356_v40  ;;  %v11882_v46 = vcombine.high %v353_v41, %v357_v42  ;;  %v11879_v51 = vcombine.low %v352_v39, %v356_v40  ;;  %v408_v33 = vld [vmem:[#allocation7 + $0x8c0] sm:$0xff] }
  0xc2   :  { %2647 = vmatmul.mubr.bf16.gmra.mrb[8].mxu0 %v13381_v47  ;;  %2866 = vmatmul.mubr.bf16.gmra.mrb[8].mxu1 %v13381_v47  ;;  %v360_v47 = vld [vmem:[#allocation7 + $0x740] sm:$0xff] }
  0xc3   :  { %2676 = vmatpush1.bf16.msra.mxu0 %v11815_v48  ;;  %2895 = vmatpush1.bf16.msra.mxu1 %v11817_v49  ;;  %v364_v48 = vld [vmem:[#allocation7 + $0x760] sm:$0xff]  ;;  %v361_v49 = vld [vmem:[#allocation7 + $0x748] sm:$0xff] }
  0xc4   :  { %2677 = vmatprep.subr.bf16.mxu0 %v11824_v50  ;;  %2896 = vmatprep.subr.bf16.mxu1 %v11826_v52  ;;  %v365_v50 = vld [vmem:[#allocation7 + $0x768] sm:$0xff]  ;;  %v11881_v52 = vcombine.low %v353_v41, %v357_v42  ;;  %v11888_v53 = vcombine.high %v360_v47, %v364_v48  ;;  %v412_v34 = vld [vmem:[#allocation7 + $0x8e0] sm:$0xff] }
  0xc5   :  { %2656 = vmatprep.mubr.bf16.mxu0 %v13382_v54  ;;  %2875 = vmatprep.mubr.bf16.mxu1 %v13382_v54  ;;  %v11890_v54 = vcombine.high %v361_v49, %v365_v50  ;;  %v11889_v60 = vcombine.low %v361_v49, %v365_v50  ;;  %v11936_v40 = vcombine.high %v408_v33, %v412_v34  ;;  %v416_v42 = vld [vmem:[#allocation7 + $0x900] sm:$0xff] }
  0xc7   :  { %2678 = vmatpush1.bf16.msra.mxu0 %v11823_v57  ;;  %2897 = vmatpush1.bf16.msra.mxu1 %v11825_v58  ;;  %v369_v57 = vld [vmem:[#allocation7 + $0x788] sm:$0xff] }
  0xc8   :  { %2679 = vmatprep.subr.bf16.mxu0 %v11832_v59  ;;  %2898 = vmatprep.subr.bf16.mxu1 %v11834_v61  ;;  %v373_v58 = vld [vmem:[#allocation7 + $0x7a8] sm:$0xff]  ;;  %v11887_v59 = vcombine.low %v360_v47, %v364_v48  ;;  %v11896_v61 = vcombine.high %v368_v55, %v372_v56  ;;  %v11935_v47 = vcombine.low %v408_v33, %v412_v34 }
  0xc9   :  { %v11898_v62 = vcombine.high %v369_v57, %v373_v58  ;;  %v465_v33 = vld [vmem:[#allocation7 + $0xa88] sm:$0xff] }
  0xca   :  { %2657 = vmatmul.mubr.bf16.gmra.mrb[12].mxu0 %v13384_v1  ;;  %2876 = vmatmul.mubr.bf16.gmra.mrb[12].mxu1 %v13384_v1  ;;  %v377_v1 = vld [vmem:[#allocation7 + $0x7c8] sm:$0xff] }
  0xcb   :  { %2680 = vmatpush1.bf16.msra.mxu0 %v11831_v2  ;;  %2899 = vmatpush1.bf16.msra.mxu1 %v11833_v3  ;;  %v381_v2 = vld [vmem:[#allocation7 + $0x7e8] sm:$0xff]  ;;  %v11895_v3 = vcombine.low %v368_v55, %v372_v56 }
  0xcc   :  { %2681 = vmatprep.subr.bf16.mxu0 %v11840_v4  ;;  %2900 = vmatprep.subr.bf16.mxu1 %v11842_v5  ;;  %v11897_v4 = vcombine.low %v369_v57, %v373_v58  ;;  %v11904_v5 = vcombine.high %v376_v63, %v380_v0  ;;  %v11906_v6 = vcombine.high %v377_v1, %v381_v2  ;;  %v13393_v55 = vld [vmem:[#allocation4 + $0x68] ss:$24 sps:$4 sm:$0xff]  }
  0xcd   :  { %2699 = vmatprep.mubr.bf16.mxu0 %v13387_v8  ;;  %2918 = vmatprep.mubr.bf16.mxu1 %v13387_v8  ;;  %v388_v8 = vld [vmem:[#allocation7 + $0x820] sm:$0xff]  ;;  %v469_v34 = vld [vmem:[#allocation7 + $0xaa8] sm:$0xff] }
  0xcf   :  { %2682 = vmatpush1.bf16.msra.mxu0 %v11839_v11  ;;  %2901 = vmatpush1.bf16.msra.mxu1 %v11841_v12  ;;  %v11903_v11 = vcombine.low %v376_v63, %v380_v0  ;;  %v11905_v12 = vcombine.low %v377_v1, %v381_v2  ;;  %v433_v63 = vld [vmem:[#allocation7 + $0x988] sm:$0xff] }
  0xd0   :  { %2683 = vmatprep.subr.bf16.mxu0 %v11848_v13  ;;  %2902 = vmatprep.subr.bf16.mxu1 %v11850_v14  ;;  %v11912_v13 = vcombine.high %v384_v7, %v388_v8  ;;  %v11914_v14 = vcombine.high %v385_v9, %v389_v10  ;;  %v437_v0 = vld [vmem:[#allocation7 + $0x9a8] sm:$0xff] }
  0xd3   :  { %2684 = vmatpush1.bf16.msra.mxu0 %v11847_v19  ;;  %2903 = vmatpush1.bf16.msra.mxu1 %v11849_v20  ;;  %v397_v19 = vld [vmem:[#allocation7 + $0x868] sm:$0xff]  ;;  %v11911_v20 = vcombine.low %v384_v7, %v388_v8 }
  0xd4   :  { %2685 = vmatprep.subr.bf16.mxu0 %v11856_v21  ;;  %2904 = vmatprep.subr.bf16.mxu1 %v11858_v22  ;;  %v11913_v21 = vcombine.low %v385_v9, %v389_v10  ;;  %v11920_v22 = vcombine.high %v392_v15, %v396_v16  ;;  %v11922_v23 = vcombine.high %v393_v18, %v397_v19  ;;  %v441_v7 = vld [vmem:[#allocation7 + $0x9c8] sm:$0xff]  ;;  %v13396_v9 = vld [vmem:[#allocation4 + $0x98] ss:$24 sps:$4 sm:$0xff]  }
  0xd5   :  { %v445_v8 = vld [vmem:[#allocation7 + $0x9e8] sm:$0xff] }
  0xd7   :  { %2686 = vmatpush1.bf16.msra.mxu0 %v11855_v27  ;;  %2905 = vmatpush1.bf16.msra.mxu1 %v11857_v28  ;;  %v401_v27 = vld [vmem:[#allocation7 + $0x888] sm:$0xff] }
  0xd8   :  { %2687 = vmatprep.subr.bf16.mxu0 %v11864_v29  ;;  %2906 = vmatprep.subr.bf16.mxu1 %v11866_v30  ;;  %v405_v28 = vld [vmem:[#allocation7 + $0x8a8] sm:$0xff]  ;;  %v11919_v29 = vcombine.low %v392_v15, %v396_v16  ;;  %v11921_v30 = vcombine.low %v393_v18, %v397_v19  ;;  %v452_v15 = vld [vmem:[#allocation7 + $0xa20] sm:$0xff] }
  0xd9   :  { %v11930_v32 = vcombine.high %v401_v27, %v405_v28  ;;  %v11929_v39 = vcombine.low %v401_v27, %v405_v28  ;;  %v13399_v16 = vld [vmem:[#allocation4 + $0x14] ss:$24 sps:$4 sm:$0xff]  }
  0xda   :  { %v453_v18 = vld [vmem:[#allocation7 + $0xa28] sm:$0xff] }
  0xdb   :  { %2688 = vmatpush1.bf16.msra.mxu0 %v11863_v35  ;;  %2907 = vmatpush1.bf16.msra.mxu1 %v11865_v36  ;;  %v409_v35 = vld [vmem:[#allocation7 + $0x8c8] sm:$0xff] }
  0xdc   :  { %2689 = vmatprep.subr.bf16.mxu0 %v11872_v37  ;;  %2908 = vmatprep.subr.bf16.mxu1 %v11874_v38  ;;  %v413_v36 = vld [vmem:[#allocation7 + $0x8e8] sm:$0xff]  ;;  %v13390_v37 = vld [vmem:[#allocation4 + $0x38] ss:$24 sps:$4 sm:$0xff]   ;;  %v11927_v38 = vcombine.low %v400_v24, %v404_v25  ;;  %v460_v24 = vld [vmem:[#allocation7 + $0xa60] sm:$0xff] }
  0xdd   :  { %v11938_v41 = vcombine.high %v409_v35, %v413_v36  ;;  %v11937_v48 = vcombine.low %v409_v35, %v413_v36  ;;  %v457_v25 = vld [vmem:[#allocation7 + $0xa48] sm:$0xff] }
  0xdf   :  { %2690 = vmatpush1.bf16.msra.mxu0 %v11871_v43  ;;  %2909 = vmatpush1.bf16.msra.mxu1 %v11873_v44  ;;  %v420_v43 = vld [vmem:[#allocation7 + $0x920] sm:$0xff] }
  0xe0   :  { %2691 = vmatprep.subr.bf16.mxu0 %v11880_v45  ;;  %2910 = vmatprep.subr.bf16.mxu1 %v11882_v46  ;;  %v13391_v44 = vld [vmem:[#allocation4 + $0x6c] ss:$24 sps:$4 sm:$0xff]   ;;  %v11944_v49 = vcombine.high %v416_v42, %v420_v43  ;;  %v11943_v56 = vcombine.low %v416_v42, %v420_v43 }
  0xe1   :  { %v417_v45 = vld [vmem:[#allocation7 + $0x908] sm:$0xff] }
  0xe2   :  { %v421_v46 = vld [vmem:[#allocation7 + $0x928] sm:$0xff] }
  0xe3   :  { %2692 = vmatpush1.bf16.msra.mxu0 %v11879_v51  ;;  %2911 = vmatpush1.bf16.msra.mxu1 %v11881_v52  ;;  %v11946_v50 = vcombine.high %v417_v45, %v421_v46  ;;  %v424_v51 = vld [vmem:[#allocation7 + $0x940] sm:$0xff]  ;;  %v11945_v57 = vcombine.low %v417_v45, %v421_v46  ;;  %v477_v42 = vld [vmem:[#allocation7 + $0xae8] sm:$0xff] }
  0xe4   :  { %2693 = vmatprep.subr.bf16.mxu0 %v11888_v53  ;;  %2912 = vmatprep.subr.bf16.mxu1 %v11890_v54  ;;  %v428_v52 = vld [vmem:[#allocation7 + $0x960] sm:$0xff]  ;;  %v425_v53 = vld [vmem:[#allocation7 + $0x948] sm:$0xff] }
  0xe5   :  { %v429_v54 = vld [vmem:[#allocation7 + $0x968] sm:$0xff]  ;;  %v11952_v58 = vcombine.high %v424_v51, %v428_v52  ;;  %v11951_v1 = vcombine.low %v424_v51, %v428_v52 }
  0xe6   :  { %v11953_v2 = vcombine.low %v425_v53, %v429_v54 }
  0xe7   :  { %2694 = vmatpush1.bf16.msra.mxu0 %v11887_v59  ;;  %2913 = vmatpush1.bf16.msra.mxu1 %v11889_v60  ;;  %v11954_v59 = vcombine.high %v425_v53, %v429_v54  ;;  %v432_v60 = vld [vmem:[#allocation7 + $0x980] sm:$0xff] }
  0xe8   :  { %2695 = vmatprep.subr.bf16.mxu0 %v11896_v61  ;;  %2914 = vmatprep.subr.bf16.mxu1 %v11898_v62  ;;  %v436_v61 = vld [vmem:[#allocation7 + $0x9a0] sm:$0xff]  ;;  %v13394_v62 = vld [vmem:[#allocation4 + $0x9c] ss:$24 sps:$4 sm:$0xff]  }
  0xe9   :  { %v11959_v10 = vcombine.low %v432_v60, %v436_v61 }
  0xeb   :  { %2696 = vmatpush1.bf16.msra.mxu0 %v11895_v3  ;;  %2915 = vmatpush1.bf16.msra.mxu1 %v11897_v4  ;;  %v11960_v3 = vcombine.high %v432_v60, %v436_v61  ;;  %v11962_v4 = vcombine.high %v433_v63, %v437_v0 }
  0xec   :  { %2697 = vmatprep.subr.bf16.mxu0 %v11904_v5  ;;  %2916 = vmatprep.subr.bf16.mxu1 %v11906_v6  ;;  %v440_v5 = vld [vmem:[#allocation7 + $0x9c0] sm:$0xff] }
  0xed   :  { %v444_v6 = vld [vmem:[#allocation7 + $0x9e0] sm:$0xff] }
  0xee   :  { %v11967_v19 = vcombine.low %v440_v5, %v444_v6 }
  0xef   :  { %2698 = vmatpush1.bf16.msra.mxu0 %v11903_v11  ;;  %2917 = vmatpush1.bf16.msra.mxu1 %v11905_v12  ;;  %v11961_v11 = vcombine.low %v433_v63, %v437_v0  ;;  %v11968_v12 = vcombine.high %v440_v5, %v444_v6  ;;  %v496_v63 = vld [vmem:[#allocation7 + $0xb80] sm:$0xff] }
  0xf0   :  { %2740 = vmatprep.subr.bf16.mxu0 %v11912_v13  ;;  %2959 = vmatprep.subr.bf16.mxu1 %v11914_v14  ;;  %v11970_v13 = vcombine.high %v441_v7, %v445_v8  ;;  %v448_v14 = vld [vmem:[#allocation7 + $0xa00] sm:$0xff] }
  0xf1   :  { %v11975_v27 = vcombine.low %v448_v14, %v452_v15  ;;  %v500_v0 = vld [vmem:[#allocation7 + $0xba0] sm:$0xff] }
  0xf2   :  { %2700 = vmatmul.mubr.bf16.vlgmr.msra.gmra.mrb[0].mxu0 %v13385_v17  ;;  %2919 = vmatmul.mubr.bf16.vlgmr.msra.gmra.mrb[0].mxu1 %v13385_v17  ;;  %v449_v17 = vld [vmem:[#allocation7 + $0xa08] sm:$0xff]  ;;  %v12024_v5 = vcombine.high %v496_v63, %v500_v0 }
  0xf3   :  { %2741 = vmatpush1.bf16.msra.mxu0 %v11911_v20  ;;  %2960 = vmatpush1.bf16.msra.mxu1 %v11913_v21  ;;  %v11969_v20 = vcombine.low %v441_v7, %v445_v8  ;;  %v11976_v21 = vcombine.high %v448_v14, %v452_v15  ;;  %v11977_v28 = vcombine.low %v449_v17, %v453_v18  ;;  %v504_v7 = vld [vmem:[#allocation7 + $0xbc0] sm:$0xff]  ;;  %v130_v15 = vld [vmem:[#allocation7 + $0x10] sm:$0xff] }
  0xf4   :  { %2742 = vmatprep.subr.bf16.mxu0 %v11920_v22  ;;  %2961 = vmatprep.subr.bf16.mxu1 %v11922_v23  ;;  %v11978_v22 = vcombine.high %v449_v17, %v453_v18  ;;  %v456_v23 = vld [vmem:[#allocation7 + $0xa40] sm:$0xff]  ;;  %v131_v17 = vld [vmem:[#allocation7 + $0x18] sm:$0xff] }
  0xf5   :  { %2709 = vmatprep.mubr.bf16.mxu0 %v13388_v26  ;;  %2928 = vmatprep.mubr.bf16.mxu1 %v13388_v26  ;;  %v461_v26 = vld [vmem:[#allocation7 + $0xa68] sm:$0xff]  ;;  %v11983_v35 = vcombine.low %v456_v23, %v460_v24  ;;  %v508_v8 = vld [vmem:[#allocation7 + $0xbe0] sm:$0xff]  ;;  %v135_v18 = vld [vmem:[#allocation7 + $0x38] sm:$0xff] }
  0xf6   :  { %v11985_v36 = vcombine.low %v457_v25, %v461_v26 }
  0xf7   :  { %2743 = vmatpush1.bf16.msra.mxu0 %v11919_v29  ;;  %2962 = vmatpush1.bf16.msra.mxu1 %v11921_v30  ;;  %v11984_v29 = vcombine.high %v456_v23, %v460_v24  ;;  %v11986_v30 = vcombine.high %v457_v25, %v461_v26  ;;  %v138_v23 = vld [vmem:[#allocation7 + $0x50] sm:$0xff]  ;;  %v139_v26 = vld [vmem:[#allocation7 + $0x58] sm:$0xff] }
  0xf8   :  { %2744 = vmatprep.subr.bf16.mxu0 %v11928_v31  ;;  %2963 = vmatprep.subr.bf16.mxu1 %v11930_v32  ;;  %v464_v31 = vld [vmem:[#allocation7 + $0xa80] sm:$0xff]  ;;  %v142_v24 = vld [vmem:[#allocation7 + $0x70] sm:$0xff] }
  0xf9   :  { %v468_v32 = vld [vmem:[#allocation7 + $0xaa0] sm:$0xff]  ;;  %v13397_v25 = vld [vmem:[#allocation4 + $0x10] ss:$24 sps:$4 sm:$0xff]  }
  0xfa   :  { %2710 = vmatmul.mubr.bf16.gmra.mrb[4].mxu0 %v13390_v37  ;;  %2929 = vmatmul.mubr.bf16.gmra.mrb[4].mxu1 %v13390_v37  ;;  %v11992_v37 = vcombine.high %v464_v31, %v468_v32  ;;  %v11991_v43 = vcombine.low %v464_v31, %v468_v32  ;;  %v13400_v32 = vld [vmem:[#allocation4 + $0x44] ss:$24 sps:$4 sm:$0xff]  }
  0xfb   :  { %2745 = vmatpush1.bf16.msra.mxu0 %v11927_v38  ;;  %2964 = vmatpush1.bf16.msra.mxu1 %v11929_v39  ;;  %v11994_v38 = vcombine.high %v465_v33, %v469_v34  ;;  %v472_v39 = vld [vmem:[#allocation7 + $0xac0] sm:$0xff] }
  0xfc   :  { %2746 = vmatprep.subr.bf16.mxu0 %v11936_v40  ;;  %2965 = vmatprep.subr.bf16.mxu1 %v11938_v41  ;;  %v476_v40 = vld [vmem:[#allocation7 + $0xae0] sm:$0xff]  ;;  %v473_v41 = vld [vmem:[#allocation7 + $0xac8] sm:$0xff] }
  0xfd   :  { %2719 = vmatprep.mubr.bf16.mxu0 %v13391_v44  ;;  %2938 = vmatprep.mubr.bf16.mxu1 %v13391_v44  ;;  %v11993_v44 = vcombine.low %v465_v33, %v469_v34  ;;  %v12000_v45 = vcombine.high %v472_v39, %v476_v40  ;;  %v12002_v46 = vcombine.high %v473_v41, %v477_v42  ;;  %v146_v33 = vld [vmem:[#allocation7 + $0x90] sm:$0xff] }
  0xfe   :  { %v11999_v51 = vcombine.low %v472_v39, %v476_v40  ;;  %v12001_v52 = vcombine.low %v473_v41, %v477_v42  ;;  %v150_v34 = vld [vmem:[#allocation7 + $0xb0] sm:$0xff] }
  0xff   :  { %2747 = vmatpush1.bf16.msra.mxu0 %v11935_v47  ;;  %2966 = vmatpush1.bf16.msra.mxu1 %v11937_v48  ;;  %v480_v47 = vld [vmem:[#allocation7 + $0xb00] sm:$0xff]  ;;  %v11676_v39 = vcombine.high %v146_v33, %v150_v34  ;;  %v154_v41 = vld [vmem:[#allocation7 + $0xd0] sm:$0xff] }
 0x100   :  { %2748 = vmatprep.subr.bf16.mxu0 %v11944_v49  ;;  %2967 = vmatprep.subr.bf16.mxu1 %v11946_v50  ;;  %v484_v48 = vld [vmem:[#allocation7 + $0xb20] sm:$0xff]  ;;  %v481_v49 = vld [vmem:[#allocation7 + $0xb08] sm:$0xff]  ;;  %v158_v42 = vld [vmem:[#allocation7 + $0xf0] sm:$0xff] }
 0x101   :  { %v485_v50 = vld [vmem:[#allocation7 + $0xb28] sm:$0xff]  ;;  %v12008_v53 = vcombine.high %v480_v47, %v484_v48 }
 0x102   :  { %2720 = vmatmul.mubr.bf16.gmra.mrb[8].mxu0 %v13393_v55  ;;  %2939 = vmatmul.mubr.bf16.gmra.mrb[8].mxu1 %v13393_v55  ;;  %v12010_v54 = vcombine.high %v481_v49, %v485_v50  ;;  %v488_v55 = vld [vmem:[#allocation7 + $0xb40] sm:$0xff]  ;;  %v12009_v60 = vcombine.low %v481_v49, %v485_v50  ;;  %v13403_v50 = vld [vmem:[#allocation4 + $0x74] ss:$24 sps:$4 sm:$0xff]  }
 0x103   :  { %2749 = vmatpush1.bf16.msra.mxu0 %v11943_v56  ;;  %2968 = vmatpush1.bf16.msra.mxu1 %v11945_v57  ;;  %v492_v56 = vld [vmem:[#allocation7 + $0xb60] sm:$0xff]  ;;  %v489_v57 = vld [vmem:[#allocation7 + $0xb48] sm:$0xff] }
 0x104   :  { %2750 = vmatprep.subr.bf16.mxu0 %v11952_v58  ;;  %2969 = vmatprep.subr.bf16.mxu1 %v11954_v59  ;;  %v493_v58 = vld [vmem:[#allocation7 + $0xb68] sm:$0xff]  ;;  %v12007_v59 = vcombine.low %v480_v47, %v484_v48  ;;  %v12016_v61 = vcombine.high %v488_v55, %v492_v56  ;;  %v11684_v48 = vcombine.high %v154_v41, %v158_v42 }
 0x105   :  { %2729 = vmatprep.mubr.bf16.mxu0 %v13394_v62  ;;  %2948 = vmatprep.mubr.bf16.mxu1 %v13394_v62  ;;  %v12018_v62 = vcombine.high %v489_v57, %v493_v58 }
 0x107   :  { %2751 = vmatpush1.bf16.msra.mxu0 %v11951_v1  ;;  %2970 = vmatpush1.bf16.msra.mxu1 %v11953_v2  ;;  %v497_v1 = vld [vmem:[#allocation7 + $0xb88] sm:$0xff] }
 0x108   :  { %2752 = vmatprep.subr.bf16.mxu0 %v11960_v3  ;;  %2971 = vmatprep.subr.bf16.mxu1 %v11962_v4  ;;  %v501_v2 = vld [vmem:[#allocation7 + $0xba8] sm:$0xff]  ;;  %v12015_v3 = vcombine.low %v488_v55, %v492_v56  ;;  %v12017_v4 = vcombine.low %v489_v57, %v493_v58  ;;  %v11683_v55 = vcombine.low %v154_v41, %v158_v42  ;;  %v211_v41 = vld [vmem:[#allocation7 + $0x298] sm:$0xff] }
 0x109   :  { %v12026_v6 = vcombine.high %v497_v1, %v501_v2  ;;  %v215_v42 = vld [vmem:[#allocation7 + $0x2b8] sm:$0xff] }
 0x10a   :  { %2730 = vmatmul.mubr.bf16.gmra.mrb[12].mxu0 %v13396_v9  ;;  %2949 = vmatmul.mubr.bf16.gmra.mrb[12].mxu1 %v13396_v9  ;;  %v505_v9 = vld [vmem:[#allocation7 + $0xbc8] sm:$0xff] }
 0x10b   :  { %2753 = vmatpush1.bf16.msra.mxu0 %v11959_v10  ;;  %2972 = vmatpush1.bf16.msra.mxu1 %v11961_v11  ;;  %v509_v10 = vld [vmem:[#allocation7 + $0xbe8] sm:$0xff]  ;;  %v12023_v11 = vcombine.low %v496_v63, %v500_v0  ;;  %v175_v63 = vld [vmem:[#allocation7 + $0x178] sm:$0xff] }
 0x10c   :  { %2754 = vmatprep.subr.bf16.mxu0 %v11968_v12  ;;  %2973 = vmatprep.subr.bf16.mxu1 %v11970_v13  ;;  %v12025_v12 = vcombine.low %v497_v1, %v501_v2  ;;  %v12032_v13 = vcombine.high %v504_v7, %v508_v8  ;;  %v12034_v14 = vcombine.high %v505_v9, %v509_v10 }
 0x10d   :  { %2772 = vmatprep.mubr.bf16.mxu0 %v13399_v16  ;;  %2991 = vmatprep.mubr.bf16.mxu1 %v13399_v16  ;;  %v134_v16 = vld [vmem:[#allocation7 + $0x30] sm:$0xff] }
 0x10f   :  { %2755 = vmatpush1.bf16.msra.mxu0 %v11967_v19  ;;  %2974 = vmatpush1.bf16.msra.mxu1 %v11969_v20  ;;  %v12031_v19 = vcombine.low %v504_v7, %v508_v8  ;;  %v12033_v20 = vcombine.low %v505_v9, %v509_v10  ;;  %v179_v7 = vld [vmem:[#allocation7 + $0x198] sm:$0xff] }
 0x110   :  { %2756 = vmatprep.subr.bf16.mxu0 %v11976_v21  ;;  %2975 = vmatprep.subr.bf16.mxu1 %v11978_v22  ;;  %v11660_v21 = vcombine.high %v130_v15, %v134_v16  ;;  %v11662_v22 = vcombine.high %v131_v17, %v135_v18  ;;  %v183_v8 = vld [vmem:[#allocation7 + $0x1b8] sm:$0xff] }
 0x113   :  { %2757 = vmatpush1.bf16.msra.mxu0 %v11975_v27  ;;  %2976 = vmatpush1.bf16.msra.mxu1 %v11977_v28  ;;  %v143_v27 = vld [vmem:[#allocation7 + $0x78] sm:$0xff]  ;;  %v11659_v28 = vcombine.low %v130_v15, %v134_v16 }
 0x114   :  { %2758 = vmatprep.subr.bf16.mxu0 %v11984_v29  ;;  %2977 = vmatprep.subr.bf16.mxu1 %v11986_v30  ;;  %v11661_v29 = vcombine.low %v131_v17, %v135_v18  ;;  %v11668_v30 = vcombine.high %v138_v23, %v142_v24  ;;  %v11670_v31 = vcombine.high %v139_v26, %v143_v27  ;;  %v13408_v15 = vld [vmem:[#allocation4 + $0xa0] ss:$24 sps:$4 sm:$0xff]  }
 0x115   :  { %v187_v16 = vld [vmem:[#allocation7 + $0x1d8] sm:$0xff] }
 0x116   :  { %v191_v17 = vld [vmem:[#allocation7 + $0x1f8] sm:$0xff] }
 0x117   :  { %2759 = vmatpush1.bf16.msra.mxu0 %v11983_v35  ;;  %2978 = vmatpush1.bf16.msra.mxu1 %v11985_v36  ;;  %v147_v35 = vld [vmem:[#allocation7 + $0x98] sm:$0xff] }
 0x118   :  { %2760 = vmatprep.subr.bf16.mxu0 %v11992_v37  ;;  %2979 = vmatprep.subr.bf16.mxu1 %v11994_v38  ;;  %v151_v36 = vld [vmem:[#allocation7 + $0xb8] sm:$0xff]  ;;  %v11667_v37 = vcombine.low %v138_v23, %v142_v24  ;;  %v11669_v38 = vcombine.low %v139_v26, %v143_v27  ;;  %v198_v23 = vld [vmem:[#allocation7 + $0x230] sm:$0xff]  ;;  %v11717_v27 = vcombine.low %v187_v16, %v191_v17 }
 0x119   :  { %v11678_v40 = vcombine.high %v147_v35, %v151_v36  ;;  %v11677_v47 = vcombine.low %v147_v35, %v151_v36  ;;  %v195_v24 = vld [vmem:[#allocation7 + $0x218] sm:$0xff] }
 0x11b   :  { %2761 = vmatpush1.bf16.msra.mxu0 %v11991_v43  ;;  %2980 = vmatpush1.bf16.msra.mxu1 %v11993_v44  ;;  %v13402_v43 = vld [vmem:[#allocation4 + $0x40] ss:$24 sps:$4 sm:$0xff]  }
 0x11c   :  { %2762 = vmatprep.subr.bf16.mxu0 %v12000_v45  ;;  %2981 = vmatprep.subr.bf16.mxu1 %v12002_v46  ;;  %v155_v44 = vld [vmem:[#allocation7 + $0xd8] sm:$0xff]  ;;  %v11675_v46 = vcombine.low %v146_v33, %v150_v34 }
 0x11d   :  { %v159_v45 = vld [vmem:[#allocation7 + $0xf8] sm:$0xff] }
 0x11e   :  { %v11686_v49 = vcombine.high %v155_v44, %v159_v45  ;;  %v11685_v56 = vcombine.low %v155_v44, %v159_v45  ;;  %v203_v33 = vld [vmem:[#allocation7 + $0x258] sm:$0xff] }
 0x11f   :  { %2763 = vmatpush1.bf16.msra.mxu0 %v11999_v51  ;;  %2982 = vmatpush1.bf16.msra.mxu1 %v12001_v52  ;;  %v162_v51 = vld [vmem:[#allocation7 + $0x110] sm:$0xff]  ;;  %v207_v34 = vld [vmem:[#allocation7 + $0x278] sm:$0xff] }
 0x120   :  { %2764 = vmatprep.subr.bf16.mxu0 %v12008_v53  ;;  %2983 = vmatprep.subr.bf16.mxu1 %v12010_v54  ;;  %v166_v52 = vld [vmem:[#allocation7 + $0x130] sm:$0xff]  ;;  %v163_v53 = vld [vmem:[#allocation7 + $0x118] sm:$0xff]  ;;  %v11733_v44 = vcombine.low %v203_v33, %v207_v34 }
 0x121   :  { %v167_v54 = vld [vmem:[#allocation7 + $0x138] sm:$0xff]  ;;  %v11692_v57 = vcombine.high %v162_v51, %v166_v52  ;;  %v11691_v0 = vcombine.low %v162_v51, %v166_v52  ;;  %v11741_v52 = vcombine.low %v211_v41, %v215_v42 }
 0x122   :  { %v11694_v58 = vcombine.high %v163_v53, %v167_v54  ;;  %v11693_v1 = vcombine.low %v163_v53, %v167_v54 }
 0x123   :  { %2765 = vmatpush1.bf16.msra.mxu0 %v12007_v59  ;;  %2984 = vmatpush1.bf16.msra.mxu1 %v12009_v60  ;;  %v170_v59 = vld [vmem:[#allocation7 + $0x150] sm:$0xff] }
 0x124   :  { %2766 = vmatprep.subr.bf16.mxu0 %v12016_v61  ;;  %2985 = vmatprep.subr.bf16.mxu1 %v12018_v62  ;;  %v174_v60 = vld [vmem:[#allocation7 + $0x170] sm:$0xff]  ;;  %v171_v62 = vld [vmem:[#allocation7 + $0x158] sm:$0xff] }
 0x125   :  { %v13405_v61 = vld [vmem:[#allocation4 + $0x70] ss:$24 sps:$4 sm:$0xff]   ;;  %v11700_v2 = vcombine.high %v170_v59, %v174_v60  ;;  %v11699_v9 = vcombine.low %v170_v59, %v174_v60  ;;  %v11701_v10 = vcombine.low %v171_v62, %v175_v63 }
 0x127   :  { %2767 = vmatpush1.bf16.msra.mxu0 %v12015_v3  ;;  %2986 = vmatpush1.bf16.msra.mxu1 %v12017_v4  ;;  %v11702_v3 = vcombine.high %v171_v62, %v175_v63  ;;  %v13406_v4 = vld [vmem:[#allocation4 + $0xa4] ss:$24 sps:$4 sm:$0xff]   ;;  %v234_v63 = vld [vmem:[#allocation7 + $0x350] sm:$0xff] }
 0x128   :  { %2768 = vmatprep.subr.bf16.mxu0 %v12024_v5  ;;  %2987 = vmatprep.subr.bf16.mxu1 %v12026_v6  ;;  %v178_v5 = vld [vmem:[#allocation7 + $0x190] sm:$0xff] }
 0x129   :  { %v182_v6 = vld [vmem:[#allocation7 + $0x1b0] sm:$0xff] }
 0x12a   :  { %v11707_v18 = vcombine.low %v178_v5, %v182_v6 }
 0x12b   :  { %2769 = vmatpush1.bf16.msra.mxu0 %v12023_v11  ;;  %2988 = vmatpush1.bf16.msra.mxu1 %v12025_v12  ;;  %v11708_v11 = vcombine.high %v178_v5, %v182_v6  ;;  %v11710_v12 = vcombine.high %v179_v7, %v183_v8 }
 0x12c   :  { %2770 = vmatprep.subr.bf16.mxu0 %v12032_v13  ;;  %2989 = vmatprep.subr.bf16.mxu1 %v12034_v14  ;;  %v186_v13 = vld [vmem:[#allocation7 + $0x1d0] sm:$0xff] }
 0x12d   :  { %v190_v14 = vld [vmem:[#allocation7 + $0x1f0] sm:$0xff] }
 0x12e   :  { %v11715_v26 = vcombine.low %v186_v13, %v190_v14 }
 0x12f   :  { %2771 = vmatpush1.bf16.msra.mxu0 %v12031_v19  ;;  %2990 = vmatpush1.bf16.msra.mxu1 %v12033_v20  ;;  %v11709_v19 = vcombine.low %v179_v7, %v183_v8  ;;  %v11716_v20 = vcombine.high %v186_v13, %v190_v14  ;;  %v242_v7 = vld [vmem:[#allocation7 + $0x390] sm:$0xff] }
 0x130   :  { %3032 = vmatprep.subr.bf16.mxu0 %v11660_v21  ;;  %3251 = vmatprep.subr.bf16.mxu1 %v11662_v22  ;;  %v11718_v21 = vcombine.high %v187_v16, %v191_v17  ;;  %v194_v22 = vld [vmem:[#allocation7 + $0x210] sm:$0xff]  ;;  %v251_v17 = vld [vmem:[#allocation7 + $0x3d8] sm:$0xff] }
 0x131   :  { %v11723_v35 = vcombine.low %v194_v22, %v198_v23  ;;  %v246_v8 = vld [vmem:[#allocation7 + $0x3b0] sm:$0xff] }
 0x132   :  { %2773 = vmatmul.mubr.bf16.vlgmr.msra.gmra.mrb[0].mxu0 %v13397_v25  ;;  %2992 = vmatmul.mubr.bf16.vlgmr.msra.gmra.mrb[0].mxu1 %v13397_v25  ;;  %v199_v25 = vld [vmem:[#allocation7 + $0x238] sm:$0xff]  ;;  %v11772_v13 = vcombine.high %v242_v7, %v246_v8  ;;  %v254_v16 = vld [vmem:[#allocation7 + $0x3f0] sm:$0xff] }
 0x133   :  { %3033 = vmatpush1.bf16.msra.mxu0 %v11659_v28  ;;  %3252 = vmatpush1.bf16.msra.mxu1 %v11661_v29  ;;  %v11724_v28 = vcombine.high %v194_v22, %v198_v23  ;;  %v11726_v29 = vcombine.high %v195_v24, %v199_v25  ;;  %v11725_v36 = vcombine.low %v195_v24, %v199_v25  ;;  %v258_v23 = vld [vmem:[#allocation7 + $0x410] sm:$0xff]  ;;  %v259_v25 = vld [vmem:[#allocation7 + $0x418] sm:$0xff] }
 0x134   :  { %3034 = vmatprep.subr.bf16.mxu0 %v11668_v30  ;;  %3253 = vmatprep.subr.bf16.mxu1 %v11670_v31  ;;  %v202_v30 = vld [vmem:[#allocation7 + $0x250] sm:$0xff] }
 0x135   :  { %2782 = vmatprep.mubr.bf16.mxu0 %v13400_v32  ;;  %3001 = vmatprep.mubr.bf16.mxu1 %v13400_v32  ;;  %v206_v31 = vld [vmem:[#allocation7 + $0x270] sm:$0xff]  ;;  %v13569_v32 = vld [vmem:[#allocation4 + $0x4] ss:$24 sps:$4 sm:$0xff]  }
 0x136   :  { %v262_v24 = vld [vmem:[#allocation7 + $0x430] sm:$0xff] }
 0x137   :  { %3035 = vmatpush1.bf16.msra.mxu0 %v11667_v37  ;;  %3254 = vmatpush1.bf16.msra.mxu1 %v11669_v38  ;;  %v11732_v37 = vcombine.high %v202_v30, %v206_v31  ;;  %v11734_v38 = vcombine.high %v203_v33, %v207_v34  ;;  %v267_v33 = vld [vmem:[#allocation7 + $0x458] sm:$0xff] }
 0x138   :  { %3036 = vmatprep.subr.bf16.mxu0 %v11676_v39  ;;  %3255 = vmatprep.subr.bf16.mxu1 %v11678_v40  ;;  %v210_v39 = vld [vmem:[#allocation7 + $0x290] sm:$0xff]  ;;  %v271_v34 = vld [vmem:[#allocation7 + $0x478] sm:$0xff] }
 0x139   :  { %v214_v40 = vld [vmem:[#allocation7 + $0x2b0] sm:$0xff] }
 0x13a   :  { %2783 = vmatmul.mubr.bf16.gmra.mrb[4].mxu0 %v13402_v43  ;;  %3002 = vmatmul.mubr.bf16.gmra.mrb[4].mxu1 %v13402_v43  ;;  %v11731_v43 = vcombine.low %v202_v30, %v206_v31  ;;  %v11740_v45 = vcombine.high %v210_v39, %v214_v40  ;;  %v11739_v51 = vcombine.low %v210_v39, %v214_v40  ;;  %v266_v31 = vld [vmem:[#allocation7 + $0x450] sm:$0xff] }
 0x13b   :  { %3037 = vmatpush1.bf16.msra.mxu0 %v11675_v46  ;;  %3256 = vmatpush1.bf16.msra.mxu1 %v11677_v47  ;;  %v11742_v46 = vcombine.high %v211_v41, %v215_v42  ;;  %v218_v47 = vld [vmem:[#allocation7 + $0x2d0] sm:$0xff]  ;;  %v13570_v41 = vld [vmem:[#allocation4] ss:$24 sps:$4 sm:$0xff]  }
 0x13c   :  { %3038 = vmatprep.subr.bf16.mxu0 %v11684_v48  ;;  %3257 = vmatprep.subr.bf16.mxu1 %v11686_v49  ;;  %v222_v48 = vld [vmem:[#allocation7 + $0x2f0] sm:$0xff]  ;;  %v219_v49 = vld [vmem:[#allocation7 + $0x2d8] sm:$0xff] }
 0x13d   :  { %2792 = vmatprep.mubr.bf16.mxu0 %v13403_v50  ;;  %3011 = vmatprep.mubr.bf16.mxu1 %v13403_v50  ;;  %v223_v50 = vld [vmem:[#allocation7 + $0x2f8] sm:$0xff]  ;;  %v11748_v53 = vcombine.high %v218_v47, %v222_v48  ;;  %v11747_v59 = vcombine.low %v218_v47, %v222_v48  ;;  %v274_v39 = vld [vmem:[#allocation7 + $0x490] sm:$0xff] }
 0x13e   :  { %v11750_v54 = vcombine.high %v219_v49, %v223_v50  ;;  %v11749_v60 = vcombine.low %v219_v49, %v223_v50  ;;  %v278_v40 = vld [vmem:[#allocation7 + $0x4b0] sm:$0xff]  ;;  %v275_v42 = vld [vmem:[#allocation7 + $0x498] sm:$0xff] }
 0x13f   :  { %3039 = vmatpush1.bf16.msra.mxu0 %v11683_v55  ;;  %3258 = vmatpush1.bf16.msra.mxu1 %v11685_v56  ;;  %v226_v55 = vld [vmem:[#allocation7 + $0x310] sm:$0xff] }
 0x140   :  { %3040 = vmatprep.subr.bf16.mxu0 %v11692_v57  ;;  %3259 = vmatprep.subr.bf16.mxu1 %v11694_v58  ;;  %v230_v56 = vld [vmem:[#allocation7 + $0x330] sm:$0xff]  ;;  %v227_v57 = vld [vmem:[#allocation7 + $0x318] sm:$0xff] }
 0x141   :  { %v231_v58 = vld [vmem:[#allocation7 + $0x338] sm:$0xff]  ;;  %v282_v48 = vld [vmem:[#allocation7 + $0x4d0] sm:$0xff] }
 0x142   :  { %2793 = vmatmul.mubr.bf16.gmra.mrb[8].mxu0 %v13405_v61  ;;  %3012 = vmatmul.mubr.bf16.gmra.mrb[8].mxu1 %v13405_v61  ;;  %v11756_v61 = vcombine.high %v226_v55, %v230_v56  ;;  %v11758_v62 = vcombine.high %v227_v57, %v231_v58  ;;  %v286_v49 = vld [vmem:[#allocation7 + $0x4f0] sm:$0xff] }
 0x143   :  { %3041 = vmatpush1.bf16.msra.mxu0 %v11691_v0  ;;  %3260 = vmatpush1.bf16.msra.mxu1 %v11693_v1  ;;  %v238_v0 = vld [vmem:[#allocation7 + $0x370] sm:$0xff]  ;;  %v235_v1 = vld [vmem:[#allocation7 + $0x358] sm:$0xff] }
 0x144   :  { %3042 = vmatprep.subr.bf16.mxu0 %v11700_v2  ;;  %3261 = vmatprep.subr.bf16.mxu1 %v11702_v3  ;;  %v239_v2 = vld [vmem:[#allocation7 + $0x378] sm:$0xff]  ;;  %v11755_v3 = vcombine.low %v226_v55, %v230_v56  ;;  %v11764_v5 = vcombine.high %v234_v63, %v238_v0  ;;  %v13571_v50 = vld [vmem:[#allocation4 + $0x34] ss:$24 sps:$4 sm:$0xff]   ;;  %v11812_v55 = vcombine.high %v282_v48, %v286_v49 }
 0x145   :  { %2802 = vmatprep.mubr.bf16.mxu0 %v13406_v4  ;;  %3021 = vmatprep.mubr.bf16.mxu1 %v13406_v4  ;;  %v11757_v4 = vcombine.low %v227_v57, %v231_v58  ;;  %v11766_v6 = vcombine.high %v235_v1, %v239_v2  ;;  %v290_v57 = vld [vmem:[#allocation7 + $0x510] sm:$0xff] }
 0x146   :  { %v294_v58 = vld [vmem:[#allocation7 + $0x530] sm:$0xff] }
 0x147   :  { %3043 = vmatpush1.bf16.msra.mxu0 %v11699_v9  ;;  %3262 = vmatpush1.bf16.msra.mxu1 %v11701_v10  ;;  %v243_v9 = vld [vmem:[#allocation7 + $0x398] sm:$0xff] }
 0x148   :  { %3044 = vmatprep.subr.bf16.mxu0 %v11708_v11  ;;  %3263 = vmatprep.subr.bf16.mxu1 %v11710_v12  ;;  %v247_v10 = vld [vmem:[#allocation7 + $0x3b8] sm:$0xff]  ;;  %v11763_v11 = vcombine.low %v234_v63, %v238_v0  ;;  %v11765_v12 = vcombine.low %v235_v1, %v239_v2  ;;  %v11820_v0 = vcombine.high %v290_v57, %v294_v58  ;;  %v298_v2 = vld [vmem:[#allocation7 + $0x550] sm:$0xff] }
 0x149   :  { %v11774_v14 = vcombine.high %v243_v9, %v247_v10 }
 0x14a   :  { %2803 = vmatmul.mubr.bf16.gmra.mrb[12].mxu0 %v13408_v15  ;;  %3022 = vmatmul.mubr.bf16.gmra.mrb[12].mxu1 %v13408_v15  ;;  %v250_v15 = vld [vmem:[#allocation7 + $0x3d0] sm:$0xff] }
 0x14b   :  { %3045 = vmatpush1.bf16.msra.mxu0 %v11707_v18  ;;  %3264 = vmatpush1.bf16.msra.mxu1 %v11709_v19  ;;  %v255_v18 = vld [vmem:[#allocation7 + $0x3f8] sm:$0xff]  ;;  %v11771_v19 = vcombine.low %v242_v7, %v246_v8  ;;  %v11819_v7 = vcombine.low %v290_v57, %v294_v58 }
 0x14c   :  { %3046 = vmatprep.subr.bf16.mxu0 %v11716_v20  ;;  %3265 = vmatprep.subr.bf16.mxu1 %v11718_v21  ;;  %v11773_v20 = vcombine.low %v243_v9, %v247_v10  ;;  %v11780_v21 = vcombine.high %v250_v15, %v254_v16  ;;  %v11782_v22 = vcombine.high %v251_v17, %v255_v18  ;;  %v347_v57 = vld [vmem:[#allocation7 + $0x6d8] sm:$0xff] }
 0x14d   :  { %3064 = vmatprep.mubr.bf16.mxu0 %v13569_v32  ;;  %3283 = vmatprep.mubr.bf16.mxu1 %v13569_v32  ;;  %v270_v32 = vld [vmem:[#allocation7 + $0x470] sm:$0xff]  ;;  %v351_v58 = vld [vmem:[#allocation7 + $0x6f8] sm:$0xff] }
 0x14f   :  { %3047 = vmatpush1.bf16.msra.mxu0 %v11715_v26  ;;  %3266 = vmatpush1.bf16.msra.mxu1 %v11717_v27  ;;  %v263_v26 = vld [vmem:[#allocation7 + $0x438] sm:$0xff]  ;;  %v11779_v27 = vcombine.low %v250_v15, %v254_v16 }
 0x150   :  { %3048 = vmatprep.subr.bf16.mxu0 %v11724_v28  ;;  %3267 = vmatprep.subr.bf16.mxu1 %v11726_v29  ;;  %v11781_v28 = vcombine.low %v251_v17, %v255_v18  ;;  %v11788_v29 = vcombine.high %v258_v23, %v262_v24  ;;  %v11790_v30 = vcombine.high %v259_v25, %v263_v26  ;;  %v13574_v15 = vld [vmem:[#allocation4 + $0x60] ss:$24 sps:$4 sm:$0xff]  }
 0x153   :  { %3049 = vmatpush1.bf16.msra.mxu0 %v11723_v35  ;;  %3268 = vmatpush1.bf16.msra.mxu1 %v11725_v36  ;;  %v11787_v35 = vcombine.low %v258_v23, %v262_v24  ;;  %v11789_v36 = vcombine.low %v259_v25, %v263_v26  ;;  %v315_v23 = vld [vmem:[#allocation7 + $0x5d8] sm:$0xff] }
 0x154   :  { %3050 = vmatprep.subr.bf16.mxu0 %v11732_v37  ;;  %3269 = vmatprep.subr.bf16.mxu1 %v11734_v38  ;;  %v11796_v37 = vcombine.high %v266_v31, %v270_v32  ;;  %v11798_v38 = vcombine.high %v267_v33, %v271_v34  ;;  %v319_v24 = vld [vmem:[#allocation7 + $0x5f8] sm:$0xff] }
 0x157   :  { %3051 = vmatpush1.bf16.msra.mxu0 %v11731_v43  ;;  %3270 = vmatpush1.bf16.msra.mxu1 %v11733_v44  ;;  %v279_v43 = vld [vmem:[#allocation7 + $0x4b8] sm:$0xff]  ;;  %v11795_v44 = vcombine.low %v266_v31, %v270_v32 }
 0x158   :  { %3052 = vmatprep.subr.bf16.mxu0 %v11740_v45  ;;  %3271 = vmatprep.subr.bf16.mxu1 %v11742_v46  ;;  %v11797_v45 = vcombine.low %v267_v33, %v271_v34  ;;  %v11804_v46 = vcombine.high %v274_v39, %v278_v40  ;;  %v11806_v47 = vcombine.high %v275_v42, %v279_v43  ;;  %v323_v31 = vld [vmem:[#allocation7 + $0x618] sm:$0xff]  ;;  %v13576_v33 = vld [vmem:[#allocation4 + $0x90] ss:$24 sps:$4 sm:$0xff]  }
 0x159   :  { %v327_v32 = vld [vmem:[#allocation7 + $0x638] sm:$0xff] }
 0x15b   :  { %3053 = vmatpush1.bf16.msra.mxu0 %v11739_v51  ;;  %3272 = vmatpush1.bf16.msra.mxu1 %v11741_v52  ;;  %v283_v51 = vld [vmem:[#allocation7 + $0x4d8] sm:$0xff] }
 0x15c   :  { %3054 = vmatprep.subr.bf16.mxu0 %v11748_v53  ;;  %3273 = vmatprep.subr.bf16.mxu1 %v11750_v54  ;;  %v287_v52 = vld [vmem:[#allocation7 + $0x4f8] sm:$0xff]  ;;  %v11803_v53 = vcombine.low %v274_v39, %v278_v40  ;;  %v11805_v54 = vcombine.low %v275_v42, %v279_v43  ;;  %v334_v39 = vld [vmem:[#allocation7 + $0x670] sm:$0xff]  ;;  %v13577_v40 = vld [vmem:[#allocation4 + $0xc] ss:$24 sps:$4 sm:$0xff]  }
 0x15d   :  { %v11814_v56 = vcombine.high %v283_v51, %v287_v52  ;;  %v11813_v63 = vcombine.low %v283_v51, %v287_v52  ;;  %v335_v42 = vld [vmem:[#allocation7 + $0x678] sm:$0xff] }
 0x15f   :  { %3055 = vmatpush1.bf16.msra.mxu0 %v11747_v59  ;;  %3274 = vmatpush1.bf16.msra.mxu1 %v11749_v60  ;;  %v291_v59 = vld [vmem:[#allocation7 + $0x518] sm:$0xff] }
 0x160   :  { %3056 = vmatprep.subr.bf16.mxu0 %v11756_v61  ;;  %3275 = vmatprep.subr.bf16.mxu1 %v11758_v62  ;;  %v295_v60 = vld [vmem:[#allocation7 + $0x538] sm:$0xff]  ;;  %v13572_v61 = vld [vmem:[#allocation4 + $0x30] ss:$24 sps:$4 sm:$0xff]   ;;  %v11811_v62 = vcombine.low %v282_v48, %v286_v49 }
 0x161   :  { %v11822_v1 = vcombine.high %v291_v59, %v295_v60  ;;  %v11821_v8 = vcombine.low %v291_v59, %v295_v60  ;;  %v342_v48 = vld [vmem:[#allocation7 + $0x6b0] sm:$0xff]  ;;  %v339_v49 = vld [vmem:[#allocation7 + $0x698] sm:$0xff] }
 0x163   :  { %3057 = vmatpush1.bf16.msra.mxu0 %v11755_v3  ;;  %3276 = vmatpush1.bf16.msra.mxu1 %v11757_v4  ;;  %v302_v3 = vld [vmem:[#allocation7 + $0x570] sm:$0xff]  ;;  %v13573_v4 = vld [vmem:[#allocation4 + $0x64] ss:$24 sps:$4 sm:$0xff]  }
 0x164   :  { %3058 = vmatprep.subr.bf16.mxu0 %v11764_v5  ;;  %3277 = vmatprep.subr.bf16.mxu1 %v11766_v6  ;;  %v299_v5 = vld [vmem:[#allocation7 + $0x558] sm:$0xff]  ;;  %v11828_v9 = vcombine.high %v298_v2, %v302_v3  ;;  %v11827_v16 = vcombine.low %v298_v2, %v302_v3 }
 0x165   :  { %v303_v6 = vld [vmem:[#allocation7 + $0x578] sm:$0xff] }
 0x166   :  { %v11830_v10 = vcombine.high %v299_v5, %v303_v6  ;;  %v11829_v17 = vcombine.low %v299_v5, %v303_v6  ;;  %v359_v2 = vld [vmem:[#allocation7 + $0x738] sm:$0xff] }
 0x167   :  { %3059 = vmatpush1.bf16.msra.mxu0 %v11763_v11  ;;  %3278 = vmatpush1.bf16.msra.mxu1 %v11765_v12  ;;  %v306_v11 = vld [vmem:[#allocation7 + $0x590] sm:$0xff] }
 0x168   :  { %3060 = vmatprep.subr.bf16.mxu0 %v11772_v13  ;;  %3279 = vmatprep.subr.bf16.mxu1 %v11774_v14  ;;  %v310_v12 = vld [vmem:[#allocation7 + $0x5b0] sm:$0xff]  ;;  %v307_v13 = vld [vmem:[#allocation7 + $0x598] sm:$0xff] }
 0x169   :  { %v311_v14 = vld [vmem:[#allocation7 + $0x5b8] sm:$0xff]  ;;  %v11836_v18 = vcombine.high %v306_v11, %v310_v12  ;;  %v11835_v25 = vcombine.low %v306_v11, %v310_v12 }
 0x16a   :  { %v11837_v26 = vcombine.low %v307_v13, %v311_v14 }
 0x16b   :  { %3061 = vmatpush1.bf16.msra.mxu0 %v11771_v19  ;;  %3280 = vmatpush1.bf16.msra.mxu1 %v11773_v20  ;;  %v11838_v19 = vcombine.high %v307_v13, %v311_v14  ;;  %v314_v20 = vld [vmem:[#allocation7 + $0x5d0] sm:$0xff] }
 0x16c   :  { %3062 = vmatprep.subr.bf16.mxu0 %v11780_v21  ;;  %3281 = vmatprep.subr.bf16.mxu1 %v11782_v22  ;;  %v318_v21 = vld [vmem:[#allocation7 + $0x5f0] sm:$0xff] }
 0x16d   :  { %v13575_v22 = vld [vmem:[#allocation4 + $0x94] ss:$24 sps:$4 sm:$0xff]   ;;  %v11843_v34 = vcombine.low %v314_v20, %v318_v21 }
 0x16f   :  { %3063 = vmatpush1.bf16.msra.mxu0 %v11779_v27  ;;  %3282 = vmatpush1.bf16.msra.mxu1 %v11781_v28  ;;  %v11844_v27 = vcombine.high %v314_v20, %v318_v21  ;;  %v11846_v28 = vcombine.high %v315_v23, %v319_v24 }
 0x170   :  { %3105 = vmatprep.subr.bf16.mxu0 %v11788_v29  ;;  %3324 = vmatprep.subr.bf16.mxu1 %v11790_v30  ;;  %v322_v29 = vld [vmem:[#allocation7 + $0x610] sm:$0xff] }
 0x171   :  { %v326_v30 = vld [vmem:[#allocation7 + $0x630] sm:$0xff] }
 0x172   :  { %3065 = vmatmul.mubr.bf16.vlgmr.msra.gmra.mrb[16].mxu0 %v13570_v41  ;;  %3284 = vmatmul.mubr.bf16.vlgmr.msra.gmra.mrb[16].mxu1 %v13570_v41  ;;  %v331_v41 = vld [vmem:[#allocation7 + $0x658] sm:$0xff]  ;;  %v11851_v43 = vcombine.low %v322_v29, %v326_v30 }
 0x173   :  { %3106 = vmatpush1.bf16.msra.mxu0 %v11787_v35  ;;  %3325 = vmatpush1.bf16.msra.mxu1 %v11789_v36  ;;  %v11845_v35 = vcombine.low %v315_v23, %v319_v24  ;;  %v11852_v36 = vcombine.high %v322_v29, %v326_v30  ;;  %v11861_v52 = vcombine.low %v331_v41, %v335_v42  ;;  %v378_v23 = vld [vmem:[#allocation7 + $0x7d0] sm:$0xff] }
 0x174   :  { %3107 = vmatprep.subr.bf16.mxu0 %v11796_v37  ;;  %3326 = vmatprep.subr.bf16.mxu1 %v11798_v38  ;;  %v11854_v37 = vcombine.high %v323_v31, %v327_v32  ;;  %v330_v38 = vld [vmem:[#allocation7 + $0x650] sm:$0xff] }
 0x175   :  { %3074 = vmatprep.mubr.bf16.mxu0 %v13571_v50  ;;  %3293 = vmatprep.mubr.bf16.mxu1 %v13571_v50  ;;  %v343_v50 = vld [vmem:[#allocation7 + $0x6b8] sm:$0xff]  ;;  %v11859_v51 = vcombine.low %v330_v38, %v334_v39  ;;  %v382_v24 = vld [vmem:[#allocation7 + $0x7f0] sm:$0xff] }
 0x176   :  { %v11869_v60 = vcombine.low %v339_v49, %v343_v50  ;;  %v11908_v29 = vcombine.high %v378_v23, %v382_v24 }
 0x177   :  { %3108 = vmatpush1.bf16.msra.mxu0 %v11795_v44  ;;  %3327 = vmatpush1.bf16.msra.mxu1 %v11797_v45  ;;  %v11853_v44 = vcombine.low %v323_v31, %v327_v32  ;;  %v11860_v45 = vcombine.high %v330_v38, %v334_v39  ;;  %v386_v31 = vld [vmem:[#allocation7 + $0x810] sm:$0xff] }
 0x178   :  { %3109 = vmatprep.subr.bf16.mxu0 %v11804_v46  ;;  %3328 = vmatprep.subr.bf16.mxu1 %v11806_v47  ;;  %v11862_v46 = vcombine.high %v331_v41, %v335_v42  ;;  %v338_v47 = vld [vmem:[#allocation7 + $0x690] sm:$0xff]  ;;  %v395_v41 = vld [vmem:[#allocation7 + $0x858] sm:$0xff] }
 0x179   :  { %v11867_v59 = vcombine.low %v338_v47, %v342_v48  ;;  %v390_v32 = vld [vmem:[#allocation7 + $0x830] sm:$0xff]  ;;  %v399_v42 = vld [vmem:[#allocation7 + $0x878] sm:$0xff] }
 0x17a   :  { %3075 = vmatmul.mubr.bf16.gmra.mrb[20].mxu0 %v13572_v61  ;;  %3294 = vmatmul.mubr.bf16.gmra.mrb[20].mxu1 %v13572_v61  ;;  %v394_v39 = vld [vmem:[#allocation7 + $0x850] sm:$0xff] }
 0x17b   :  { %3110 = vmatpush1.bf16.msra.mxu0 %v11803_v53  ;;  %3329 = vmatpush1.bf16.msra.mxu1 %v11805_v54  ;;  %v11868_v53 = vcombine.high %v338_v47, %v342_v48  ;;  %v11870_v54 = vcombine.high %v339_v49, %v343_v50  ;;  %v402_v47 = vld [vmem:[#allocation7 + $0x890] sm:$0xff]  ;;  %v13578_v49 = vld [vmem:[#allocation4 + $0x8] ss:$24 sps:$4 sm:$0xff]   ;;  %v403_v50 = vld [vmem:[#allocation7 + $0x898] sm:$0xff] }
 0x17c   :  { %3111 = vmatprep.subr.bf16.mxu0 %v11812_v55  ;;  %3330 = vmatprep.subr.bf16.mxu1 %v11814_v56  ;;  %v346_v55 = vld [vmem:[#allocation7 + $0x6d0] sm:$0xff] }
 0x17d   :  { %3084 = vmatprep.mubr.bf16.mxu0 %v13573_v4  ;;  %3303 = vmatprep.mubr.bf16.mxu1 %v13573_v4  ;;  %v350_v56 = vld [vmem:[#allocation7 + $0x6f0] sm:$0xff]  ;;  %v11877_v4 = vcombine.low %v347_v57, %v351_v58 }
 0x17e   :  { %v11876_v61 = vcombine.high %v346_v55, %v350_v56  ;;  %v11875_v3 = vcombine.low %v346_v55, %v350_v56  ;;  %v406_v48 = vld [vmem:[#allocation7 + $0x8b0] sm:$0xff] }
 0x17f   :  { %3112 = vmatpush1.bf16.msra.mxu0 %v11811_v62  ;;  %3331 = vmatpush1.bf16.msra.mxu1 %v11813_v63  ;;  %v11878_v62 = vcombine.high %v347_v57, %v351_v58  ;;  %v354_v63 = vld [vmem:[#allocation7 + $0x710] sm:$0xff] }
 0x180   :  { %3113 = vmatprep.subr.bf16.mxu0 %v11820_v0  ;;  %3332 = vmatprep.subr.bf16.mxu1 %v11822_v1  ;;  %v358_v0 = vld [vmem:[#allocation7 + $0x730] sm:$0xff]  ;;  %v355_v1 = vld [vmem:[#allocation7 + $0x718] sm:$0xff] }
 0x181   :  { %v11884_v5 = vcombine.high %v354_v63, %v358_v0  ;;  %v11886_v6 = vcombine.high %v355_v1, %v359_v2  ;;  %v11883_v11 = vcombine.low %v354_v63, %v358_v0  ;;  %v11885_v12 = vcombine.low %v355_v1, %v359_v2  ;;  %v410_v56 = vld [vmem:[#allocation7 + $0x8d0] sm:$0xff] }
 0x182   :  { %3085 = vmatmul.mubr.bf16.gmra.mrb[24].mxu0 %v13574_v15  ;;  %3304 = vmatmul.mubr.bf16.gmra.mrb[24].mxu1 %v13574_v15  ;;  %v370_v15 = vld [vmem:[#allocation7 + $0x790] sm:$0xff] }
 0x183   :  { %3114 = vmatpush1.bf16.msra.mxu0 %v11819_v7  ;;  %3333 = vmatpush1.bf16.msra.mxu1 %v11821_v8  ;;  %v362_v7 = vld [vmem:[#allocation7 + $0x750] sm:$0xff] }
 0x184   :  { %3115 = vmatprep.subr.bf16.mxu0 %v11828_v9  ;;  %3334 = vmatprep.subr.bf16.mxu1 %v11830_v10  ;;  %v366_v8 = vld [vmem:[#allocation7 + $0x770] sm:$0xff]  ;;  %v363_v9 = vld [vmem:[#allocation7 + $0x758] sm:$0xff] }
 0x185   :  { %3094 = vmatprep.mubr.bf16.mxu0 %v13575_v22  ;;  %3313 = vmatprep.mubr.bf16.mxu1 %v13575_v22  ;;  %v367_v10 = vld [vmem:[#allocation7 + $0x778] sm:$0xff]  ;;  %v11892_v13 = vcombine.high %v362_v7, %v366_v8  ;;  %v414_v57 = vld [vmem:[#allocation7 + $0x8f0] sm:$0xff] }
 0x186   :  { %v11894_v14 = vcombine.high %v363_v9, %v367_v10  ;;  %v11893_v20 = vcombine.low %v363_v9, %v367_v10  ;;  %v13579_v58 = vld [vmem:[#allocation4 + $0x3c] ss:$24 sps:$4 sm:$0xff]   ;;  %v11940_v63 = vcombine.high %v410_v56, %v414_v57 }
 0x187   :  { %3116 = vmatpush1.bf16.msra.mxu0 %v11827_v16  ;;  %3335 = vmatpush1.bf16.msra.mxu1 %v11829_v17  ;;  %v374_v16 = vld [vmem:[#allocation7 + $0x7b0] sm:$0xff]  ;;  %v371_v17 = vld [vmem:[#allocation7 + $0x798] sm:$0xff] }
 0x188   :  { %3117 = vmatprep.subr.bf16.mxu0 %v11836_v18  ;;  %3336 = vmatprep.subr.bf16.mxu1 %v11838_v19  ;;  %v375_v18 = vld [vmem:[#allocation7 + $0x7b8] sm:$0xff]  ;;  %v11891_v19 = vcombine.low %v362_v7, %v366_v8  ;;  %v11900_v21 = vcombine.high %v370_v15, %v374_v16  ;;  %v418_v1 = vld [vmem:[#allocation7 + $0x910] sm:$0xff] }
 0x189   :  { %v11902_v22 = vcombine.high %v371_v17, %v375_v18  ;;  %v422_v2 = vld [vmem:[#allocation7 + $0x930] sm:$0xff] }
 0x18a   :  { %3095 = vmatmul.mubr.bf16.gmra.mrb[28].mxu0 %v13576_v33  ;;  %3314 = vmatmul.mubr.bf16.gmra.mrb[28].mxu1 %v13576_v33  ;;  %v387_v33 = vld [vmem:[#allocation7 + $0x818] sm:$0xff]  ;;  %v11948_v8 = vcombine.high %v418_v1, %v422_v2  ;;  %v426_v10 = vld [vmem:[#allocation7 + $0x950] sm:$0xff] }
 0x18b   :  { %3118 = vmatpush1.bf16.msra.mxu0 %v11835_v25  ;;  %3337 = vmatpush1.bf16.msra.mxu1 %v11837_v26  ;;  %v379_v25 = vld [vmem:[#allocation7 + $0x7d8] sm:$0xff] }
 0x18c   :  { %3119 = vmatprep.subr.bf16.mxu0 %v11844_v27  ;;  %3338 = vmatprep.subr.bf16.mxu1 %v11846_v28  ;;  %v383_v26 = vld [vmem:[#allocation7 + $0x7f8] sm:$0xff]  ;;  %v11899_v27 = vcombine.low %v370_v15, %v374_v16  ;;  %v11901_v28 = vcombine.low %v371_v17, %v375_v18  ;;  %v11947_v15 = vcombine.low %v418_v1, %v422_v2 }
 0x18d   :  { %3137 = vmatprep.mubr.bf16.mxu0 %v13577_v40  ;;  %3356 = vmatprep.mubr.bf16.mxu1 %v13577_v40  ;;  %v11910_v30 = vcombine.high %v379_v25, %v383_v26  ;;  %v398_v40 = vld [vmem:[#allocation7 + $0x870] sm:$0xff]  ;;  %v475_v1 = vld [vmem:[#allocation7 + $0xad8] sm:$0xff] }
 0x18e   :  { %v479_v2 = vld [vmem:[#allocation7 + $0xaf8] sm:$0xff] }
 0x18f   :  { %3120 = vmatpush1.bf16.msra.mxu0 %v11843_v34  ;;  %3339 = vmatpush1.bf16.msra.mxu1 %v11845_v35  ;;  %v391_v34 = vld [vmem:[#allocation7 + $0x838] sm:$0xff]  ;;  %v11907_v35 = vcombine.low %v378_v23, %v382_v24  ;;  %v13582_v23 = vld [vmem:[#allocation4 + $0x68] ss:$24 sps:$4 sm:$0xff]  }
 0x190   :  { %3121 = vmatprep.subr.bf16.mxu0 %v11852_v36  ;;  %3340 = vmatprep.subr.bf16.mxu1 %v11854_v37  ;;  %v11909_v36 = vcombine.low %v379_v25, %v383_v26  ;;  %v11916_v37 = vcombine.high %v386_v31, %v390_v32  ;;  %v11918_v38 = vcombine.high %v387_v33, %v391_v34 }
 0x193   :  { %3122 = vmatpush1.bf16.msra.mxu0 %v11851_v43  ;;  %3341 = vmatpush1.bf16.msra.mxu1 %v11853_v44  ;;  %v11915_v43 = vcombine.low %v386_v31, %v390_v32  ;;  %v11917_v44 = vcombine.low %v387_v33, %v391_v34  ;;  %v443_v31 = vld [vmem:[#allocation7 + $0x9d8] sm:$0xff] }
 0x194   :  { %3123 = vmatprep.subr.bf16.mxu0 %v11860_v45  ;;  %3342 = vmatprep.subr.bf16.mxu1 %v11862_v46  ;;  %v11924_v45 = vcombine.high %v394_v39, %v398_v40  ;;  %v11926_v46 = vcombine.high %v395_v41, %v399_v42  ;;  %v447_v32 = vld [vmem:[#allocation7 + $0x9f8] sm:$0xff] }
 0x197   :  { %3124 = vmatpush1.bf16.msra.mxu0 %v11859_v51  ;;  %3343 = vmatpush1.bf16.msra.mxu1 %v11861_v52  ;;  %v407_v51 = vld [vmem:[#allocation7 + $0x8b8] sm:$0xff]  ;;  %v11923_v52 = vcombine.low %v394_v39, %v398_v40 }
 0x198   :  { %3125 = vmatprep.subr.bf16.mxu0 %v11868_v53  ;;  %3344 = vmatprep.subr.bf16.mxu1 %v11870_v54  ;;  %v11925_v53 = vcombine.low %v395_v41, %v399_v42  ;;  %v11932_v54 = vcombine.high %v402_v47, %v406_v48  ;;  %v11934_v55 = vcombine.high %v403_v50, %v407_v51  ;;  %v451_v39 = vld [vmem:[#allocation7 + $0xa18] sm:$0xff] }
 0x199   :  { %v455_v40 = vld [vmem:[#allocation7 + $0xa38] sm:$0xff] }
 0x19a   :  { %v13584_v41 = vld [vmem:[#allocation4 + $0x98] ss:$24 sps:$4 sm:$0xff]  }
 0x19b   :  { %3126 = vmatpush1.bf16.msra.mxu0 %v11867_v59  ;;  %3345 = vmatpush1.bf16.msra.mxu1 %v11869_v60  ;;  %v411_v59 = vld [vmem:[#allocation7 + $0x8d8] sm:$0xff] }
 0x19c   :  { %3127 = vmatprep.subr.bf16.mxu0 %v11876_v61  ;;  %3346 = vmatprep.subr.bf16.mxu1 %v11878_v62  ;;  %v415_v60 = vld [vmem:[#allocation7 + $0x8f8] sm:$0xff]  ;;  %v11931_v61 = vcombine.low %v402_v47, %v406_v48  ;;  %v11933_v62 = vcombine.low %v403_v50, %v407_v51  ;;  %v462_v47 = vld [vmem:[#allocation7 + $0xa70] sm:$0xff] }
 0x19d   :  { %v11942_v0 = vcombine.high %v411_v59, %v415_v60  ;;  %v11941_v7 = vcombine.low %v411_v59, %v415_v60  ;;  %v13585_v48 = vld [vmem:[#allocation4 + $0x14] ss:$24 sps:$4 sm:$0xff]   ;;  %v463_v50 = vld [vmem:[#allocation7 + $0xa78] sm:$0xff] }
 0x19f   :  { %3128 = vmatpush1.bf16.msra.mxu0 %v11875_v3  ;;  %3347 = vmatpush1.bf16.msra.mxu1 %v11877_v4  ;;  %v419_v3 = vld [vmem:[#allocation7 + $0x918] sm:$0xff] }
 0x1a0   :  { %3129 = vmatprep.subr.bf16.mxu0 %v11884_v5  ;;  %3348 = vmatprep.subr.bf16.mxu1 %v11886_v6  ;;  %v423_v4 = vld [vmem:[#allocation7 + $0x938] sm:$0xff]  ;;  %v11939_v6 = vcombine.low %v410_v56, %v414_v57  ;;  %v470_v56 = vld [vmem:[#allocation7 + $0xab0] sm:$0xff] }
 0x1a1   :  { %v13580_v5 = vld [vmem:[#allocation4 + $0x38] ss:$24 sps:$4 sm:$0xff]   ;;  %v11950_v9 = vcombine.high %v419_v3, %v423_v4  ;;  %v11949_v16 = vcombine.low %v419_v3, %v423_v4 }
 0x1a2   :  { %v467_v57 = vld [vmem:[#allocation7 + $0xa98] sm:$0xff] }
 0x1a3   :  { %3130 = vmatpush1.bf16.msra.mxu0 %v11883_v11  ;;  %3349 = vmatpush1.bf16.msra.mxu1 %v11885_v12  ;;  %v430_v11 = vld [vmem:[#allocation7 + $0x970] sm:$0xff]  ;;  %v13581_v12 = vld [vmem:[#allocation4 + $0x6c] ss:$24 sps:$4 sm:$0xff]  }
 0x1a4   :  { %3131 = vmatprep.subr.bf16.mxu0 %v11892_v13  ;;  %3350 = vmatprep.subr.bf16.mxu1 %v11894_v14  ;;  %v427_v13 = vld [vmem:[#allocation7 + $0x958] sm:$0xff]  ;;  %v11956_v17 = vcombine.high %v426_v10, %v430_v11  ;;  %v11955_v24 = vcombine.low %v426_v10, %v430_v11 }
 0x1a5   :  { %v431_v14 = vld [vmem:[#allocation7 + $0x978] sm:$0xff] }
 0x1a6   :  { %v11958_v18 = vcombine.high %v427_v13, %v431_v14  ;;  %v11957_v25 = vcombine.low %v427_v13, %v431_v14  ;;  %v487_v10 = vld [vmem:[#allocation7 + $0xb38] sm:$0xff] }
 0x1a7   :  { %3132 = vmatpush1.bf16.msra.mxu0 %v11891_v19  ;;  %3351 = vmatpush1.bf16.msra.mxu1 %v11893_v20  ;;  %v434_v19 = vld [vmem:[#allocation7 + $0x990] sm:$0xff] }
 0x1a8   :  { %3133 = vmatprep.subr.bf16.mxu0 %v11900_v21  ;;  %3352 = vmatprep.subr.bf16.mxu1 %v11902_v22  ;;  %v438_v20 = vld [vmem:[#allocation7 + $0x9b0] sm:$0xff]  ;;  %v435_v21 = vld [vmem:[#allocation7 + $0x998] sm:$0xff] }
 0x1a9   :  { %v439_v22 = vld [vmem:[#allocation7 + $0x9b8] sm:$0xff]  ;;  %v11964_v26 = vcombine.high %v434_v19, %v438_v20  ;;  %v11963_v33 = vcombine.low %v434_v19, %v438_v20 }
 0x1aa   :  { %v11965_v34 = vcombine.low %v435_v21, %v439_v22 }
 0x1ab   :  { %3134 = vmatpush1.bf16.msra.mxu0 %v11899_v27  ;;  %3353 = vmatpush1.bf16.msra.mxu1 %v11901_v28  ;;  %v11966_v27 = vcombine.high %v435_v21, %v439_v22  ;;  %v442_v28 = vld [vmem:[#allocation7 + $0x9d0] sm:$0xff] }
 0x1ac   :  { %3135 = vmatprep.subr.bf16.mxu0 %v11908_v29  ;;  %3354 = vmatprep.subr.bf16.mxu1 %v11910_v30  ;;  %v446_v29 = vld [vmem:[#allocation7 + $0x9f0] sm:$0xff] }
 0x1ad   :  { %v13583_v30 = vld [vmem:[#allocation4 + $0x9c] ss:$24 sps:$4 sm:$0xff]   ;;  %v11971_v42 = vcombine.low %v442_v28, %v446_v29 }
 0x1af   :  { %3136 = vmatpush1.bf16.msra.mxu0 %v11907_v35  ;;  %3355 = vmatpush1.bf16.msra.mxu1 %v11909_v36  ;;  %v11972_v35 = vcombine.high %v442_v28, %v446_v29  ;;  %v11974_v36 = vcombine.high %v443_v31, %v447_v32 }
 0x1b0   :  { %3178 = vmatprep.subr.bf16.mxu0 %v11916_v37  ;;  %3397 = vmatprep.subr.bf16.mxu1 %v11918_v38  ;;  %v450_v37 = vld [vmem:[#allocation7 + $0xa10] sm:$0xff] }
 0x1b1   :  { %v454_v38 = vld [vmem:[#allocation7 + $0xa30] sm:$0xff] }
 0x1b2   :  { %3138 = vmatmul.mubr.bf16.vlgmr.msra.gmra.mrb[16].mxu0 %v13578_v49  ;;  %3357 = vmatmul.mubr.bf16.vlgmr.msra.gmra.mrb[16].mxu1 %v13578_v49  ;;  %v459_v49 = vld [vmem:[#allocation7 + $0xa58] sm:$0xff]  ;;  %v11979_v51 = vcombine.low %v450_v37, %v454_v38 }
 0x1b3   :  { %3179 = vmatpush1.bf16.msra.mxu0 %v11915_v43  ;;  %3398 = vmatpush1.bf16.msra.mxu1 %v11917_v44  ;;  %v11973_v43 = vcombine.low %v443_v31, %v447_v32  ;;  %v11980_v44 = vcombine.high %v450_v37, %v454_v38  ;;  %v11989_v60 = vcombine.low %v459_v49, %v463_v50  ;;  %v506_v31 = vld [vmem:[#allocation7 + $0xbd0] sm:$0xff] }
 0x1b4   :  { %3180 = vmatprep.subr.bf16.mxu0 %v11924_v45  ;;  %3399 = vmatprep.subr.bf16.mxu1 %v11926_v46  ;;  %v11982_v45 = vcombine.high %v451_v39, %v455_v40  ;;  %v458_v46 = vld [vmem:[#allocation7 + $0xa50] sm:$0xff] }
 0x1b5   :  { %3147 = vmatprep.mubr.bf16.mxu0 %v13579_v58  ;;  %3366 = vmatprep.mubr.bf16.mxu1 %v13579_v58  ;;  %v471_v58 = vld [vmem:[#allocation7 + $0xab8] sm:$0xff]  ;;  %v11987_v59 = vcombine.low %v458_v46, %v462_v47  ;;  %v510_v32 = vld [vmem:[#allocation7 + $0xbf0] sm:$0xff] }
 0x1b6   :  { %v11997_v4 = vcombine.low %v467_v57, %v471_v58  ;;  %v12036_v37 = vcombine.high %v506_v31, %v510_v32 }
 0x1b7   :  { %3181 = vmatpush1.bf16.msra.mxu0 %v11923_v52  ;;  %3400 = vmatpush1.bf16.msra.mxu1 %v11925_v53  ;;  %v11981_v52 = vcombine.low %v451_v39, %v455_v40  ;;  %v11988_v53 = vcombine.high %v458_v46, %v462_v47  ;;  %v3543_v39 = vld [vmem:[#allocation10] sm:$0xff] }
 0x1b8   :  { %3182 = vmatprep.subr.bf16.mxu0 %v11932_v54  ;;  %3401 = vmatprep.subr.bf16.mxu1 %v11934_v55  ;;  %v11990_v54 = vcombine.high %v459_v49, %v463_v50  ;;  %v466_v55 = vld [vmem:[#allocation7 + $0xa90] sm:$0xff]  ;;  %v3547_v40 = vld [vmem:[#allocation10 + $0x20] sm:$0xff] }
 0x1b9   :  { %v11995_v3 = vcombine.low %v466_v55, %v470_v56  ;;  %v3551_v47 = vld [vmem:[#allocation10 + $0x40] sm:$0xff]  ;;  %v3552_v49 = vld [vmem:[#allocation10 + $0x48] sm:$0xff] }
 0x1ba   :  { %3148 = vmatmul.mubr.bf16.gmra.mrb[20].mxu0 %v13580_v5  ;;  %3367 = vmatmul.mubr.bf16.gmra.mrb[20].mxu1 %v13580_v5  ;;  %v3556_v50 = vld [vmem:[#allocation10 + $0x68] sm:$0xff] }
 0x1bb   :  { %3183 = vmatpush1.bf16.msra.mxu0 %v11931_v61  ;;  %3402 = vmatpush1.bf16.msra.mxu1 %v11933_v62  ;;  %v11996_v61 = vcombine.high %v466_v55, %v470_v56  ;;  %v11998_v62 = vcombine.high %v467_v57, %v471_v58  ;;  %v3559_v55 = vld [vmem:[#allocation10 + $0x80] sm:$0xff]  ;;  %v3560_v58 = vld [vmem:[#allocation10 + $0x88] sm:$0xff] }
 0x1bc   :  { %3184 = vmatprep.subr.bf16.mxu0 %v11940_v63  ;;  %3403 = vmatprep.subr.bf16.mxu1 %v11942_v0  ;;  %v474_v63 = vld [vmem:[#allocation7 + $0xad0] sm:$0xff]  ;;  %v3563_v56 = vld [vmem:[#allocation10 + $0xa0] sm:$0xff] }
 0x1bd   :  { %3157 = vmatprep.mubr.bf16.mxu0 %v13581_v12  ;;  %3376 = vmatprep.mubr.bf16.mxu1 %v13581_v12  ;;  %v478_v0 = vld [vmem:[#allocation7 + $0xaf0] sm:$0xff]  ;;  %v12005_v12 = vcombine.low %v475_v1, %v479_v2 }
 0x1be   :  { %v12004_v5 = vcombine.high %v474_v63, %v478_v0  ;;  %v12003_v11 = vcombine.low %v474_v63, %v478_v0  ;;  %v13586_v57 = vld [vmem:[#allocation4 + $0x10] ss:$24 sps:$4 sm:$0xff]   ;;  %v13587_v63 = vld [vmem:[#allocation4 + $0x44] ss:$24 sps:$4 sm:$0xff]  }
 0x1bf   :  { %3185 = vmatpush1.bf16.msra.mxu0 %v11939_v6  ;;  %3404 = vmatpush1.bf16.msra.mxu1 %v11941_v7  ;;  %v12006_v6 = vcombine.high %v475_v1, %v479_v2  ;;  %v482_v7 = vld [vmem:[#allocation7 + $0xb10] sm:$0xff]  ;;  %v3567_v1 = vld [vmem:[#allocation10 + $0xc0] sm:$0xff] }
 0x1c0   :  { %3186 = vmatprep.subr.bf16.mxu0 %v11948_v8  ;;  %3405 = vmatprep.subr.bf16.mxu1 %v11950_v9  ;;  %v486_v8 = vld [vmem:[#allocation7 + $0xb30] sm:$0xff]  ;;  %v483_v9 = vld [vmem:[#allocation7 + $0xb18] sm:$0xff]  ;;  %v3571_v2 = vld [vmem:[#allocation10 + $0xe0] sm:$0xff] }
 0x1c1   :  { %v12012_v13 = vcombine.high %v482_v7, %v486_v8  ;;  %v12014_v14 = vcombine.high %v483_v9, %v487_v10  ;;  %v12011_v19 = vcombine.low %v482_v7, %v486_v8  ;;  %v12013_v20 = vcombine.low %v483_v9, %v487_v10  ;;  %v3575_v9 = vld [vmem:[#allocation10 + $0x100] sm:$0xff] }
 0x1c2   :  { %3158 = vmatmul.mubr.bf16.gmra.mrb[24].mxu0 %v13582_v23  ;;  %3377 = vmatmul.mubr.bf16.gmra.mrb[24].mxu1 %v13582_v23  ;;  %v498_v23 = vld [vmem:[#allocation7 + $0xb90] sm:$0xff]  ;;  %v12064_v7 = vcombine.high %v3567_v1, %v3571_v2  ;;  %v3579_v10 = vld [vmem:[#allocation10 + $0x120] sm:$0xff] }
 0x1c3   :  { %3187 = vmatpush1.bf16.msra.mxu0 %v11947_v15  ;;  %3406 = vmatpush1.bf16.msra.mxu1 %v11949_v16  ;;  %v490_v15 = vld [vmem:[#allocation7 + $0xb50] sm:$0xff] }
 0x1c4   :  { %3188 = vmatprep.subr.bf16.mxu0 %v11956_v17  ;;  %3407 = vmatprep.subr.bf16.mxu1 %v11958_v18  ;;  %v494_v16 = vld [vmem:[#allocation7 + $0xb70] sm:$0xff]  ;;  %v491_v17 = vld [vmem:[#allocation7 + $0xb58] sm:$0xff] }
 0x1c5   :  { %3167 = vmatprep.mubr.bf16.mxu0 %v13583_v30  ;;  %3386 = vmatprep.mubr.bf16.mxu1 %v13583_v30  ;;  %v495_v18 = vld [vmem:[#allocation7 + $0xb78] sm:$0xff]  ;;  %v12020_v21 = vcombine.high %v490_v15, %v494_v16 }
 0x1c6   :  { %v12022_v22 = vcombine.high %v491_v17, %v495_v18  ;;  %v12021_v28 = vcombine.low %v491_v17, %v495_v18  ;;  %v12072_v17 = vcombine.high %v3575_v9, %v3579_v10  ;;  %v13589_v18 = vld [vmem:[#allocation4 + $0x74] ss:$24 sps:$4 sm:$0xff]  }
 0x1c7   :  { %3189 = vmatpush1.bf16.msra.mxu0 %v11955_v24  ;;  %3408 = vmatpush1.bf16.msra.mxu1 %v11957_v25  ;;  %v502_v24 = vld [vmem:[#allocation7 + $0xbb0] sm:$0xff]  ;;  %v499_v25 = vld [vmem:[#allocation7 + $0xb98] sm:$0xff] }
 0x1c8   :  { %3190 = vmatprep.subr.bf16.mxu0 %v11964_v26  ;;  %3409 = vmatprep.subr.bf16.mxu1 %v11966_v27  ;;  %v503_v26 = vld [vmem:[#allocation7 + $0xbb8] sm:$0xff]  ;;  %v12019_v27 = vcombine.low %v490_v15, %v494_v16  ;;  %v12028_v29 = vcombine.high %v498_v23, %v502_v24  ;;  %v12063_v15 = vcombine.low %v3567_v1, %v3571_v2 }
 0x1c9   :  { %v12030_v30 = vcombine.high %v499_v25, %v503_v26 }
 0x1ca   :  { %3168 = vmatmul.mubr.bf16.gmra.mrb[28].mxu0 %v13584_v41  ;;  %3387 = vmatmul.mubr.bf16.gmra.mrb[28].mxu1 %v13584_v41  ;;  %v3544_v41 = vld [vmem:[#allocation10 + $0x8] sm:$0xff] }
 0x1cb   :  { %3191 = vmatpush1.bf16.msra.mxu0 %v11963_v33  ;;  %3410 = vmatpush1.bf16.msra.mxu1 %v11965_v34  ;;  %v507_v33 = vld [vmem:[#allocation7 + $0xbd8] sm:$0xff] }
 0x1cc   :  { %3192 = vmatprep.subr.bf16.mxu0 %v11972_v35  ;;  %3411 = vmatprep.subr.bf16.mxu1 %v11974_v36  ;;  %v511_v34 = vld [vmem:[#allocation7 + $0xbf8] sm:$0xff]  ;;  %v12027_v35 = vcombine.low %v498_v23, %v502_v24  ;;  %v12029_v36 = vcombine.low %v499_v25, %v503_v26  ;;  %v3584_v23 = vld [vmem:[#allocation10 + $0x148] sm:$0xff]  ;;  %v12071_v25 = vcombine.low %v3575_v9, %v3579_v10 }
 0x1cd   :  { %3210 = vmatprep.mubr.bf16.mxu0 %v13585_v48  ;;  %3429 = vmatprep.mubr.bf16.mxu1 %v13585_v48  ;;  %v12038_v38 = vcombine.high %v507_v33, %v511_v34  ;;  %v3555_v48 = vld [vmem:[#allocation10 + $0x60] sm:$0xff]  ;;  %v3588_v24 = vld [vmem:[#allocation10 + $0x168] sm:$0xff] }
 0x1ce   :  { %v3608_v9 = vld [vmem:[#allocation10 + $0x208] sm:$0xff] }
 0x1cf   :  { %3193 = vmatpush1.bf16.msra.mxu0 %v11971_v42  ;;  %3412 = vmatpush1.bf16.msra.mxu1 %v11973_v43  ;;  %v3548_v42 = vld [vmem:[#allocation10 + $0x28] sm:$0xff]  ;;  %v12035_v43 = vcombine.low %v506_v31, %v510_v32 }
 0x1d0   :  { %3194 = vmatprep.subr.bf16.mxu0 %v11980_v44  ;;  %3413 = vmatprep.subr.bf16.mxu1 %v11982_v45  ;;  %v12037_v44 = vcombine.low %v507_v33, %v511_v34  ;;  %v12040_v45 = vcombine.high %v3543_v39, %v3547_v40  ;;  %v12042_v46 = vcombine.high %v3544_v41, %v3548_v42  ;;  %v13590_v31 = vld [vmem:[#allocation4 + $0x70] ss:$24 sps:$4 sm:$0xff]  }
 0x1d1   :  { %v3592_v33 = vld [vmem:[#allocation10 + $0x188] sm:$0xff] }
 0x1d2   :  { %v3596_v34 = vld [vmem:[#allocation10 + $0x1a8] sm:$0xff] }
 0x1d3   :  { %3195 = vmatpush1.bf16.msra.mxu0 %v11979_v51  ;;  %3414 = vmatpush1.bf16.msra.mxu1 %v11981_v52  ;;  %v12039_v51 = vcombine.low %v3543_v39, %v3547_v40  ;;  %v12041_v52 = vcombine.low %v3544_v41, %v3548_v42  ;;  %v12081_v40 = vcombine.low %v3584_v23, %v3588_v24  ;;  %v3612_v10 = vld [vmem:[#allocation10 + $0x228] sm:$0xff] }
 0x1d4   :  { %3196 = vmatprep.subr.bf16.mxu0 %v11988_v53  ;;  %3415 = vmatprep.subr.bf16.mxu1 %v11990_v54  ;;  %v12048_v53 = vcombine.high %v3551_v47, %v3555_v48  ;;  %v12050_v54 = vcombine.high %v3552_v49, %v3556_v50 }
 0x1d7   :  { %3197 = vmatpush1.bf16.msra.mxu0 %v11987_v59  ;;  %3416 = vmatpush1.bf16.msra.mxu1 %v11989_v60  ;;  %v3564_v59 = vld [vmem:[#allocation10 + $0xa8] sm:$0xff]  ;;  %v12047_v60 = vcombine.low %v3551_v47, %v3555_v48 }
 0x1d8   :  { %3198 = vmatprep.subr.bf16.mxu0 %v11996_v61  ;;  %3417 = vmatprep.subr.bf16.mxu1 %v11998_v62  ;;  %v12049_v61 = vcombine.low %v3552_v49, %v3556_v50  ;;  %v12056_v62 = vcombine.high %v3559_v55, %v3563_v56  ;;  %v12058_v0 = vcombine.high %v3560_v58, %v3564_v59  ;;  %v3600_v50 = vld [vmem:[#allocation10 + $0x1c8] sm:$0xff] }
 0x1db   :  { %3199 = vmatpush1.bf16.msra.mxu0 %v11995_v3  ;;  %3418 = vmatpush1.bf16.msra.mxu1 %v11997_v4  ;;  %v3568_v3 = vld [vmem:[#allocation10 + $0xc8] sm:$0xff] }
 0x1dc   :  { %3200 = vmatprep.subr.bf16.mxu0 %v12004_v5  ;;  %3419 = vmatprep.subr.bf16.mxu1 %v12006_v6  ;;  %v3572_v4 = vld [vmem:[#allocation10 + $0xe8] sm:$0xff]  ;;  %v12055_v5 = vcombine.low %v3559_v55, %v3563_v56  ;;  %v12057_v6 = vcombine.low %v3560_v58, %v3564_v59 }
 0x1dd   :  { %v12066_v8 = vcombine.high %v3568_v3, %v3572_v4  ;;  %v12065_v16 = vcombine.low %v3568_v3, %v3572_v4  ;;  %v3607_v4 = vld [vmem:[#allocation10 + $0x200] sm:$0xff] }
 0x1df   :  { %3201 = vmatpush1.bf16.msra.mxu0 %v12003_v11  ;;  %3420 = vmatpush1.bf16.msra.mxu1 %v12005_v12  ;;  %v13588_v11 = vld [vmem:[#allocation4 + $0x40] ss:$24 sps:$4 sm:$0xff]   ;;  %v3576_v12 = vld [vmem:[#allocation10 + $0x108] sm:$0xff] }
 0x1e0   :  { %3202 = vmatprep.subr.bf16.mxu0 %v12012_v13  ;;  %3421 = vmatprep.subr.bf16.mxu1 %v12014_v14  ;;  %v3580_v13 = vld [vmem:[#allocation10 + $0x128] sm:$0xff]  ;;  %v514_v14 = vlaneseq }
 0x1e1   :  { %v12073_v26 = vcombine.low %v3576_v12, %v3580_v13 }
 0x1e3   :  { %3203 = vmatpush1.bf16.msra.mxu0 %v12011_v19  ;;  %3422 = vmatpush1.bf16.msra.mxu1 %v12013_v20  ;;  %v12074_v19 = vcombine.high %v3576_v12, %v3580_v13  ;;  %v3583_v20 = vld [vmem:[#allocation10 + $0x140] sm:$0xff] }
 0x1e4   :  { %3204 = vmatprep.subr.bf16.mxu0 %v12020_v21  ;;  %3423 = vmatprep.subr.bf16.mxu1 %v12022_v22  ;;  %v3587_v21 = vld [vmem:[#allocation10 + $0x160] sm:$0xff]  ;;  %v13883_v22 = vshrl.u32 %v514_v14, 7 }
 0x1e5   :  { %v12079_v39 = vcombine.low %v3583_v20, %v3587_v21 }
 0x1e6   :  { %v516_v32 = vsub.s32 0, %v13883_v22 }
 0x1e7   :  { %3205 = vmatpush1.bf16.msra.mxu0 %v12019_v27  ;;  %3424 = vmatpush1.bf16.msra.mxu1 %v12021_v28  ;;  %v12080_v27 = vcombine.high %v3583_v20, %v3587_v21  ;;  %v12082_v28 = vcombine.high %v3584_v23, %v3588_v24  ;;  %v3616_v21 = vld [vmem:[#allocation10 + $0x248] sm:$0xff] }
 0x1e8   :  { %3206 = vmatprep.subr.bf16.mxu0 %v12028_v29  ;;  %3425 = vmatprep.subr.bf16.mxu1 %v12030_v30  ;;  %v3591_v29 = vld [vmem:[#allocation10 + $0x180] sm:$0xff]  ;;  %v3620_v23 = vld [vmem:[#allocation10 + $0x268] sm:$0xff] }
 0x1e9   :  { %v3595_v30 = vld [vmem:[#allocation10 + $0x1a0] sm:$0xff] }
 0x1ea   :  { %v12088_v41 = vcombine.high %v3591_v29, %v3595_v30  ;;  %v12087_v58 = vcombine.low %v3591_v29, %v3595_v30  ;;  %v12105_v29 = vcombine.low %v3608_v9, %v3612_v10 }
 0x1eb   :  { %3207 = vmatpush1.bf16.msra.mxu0 %v12027_v35  ;;  %3426 = vmatpush1.bf16.msra.mxu1 %v12029_v36  ;;  %v13886_v35 = vld [vmem:[#allocation9] sm:$0xff]  ;;  %v524_v36 = vsub.s32 2, %v13883_v22 }
 0x1ec   :  { %3208 = vmatprep.subr.bf16.mxu0 %v12036_v37  ;;  %3427 = vmatprep.subr.bf16.mxu1 %v12038_v38  ;;  %v520_v37 = vsub.s32 1, %v13883_v22  ;;  %v528_v38 = vsub.s32 3, %v13883_v22  ;;  %v13894_v47 = vrot.slane %v13886_v35, %v516_v32 }
 0x1ee   :  { %v13907_v55 = vrot.slane %v13886_v35, %v528_v38 }
 0x1ef   :  { %3209 = vmatpush1.bf16.msra.mxu0 %v12035_v43  ;;  %3428 = vmatpush1.bf16.msra.mxu1 %v12037_v44  ;;  %v13591_v43 = vld [vmem:[#allocation4 + $0xa4] ss:$24 sps:$4 sm:$0xff]   ;;  %v12090_v44 = vcombine.high %v3592_v33, %v3596_v34 }
 0x1f0   :  { %4311 = vmatprep.subr.bf16.mxu0 %v12040_v45  ;;  %4352 = vmatprep.subr.bf16.mxu1 %v12042_v46  ;;  %v3599_v45 = vld [vmem:[#allocation10 + $0x1c0] sm:$0xff] }
 0x1f1   :  { %v3603_v46 = vld [vmem:[#allocation10 + $0x1e0] sm:$0xff] }
 0x1f2   :  { %3211 = vmatmul.mubr.bf16.vlgmr.msra.gmra.mrb[16].mxu0 %v13586_v57  ;;  %3430 = vmatmul.mubr.bf16.vlgmr.msra.gmra.mrb[16].mxu1 %v13586_v57 }
 0x1f3   :  { %4312 = vmatpush1.bf16.msra.mxu0 %v12039_v51  ;;  %4353 = vmatpush1.bf16.msra.mxu1 %v12041_v52  ;;  %v3604_v51 = vld [vmem:[#allocation10 + $0x1e8] sm:$0xff] }
 0x1f4   :  { %4313 = vmatprep.subr.bf16.mxu0 %v12048_v53  ;;  %4354 = vmatprep.subr.bf16.mxu1 %v12050_v54  ;;  %v3538_v52 = vld [vmem:[#allocation12 + $0x8] sm:$0xff]  ;;  %v13901_v53 = vrot.slane %v13886_v35, %v524_v36  ;;  %v13904_v54 = vrot.slane %v13886_v35, %v520_v37  ;;  %v12098_v3 = vcombine.high %v3600_v50, %v3604_v51 }
 0x1f5   :  { %3220 = vmatprep.mubr.bf16.mxu0 %v13587_v63  ;;  %3439 = vmatprep.mubr.bf16.mxu1 %v13587_v63  ;;  %v12096_v63 = vcombine.high %v3599_v45, %v3603_v46  ;;  %v12097_v12 = vcombine.low %v3600_v50, %v3604_v51  ;;  %v12113_v50 = vcombine.low %v3616_v21, %v3620_v23 }
 0x1f7   :  { %4314 = vmatpush1.bf16.msra.mxu0 %v12047_v60  ;;  %4355 = vmatpush1.bf16.msra.mxu1 %v12049_v61 }
 0x1f8   :  { %4315 = vmatprep.subr.bf16.mxu0 %v12056_v62  ;;  %4356 = vmatprep.subr.bf16.mxu1 %v12058_v0  ;;  %v12089_v62 = vcombine.low %v3592_v33, %v3596_v34 }
 0x1fa   :  { %3221 = vmatmul.mubr.bf16.gmra.mrb[20].mxu0 %v13588_v11  ;;  %3440 = vmatmul.mubr.bf16.gmra.mrb[20].mxu1 %v13588_v11  ;;  %v12095_v11 = vcombine.low %v3599_v45, %v3603_v46  ;;  %v3628_v45 = vld [vmem:[#allocation10 + $0x2a8] sm:$0xff] }
 0x1fb   :  { %4316 = vmatpush1.bf16.msra.mxu0 %v12055_v5  ;;  %4357 = vmatpush1.bf16.msra.mxu1 %v12057_v6  ;;  %v3611_v5 = vld [vmem:[#allocation10 + $0x220] sm:$0xff]  ;;  %v13920_v6 = vpack.c.bf16 %v3538_v52, %v3538_v52 }
 0x1fc   :  { %4317 = vmatprep.subr.bf16.mxu0 %v12064_v7  ;;  %4358 = vmatprep.subr.bf16.mxu1 %v12066_v8  ;;  %v13592_v8 = vld [vmem:[#allocation4 + $0xa0] ss:$24 sps:$4 sm:$0xff]   ;;  %v12104_v13 = vcombine.high %v3607_v4, %v3611_v5 }
 0x1fd   :  { %3230 = vmatprep.mubr.bf16.mxu0 %v13589_v18  ;;  %3449 = vmatprep.mubr.bf16.mxu1 %v13589_v18 }
 0x1ff   :  { %4318 = vmatpush1.bf16.msra.mxu0 %v12063_v15  ;;  %4359 = vmatpush1.bf16.msra.mxu1 %v12065_v16  ;;  %v12106_v15 = vcombine.high %v3608_v9, %v3612_v10  ;;  %v3615_v16 = vld [vmem:[#allocation10 + $0x240] sm:$0xff] }
 0x200   :  { %4319 = vmatprep.subr.bf16.mxu0 %v12072_v17  ;;  %4360 = vmatprep.subr.bf16.mxu1 %v12074_v19  ;;  %v3619_v17 = vld [vmem:[#allocation10 + $0x260] sm:$0xff] }
 0x201   :  { %v12112_v34 = vcombine.high %v3615_v16, %v3619_v17  ;;  %v12111_v46 = vcombine.low %v3615_v16, %v3619_v17 }
 0x202   :  { %3231 = vmatmul.mubr.bf16.gmra.mrb[24].mxu0 %v13590_v31  ;;  %3450 = vmatmul.mubr.bf16.gmra.mrb[24].mxu1 %v13590_v31 }
 0x203   :  { %4320 = vmatpush1.bf16.msra.mxu0 %v12071_v25  ;;  %4361 = vmatpush1.bf16.msra.mxu1 %v12073_v26 }
 0x204   :  { %4321 = vmatprep.subr.bf16.mxu0 %v12080_v27  ;;  %4362 = vmatprep.subr.bf16.mxu1 %v12082_v28  ;;  %v12103_v28 = vcombine.low %v3607_v4, %v3611_v5 }
 0x205   :  { %v13891_v42 = vpop.f32.mrb[0].mxu0  ;;  %3240 = vmatprep.mubr.bf16.mxu0 %v13591_v43  ;;  %v13896_v48 = vpop.f32.mrb[0].mxu1  ;;  %3459 = vmatprep.mubr.bf16.mxu1 %v13591_v43 }
 0x206   :  { %v13898_v49 = vpop.f32.mrb[1].mxu0  ;;  %v13909_v56 = vpop.f32.mrb[1].mxu1 }
 0x207   :  { %v2778_v57 = vpop.f32.mrb[2].mxu0  ;;  %4322 = vmatpush1.bf16.msra.mxu0 %v12079_v39  ;;  %v2997_v60 = vpop.f32.mrb[2].mxu1  ;;  %4363 = vmatpush1.bf16.msra.mxu1 %v12081_v40  ;;  %v12114_v39 = vcombine.high %v3616_v21, %v3620_v23  ;;  %v3623_v40 = vld [vmem:[#allocation10 + $0x280] sm:$0xff] }
 0x208   :  { %v13912_v59 = vadd.f32 %v2778_v57, %v13894_v47  ;;  %v2780_v61 = vpop.f32.mrb[3].mxu0  ;;  %4323 = vmatprep.subr.bf16.mxu0 %v12088_v41  ;;  %v13915_v0 = vadd.f32 %v2997_v60, %v13901_v53  ;;  %v2999_v2 = vpop.f32.mrb[3].mxu1  ;;  %4364 = vmatprep.subr.bf16.mxu1 %v12090_v44  ;;  %v3627_v41 = vld [vmem:[#allocation10 + $0x2a0] sm:$0xff]  ;;  %v3624_v44 = vld [vmem:[#allocation10 + $0x288] sm:$0xff] }
 0x209   :  { %v13918_v1 = vadd.f32 %v2780_v61, %v13904_v54  ;;  %v13923_v7 = vadd.f32 %v2999_v2, %v13907_v55  ;;  %v12120_v51 = vcombine.high %v3623_v40, %v3627_v41  ;;  %v12122_v57 = vcombine.high %v3624_v44, %v3628_v45  ;;  %v3635_v60 = vld [vmem:[#allocation10 + $0x2e0] sm:$0xff]  ;;  %v3632_v2 = vld [vmem:[#allocation10 + $0x2c8] sm:$0xff] }
 0x20a   :  { %16170 = vst [vmem:[#allocation21_spill] sm:$0xff] %v13912_v59  ;;  %16171 = vst [vmem:[#allocation22_spill] sm:$0xff] %v13915_v0  ;;  %3241 = vmatmul.mubr.bf16.gmra.mrb[28].mxu0 %v13592_v8  ;;  %3460 = vmatmul.mubr.bf16.gmra.mrb[28].mxu1 %v13592_v8  ;;  %v12119_v10 = vcombine.low %v3623_v40, %v3627_v41  ;;  %v3639_v23 = vld [vmem:[#allocation10 + $0x300] sm:$0xff] }
 0x20b   :  { %16172 = vst [vmem:[#allocation23_spill] sm:$0xff] %v13918_v1  ;;  %16173 = vst [vmem:[#allocation24_spill] sm:$0xff] %v13923_v7  ;;  %4324 = vmatpush1.bf16.msra.mxu0 %v12087_v58  ;;  %4365 = vmatpush1.bf16.msra.mxu1 %v12089_v62  ;;  %v3631_v58 = vld [vmem:[#allocation10 + $0x2c0] sm:$0xff] }
 0x20c   :  { %4325 = vmatprep.subr.bf16.mxu0 %v12096_v63  ;;  %4366 = vmatprep.subr.bf16.mxu1 %v12098_v3  ;;  %v3636_v3 = vld [vmem:[#allocation10 + $0x2e8] sm:$0xff]  ;;  %v12128_v16 = vcombine.high %v3631_v58, %v3635_v60  ;;  %v3647_v40 = vld [vmem:[#allocation10 + $0x340] sm:$0xff] }
 0x20d   :  { %v2784_v14 = vpop.f32.mrb[4].mxu0  ;;  %4343 = vmatprep.mubr.bf16.mxu0 %v13920_v6  ;;  %v3003_v19 = vpop.f32.mrb[4].mxu1  ;;  %4384 = vmatprep.mubr.bf16.mxu1 %v13920_v6  ;;  %v12130_v21 = vcombine.high %v3632_v2, %v3636_v3  ;;  %v3651_v41 = vld [vmem:[#allocation10 + $0x360] sm:$0xff] }
 0x20e   :  { %v13927_v18 = vadd.f32 %v2784_v14, %v13894_v47  ;;  %v2786_v20 = vpop.f32.mrb[5].mxu0  ;;  %v13931_v24 = vadd.f32 %v3003_v19, %v13901_v53  ;;  %v3005_v26 = vpop.f32.mrb[5].mxu1 }
 0x20f   :  { %v13934_v25 = vadd.f32 %v2786_v20, %v13904_v54  ;;  %v2788_v27 = vpop.f32.mrb[6].mxu0  ;;  %4326 = vmatpush1.bf16.msra.mxu0 %v12095_v11  ;;  %v13937_v30 = vadd.f32 %v3005_v26, %v13907_v55  ;;  %v3007_v32 = vpop.f32.mrb[6].mxu1  ;;  %4367 = vmatpush1.bf16.msra.mxu1 %v12097_v12  ;;  %v12121_v11 = vcombine.low %v3624_v44, %v3628_v45  ;;  %v3643_v26 = vld [vmem:[#allocation10 + $0x320] sm:$0xff] }
 0x210   :  { %16174 = vst [vmem:[#allocation25_spill] sm:$0xff] %v13927_v18  ;;  %16175 = vst [vmem:[#allocation26_spill] sm:$0xff] %v13931_v24  ;;  %v13940_v31 = vadd.f32 %v2788_v27, %v13894_v47  ;;  %v2790_v33 = vpop.f32.mrb[7].mxu0  ;;  %4327 = vmatprep.subr.bf16.mxu0 %v12104_v13  ;;  %v13943_v36 = vadd.f32 %v3007_v32, %v13901_v53  ;;  %v3009_v38 = vpop.f32.mrb[7].mxu1  ;;  %4368 = vmatprep.subr.bf16.mxu1 %v12106_v15 }
 0x211   :  { %16176 = vst [vmem:[#allocation27_spill] sm:$0xff] %v13934_v25  ;;  %16177 = vst [vmem:[#allocation28_spill] sm:$0xff] %v13937_v30  ;;  %v13946_v37 = vadd.f32 %v2790_v33, %v13904_v54  ;;  %v13949_v43 = vadd.f32 %v3009_v38, %v13907_v55  ;;  %v12127_v32 = vcombine.low %v3631_v58, %v3635_v60 }
 0x212   :  { %16178 = vst [vmem:[#allocation29_spill] sm:$0xff] %v13940_v31  ;;  %16179 = vst [vmem:[#allocation30_spill] sm:$0xff] %v13943_v36  ;;  %v12129_v33 = vcombine.low %v3632_v2, %v3636_v3 }
 0x213   :  { %16180 = vst [vmem:[#allocation31_spill] sm:$0xff] %v13946_v37  ;;  %16181 = vst [vmem:[#allocation32_spill] sm:$0xff] %v13949_v43  ;;  %4328 = vmatpush1.bf16.msra.mxu0 %v12103_v28  ;;  %4369 = vmatpush1.bf16.msra.mxu1 %v12105_v29  ;;  %v3640_v28 = vld [vmem:[#allocation10 + $0x308] sm:$0xff] }
 0x214   :  { %4329 = vmatprep.subr.bf16.mxu0 %v12112_v34  ;;  %4370 = vmatprep.subr.bf16.mxu1 %v12114_v39  ;;  %v3644_v29 = vld [vmem:[#allocation10 + $0x328] sm:$0xff]  ;;  %v12136_v34 = vcombine.high %v3639_v23, %v3643_v26 }
 0x215   :  { %v2794_v52 = vpop.f32.mrb[8].mxu0  ;;  %v3013_v62 = vpop.f32.mrb[8].mxu1  ;;  %v12138_v39 = vcombine.high %v3640_v28, %v3644_v29 }
 0x216   :  { %v13952_v61 = vadd.f32 %v2794_v52, %v13894_v47  ;;  %v2796_v63 = vpop.f32.mrb[9].mxu0  ;;  %v13955_v4 = vadd.f32 %v3013_v62, %v13901_v53  ;;  %v3015_v8 = vpop.f32.mrb[9].mxu1  ;;  %v12135_v62 = vcombine.low %v3639_v23, %v3643_v26  ;;  %v3656_v26 = vld [vmem:[#allocation10 + $0x388] sm:$0xff] }
 0x217   :  { %v13958_v5 = vadd.f32 %v2796_v63, %v13904_v54  ;;  %v2798_v9 = vpop.f32.mrb[10].mxu0  ;;  %4330 = vmatpush1.bf16.msra.mxu0 %v12111_v46  ;;  %v13961_v12 = vadd.f32 %v3015_v8, %v13907_v55  ;;  %v3017_v14 = vpop.f32.mrb[10].mxu1  ;;  %4371 = vmatpush1.bf16.msra.mxu1 %v12113_v50  ;;  %v3648_v50 = vld [vmem:[#allocation10 + $0x348] sm:$0xff]  ;;  %v12137_v63 = vcombine.low %v3640_v28, %v3644_v29 }
 0x218   :  { %16182 = vst [vmem:[#allocation33_spill] sm:$0xff] %v13952_v61  ;;  %16183 = vst [vmem:[#allocation34_spill] sm:$0xff] %v13955_v4  ;;  %v13964_v13 = vadd.f32 %v2798_v9, %v13894_v47  ;;  %v2800_v15 = vpop.f32.mrb[11].mxu0  ;;  %4331 = vmatprep.subr.bf16.mxu0 %v12120_v51  ;;  %v13967_v17 = vadd.f32 %v3017_v14, %v13901_v53  ;;  %v3019_v20 = vpop.f32.mrb[11].mxu1  ;;  %4372 = vmatprep.subr.bf16.mxu1 %v12122_v57  ;;  %v3652_v51 = vld [vmem:[#allocation10 + $0x368] sm:$0xff] }
 0x219   :  { %16184 = vst [vmem:[#allocation35_spill] sm:$0xff] %v13958_v5  ;;  %16185 = vst [vmem:[#allocation36_spill] sm:$0xff] %v13961_v12  ;;  %v13970_v19 = vadd.f32 %v2800_v15, %v13904_v54  ;;  %v13973_v27 = vadd.f32 %v3019_v20, %v13907_v55  ;;  %v3655_v20 = vld [vmem:[#allocation10 + $0x380] sm:$0xff]  ;;  %v3660_v28 = vld [vmem:[#allocation10 + $0x3a8] sm:$0xff]  ;;  %v12143_v29 = vcombine.low %v3647_v40, %v3651_v41 }
 0x21a   :  { %16186 = vst [vmem:[#allocation37_spill] sm:$0xff] %v13964_v13  ;;  %16187 = vst [vmem:[#allocation38_spill] sm:$0xff] %v13967_v17 }
 0x21b   :  { %16188 = vst [vmem:[#allocation39_spill] sm:$0xff] %v13970_v19  ;;  %16189 = vst [vmem:[#allocation40_spill] sm:$0xff] %v13973_v27  ;;  %4332 = vmatpush1.bf16.msra.mxu0 %v12119_v10  ;;  %4373 = vmatpush1.bf16.msra.mxu1 %v12121_v11  ;;  %v12144_v10 = vcombine.high %v3647_v40, %v3651_v41  ;;  %v3549_v40 = vld [vmem:[#allocation10 + $0x30] sm:$0xff]  ;;  %v3546_v41 = vld [vmem:[#allocation10 + $0x18] sm:$0xff] }
 0x21c   :  { %4333 = vmatprep.subr.bf16.mxu0 %v12128_v16  ;;  %4374 = vmatprep.subr.bf16.mxu1 %v12130_v21  ;;  %v12146_v16 = vcombine.high %v3648_v50, %v3652_v51  ;;  %v3659_v21 = vld [vmem:[#allocation10 + $0x3a0] sm:$0xff]  ;;  %v4584_v19 = vld [vmem:[#allocation10 + $0x1a8] sm:$0xff] }
 0x21d   :  { %v2804_v38 = vpop.f32.mrb[12].mxu0  ;;  %v3023_v45 = vpop.f32.mrb[12].mxu1 }
 0x21e   :  { %v13976_v44 = vadd.f32 %v2804_v38, %v13894_v47  ;;  %v2806_v46 = vpop.f32.mrb[13].mxu0  ;;  %v13979_v52 = vadd.f32 %v3023_v45, %v13901_v53  ;;  %v3025_v58 = vpop.f32.mrb[13].mxu1  ;;  %v3663_v38 = vld [vmem:[#allocation10 + $0x3c0] sm:$0xff] }
 0x21f   :  { %v13982_v57 = vadd.f32 %v2806_v46, %v13904_v54  ;;  %v2808_v60 = vpop.f32.mrb[14].mxu0  ;;  %4334 = vmatpush1.bf16.msra.mxu0 %v12127_v32  ;;  %v13985_v2 = vadd.f32 %v3025_v58, %v13907_v55  ;;  %v3027_v8 = vpop.f32.mrb[14].mxu1  ;;  %4375 = vmatpush1.bf16.msra.mxu1 %v12129_v33  ;;  %v12145_v32 = vcombine.low %v3648_v50, %v3652_v51  ;;  %v3667_v45 = vld [vmem:[#allocation10 + $0x3e0] sm:$0xff]  ;;  %v3664_v46 = vld [vmem:[#allocation10 + $0x3c8] sm:$0xff] }
 0x220   :  { %16190 = vst [vmem:[#allocation41_spill] sm:$0xff] %v13976_v44  ;;  %16191 = vst [vmem:[#allocation42_spill] sm:$0xff] %v13979_v52  ;;  %v13988_v3 = vadd.f32 %v2808_v60, %v13894_v47  ;;  %v2810_v9 = vpop.f32.mrb[15].mxu0  ;;  %4335 = vmatprep.subr.bf16.mxu0 %v12136_v34  ;;  %v13991_v11 = vadd.f32 %v3027_v8, %v13901_v53  ;;  %v3029_v15 = vpop.f32.mrb[15].mxu1  ;;  %4376 = vmatprep.subr.bf16.mxu1 %v12138_v39  ;;  %v3668_v39 = vld [vmem:[#allocation10 + $0x3e8] sm:$0xff]  ;;  %v3534_v51 = vld [vmem:[#allocation12] sm:$0xff] }
 0x221   :  { %16192 = vst [vmem:[#allocation43_spill] sm:$0xff] %v13982_v57  ;;  %16193 = vst [vmem:[#allocation44_spill] sm:$0xff] %v13985_v2  ;;  %v13994_v14 = vadd.f32 %v2810_v9, %v13904_v54  ;;  %v13997_v23 = vadd.f32 %v3029_v15, %v13907_v55  ;;  %v12152_v33 = vcombine.high %v3655_v20, %v3659_v21  ;;  %v532_v57 = vsub.s32 4, %v13883_v22  ;;  %v4583_v52 = vld [vmem:[#allocation10 + $0x1a0] sm:$0xff]  ;;  %v4580_v44 = vld [vmem:[#allocation10 + $0x188] sm:$0xff] }
 0x222   :  { %16194 = vst [vmem:[#allocation45_spill] sm:$0xff] %v13988_v3  ;;  %16195 = vst [vmem:[#allocation46_spill] sm:$0xff] %v13991_v11  ;;  %v12154_v34 = vcombine.high %v3656_v26, %v3660_v28  ;;  %v12151_v58 = vcombine.low %v3655_v20, %v3659_v21  ;;  %v12153_v60 = vcombine.low %v3656_v26, %v3660_v28  ;;  %v3553_v20 = vld [vmem:[#allocation10 + $0x50] sm:$0xff]  ;;  %v3554_v26 = vld [vmem:[#allocation10 + $0x58] sm:$0xff] }
 0x223   :  { %16196 = vst [vmem:[#allocation47_spill] sm:$0xff] %v13994_v14  ;;  %16197 = vst [vmem:[#allocation48_spill] sm:$0xff] %v13997_v23  ;;  %4336 = vmatpush1.bf16.msra.mxu0 %v12135_v62  ;;  %4377 = vmatpush1.bf16.msra.mxu1 %v12137_v63  ;;  %v12160_v8 = vcombine.high %v3663_v38, %v3667_v45  ;;  %v12162_v9 = vcombine.high %v3664_v46, %v3668_v39  ;;  %v3545_v62 = vld [vmem:[#allocation10 + $0x10] sm:$0xff]  ;;  %v3550_v63 = vld [vmem:[#allocation10 + $0x38] sm:$0xff] }
 0x224   :  { %4337 = vmatprep.subr.bf16.mxu0 %v12144_v10  ;;  %4378 = vmatprep.subr.bf16.mxu1 %v12146_v16  ;;  %v12159_v50 = vcombine.low %v3663_v38, %v3667_v45  ;;  %v12161_v10 = vcombine.low %v3664_v46, %v3668_v39  ;;  %v12044_v15 = vcombine.high %v3545_v62, %v3549_v40  ;;  %v3557_v21 = vld [vmem:[#allocation10 + $0x70] sm:$0xff]  ;;  %v3558_v28 = vld [vmem:[#allocation10 + $0x78] sm:$0xff]  ;;  %v4571_v23 = vld [vmem:[#allocation10 + $0x140] sm:$0xff] }
 0x225   :  { %v12046_v16 = vcombine.high %v3546_v41, %v3550_v63  ;;  %v12054_v38 = vcombine.high %v3554_v26, %v3558_v28  ;;  %v3561_v45 = vld [vmem:[#allocation10 + $0x90] sm:$0xff]  ;;  %v3562_v46 = vld [vmem:[#allocation10 + $0x98] sm:$0xff]  ;;  %v4575_v14 = vld [vmem:[#allocation10 + $0x160] sm:$0xff]  ;;  %v14099_v13 = vcombine.low %v4580_v44, %v4584_v19  ;;  %v14101_v12 = vcombine.high %v4580_v44, %v4584_v19 }
 0x226   :  { %v3566_v39 = vld [vmem:[#allocation10 + $0xb8] sm:$0xff]  ;;  %v4572_v11 = vld [vmem:[#allocation10 + $0x148] sm:$0xff]  ;;  %v14070_v2 = vcombine.low %v4571_v23, %v4575_v14  ;;  %v4587_v19 = vld [vmem:[#allocation10 + $0x1c0] sm:$0xff] }
 0x227   :  { %4338 = vmatpush1.bf16.msra.mxu0 %v12143_v29  ;;  %4379 = vmatpush1.bf16.msra.mxu1 %v12145_v32  ;;  %v13999_v29 = vpack.c.bf16 %v3534_v51, %v3534_v51  ;;  %v12043_v32 = vcombine.low %v3545_v62, %v3549_v40  ;;  %v12062_v62 = vcombine.high %v3562_v46, %v3566_v39  ;;  %v3569_v40 = vld [vmem:[#allocation10 + $0xd0] sm:$0xff]  ;;  %v4576_v3 = vld [vmem:[#allocation10 + $0x168] sm:$0xff]  ;;  %v4591_v44 = vld [vmem:[#allocation10 + $0x1e0] sm:$0xff] }
 0x228   :  { %4339 = vmatprep.subr.bf16.mxu0 %v12152_v33  ;;  %4380 = vmatprep.subr.bf16.mxu1 %v12154_v34  ;;  %v12045_v33 = vcombine.low %v3546_v41, %v3550_v63  ;;  %v12052_v34 = vcombine.high %v3553_v20, %v3557_v21  ;;  %v3573_v41 = vld [vmem:[#allocation10 + $0xf0] sm:$0xff]  ;;  %v3570_v63 = vld [vmem:[#allocation10 + $0xd8] sm:$0xff]  ;;  %v14130_v36 = vcombine.low %v4587_v19, %v4591_v44 }
 0x22b   :  { %4340 = vmatpush1.bf16.msra.mxu0 %v12151_v58  ;;  %4381 = vmatpush1.bf16.msra.mxu1 %v12153_v60  ;;  %v3565_v58 = vld [vmem:[#allocation10 + $0xb0] sm:$0xff]  ;;  %v12051_v60 = vcombine.low %v3553_v20, %v3557_v21 }
 0x22c   :  { %4341 = vmatprep.subr.bf16.mxu0 %v12160_v8  ;;  %4382 = vmatprep.subr.bf16.mxu1 %v12162_v9  ;;  %v12053_v8 = vcombine.low %v3554_v26, %v3558_v28  ;;  %v12060_v9 = vcombine.high %v3561_v45, %v3565_v58  ;;  %v12059_v51 = vcombine.low %v3561_v45, %v3565_v58  ;;  %v3577_v20 = vld [vmem:[#allocation10 + $0x110] sm:$0xff]  ;;  %v3578_v26 = vld [vmem:[#allocation10 + $0x118] sm:$0xff] }
 0x22d   :  { %v3581_v21 = vld [vmem:[#allocation10 + $0x130] sm:$0xff]  ;;  %v3582_v28 = vld [vmem:[#allocation10 + $0x138] sm:$0xff] }
 0x22e   :  { %v3589_v45 = vld [vmem:[#allocation10 + $0x170] sm:$0xff]  ;;  %v3586_v58 = vld [vmem:[#allocation10 + $0x158] sm:$0xff] }
 0x22f   :  { %4342 = vmatpush1.bf16.msra.mxu0 %v12159_v50  ;;  %4383 = vmatpush1.bf16.msra.mxu1 %v12161_v10  ;;  %v3574_v50 = vld [vmem:[#allocation10 + $0xf8] sm:$0xff]  ;;  %v12061_v10 = vcombine.low %v3562_v46, %v3566_v39  ;;  %v12075_v46 = vcombine.low %v3577_v20, %v3581_v21  ;;  %v12077_v39 = vcombine.low %v3578_v26, %v3582_v28 }
 0x230   :  { %4393 = vmatprep.subr.bf16.mxu0 %v12044_v15  ;;  %4434 = vmatprep.subr.bf16.mxu1 %v12046_v16  ;;  %v12068_v15 = vcombine.high %v3569_v40, %v3573_v41  ;;  %v12070_v16 = vcombine.high %v3570_v63, %v3574_v50 }
 0x232   :  { %4344 = vmatmul.mubr.bf16.vlgmr.msra.gmra.mrb[32].mxu0 %v13999_v29  ;;  %4385 = vmatmul.mubr.bf16.vlgmr.msra.gmra.mrb[32].mxu1 %v13999_v29 }
 0x233   :  { %4394 = vmatpush1.bf16.msra.mxu0 %v12043_v32  ;;  %4435 = vmatpush1.bf16.msra.mxu1 %v12045_v33  ;;  %v12067_v32 = vcombine.low %v3569_v40, %v3573_v41  ;;  %v12069_v33 = vcombine.low %v3570_v63, %v3574_v50  ;;  %v3597_v40 = vld [vmem:[#allocation10 + $0x1b0] sm:$0xff]  ;;  %v3594_v41 = vld [vmem:[#allocation10 + $0x198] sm:$0xff] }
 0x234   :  { %4395 = vmatprep.subr.bf16.mxu0 %v12052_v34  ;;  %4436 = vmatprep.subr.bf16.mxu1 %v12054_v38  ;;  %v12076_v34 = vcombine.high %v3577_v20, %v3581_v21  ;;  %v3585_v38 = vld [vmem:[#allocation10 + $0x150] sm:$0xff]  ;;  %v3602_v21 = vld [vmem:[#allocation10 + $0x1d8] sm:$0xff] }
 0x235   :  { %4425 = vmatprep.mubr.bf16.mxu0 %v13920_v6  ;;  %4466 = vmatprep.mubr.bf16.mxu1 %v13920_v6  ;;  %v12078_v6 = vcombine.high %v3578_v26, %v3582_v28  ;;  %v12083_v63 = vcombine.low %v3585_v38, %v3589_v45  ;;  %v3605_v20 = vld [vmem:[#allocation10 + $0x1f0] sm:$0xff] }
 0x237   :  { %4396 = vmatpush1.bf16.msra.mxu0 %v12051_v60  ;;  %4437 = vmatpush1.bf16.msra.mxu1 %v12053_v8  ;;  %v3590_v60 = vld [vmem:[#allocation10 + $0x178] sm:$0xff]  ;;  %v12084_v8 = vcombine.high %v3585_v38, %v3589_v45  ;;  %v3613_v38 = vld [vmem:[#allocation10 + $0x230] sm:$0xff] }
 0x238   :  { %4397 = vmatprep.subr.bf16.mxu0 %v12060_v9  ;;  %4438 = vmatprep.subr.bf16.mxu1 %v12062_v62  ;;  %v12086_v9 = vcombine.high %v3586_v58, %v3590_v60  ;;  %v3593_v62 = vld [vmem:[#allocation10 + $0x190] sm:$0xff]  ;;  %v12085_v50 = vcombine.low %v3586_v58, %v3590_v60  ;;  %v3610_v45 = vld [vmem:[#allocation10 + $0x218] sm:$0xff] }
 0x239   :  { %v12091_v26 = vcombine.low %v3593_v62, %v3597_v40 }
 0x23b   :  { %4398 = vmatpush1.bf16.msra.mxu0 %v12059_v51  ;;  %4439 = vmatpush1.bf16.msra.mxu1 %v12061_v10  ;;  %v3598_v51 = vld [vmem:[#allocation10 + $0x1b8] sm:$0xff]  ;;  %v12092_v10 = vcombine.high %v3593_v62, %v3597_v40  ;;  %v3621_v62 = vld [vmem:[#allocation10 + $0x270] sm:$0xff] }
 0x23c   :  { %4399 = vmatprep.subr.bf16.mxu0 %v12068_v15  ;;  %4440 = vmatprep.subr.bf16.mxu1 %v12070_v16  ;;  %v12094_v15 = vcombine.high %v3594_v41, %v3598_v51  ;;  %v3601_v16 = vld [vmem:[#allocation10 + $0x1d0] sm:$0xff]  ;;  %v12093_v28 = vcombine.low %v3594_v41, %v3598_v51  ;;  %v3618_v40 = vld [vmem:[#allocation10 + $0x258] sm:$0xff] }
 0x23d   :  { %v12099_v58 = vcombine.low %v3601_v16, %v3605_v20 }
 0x23f   :  { %4400 = vmatpush1.bf16.msra.mxu0 %v12067_v32  ;;  %4441 = vmatpush1.bf16.msra.mxu1 %v12069_v33  ;;  %v3606_v32 = vld [vmem:[#allocation10 + $0x1f8] sm:$0xff]  ;;  %v12100_v33 = vcombine.high %v3601_v16, %v3605_v20  ;;  %v3629_v16 = vld [vmem:[#allocation10 + $0x2b0] sm:$0xff] }
 0x240   :  { %4401 = vmatprep.subr.bf16.mxu0 %v12076_v34  ;;  %4442 = vmatprep.subr.bf16.mxu1 %v12078_v6  ;;  %v12102_v34 = vcombine.high %v3602_v21, %v3606_v32  ;;  %v3609_v6 = vld [vmem:[#allocation10 + $0x210] sm:$0xff]  ;;  %v12101_v60 = vcombine.low %v3602_v21, %v3606_v32  ;;  %v3626_v20 = vld [vmem:[#allocation10 + $0x298] sm:$0xff] }
 0x241   :  { %v12107_v41 = vcombine.low %v3609_v6, %v3613_v38 }
 0x243   :  { %4402 = vmatpush1.bf16.msra.mxu0 %v12075_v46  ;;  %4443 = vmatpush1.bf16.msra.mxu1 %v12077_v39  ;;  %v3614_v46 = vld [vmem:[#allocation10 + $0x238] sm:$0xff]  ;;  %v12108_v39 = vcombine.high %v3609_v6, %v3613_v38  ;;  %v3637_v6 = vld [vmem:[#allocation10 + $0x2f0] sm:$0xff] }
 0x244   :  { %4403 = vmatprep.subr.bf16.mxu0 %v12084_v8  ;;  %4444 = vmatprep.subr.bf16.mxu1 %v12086_v9  ;;  %v12110_v8 = vcombine.high %v3610_v45, %v3614_v46  ;;  %v3617_v9 = vld [vmem:[#allocation10 + $0x250] sm:$0xff]  ;;  %v12109_v51 = vcombine.low %v3610_v45, %v3614_v46  ;;  %v3634_v38 = vld [vmem:[#allocation10 + $0x2d8] sm:$0xff] }
 0x245   :  { %v12115_v21 = vcombine.low %v3617_v9, %v3621_v62 }
 0x247   :  { %4404 = vmatpush1.bf16.msra.mxu0 %v12083_v63  ;;  %4445 = vmatpush1.bf16.msra.mxu1 %v12085_v50  ;;  %v3622_v63 = vld [vmem:[#allocation10 + $0x278] sm:$0xff]  ;;  %v12116_v50 = vcombine.high %v3617_v9, %v3621_v62  ;;  %v3645_v9 = vld [vmem:[#allocation10 + $0x330] sm:$0xff] }
 0x248   :  { %4405 = vmatprep.subr.bf16.mxu0 %v12092_v10  ;;  %4446 = vmatprep.subr.bf16.mxu1 %v12094_v15  ;;  %v12118_v10 = vcombine.high %v3618_v40, %v3622_v63  ;;  %v3625_v15 = vld [vmem:[#allocation10 + $0x290] sm:$0xff]  ;;  %v12117_v32 = vcombine.low %v3618_v40, %v3622_v63  ;;  %v3642_v62 = vld [vmem:[#allocation10 + $0x318] sm:$0xff] }
 0x249   :  { %v12123_v45 = vcombine.low %v3625_v15, %v3629_v16 }
 0x24b   :  { %4406 = vmatpush1.bf16.msra.mxu0 %v12091_v26  ;;  %4447 = vmatpush1.bf16.msra.mxu1 %v12093_v28  ;;  %v3630_v26 = vld [vmem:[#allocation10 + $0x2b8] sm:$0xff]  ;;  %v12124_v28 = vcombine.high %v3625_v15, %v3629_v16  ;;  %v3653_v15 = vld [vmem:[#allocation10 + $0x370] sm:$0xff] }
 0x24c   :  { %4407 = vmatprep.subr.bf16.mxu0 %v12100_v33  ;;  %4448 = vmatprep.subr.bf16.mxu1 %v12102_v34  ;;  %v12126_v33 = vcombine.high %v3626_v20, %v3630_v26  ;;  %v3633_v34 = vld [vmem:[#allocation10 + $0x2d0] sm:$0xff]  ;;  %v12125_v46 = vcombine.low %v3626_v20, %v3630_v26  ;;  %v3650_v16 = vld [vmem:[#allocation10 + $0x358] sm:$0xff] }
 0x24d   :  { %v12131_v40 = vcombine.low %v3633_v34, %v3637_v6 }
 0x24f   :  { %4408 = vmatpush1.bf16.msra.mxu0 %v12099_v58  ;;  %4449 = vmatpush1.bf16.msra.mxu1 %v12101_v60  ;;  %v3638_v58 = vld [vmem:[#allocation10 + $0x2f8] sm:$0xff]  ;;  %v12132_v60 = vcombine.high %v3633_v34, %v3637_v6  ;;  %v3661_v34 = vld [vmem:[#allocation10 + $0x3b0] sm:$0xff] }
 0x250   :  { %4409 = vmatprep.subr.bf16.mxu0 %v12108_v39  ;;  %4450 = vmatprep.subr.bf16.mxu1 %v12110_v8  ;;  %v12134_v39 = vcombine.high %v3634_v38, %v3638_v58  ;;  %v3641_v8 = vld [vmem:[#allocation10 + $0x310] sm:$0xff]  ;;  %v12133_v63 = vcombine.low %v3634_v38, %v3638_v58  ;;  %v3658_v6 = vld [vmem:[#allocation10 + $0x398] sm:$0xff] }
 0x251   :  { %v12139_v20 = vcombine.low %v3641_v8, %v3645_v9 }
 0x253   :  { %4410 = vmatpush1.bf16.msra.mxu0 %v12107_v41  ;;  %4451 = vmatpush1.bf16.msra.mxu1 %v12109_v51  ;;  %v3646_v41 = vld [vmem:[#allocation10 + $0x338] sm:$0xff]  ;;  %v12140_v51 = vcombine.high %v3641_v8, %v3645_v9  ;;  %v3669_v8 = vld [vmem:[#allocation10 + $0x3f0] sm:$0xff] }
 0x254   :  { %4411 = vmatprep.subr.bf16.mxu0 %v12116_v50  ;;  %4452 = vmatprep.subr.bf16.mxu1 %v12118_v10  ;;  %v12142_v50 = vcombine.high %v3642_v62, %v3646_v41  ;;  %v3649_v10 = vld [vmem:[#allocation10 + $0x350] sm:$0xff]  ;;  %v12141_v26 = vcombine.low %v3642_v62, %v3646_v41  ;;  %v3666_v9 = vld [vmem:[#allocation10 + $0x3d8] sm:$0xff] }
 0x255   :  { %v12147_v38 = vcombine.low %v3649_v10, %v3653_v15 }
 0x257   :  { %4412 = vmatpush1.bf16.msra.mxu0 %v12115_v21  ;;  %4453 = vmatpush1.bf16.msra.mxu1 %v12117_v32  ;;  %v3654_v21 = vld [vmem:[#allocation10 + $0x378] sm:$0xff]  ;;  %v12148_v32 = vcombine.high %v3649_v10, %v3653_v15  ;;  %v4531_v15 = vld [vmem:[#allocation10] sm:$0xff] }
 0x258   :  { %4413 = vmatprep.subr.bf16.mxu0 %v12124_v28  ;;  %4454 = vmatprep.subr.bf16.mxu1 %v12126_v33  ;;  %v12150_v28 = vcombine.high %v3650_v16, %v3654_v21  ;;  %v3657_v33 = vld [vmem:[#allocation10 + $0x390] sm:$0xff]  ;;  %v12149_v58 = vcombine.low %v3650_v16, %v3654_v21  ;;  %v4535_v16 = vld [vmem:[#allocation10 + $0x20] sm:$0xff]  ;;  %v4532_v21 = vld [vmem:[#allocation10 + $0x8] sm:$0xff] }
 0x259   :  { %v12155_v62 = vcombine.low %v3657_v33, %v3661_v34 }
 0x25b   :  { %4414 = vmatpush1.bf16.msra.mxu0 %v12123_v45  ;;  %4455 = vmatpush1.bf16.msra.mxu1 %v12125_v46  ;;  %v3662_v45 = vld [vmem:[#allocation10 + $0x3b8] sm:$0xff]  ;;  %v12156_v46 = vcombine.high %v3657_v33, %v3661_v34  ;;  %v4543_v33 = vld [vmem:[#allocation10 + $0x60] sm:$0xff] }
 0x25c   :  { %4415 = vmatprep.subr.bf16.mxu0 %v12132_v60  ;;  %4456 = vmatprep.subr.bf16.mxu1 %v12134_v39  ;;  %v12158_v60 = vcombine.high %v3658_v6, %v3662_v45  ;;  %v3665_v39 = vld [vmem:[#allocation10 + $0x3d0] sm:$0xff]  ;;  %v12157_v41 = vcombine.low %v3658_v6, %v3662_v45 }
 0x25f   :  { %4416 = vmatpush1.bf16.msra.mxu0 %v12131_v40  ;;  %4457 = vmatpush1.bf16.msra.mxu1 %v12133_v63  ;;  %v3670_v40 = vld [vmem:[#allocation10 + $0x3f8] sm:$0xff]  ;;  %v12164_v63 = vcombine.high %v3665_v39, %v3669_v8 }
 0x260   :  { %4417 = vmatprep.subr.bf16.mxu0 %v12140_v51  ;;  %4458 = vmatprep.subr.bf16.mxu1 %v12142_v50  ;;  %v12166_v51 = vcombine.high %v3666_v9, %v3670_v40  ;;  %v12163_v50 = vcombine.low %v3665_v39, %v3669_v8  ;;  %v12165_v10 = vcombine.low %v3666_v9, %v3670_v40  ;;  %v4548_v39 = vld [vmem:[#allocation10 + $0x88] sm:$0xff] }
 0x261   :  { %v4552_v8 = vld [vmem:[#allocation10 + $0xa8] sm:$0xff] }
 0x263   :  { %4418 = vmatpush1.bf16.msra.mxu0 %v12139_v20  ;;  %4459 = vmatpush1.bf16.msra.mxu1 %v12141_v26  ;;  %v14007_v20 = vcombine.low %v4531_v15, %v4535_v16  ;;  %v14009_v26 = vcombine.high %v4531_v15, %v4535_v16  ;;  %v14038_v16 = vcombine.low %v4548_v39, %v4552_v8 }
 0x264   :  { %4419 = vmatprep.subr.bf16.mxu0 %v12148_v32  ;;  %4460 = vmatprep.subr.bf16.mxu1 %v12150_v28  ;;  %v4536_v32 = vld [vmem:[#allocation10 + $0x28] sm:$0xff]  ;;  %v4539_v28 = vld [vmem:[#allocation10 + $0x40] sm:$0xff] }
 0x265   :  { %v14011_v34 = vcombine.low %v4532_v21, %v4536_v32  ;;  %v14013_v6 = vcombine.high %v4532_v21, %v4536_v32  ;;  %v14015_v45 = vcombine.high %v4539_v28, %v4543_v33  ;;  %v14022_v9 = vcombine.low %v4539_v28, %v4543_v33  ;;  %v4563_v28 = vld [vmem:[#allocation10 + $0x100] sm:$0xff] }
 0x266   :  { %v4567_v33 = vld [vmem:[#allocation10 + $0x120] sm:$0xff] }
 0x267   :  { %4420 = vmatpush1.bf16.msra.mxu0 %v12147_v38  ;;  %4461 = vmatpush1.bf16.msra.mxu1 %v12149_v58  ;;  %v4540_v38 = vld [vmem:[#allocation10 + $0x48] sm:$0xff] }
 0x268   :  { %4421 = vmatprep.subr.bf16.mxu0 %v12156_v46  ;;  %4462 = vmatprep.subr.bf16.mxu1 %v12158_v60  ;;  %v4544_v58 = vld [vmem:[#allocation10 + $0x68] sm:$0xff]  ;;  %v4547_v46 = vld [vmem:[#allocation10 + $0x80] sm:$0xff] }
 0x269   :  { %v4551_v60 = vld [vmem:[#allocation10 + $0xa0] sm:$0xff]  ;;  %v14026_v40 = vcombine.low %v4540_v38, %v4544_v58 }
 0x26a   :  { %v14034_v15 = vcombine.low %v4547_v46, %v4551_v60 }
 0x26b   :  { %4422 = vmatpush1.bf16.msra.mxu0 %v12155_v62  ;;  %4463 = vmatpush1.bf16.msra.mxu1 %v12157_v41  ;;  %v14028_v62 = vcombine.high %v4547_v46, %v4551_v60  ;;  %v14031_v41 = vcombine.high %v4548_v39, %v4552_v8  ;;  %v14052_v39 = vcombine.high %v4563_v28, %v4567_v33 }
 0x26c   :  { %4423 = vmatprep.subr.bf16.mxu0 %v12164_v63  ;;  %4464 = vmatprep.subr.bf16.mxu1 %v12166_v51  ;;  %v4555_v63 = vld [vmem:[#allocation10 + $0xc0] sm:$0xff] }
 0x26d   :  { %v4559_v51 = vld [vmem:[#allocation10 + $0xe0] sm:$0xff] }
 0x26e   :  { %v14040_v21 = vcombine.high %v4555_v63, %v4559_v51  ;;  %v14046_v46 = vcombine.low %v4555_v63, %v4559_v51  ;;  %v14058_v63 = vcombine.low %v4563_v28, %v4567_v33  ;;  %v14075_v28 = vcombine.low %v4572_v11, %v4576_v3 }
 0x26f   :  { %4424 = vmatpush1.bf16.msra.mxu0 %v12163_v50  ;;  %4465 = vmatpush1.bf16.msra.mxu1 %v12165_v10  ;;  %v4556_v50 = vld [vmem:[#allocation10 + $0xc8] sm:$0xff]  ;;  %v540_v33 = vsub.s32 6, %v13883_v22 }
 0x270   :  { %5299 = vmatprep.subr.bf16.mxu0 %v14009_v26  ;;  %5340 = vmatprep.subr.bf16.mxu1 %v14013_v6  ;;  %v4560_v10 = vld [vmem:[#allocation10 + $0xe8] sm:$0xff] }
 0x271   :  { %v14043_v32 = vcombine.high %v4556_v50, %v4560_v10  ;;  %v14050_v60 = vcombine.low %v4556_v50, %v4560_v10  ;;  %v14064_v50 = vcombine.high %v4571_v23, %v4575_v14  ;;  %v14067_v10 = vcombine.high %v4572_v11, %v4576_v3  ;;  %v4579_v11 = vld [vmem:[#allocation10 + $0x180] sm:$0xff] }
 0x272   :  { %4426 = vmatmul.mubr.bf16.vlgmr.msra.gmra.mrb[36].mxu0 %v13999_v29  ;;  %4467 = vmatmul.mubr.bf16.vlgmr.msra.gmra.mrb[36].mxu1 %v13999_v29  ;;  %v14018_v29 = vcombine.high %v4540_v38, %v4544_v58  ;;  %v4564_v38 = vld [vmem:[#allocation10 + $0x108] sm:$0xff]  ;;  %v14083_v14 = vrot.slane %v13886_v35, %v532_v57  ;;  %v14087_v23 = vrot.slane %v13886_v35, %v540_v33 }
 0x273   :  { %5300 = vmatpush1.bf16.msra.mxu0 %v14007_v20  ;;  %5341 = vmatpush1.bf16.msra.mxu1 %v14011_v34  ;;  %v4568_v58 = vld [vmem:[#allocation10 + $0x128] sm:$0xff]  ;;  %v14097_v57 = vcombine.low %v4579_v11, %v4583_v52 }
 0x274   :  { %5301 = vmatprep.subr.bf16.mxu0 %v14015_v45  ;;  %5342 = vmatprep.subr.bf16.mxu1 %v14018_v29  ;;  %v14055_v8 = vcombine.high %v4564_v38, %v4568_v58  ;;  %v14062_v51 = vcombine.low %v4564_v38, %v4568_v58  ;;  %v536_v38 = vsub.s32 5, %v13883_v22  ;;  %v544_v58 = vsub.s32 7, %v13883_v22 }
 0x275   :  { %v14095_v22 = vcombine.high %v4579_v11, %v4583_v52 }
 0x276   :  { %v14090_v3 = vrot.slane %v13886_v35, %v536_v38  ;;  %v14093_v27 = vrot.slane %v13886_v35, %v544_v58 }
 0x277   :  { %5302 = vmatpush1.bf16.msra.mxu0 %v14022_v9  ;;  %5343 = vmatpush1.bf16.msra.mxu1 %v14026_v40 }
 0x278   :  { %5303 = vmatprep.subr.bf16.mxu0 %v14028_v62  ;;  %5344 = vmatprep.subr.bf16.mxu1 %v14031_v41 }
 0x27b   :  { %5304 = vmatpush1.bf16.msra.mxu0 %v14034_v15  ;;  %5345 = vmatpush1.bf16.msra.mxu1 %v14038_v16 }
 0x27c   :  { %5305 = vmatprep.subr.bf16.mxu0 %v14040_v21  ;;  %5346 = vmatprep.subr.bf16.mxu1 %v14043_v32 }
 0x27f   :  { %5306 = vmatpush1.bf16.msra.mxu0 %v14046_v46  ;;  %5347 = vmatpush1.bf16.msra.mxu1 %v14050_v60 }
 0x280   :  { %5307 = vmatprep.subr.bf16.mxu0 %v14052_v39  ;;  %5348 = vmatprep.subr.bf16.mxu1 %v14055_v8 }
 0x283   :  { %5308 = vmatpush1.bf16.msra.mxu0 %v14058_v63  ;;  %5349 = vmatpush1.bf16.msra.mxu1 %v14062_v51 }
 0x284   :  { %5309 = vmatprep.subr.bf16.mxu0 %v14064_v50  ;;  %5350 = vmatprep.subr.bf16.mxu1 %v14067_v10 }
 0x287   :  { %5310 = vmatpush1.bf16.msra.mxu0 %v14070_v2  ;;  %5351 = vmatpush1.bf16.msra.mxu1 %v14075_v28 }
 0x288   :  { %5311 = vmatprep.subr.bf16.mxu0 %v14095_v22  ;;  %5352 = vmatprep.subr.bf16.mxu1 %v14101_v12 }
 0x28b   :  { %5312 = vmatpush1.bf16.msra.mxu0 %v14097_v57  ;;  %5353 = vmatpush1.bf16.msra.mxu1 %v14099_v13 }
 0x2c5   :  { %v3212_v17 = vpop.f32.mrb[16].mxu0  ;;  %v3431_v38 = vpop.f32.mrb[16].mxu1 }
 0x2c6   :  { %v14104_v33 = vadd.f32 %v3212_v17, %v14083_v14  ;;  %v3214_v5 = vpop.f32.mrb[17].mxu0  ;;  %v14108_v35 = vadd.f32 %v3431_v38, %v14087_v23  ;;  %v3433_v4 = vpop.f32.mrb[17].mxu1  ;;  %v4588_v17 = vld [vmem:[#allocation10 + $0x1c8] sm:$0xff] }
 0x2c7   :  { %v14111_v58 = vadd.f32 %v3214_v5, %v14090_v3  ;;  %v3216_v52 = vpop.f32.mrb[18].mxu0  ;;  %v14116_v11 = vadd.f32 %v3433_v4, %v14093_v27  ;;  %v3435_v38 = vpop.f32.mrb[18].mxu1  ;;  %v14122_v5 = vcombine.high %v4587_v19, %v4591_v44  ;;  %v4600_v19 = vld [vmem:[#allocation10 + $0x228] sm:$0xff] }
 0x2c8   :  { %16198 = vst [vmem:[#allocation49_spill] sm:$0xff] %v14104_v33  ;;  %16199 = vst [vmem:[#allocation50_spill] sm:$0xff] %v14108_v35  ;;  %v14119_v33 = vadd.f32 %v3216_v52, %v14083_v14  ;;  %v3218_v35 = vpop.f32.mrb[19].mxu0  ;;  %v14125_v61 = vadd.f32 %v3435_v38, %v14087_v23  ;;  %v3437_v37 = vpop.f32.mrb[19].mxu1  ;;  %v4599_v38 = vld [vmem:[#allocation10 + $0x220] sm:$0xff] }
 0x2c9   :  { %16200 = vst [vmem:[#allocation51_spill] sm:$0xff] %v14111_v58  ;;  %16201 = vst [vmem:[#allocation52_spill] sm:$0xff] %v14116_v11  ;;  %v4592_v58 = vld [vmem:[#allocation10 + $0x1e8] sm:$0xff]  ;;  %v14128_v43 = vadd.f32 %v3218_v35, %v14090_v3  ;;  %v14135_v52 = vadd.f32 %v3437_v37, %v14093_v27  ;;  %5313 = vmatprep.subr.bf16.mxu0 %v14122_v5 }
 0x2ca   :  { %16202 = vst [vmem:[#allocation53_spill] sm:$0xff] %v14119_v33  ;;  %16203 = vst [vmem:[#allocation54_spill] sm:$0xff] %v14125_v61  ;;  %v14132_v4 = vcombine.low %v4588_v17, %v4592_v58  ;;  %v14138_v11 = vcombine.high %v4588_v17, %v4592_v58  ;;  %5314 = vmatpush1.bf16.msra.mxu0 %v14130_v36  ;;  %v4595_v33 = vld [vmem:[#allocation10 + $0x200] sm:$0xff]  ;;  %v4596_v61 = vld [vmem:[#allocation10 + $0x208] sm:$0xff] }
 0x2cb   :  { %16204 = vst [vmem:[#allocation55_spill] sm:$0xff] %v14128_v43  ;;  %16206 = vst [vmem:[#allocation57_spill] sm:$0xff] %v14135_v52  ;;  %v14142_v35 = vcombine.high %v4595_v33, %v4599_v38  ;;  %v14145_v43 = vcombine.low %v4595_v33, %v4599_v38  ;;  %v14147_v37 = vcombine.low %v4596_v61, %v4600_v19  ;;  %v4607_v38 = vld [vmem:[#allocation10 + $0x260] sm:$0xff] }
 0x2cc   :  { %16205 = vst [vmem:[#allocation56_spill] sm:$0xff] %v14132_v4  ;;  %5354 = vmatprep.subr.bf16.mxu1 %v14138_v11  ;;  %v14149_v52 = vcombine.high %v4596_v61, %v4600_v19  ;;  %v4603_v61 = vld [vmem:[#allocation10 + $0x240] sm:$0xff]  ;;  %v4604_v19 = vld [vmem:[#allocation10 + $0x248] sm:$0xff] }
 0x2cd   :  { %16207 = vst [vmem:[#allocation58_spill] sm:$0xff] %v14142_v35  ;;  %v3222_v44 = vpop.f32.mrb[20].mxu0  ;;  %5355 = vmatpush1.bf16.msra.mxu1 %v14132_v4  ;;  %16208 = vst [vmem:[#allocation59_spill] sm:$0xff] %v14145_v43  ;;  %v3441_v17 = vpop.f32.mrb[20].mxu1  ;;  %5315 = vmatprep.subr.bf16.mxu0 %v14142_v35  ;;  %v14169_v18 = vcombine.high %v4603_v61, %v4607_v38  ;;  %v14178_v0 = vcombine.low %v4603_v61, %v4607_v38  ;;  %v4616_v61 = vld [vmem:[#allocation10 + $0x2a8] sm:$0xff] }
 0x2ce   :  { %16209 = vst [vmem:[#allocation60_spill] sm:$0xff] %v14147_v37  ;;  %16210 = vst [vmem:[#allocation61_spill] sm:$0xff] %v14149_v52  ;;  %v14152_v58 = vadd.f32 %v3222_v44, %v14083_v14  ;;  %v3224_v31 = vpop.f32.mrb[21].mxu0  ;;  %v14156_v30 = vadd.f32 %v3441_v17, %v14087_v23  ;;  %v3443_v24 = vpop.f32.mrb[21].mxu1  ;;  %5356 = vmatprep.subr.bf16.mxu1 %v14149_v52  ;;  %5316 = vmatpush1.bf16.msra.mxu0 %v14145_v43  ;;  %v4648_v43 = vld [vmem:[#allocation10 + $0x3a8] sm:$0xff] }
 0x2cf   :  { %v14159_v25 = vadd.f32 %v3224_v31, %v14090_v3  ;;  %v3226_v33 = vpop.f32.mrb[22].mxu0  ;;  %v14164_v44 = vadd.f32 %v3443_v24, %v14093_v27  ;;  %v3445_v17 = vpop.f32.mrb[22].mxu1  ;;  %16216 = vst [vmem:[#allocation67_spill] sm:$0xff] %v14169_v18  ;;  %v4608_v31 = vld [vmem:[#allocation10 + $0x268] sm:$0xff]  ;;  %16219 = vst [vmem:[#allocation70_spill] sm:$0xff] %v14178_v0  ;;  %5317 = vmatprep.subr.bf16.mxu0 %v14169_v18 }
 0x2d0   :  { %16211 = vst [vmem:[#allocation62_spill] sm:$0xff] %v14152_v58  ;;  %16212 = vst [vmem:[#allocation63_spill] sm:$0xff] %v14156_v30  ;;  %v14167_v58 = vadd.f32 %v3226_v33, %v14083_v14  ;;  %v3228_v30 = vpop.f32.mrb[23].mxu0  ;;  %v3447_v1 = vpop.f32.mrb[23].mxu1  ;;  %v14180_v24 = vcombine.low %v4604_v19, %v4608_v31  ;;  %v4644_v18 = vld [vmem:[#allocation10 + $0x388] sm:$0xff] }
 0x2d1   :  { %16213 = vst [vmem:[#allocation64_spill] sm:$0xff] %v14159_v25  ;;  %16214 = vst [vmem:[#allocation65_spill] sm:$0xff] %v14164_v44  ;;  %v14172_v25 = vadd.f32 %v3445_v17, %v14087_v23  ;;  %v14175_v7 = vadd.f32 %v3228_v30, %v14090_v3  ;;  %5357 = vmatpush1.bf16.msra.mxu1 %v14147_v37  ;;  %v14183_v33 = vadd.f32 %v3447_v1, %v14093_v27  ;;  %v4611_v17 = vld [vmem:[#allocation10 + $0x280] sm:$0xff]  ;;  %v4612_v30 = vld [vmem:[#allocation10 + $0x288] sm:$0xff] }
 0x2d2   :  { %16215 = vst [vmem:[#allocation66_spill] sm:$0xff] %v14167_v58  ;;  %16220 = vst [vmem:[#allocation71_spill] sm:$0xff] %v14180_v24  ;;  %v14186_v44 = vcombine.high %v4604_v19, %v4608_v31  ;;  %5318 = vmatpush1.bf16.msra.mxu0 %v14178_v0  ;;  %v14195_v1 = vcombine.low %v4612_v30, %v4616_v61 }
 0x2d3   :  { %16217 = vst [vmem:[#allocation68_spill] sm:$0xff] %v14172_v25  ;;  %16218 = vst [vmem:[#allocation69_spill] sm:$0xff] %v14175_v7  ;;  %v4615_v25 = vld [vmem:[#allocation10 + $0x2a0] sm:$0xff] }
 0x2d4   :  { %16221 = vst [vmem:[#allocation72_spill] sm:$0xff] %v14183_v33  ;;  %16222 = vst [vmem:[#allocation73_spill] sm:$0xff] %v14186_v44  ;;  %5358 = vmatprep.subr.bf16.mxu1 %v14186_v44  ;;  %v14190_v7 = vcombine.high %v4611_v17, %v4615_v25  ;;  %v14193_v58 = vcombine.low %v4611_v17, %v4615_v25  ;;  %v14197_v33 = vcombine.high %v4612_v30, %v4616_v61  ;;  %v4619_v17 = vld [vmem:[#allocation10 + $0x2c0] sm:$0xff] }
 0x2d5   :  { %v3232_v38 = vpop.f32.mrb[24].mxu0  ;;  %5359 = vmatpush1.bf16.msra.mxu1 %v14180_v24  ;;  %16225 = vst [vmem:[#allocation76_spill] sm:$0xff] %v14195_v1  ;;  %v3451_v31 = vpop.f32.mrb[24].mxu1  ;;  %v4623_v30 = vld [vmem:[#allocation10 + $0x2e0] sm:$0xff] }
 0x2d6   :  { %16223 = vst [vmem:[#allocation74_spill] sm:$0xff] %v14190_v7  ;;  %16224 = vst [vmem:[#allocation75_spill] sm:$0xff] %v14193_v58  ;;  %v14200_v19 = vadd.f32 %v3232_v38, %v14083_v14  ;;  %v3234_v59 = vpop.f32.mrb[25].mxu0  ;;  %5319 = vmatprep.subr.bf16.mxu0 %v14190_v7  ;;  %v14204_v0 = vadd.f32 %v3451_v31, %v14087_v23  ;;  %v3453_v24 = vpop.f32.mrb[25].mxu1  ;;  %5360 = vmatprep.subr.bf16.mxu1 %v14197_v33 }
 0x2d7   :  { %16226 = vst [vmem:[#allocation77_spill] sm:$0xff] %v14197_v33  ;;  %v14207_v44 = vadd.f32 %v3234_v59, %v14090_v3  ;;  %v3236_v25 = vpop.f32.mrb[26].mxu0  ;;  %5320 = vmatpush1.bf16.msra.mxu0 %v14193_v58  ;;  %v14212_v61 = vadd.f32 %v3453_v24, %v14093_v27  ;;  %v4620_v59 = vld [vmem:[#allocation10 + $0x2c8] sm:$0xff]  ;;  %v14226_v24 = vcombine.low %v4619_v17, %v4623_v30 }
 0x2d8   :  { %16227 = vst [vmem:[#allocation78_spill] sm:$0xff] %v14200_v19  ;;  %16228 = vst [vmem:[#allocation79_spill] sm:$0xff] %v14204_v0  ;;  %v14215_v38 = vadd.f32 %v3236_v25, %v14083_v14  ;;  %v3455_v19 = vpop.f32.mrb[26].mxu1  ;;  %v3238_v31 = vpop.f32.mrb[27].mxu0  ;;  %v14217_v0 = vcombine.high %v4619_v17, %v4623_v30  ;;  %v4632_v17 = vld [vmem:[#allocation10 + $0x328] sm:$0xff] }
 0x2d9   :  { %16229 = vst [vmem:[#allocation80_spill] sm:$0xff] %v14207_v44  ;;  %16230 = vst [vmem:[#allocation81_spill] sm:$0xff] %v14212_v61  ;;  %v4624_v44 = vld [vmem:[#allocation10 + $0x2e8] sm:$0xff]  ;;  %v14220_v7 = vadd.f32 %v3455_v19, %v14087_v23  ;;  %v14223_v33 = vadd.f32 %v3238_v31, %v14090_v3  ;;  %v3457_v58 = vpop.f32.mrb[27].mxu1  ;;  %5361 = vmatpush1.bf16.msra.mxu1 %v14195_v1  ;;  %v4627_v19 = vld [vmem:[#allocation10 + $0x300] sm:$0xff] }
 0x2da   :  { %16231 = vst [vmem:[#allocation82_spill] sm:$0xff] %v14215_v38  ;;  %16232 = vst [vmem:[#allocation83_spill] sm:$0xff] %v14217_v0  ;;  %v14228_v61 = vcombine.low %v4620_v59, %v4624_v44  ;;  %v14231_v25 = vadd.f32 %v3457_v58, %v14093_v27  ;;  %5321 = vmatprep.subr.bf16.mxu0 %v14217_v0  ;;  %v14234_v38 = vcombine.high %v4620_v59, %v4624_v44  ;;  %v4628_v31 = vld [vmem:[#allocation10 + $0x308] sm:$0xff] }
 0x2db   :  { %16233 = vst [vmem:[#allocation84_spill] sm:$0xff] %v14220_v7  ;;  %16234 = vst [vmem:[#allocation85_spill] sm:$0xff] %v14223_v33  ;;  %5322 = vmatpush1.bf16.msra.mxu0 %v14226_v24  ;;  %v4631_v7 = vld [vmem:[#allocation10 + $0x320] sm:$0xff]  ;;  %v14243_v58 = vcombine.low %v4628_v31, %v4632_v17 }
 0x2dc   :  { %16235 = vst [vmem:[#allocation86_spill] sm:$0xff] %v14226_v24  ;;  %16236 = vst [vmem:[#allocation87_spill] sm:$0xff] %v14228_v61  ;;  %5362 = vmatprep.subr.bf16.mxu1 %v14234_v38  ;;  %v14238_v33 = vcombine.high %v4627_v19, %v4631_v7  ;;  %v14241_v1 = vcombine.low %v4627_v19, %v4631_v7  ;;  %v4635_v19 = vld [vmem:[#allocation10 + $0x340] sm:$0xff] }
 0x2dd   :  { %16237 = vst [vmem:[#allocation88_spill] sm:$0xff] %v14231_v25  ;;  %16238 = vst [vmem:[#allocation89_spill] sm:$0xff] %v14234_v38  ;;  %v3242_v30 = vpop.f32.mrb[28].mxu0  ;;  %5363 = vmatpush1.bf16.msra.mxu1 %v14228_v61  ;;  %v14245_v25 = vcombine.high %v4628_v31, %v4632_v17  ;;  %v3461_v59 = vpop.f32.mrb[28].mxu1  ;;  %v4639_v31 = vld [vmem:[#allocation10 + $0x360] sm:$0xff]  ;;  %v4636_v17 = vld [vmem:[#allocation10 + $0x348] sm:$0xff] }
 0x2de   :  { %16239 = vst [vmem:[#allocation90_spill] sm:$0xff] %v14238_v33  ;;  %16240 = vst [vmem:[#allocation91_spill] sm:$0xff] %v14241_v1  ;;  %v14248_v44 = vadd.f32 %v3242_v30, %v14083_v14  ;;  %v3244_v24 = vpop.f32.mrb[29].mxu0  ;;  %5323 = vmatprep.subr.bf16.mxu0 %v14238_v33  ;;  %v14252_v38 = vadd.f32 %v3461_v59, %v14087_v23  ;;  %v3463_v61 = vpop.f32.mrb[29].mxu1 }
 0x2df   :  { %16241 = vst [vmem:[#allocation92_spill] sm:$0xff] %v14243_v58  ;;  %16242 = vst [vmem:[#allocation93_spill] sm:$0xff] %v14245_v25  ;;  %v14255_v0 = vadd.f32 %v3244_v24, %v14090_v3  ;;  %v14257_v7 = vpop.f32.mrb[30].mxu0  ;;  %5364 = vmatprep.subr.bf16.mxu1 %v14245_v25  ;;  %5324 = vmatpush1.bf16.msra.mxu0 %v14241_v1  ;;  %v14262_v30 = vadd.f32 %v3463_v61, %v14093_v27  ;;  %v4640_v24 = vld [vmem:[#allocation10 + $0x368] sm:$0xff]  ;;  %v4643_v61 = vld [vmem:[#allocation10 + $0x380] sm:$0xff] }
 0x2e0   :  { %16243 = vst [vmem:[#allocation94_spill] sm:$0xff] %v14248_v44  ;;  %16244 = vst [vmem:[#allocation95_spill] sm:$0xff] %v14252_v38  ;;  %v14264_v44 = vpop.f32.mrb[30].mxu1  ;;  %v14266_v59 = vpop.f32.mrb[31].mxu0  ;;  %v14268_v38 = vcombine.high %v4635_v19, %v4639_v31  ;;  %v14273_v25 = vcombine.low %v4635_v19, %v4639_v31  ;;  %v14275_v1 = vcombine.low %v4636_v17, %v4640_v24 }
 0x2e1   :  { %16245 = vst [vmem:[#allocation96_spill] sm:$0xff] %v14255_v0  ;;  %16246 = vst [vmem:[#allocation97_spill] sm:$0xff] %v14262_v30  ;;  %v14270_v0 = vpop.f32.mrb[31].mxu1  ;;  %5365 = vmatpush1.bf16.msra.mxu1 %v14243_v58  ;;  %v14278_v33 = vcombine.high %v4636_v17, %v4640_v24  ;;  %v4647_v30 = vld [vmem:[#allocation10 + $0x3a0] sm:$0xff]  ;;  %v14287_v31 = vcombine.low %v4644_v18, %v4648_v43  ;;  %v14289_v58 = vcombine.high %v4644_v18, %v4648_v43  ;;  %v4533_v43 = vld [vmem:[#allocation10 + $0x10] sm:$0xff] }
 0x2e2   :  { %16247 = vst [vmem:[#allocation98_spill] sm:$0xff] %v14268_v38  ;;  %16248 = vst [vmem:[#allocation99_spill] sm:$0xff] %v14273_v25  ;;  %5325 = vmatprep.subr.bf16.mxu0 %v14268_v38  ;;  %v14282_v37 = vcombine.high %v4643_v61, %v4647_v30  ;;  %v14285_v19 = vcombine.low %v4643_v61, %v4647_v30  ;;  %v4651_v17 = vld [vmem:[#allocation10 + $0x3c0] sm:$0xff]  ;;  %v4656_v38 = vld [vmem:[#allocation10 + $0x3e8] sm:$0xff] }
 0x2e3   :  { %16249 = vst [vmem:[#allocation100_spill] sm:$0xff] %v14275_v1  ;;  %16250 = vst [vmem:[#allocation101_spill] sm:$0xff] %v14278_v33  ;;  %5326 = vmatpush1.bf16.msra.mxu0 %v14273_v25  ;;  %5366 = vmatprep.subr.bf16.mxu1 %v14278_v33  ;;  %v4655_v24 = vld [vmem:[#allocation10 + $0x3e0] sm:$0xff]  ;;  %v4652_v25 = vld [vmem:[#allocation10 + $0x3c8] sm:$0xff] }
 0x2e4   :  { %16251 = vst [vmem:[#allocation102_spill] sm:$0xff] %v14282_v37  ;;  %16252 = vst [vmem:[#allocation103_spill] sm:$0xff] %v14285_v19  ;;  %5327 = vmatprep.subr.bf16.mxu0 %v14282_v37  ;;  %v14294_v33 = vcombine.high %v4651_v17, %v4655_v24  ;;  %v14297_v30 = vcombine.low %v4651_v17, %v4655_v24  ;;  %v14299_v61 = vcombine.low %v4652_v25, %v4656_v38 }
 0x2e5   :  { %5367 = vmatpush1.bf16.msra.mxu1 %v14275_v1  ;;  %16253 = vst [vmem:[#allocation104_spill] sm:$0xff] %v14287_v31  ;;  %16254 = vst [vmem:[#allocation105_spill] sm:$0xff] %v14289_v58  ;;  %v14301_v18 = vcombine.high %v4652_v25, %v4656_v38  ;;  %v4538_v1 = vld [vmem:[#allocation10 + $0x38] sm:$0xff]  ;;  %v13168_v25 = vadd.f32 %v13891_v42, %v13894_v47 }
 0x2e6   :  { %5368 = vmatprep.subr.bf16.mxu1 %v14289_v58  ;;  %16255 = vst [vmem:[#allocation106_spill] sm:$0xff] %v14294_v33  ;;  %16256 = vst [vmem:[#allocation107_spill] sm:$0xff] %v14297_v30  ;;  %v4534_v58 = vld [vmem:[#allocation10 + $0x18] sm:$0xff] }
 0x2e7   :  { %5328 = vmatpush1.bf16.msra.mxu0 %v14285_v19  ;;  %16257 = vst [vmem:[#allocation108_spill] sm:$0xff] %v14299_v61  ;;  %16258 = vst [vmem:[#allocation109_spill] sm:$0xff] %v14301_v18  ;;  %v4537_v19 = vld [vmem:[#allocation10 + $0x30] sm:$0xff]  ;;  %v14311_v24 = vcombine.low %v4534_v58, %v4538_v1  ;;  %v14313_v38 = vcombine.high %v4534_v58, %v4538_v1 }
 0x2e8   :  { %5329 = vmatprep.subr.bf16.mxu0 %v14294_v33  ;;  %v14306_v37 = vcombine.high %v4533_v43, %v4537_v19  ;;  %v14309_v17 = vcombine.low %v4533_v43, %v4537_v19  ;;  %v13185_v19 = vadd.f32 %v13909_v56, %v13907_v55 }
 0x2e9   :  { %5369 = vmatpush1.bf16.msra.mxu1 %v14287_v31  ;;  %16260 = vst [vmem:[#allocation111_spill] sm:$0xff] %v14313_v38 }
 0x2ea   :  { %5370 = vmatprep.subr.bf16.mxu1 %v14301_v18  ;;  %16259 = vst [vmem:[#allocation110_spill] sm:$0xff] %v14306_v37  ;;  %v13169_v18 = vadd.f32 %v13898_v49, %v13904_v54 }
 0x2eb   :  { %5330 = vmatpush1.bf16.msra.mxu0 %v14297_v30  ;;  %v13184_v30 = vadd.f32 %v13896_v48, %v13901_v53 }
 0x2ec   :  { %5381 = vmatprep.subr.bf16.mxu0 %v14306_v37 }
 0x2ed   :  { %5371 = vmatpush1.bf16.msra.mxu1 %v14299_v61 }
 0x2ee   :  { %5422 = vmatprep.subr.bf16.mxu1 %v14313_v38 }
 0x305   :  { %v4345_v61 = vpop.f32.mrb[32].mxu0  ;;  %v4386_v1 = vpop.f32.mrb[32].mxu1 }
 0x306   :  { %v4479_v43 = vadd.f32 %v13168_v25, %v4345_v61  ;;  %v4347_v58 = vpop.f32.mrb[33].mxu0  ;;  %v4481_v33 = vadd.f32 %v13184_v30, %v4386_v1  ;;  %v4388_v31 = vpop.f32.mrb[33].mxu1  ;;  %v3536_v61 = vld [vmem:[#allocation12 + $0x10] sm:$0xff] }
 0x307   :  { %v4480_v37 = vadd.f32 %v13169_v18, %v4347_v58  ;;  %v4349_v38 = vpop.f32.mrb[34].mxu0  ;;  %v4482_v35 = vadd.f32 %v13185_v19, %v4388_v31  ;;  %v4390_v47 = vpop.f32.mrb[34].mxu1  ;;  %v13214_v31 = vadd.f32 %v14257_v7, %v14083_v14 }
 0x308   :  { %v4491_v52 = vmul.f32 0.5, %v4479_v43  ;;  %v4350_v42 = vpop.f32.mrb[35].mxu0  ;;  %v4391_v48 = vpop.f32.mrb[35].mxu1 }
 0x309   :  { %v4495_v4 = vmul.f32 0.5, %v4480_v37 }
 0x30a   :  { %13409 = vtanh.f32 %v4491_v52  ;;  %v13230_v52 = vadd.f32 %v14264_v44, %v14087_v23 }
 0x30b   :  { %13411 = vtanh.f32 %v4495_v4  ;;  %v13215_v4 = vadd.f32 %v14266_v59, %v14090_v3  ;;  %v4500_v3 = vmul.f32 0.5, %v4482_v35 }
 0x30c   :  { %13413 = vtanh.f32 %v4481_v33  ;;  %v13231_v33 = vadd.f32 %v14270_v0, %v14093_v27 }
 0x314   :  { %v13410_v49 = vpop.eup %13409 }
 0x315   :  { %v13412_v53 = vpop.eup %13411  ;;  %v4493_v54 = vmul.f32 0.5, %v13410_v49 }
 0x316   :  { %v4497_v55 = vmul.f32 0.5, %v13412_v53  ;;  %v13414_v25 = vpop.eup %13413 }
 0x317   :  { %v4494_v56 = vadd.f32 0.5, %v4493_v54 }
 0x318   :  { %v4498_v30 = vadd.f32 0.5, %v4497_v55 }
 0x319   :  { %v4505_v18 = vmul.f32 %v13414_v25, %v4494_v56  ;;  %v3540_v25 = vld [vmem:[#allocation12 + $0x18] sm:$0xff] }
 0x31a   :  { %v4504_v1 = vmul.f32 %v4498_v30, %v3536_v61 }
 0x31c   :  { %v14325_v38 = vadd.f32 %v4505_v18, %v4504_v1 }
 0x345   :  { %v4427_v37 = vpop.f32.mrb[36].mxu0  ;;  %v4468_v43 = vpop.f32.mrb[36].mxu1 }
 0x346   :  { %v4487_v19 = vadd.f32 %v13214_v31, %v4427_v37  ;;  %v4429_v58 = vpop.f32.mrb[37].mxu0  ;;  %v4489_v42 = vadd.f32 %v13230_v52, %v4468_v43  ;;  %v4470_v48 = vpop.f32.mrb[37].mxu1 }
 0x347   :  { %v4488_v47 = vadd.f32 %v13215_v4, %v4429_v58  ;;  %v4431_v49 = vpop.f32.mrb[38].mxu0  ;;  %v4490_v54 = vadd.f32 %v13231_v33, %v4470_v48  ;;  %v4472_v7 = vpop.f32.mrb[38].mxu1 }
 0x348   :  { %v4509_v53 = vmul.f32 0.5, %v4487_v19  ;;  %v4432_v14 = vpop.f32.mrb[39].mxu0  ;;  %v4473_v23 = vpop.f32.mrb[39].mxu1  ;;  %v4541_v49 = vld [vmem:[#allocation10 + $0x50] sm:$0xff] }
 0x349   :  { %v4513_v55 = vmul.f32 0.5, %v4488_v47  ;;  %v4518_v44 = vmul.f32 0.5, %v4490_v54  ;;  %v4542_v54 = vld [vmem:[#allocation10 + $0x58] sm:$0xff]  ;;  %v4549_v23 = vld [vmem:[#allocation10 + $0x90] sm:$0xff] }
 0x34a   :  { %13415 = vtanh.f32 %v4509_v53  ;;  %v4545_v53 = vld [vmem:[#allocation10 + $0x70] sm:$0xff]  ;;  %v4546_v14 = vld [vmem:[#allocation10 + $0x78] sm:$0xff] }
 0x34b   :  { %13417 = vtanh.f32 %v4513_v55 }
 0x34c   :  { %13419 = vtanh.f32 %v4489_v42 }
 0x34d   :  { %13421 = vtanh.f32 %v4500_v3  ;;  %v14349_v3 = vcombine.high %v4541_v49, %v4545_v53 }
 0x34e   :  { %13423 = vtanh.f32 %v4518_v44  ;;  %v14351_v44 = vcombine.high %v4542_v54, %v4546_v14 }
 0x34f   :  { %13425 = vtanh.f32 %v14325_v38 }
 0x354   :  { %v13416_v59 = vpop.eup %13415 }
 0x355   :  { %v13418_v0 = vpop.eup %13417  ;;  %v4511_v27 = vmul.f32 0.5, %v13416_v59  ;;  %v4553_v59 = vld [vmem:[#allocation10 + $0xb0] sm:$0xff] }
 0x356   :  { %v4515_v56 = vmul.f32 0.5, %v13418_v0  ;;  %v13420_v30 = vpop.eup %13419  ;;  %v4550_v0 = vld [vmem:[#allocation10 + $0x98] sm:$0xff] }
 0x357   :  { %v4512_v61 = vadd.f32 0.5, %v4511_v27  ;;  %v13422_v35 = vpop.eup %13421  ;;  %v4554_v27 = vld [vmem:[#allocation10 + $0xb8] sm:$0xff] }
 0x358   :  { %v4516_v18 = vadd.f32 0.5, %v4515_v56  ;;  %v13424_v4 = vpop.eup %13423  ;;  %v4502_v37 = vmul.f32 0.5, %v13422_v35  ;;  %v14357_v56 = vcombine.low %v4541_v49, %v4545_v53  ;;  %v4562_v35 = vld [vmem:[#allocation10 + $0xf8] sm:$0xff] }
 0x359   :  { %v4523_v1 = vmul.f32 %v13420_v30, %v4512_v61  ;;  %v4520_v33 = vmul.f32 0.5, %v13424_v4  ;;  %v13426_v19 = vpop.eup %13425  ;;  %v14359_v61 = vcombine.low %v4542_v54, %v4546_v14  ;;  %v14363_v30 = vcombine.high %v4550_v0, %v4554_v27  ;;  %v4570_v49 = vld [vmem:[#allocation10 + $0x138] sm:$0xff] }
 0x35a   :  { %v4522_v31 = vmul.f32 %v4516_v18, %v3540_v25  ;;  %v4503_v43 = vadd.f32 0.5, %v4502_v37  ;;  %v14361_v25 = vcombine.high %v4549_v23, %v4553_v59  ;;  %v4557_v18 = vld [vmem:[#allocation10 + $0xd0] sm:$0xff]  ;;  %v14369_v4 = vcombine.low %v4549_v23, %v4553_v59 }
 0x35b   :  { %v4521_v58 = vadd.f32 0.5, %v4520_v33  ;;  %v14371_v37 = vcombine.low %v4550_v0, %v4554_v27  ;;  %v4573_v23 = vld [vmem:[#allocation10 + $0x150] sm:$0xff]  ;;  %v4574_v0 = vld [vmem:[#allocation10 + $0x158] sm:$0xff] }
 0x35c   :  { %v14336_v52 = vadd.f32 %v4523_v1, %v4522_v31  ;;  %v14339_v47 = vmul.f32 %v13426_v19, %v4503_v43  ;;  %v4561_v1 = vld [vmem:[#allocation10 + $0xf0] sm:$0xff]  ;;  %v4558_v31 = vld [vmem:[#allocation10 + $0xd8] sm:$0xff] }
 0x35d   :  { %v14375_v33 = vcombine.high %v4557_v18, %v4561_v1  ;;  %v14377_v19 = vcombine.high %v4558_v31, %v4562_v35  ;;  %v4565_v43 = vld [vmem:[#allocation10 + $0x110] sm:$0xff]  ;;  %v14381_v53 = vcombine.low %v4557_v18, %v4561_v1  ;;  %v14383_v54 = vcombine.low %v4558_v31, %v4562_v35  ;;  %v4578_v27 = vld [vmem:[#allocation10 + $0x178] sm:$0xff] }
 0x35e   :  { %13427 = vtanh.f32 %v14336_v52  ;;  %16261 = vst [vmem:[#allocation112_spill] sm:$0xff] %v14339_v47  ;;  %v14347_v55 = vpack.c.bf16 %v14339_v47, %v14339_v47  ;;  %v4577_v59 = vld [vmem:[#allocation10 + $0x170] sm:$0xff]  ;;  %v14401_v35 = vcombine.high %v4574_v0, %v4578_v27 }
 0x35f   :  { %16263 = vst [vmem:[#allocation114_spill] sm:$0xff] %v14375_v33  ;;  %16264 = vst [vmem:[#allocation115_spill] sm:$0xff] %v14377_v19  ;;  %v14399_v31 = vcombine.high %v4573_v23, %v4577_v59  ;;  %v4581_v47 = vld [vmem:[#allocation10 + $0x190] sm:$0xff] }
 0x360   :  { %16265 = vst [vmem:[#allocation116_spill] sm:$0xff] %v14381_v53  ;;  %16266 = vst [vmem:[#allocation117_spill] sm:$0xff] %v14383_v54 }
 0x361   :  { %16271 = vst [vmem:[#allocation122_spill] sm:$0xff] %v14399_v31  ;;  %16272 = vst [vmem:[#allocation123_spill] sm:$0xff] %v14401_v35 }
 0x368   :  { %v13428_v42 = vpop.eup %13427 }
 0x369   :  { %v14341_v48 = vmul.f32 %v13428_v42, %v4521_v58  ;;  %v4569_v58 = vld [vmem:[#allocation10 + $0x130] sm:$0xff]  ;;  %v4566_v42 = vld [vmem:[#allocation10 + $0x118] sm:$0xff] }
 0x36a   :  { %v14387_v14 = vcombine.high %v4565_v43, %v4569_v58  ;;  %v14393_v18 = vcombine.low %v4565_v43, %v4569_v58  ;;  %v14395_v1 = vcombine.low %v4566_v42, %v4570_v49  ;;  %v14405_v43 = vcombine.low %v4573_v23, %v4577_v59 }
 0x36b   :  { %16262 = vst [vmem:[#allocation113_spill] sm:$0xff] %v14341_v48  ;;  %v4530_v7 = vpack.c.bf16 %v14341_v48, %v14341_v48  ;;  %v4585_v48 = vld [vmem:[#allocation10 + $0x1b0] sm:$0xff]  ;;  %v14407_v58 = vcombine.low %v4574_v0, %v4578_v27 }
 0x36c   :  { %16267 = vst [vmem:[#allocation118_spill] sm:$0xff] %v14387_v14  ;;  %16269 = vst [vmem:[#allocation120_spill] sm:$0xff] %v14393_v18  ;;  %v14417_v23 = vcombine.low %v4581_v47, %v4585_v48 }
 0x36d   :  { %5331 = vmatprep.mubr.bf16.mxu0 %v4530_v7  ;;  %5372 = vmatprep.mubr.bf16.mxu1 %v4530_v7  ;;  %16270 = vst [vmem:[#allocation121_spill] sm:$0xff] %v14395_v1  ;;  %16273 = vst [vmem:[#allocation124_spill] sm:$0xff] %v14405_v43 }
 0x36e   :  { %5332 = vmatmul.mubr.bf16.vlgmr.msra.gmra.mrb[40].mxu0 %v14347_v55  ;;  %5373 = vmatmul.mubr.bf16.vlgmr.msra.gmra.mrb[40].mxu1 %v14347_v55  ;;  %16274 = vst [vmem:[#allocation125_spill] sm:$0xff] %v14407_v58  ;;  %16277 = vst [vmem:[#allocation128_spill] sm:$0xff] %v14417_v23 }
 0x36f   :  { %5382 = vmatpush1.bf16.msra.mxu0 %v14309_v17  ;;  %5423 = vmatpush1.bf16.msra.mxu1 %v14311_v24 }
 0x370   :  { %5413 = vmatprep.mubr.bf16.mxu0 %v4530_v7  ;;  %5454 = vmatprep.mubr.bf16.mxu1 %v4530_v7  ;;  %v14389_v7 = vcombine.high %v4566_v42, %v4570_v49  ;;  %v14411_v42 = vcombine.high %v4581_v47, %v4585_v48 }
 0x371   :  { %5383 = vmatprep.subr.bf16.mxu0 %v14349_v3  ;;  %5424 = vmatprep.subr.bf16.mxu1 %v14351_v44 }
 0x372   :  { %16268 = vst [vmem:[#allocation119_spill] sm:$0xff] %v14389_v7  ;;  %16275 = vst [vmem:[#allocation126_spill] sm:$0xff] %v14411_v42 }
 0x373   :  { %5384 = vmatpush1.bf16.msra.mxu0 %v14357_v56  ;;  %5425 = vmatpush1.bf16.msra.mxu1 %v14359_v61 }
 0x374   :  { %5385 = vmatprep.subr.bf16.mxu0 %v14361_v25  ;;  %5426 = vmatprep.subr.bf16.mxu1 %v14363_v30 }
 0x377   :  { %5386 = vmatpush1.bf16.msra.mxu0 %v14369_v4  ;;  %5427 = vmatpush1.bf16.msra.mxu1 %v14371_v37 }
 0x378   :  { %5387 = vmatprep.subr.bf16.mxu0 %v14375_v33  ;;  %5428 = vmatprep.subr.bf16.mxu1 %v14377_v19  ;;  %v4582_v19 = vld [vmem:[#allocation10 + $0x198] sm:$0xff] }
 0x379   :  { %v4586_v33 = vld [vmem:[#allocation10 + $0x1b8] sm:$0xff] }
 0x37a   :  { %v14413_v49 = vcombine.high %v4582_v19, %v4586_v33  ;;  %v14419_v59 = vcombine.low %v4582_v19, %v4586_v33 }
 0x37b   :  { %5388 = vmatpush1.bf16.msra.mxu0 %v14381_v53  ;;  %5429 = vmatpush1.bf16.msra.mxu1 %v14383_v54  ;;  %v4590_v54 = vld [vmem:[#allocation10 + $0x1d8] sm:$0xff] }
 0x37c   :  { %5389 = vmatprep.subr.bf16.mxu0 %v14387_v14  ;;  %5430 = vmatprep.subr.bf16.mxu1 %v14389_v7  ;;  %16276 = vst [vmem:[#allocation127_spill] sm:$0xff] %v14413_v49  ;;  %v4589_v7 = vld [vmem:[#allocation10 + $0x1d0] sm:$0xff]  ;;  %v4594_v53 = vld [vmem:[#allocation10 + $0x1f8] sm:$0xff]  ;;  %16278 = vst [vmem:[#allocation129_spill] sm:$0xff] %v14419_v59 }
 0x37d   :  { %v4593_v14 = vld [vmem:[#allocation10 + $0x1f0] sm:$0xff]  ;;  %v14425_v27 = vcombine.high %v4590_v54, %v4594_v53  ;;  %v14431_v48 = vcombine.low %v4590_v54, %v4594_v53 }
 0x37e   :  { %v14423_v0 = vcombine.high %v4589_v7, %v4593_v14  ;;  %v14429_v47 = vcombine.low %v4589_v7, %v4593_v14 }
 0x37f   :  { %5390 = vmatpush1.bf16.msra.mxu0 %v14393_v18  ;;  %5431 = vmatpush1.bf16.msra.mxu1 %v14395_v1  ;;  %16280 = vst [vmem:[#allocation131_spill] sm:$0xff] %v14425_v27  ;;  %v4598_v1 = vld [vmem:[#allocation10 + $0x218] sm:$0xff]  ;;  %16282 = vst [vmem:[#allocation133_spill] sm:$0xff] %v14431_v48 }
 0x380   :  { %5391 = vmatprep.subr.bf16.mxu0 %v14399_v31  ;;  %5432 = vmatprep.subr.bf16.mxu1 %v14401_v35  ;;  %16279 = vst [vmem:[#allocation130_spill] sm:$0xff] %v14423_v0  ;;  %v4597_v35 = vld [vmem:[#allocation10 + $0x210] sm:$0xff]  ;;  %v4602_v18 = vld [vmem:[#allocation10 + $0x238] sm:$0xff]  ;;  %16281 = vst [vmem:[#allocation132_spill] sm:$0xff] %v14429_v47 }
 0x381   :  { %v4601_v31 = vld [vmem:[#allocation10 + $0x230] sm:$0xff]  ;;  %v14437_v19 = vcombine.high %v4598_v1, %v4602_v18  ;;  %v14443_v53 = vcombine.low %v4598_v1, %v4602_v18 }
 0x382   :  { %v14435_v33 = vcombine.high %v4597_v35, %v4601_v31  ;;  %v14441_v14 = vcombine.low %v4597_v35, %v4601_v31 }
 0x383   :  { %5392 = vmatpush1.bf16.msra.mxu0 %v14405_v43  ;;  %5433 = vmatpush1.bf16.msra.mxu1 %v14407_v58  ;;  %16284 = vst [vmem:[#allocation135_spill] sm:$0xff] %v14437_v19  ;;  %v4606_v58 = vld [vmem:[#allocation10 + $0x258] sm:$0xff]  ;;  %16286 = vst [vmem:[#allocation137_spill] sm:$0xff] %v14443_v53 }
 0x384   :  { %5393 = vmatprep.subr.bf16.mxu0 %v14411_v42  ;;  %5434 = vmatprep.subr.bf16.mxu1 %v14413_v49  ;;  %16283 = vst [vmem:[#allocation134_spill] sm:$0xff] %v14435_v33  ;;  %v4605_v49 = vld [vmem:[#allocation10 + $0x250] sm:$0xff]  ;;  %v4610_v43 = vld [vmem:[#allocation10 + $0x278] sm:$0xff]  ;;  %16285 = vst [vmem:[#allocation136_spill] sm:$0xff] %v14441_v14 }
 0x385   :  { %v4609_v42 = vld [vmem:[#allocation10 + $0x270] sm:$0xff]  ;;  %v14449_v7 = vcombine.high %v4606_v58, %v4610_v43  ;;  %v14455_v18 = vcombine.low %v4606_v58, %v4610_v43 }
 0x386   :  { %v14447_v54 = vcombine.high %v4605_v49, %v4609_v42  ;;  %v14453_v31 = vcombine.low %v4605_v49, %v4609_v42 }
 0x387   :  { %5394 = vmatpush1.bf16.msra.mxu0 %v14417_v23  ;;  %5435 = vmatpush1.bf16.msra.mxu1 %v14419_v59  ;;  %16288 = vst [vmem:[#allocation139_spill] sm:$0xff] %v14449_v7  ;;  %v4614_v59 = vld [vmem:[#allocation10 + $0x298] sm:$0xff]  ;;  %16290 = vst [vmem:[#allocation141_spill] sm:$0xff] %v14455_v18 }
 0x388   :  { %5395 = vmatprep.subr.bf16.mxu0 %v14423_v0  ;;  %5436 = vmatprep.subr.bf16.mxu1 %v14425_v27  ;;  %16287 = vst [vmem:[#allocation138_spill] sm:$0xff] %v14447_v54  ;;  %v4613_v27 = vld [vmem:[#allocation10 + $0x290] sm:$0xff]  ;;  %v4618_v23 = vld [vmem:[#allocation10 + $0x2b8] sm:$0xff]  ;;  %16289 = vst [vmem:[#allocation140_spill] sm:$0xff] %v14453_v31 }
 0x389   :  { %v4617_v0 = vld [vmem:[#allocation10 + $0x2b0] sm:$0xff]  ;;  %v14461_v35 = vcombine.high %v4614_v59, %v4618_v23  ;;  %v14467_v43 = vcombine.low %v4614_v59, %v4618_v23 }
 0x38a   :  { %v14459_v1 = vcombine.high %v4613_v27, %v4617_v0  ;;  %v14465_v42 = vcombine.low %v4613_v27, %v4617_v0 }
 0x38b   :  { %5396 = vmatpush1.bf16.msra.mxu0 %v14429_v47  ;;  %5437 = vmatpush1.bf16.msra.mxu1 %v14431_v48  ;;  %16292 = vst [vmem:[#allocation143_spill] sm:$0xff] %v14461_v35  ;;  %v4622_v48 = vld [vmem:[#allocation10 + $0x2d8] sm:$0xff]  ;;  %16294 = vst [vmem:[#allocation145_spill] sm:$0xff] %v14467_v43 }
 0x38c   :  { %5397 = vmatprep.subr.bf16.mxu0 %v14435_v33  ;;  %5438 = vmatprep.subr.bf16.mxu1 %v14437_v19  ;;  %16291 = vst [vmem:[#allocation142_spill] sm:$0xff] %v14459_v1  ;;  %v4621_v19 = vld [vmem:[#allocation10 + $0x2d0] sm:$0xff]  ;;  %v4626_v47 = vld [vmem:[#allocation10 + $0x2f8] sm:$0xff]  ;;  %16293 = vst [vmem:[#allocation144_spill] sm:$0xff] %v14465_v42 }
 0x38d   :  { %v4625_v33 = vld [vmem:[#allocation10 + $0x2f0] sm:$0xff]  ;;  %v14473_v49 = vcombine.high %v4622_v48, %v4626_v47  ;;  %v14479_v23 = vcombine.low %v4622_v48, %v4626_v47 }
 0x38e   :  { %v14471_v58 = vcombine.high %v4621_v19, %v4625_v33  ;;  %v14477_v0 = vcombine.low %v4621_v19, %v4625_v33 }
 0x38f   :  { %5398 = vmatpush1.bf16.msra.mxu0 %v14441_v14  ;;  %5439 = vmatpush1.bf16.msra.mxu1 %v14443_v53  ;;  %16296 = vst [vmem:[#allocation147_spill] sm:$0xff] %v14473_v49  ;;  %v4630_v53 = vld [vmem:[#allocation10 + $0x318] sm:$0xff]  ;;  %16298 = vst [vmem:[#allocation149_spill] sm:$0xff] %v14479_v23 }
 0x390   :  { %5399 = vmatprep.subr.bf16.mxu0 %v14447_v54  ;;  %5440 = vmatprep.subr.bf16.mxu1 %v14449_v7  ;;  %16295 = vst [vmem:[#allocation146_spill] sm:$0xff] %v14471_v58  ;;  %v4629_v7 = vld [vmem:[#allocation10 + $0x310] sm:$0xff]  ;;  %v4634_v14 = vld [vmem:[#allocation10 + $0x338] sm:$0xff]  ;;  %16297 = vst [vmem:[#allocation148_spill] sm:$0xff] %v14477_v0 }
 0x391   :  { %v4633_v54 = vld [vmem:[#allocation10 + $0x330] sm:$0xff]  ;;  %v14485_v27 = vcombine.high %v4630_v53, %v4634_v14  ;;  %v14491_v47 = vcombine.low %v4630_v53, %v4634_v14 }
 0x392   :  { %v14483_v59 = vcombine.high %v4629_v7, %v4633_v54  ;;  %v14489_v33 = vcombine.low %v4629_v7, %v4633_v54 }
 0x393   :  { %5400 = vmatpush1.bf16.msra.mxu0 %v14453_v31  ;;  %5441 = vmatpush1.bf16.msra.mxu1 %v14455_v18  ;;  %16300 = vst [vmem:[#allocation151_spill] sm:$0xff] %v14485_v27  ;;  %v4638_v18 = vld [vmem:[#allocation10 + $0x358] sm:$0xff] }
 0x394   :  { %5401 = vmatprep.subr.bf16.mxu0 %v14459_v1  ;;  %5442 = vmatprep.subr.bf16.mxu1 %v14461_v35  ;;  %16299 = vst [vmem:[#allocation150_spill] sm:$0xff] %v14483_v59  ;;  %v4637_v35 = vld [vmem:[#allocation10 + $0x350] sm:$0xff]  ;;  %v4642_v31 = vld [vmem:[#allocation10 + $0x378] sm:$0xff] }
 0x395   :  { %v4641_v1 = vld [vmem:[#allocation10 + $0x370] sm:$0xff]  ;;  %v14497_v19 = vcombine.high %v4638_v18, %v4642_v31  ;;  %v14503_v14 = vcombine.low %v4638_v18, %v4642_v31 }
 0x396   :  { %v14495_v48 = vcombine.high %v4637_v35, %v4641_v1  ;;  %v14501_v54 = vcombine.low %v4637_v35, %v4641_v1 }
 0x397   :  { %5402 = vmatpush1.bf16.msra.mxu0 %v14465_v42  ;;  %5443 = vmatpush1.bf16.msra.mxu1 %v14467_v43  ;;  %16301 = vst [vmem:[#allocation152_spill] sm:$0xff] %v14497_v19  ;;  %v4646_v43 = vld [vmem:[#allocation10 + $0x398] sm:$0xff] }
 0x398   :  { %5403 = vmatprep.subr.bf16.mxu0 %v14471_v58  ;;  %5444 = vmatprep.subr.bf16.mxu1 %v14473_v49  ;;  %v4645_v49 = vld [vmem:[#allocation10 + $0x390] sm:$0xff]  ;;  %v4650_v42 = vld [vmem:[#allocation10 + $0x3b8] sm:$0xff]  ;;  %16302 = vst [vmem:[#allocation153_spill] sm:$0xff] %v14501_v54 }
 0x399   :  { %v4649_v58 = vld [vmem:[#allocation10 + $0x3b0] sm:$0xff]  ;;  %v14509_v7 = vcombine.high %v4646_v43, %v4650_v42  ;;  %v14515_v31 = vcombine.low %v4646_v43, %v4650_v42  ;;  %v16335_v42 = vld [vmem:[#allocation108_spill] sm:$0xff] }
 0x39a   :  { %v14507_v53 = vcombine.high %v4645_v49, %v4649_v58  ;;  %v14513_v1 = vcombine.low %v4645_v49, %v4649_v58  ;;  %v16336_v43 = vld [vmem:[#allocation110_spill] sm:$0xff]  ;;  %v16337_v58 = vld [vmem:[#allocation111_spill] sm:$0xff] }
 0x39b   :  { %5404 = vmatpush1.bf16.msra.mxu0 %v14477_v0  ;;  %5445 = vmatpush1.bf16.msra.mxu1 %v14479_v23  ;;  %v4654_v23 = vld [vmem:[#allocation10 + $0x3d8] sm:$0xff] }
 0x39c   :  { %5405 = vmatprep.subr.bf16.mxu0 %v14483_v59  ;;  %5446 = vmatprep.subr.bf16.mxu1 %v14485_v27  ;;  %v4653_v27 = vld [vmem:[#allocation10 + $0x3d0] sm:$0xff]  ;;  %v4658_v0 = vld [vmem:[#allocation10 + $0x3f8] sm:$0xff] }
 0x39d   :  { %v4657_v59 = vld [vmem:[#allocation10 + $0x3f0] sm:$0xff]  ;;  %v14521_v35 = vcombine.high %v4654_v23, %v4658_v0 }
 0x39e   :  { %v14519_v18 = vcombine.high %v4653_v27, %v4657_v59 }
 0x39f   :  { %5406 = vmatpush1.bf16.msra.mxu0 %v14489_v33  ;;  %5447 = vmatpush1.bf16.msra.mxu1 %v14491_v47 }
 0x3a0   :  { %5407 = vmatprep.subr.bf16.mxu0 %v14495_v48  ;;  %5448 = vmatprep.subr.bf16.mxu1 %v14497_v19  ;;  %v14525_v19 = vcombine.low %v4653_v27, %v4657_v59  ;;  %v16339_v27 = vld [vmem:[#allocation22_spill] sm:$0xff] }
 0x3a3   :  { %5408 = vmatpush1.bf16.msra.mxu0 %v14501_v54  ;;  %5449 = vmatpush1.bf16.msra.mxu1 %v14503_v14  ;;  %v14527_v54 = vcombine.low %v4654_v23, %v4658_v0  ;;  %v16338_v23 = vld [vmem:[#allocation21_spill] sm:$0xff] }
 0x3a4   :  { %5409 = vmatprep.subr.bf16.mxu0 %v14507_v53  ;;  %5450 = vmatprep.subr.bf16.mxu1 %v14509_v7 }
 0x3a7   :  { %5410 = vmatpush1.bf16.msra.mxu0 %v14513_v1  ;;  %5451 = vmatpush1.bf16.msra.mxu1 %v14515_v31 }
 0x3a8   :  { %5411 = vmatprep.subr.bf16.mxu0 %v14519_v18  ;;  %5452 = vmatprep.subr.bf16.mxu1 %v14521_v35 }
 0x3ab   :  { %5412 = vmatpush1.bf16.msra.mxu0 %v14525_v19  ;;  %5453 = vmatpush1.bf16.msra.mxu1 %v14527_v54 }
 0x3ac   :  { %6287 = vmatprep.subr.bf16.mxu0 %v14009_v26  ;;  %6328 = vmatprep.subr.bf16.mxu1 %v14013_v6  ;;  %v16304_v26 = vld [vmem:[#allocation58_spill] sm:$0xff]  ;;  %v16307_v6 = vld [vmem:[#allocation60_spill] sm:$0xff] }
 0x3ae   :  { %5414 = vmatmul.mubr.bf16.vlgmr.msra.gmra.mrb[44].mxu0 %v14347_v55  ;;  %5455 = vmatmul.mubr.bf16.vlgmr.msra.gmra.mrb[44].mxu1 %v14347_v55  ;;  %v16334_v55 = vld [vmem:[#allocation107_spill] sm:$0xff] }
 0x3af   :  { %6288 = vmatpush1.bf16.msra.mxu0 %v14007_v20  ;;  %6329 = vmatpush1.bf16.msra.mxu1 %v14011_v34  ;;  %v16303_v20 = vld [vmem:[#allocation56_spill] sm:$0xff]  ;;  %v16306_v34 = vld [vmem:[#allocation59_spill] sm:$0xff] }
 0x3b0   :  { %6289 = vmatprep.subr.bf16.mxu0 %v14015_v45  ;;  %6330 = vmatprep.subr.bf16.mxu1 %v14018_v29  ;;  %v16309_v45 = vld [vmem:[#allocation73_spill] sm:$0xff]  ;;  %v16311_v29 = vld [vmem:[#allocation71_spill] sm:$0xff] }
 0x3b3   :  { %6290 = vmatpush1.bf16.msra.mxu0 %v14022_v9  ;;  %6331 = vmatpush1.bf16.msra.mxu1 %v14026_v40  ;;  %v16312_v9 = vld [vmem:[#allocation74_spill] sm:$0xff]  ;;  %v16314_v40 = vld [vmem:[#allocation75_spill] sm:$0xff] }
 0x3b4   :  { %6291 = vmatprep.subr.bf16.mxu0 %v14028_v62  ;;  %6332 = vmatprep.subr.bf16.mxu1 %v14031_v41  ;;  %v16315_v62 = vld [vmem:[#allocation76_spill] sm:$0xff]  ;;  %v16316_v41 = vld [vmem:[#allocation83_spill] sm:$0xff] }
 0x3b7   :  { %6292 = vmatpush1.bf16.msra.mxu0 %v14034_v15  ;;  %6333 = vmatpush1.bf16.msra.mxu1 %v14038_v16  ;;  %v16317_v15 = vld [vmem:[#allocation89_spill] sm:$0xff]  ;;  %v16318_v16 = vld [vmem:[#allocation86_spill] sm:$0xff] }
 0x3b8   :  { %6293 = vmatprep.subr.bf16.mxu0 %v14040_v21  ;;  %6334 = vmatprep.subr.bf16.mxu1 %v14043_v32  ;;  %v16319_v21 = vld [vmem:[#allocation87_spill] sm:$0xff]  ;;  %v16320_v32 = vld [vmem:[#allocation90_spill] sm:$0xff] }
 0x3bb   :  { %6294 = vmatpush1.bf16.msra.mxu0 %v14046_v46  ;;  %6335 = vmatpush1.bf16.msra.mxu1 %v14050_v60  ;;  %v16321_v46 = vld [vmem:[#allocation93_spill] sm:$0xff]  ;;  %v16322_v60 = vld [vmem:[#allocation91_spill] sm:$0xff] }
 0x3bc   :  { %6295 = vmatprep.subr.bf16.mxu0 %v14052_v39  ;;  %6336 = vmatprep.subr.bf16.mxu1 %v14055_v8  ;;  %v16323_v39 = vld [vmem:[#allocation92_spill] sm:$0xff]  ;;  %v16324_v8 = vld [vmem:[#allocation98_spill] sm:$0xff] }
 0x3bf   :  { %6296 = vmatpush1.bf16.msra.mxu0 %v14058_v63  ;;  %6337 = vmatpush1.bf16.msra.mxu1 %v14062_v51  ;;  %v16325_v63 = vld [vmem:[#allocation101_spill] sm:$0xff]  ;;  %v16326_v51 = vld [vmem:[#allocation99_spill] sm:$0xff] }
 0x3c0   :  { %6297 = vmatprep.subr.bf16.mxu0 %v14064_v50  ;;  %6338 = vmatprep.subr.bf16.mxu1 %v14067_v10  ;;  %v16327_v50 = vld [vmem:[#allocation100_spill] sm:$0xff]  ;;  %v16328_v10 = vld [vmem:[#allocation102_spill] sm:$0xff] }
 0x3c3   :  { %6298 = vmatpush1.bf16.msra.mxu0 %v14070_v2  ;;  %6339 = vmatpush1.bf16.msra.mxu1 %v14075_v28  ;;  %v16305_v2 = vld [vmem:[#allocation61_spill] sm:$0xff] }
 0x3c4   :  { %6299 = vmatprep.subr.bf16.mxu0 %v14095_v22  ;;  %6340 = vmatprep.subr.bf16.mxu1 %v14101_v12  ;;  %v16308_v12 = vld [vmem:[#allocation67_spill] sm:$0xff]  ;;  %v16329_v28 = vld [vmem:[#allocation105_spill] sm:$0xff] }
 0x3c5   :  { %v16330_v22 = vld [vmem:[#allocation103_spill] sm:$0xff] }
 0x3c7   :  { %6300 = vmatpush1.bf16.msra.mxu0 %v14097_v57  ;;  %6341 = vmatpush1.bf16.msra.mxu1 %v14099_v13  ;;  %v16310_v13 = vld [vmem:[#allocation70_spill] sm:$0xff]  ;;  %v16331_v57 = vld [vmem:[#allocation104_spill] sm:$0xff] }
 0x3c8   :  { %6301 = vmatprep.subr.bf16.mxu0 %v14122_v5  ;;  %6342 = vmatprep.subr.bf16.mxu1 %v14138_v11  ;;  %v16332_v11 = vld [vmem:[#allocation106_spill] sm:$0xff]  ;;  %v16333_v5 = vld [vmem:[#allocation109_spill] sm:$0xff] }
 0x3cb   :  { %6302 = vmatpush1.bf16.msra.mxu0 %v14130_v36  ;;  %6343 = vmatpush1.bf16.msra.mxu1 %v16303_v20  ;;  %v16313_v36 = vld [vmem:[#allocation77_spill] sm:$0xff] }
 0x3cc   :  { %6303 = vmatprep.subr.bf16.mxu0 %v16304_v26  ;;  %6344 = vmatprep.subr.bf16.mxu1 %v16305_v2 }
 0x3cf   :  { %6304 = vmatpush1.bf16.msra.mxu0 %v16306_v34  ;;  %6345 = vmatpush1.bf16.msra.mxu1 %v16307_v6  ;;  %v16340_v34 = vld [vmem:[#allocation23_spill] sm:$0xff] }
 0x3d0   :  { %6305 = vmatprep.subr.bf16.mxu0 %v16308_v12  ;;  %6346 = vmatprep.subr.bf16.mxu1 %v16309_v45  ;;  %v16341_v12 = vld [vmem:[#allocation24_spill] sm:$0xff] }
 0x3d3   :  { %6306 = vmatpush1.bf16.msra.mxu0 %v16310_v13  ;;  %6347 = vmatpush1.bf16.msra.mxu1 %v16311_v29 }
 0x3d4   :  { %6307 = vmatprep.subr.bf16.mxu0 %v16312_v9  ;;  %6348 = vmatprep.subr.bf16.mxu1 %v16313_v36 }
 0x3d7   :  { %6308 = vmatpush1.bf16.msra.mxu0 %v16314_v40  ;;  %6349 = vmatpush1.bf16.msra.mxu1 %v16315_v62 }
 0x3d8   :  { %6309 = vmatprep.subr.bf16.mxu0 %v16316_v41  ;;  %6350 = vmatprep.subr.bf16.mxu1 %v16317_v15 }
 0x3db   :  { %6310 = vmatpush1.bf16.msra.mxu0 %v16318_v16  ;;  %6351 = vmatpush1.bf16.msra.mxu1 %v16319_v21 }
 0x3dc   :  { %6311 = vmatprep.subr.bf16.mxu0 %v16320_v32  ;;  %6352 = vmatprep.subr.bf16.mxu1 %v16321_v46 }
 0x3df   :  { %6312 = vmatpush1.bf16.msra.mxu0 %v16322_v60  ;;  %6353 = vmatpush1.bf16.msra.mxu1 %v16323_v39 }
 0x3e0   :  { %6313 = vmatprep.subr.bf16.mxu0 %v16324_v8  ;;  %6354 = vmatprep.subr.bf16.mxu1 %v16325_v63 }
 0x3e3   :  { %6314 = vmatpush1.bf16.msra.mxu0 %v16326_v51  ;;  %6355 = vmatpush1.bf16.msra.mxu1 %v16327_v50 }
 0x3e4   :  { %6315 = vmatprep.subr.bf16.mxu0 %v16328_v10  ;;  %6356 = vmatprep.subr.bf16.mxu1 %v16329_v28  ;;  %v16342_v10 = vld [vmem:[#allocation94_spill] sm:$0xff] }
 0x3e7   :  { %6316 = vmatpush1.bf16.msra.mxu0 %v16330_v22  ;;  %6357 = vmatpush1.bf16.msra.mxu1 %v16331_v57  ;;  %v16343_v22 = vld [vmem:[#allocation95_spill] sm:$0xff] }
 0x3e8   :  { %6317 = vmatprep.subr.bf16.mxu0 %v16332_v11  ;;  %6358 = vmatprep.subr.bf16.mxu1 %v16333_v5 }
 0x3eb   :  { %6318 = vmatpush1.bf16.msra.mxu0 %v16334_v55  ;;  %6359 = vmatpush1.bf16.msra.mxu1 %v16335_v42  ;;  %v16344_v55 = vld [vmem:[#allocation96_spill] sm:$0xff] }
 0x3ec   :  { %6369 = vmatprep.subr.bf16.mxu0 %v16336_v43  ;;  %6410 = vmatprep.subr.bf16.mxu1 %v16337_v58  ;;  %v16345_v43 = vld [vmem:[#allocation97_spill] sm:$0xff] }
 0x441   :  { %v5333_v49 = vpop.f32.mrb[40].mxu0  ;;  %v5374_v0 = vpop.f32.mrb[40].mxu1 }
 0x442   :  { %v5467_v59 = vadd.f32 %v16338_v23, %v5333_v49  ;;  %v5469_v20 = vadd.f32 %v16339_v27, %v5374_v0  ;;  %v5335_v26 = vpop.f32.mrb[41].mxu0  ;;  %v5376_v2 = vpop.f32.mrb[41].mxu1 }
 0x443   :  { %v5468_v6 = vadd.f32 %v16340_v34, %v5335_v26  ;;  %v5470_v45 = vadd.f32 %v16341_v12, %v5376_v2  ;;  %v5337_v13 = vpop.f32.mrb[42].mxu0  ;;  %v5378_v29 = vpop.f32.mrb[42].mxu1 }
 0x444   :  { %v5479_v9 = vmul.f32 0.5, %v5467_v59  ;;  %v5338_v36 = vpop.f32.mrb[43].mxu0  ;;  %v5379_v40 = vpop.f32.mrb[43].mxu1 }
 0x445   :  { %v5483_v62 = vmul.f32 0.5, %v5468_v6 }
 0x446   :  { %13429 = vtanh.f32 %v5479_v9 }
 0x447   :  { %13431 = vtanh.f32 %v5483_v62 }
 0x448   :  { %13433 = vtanh.f32 %v5469_v20  ;;  %v5488_v20 = vmul.f32 0.5, %v5470_v45 }
 0x450   :  { %v13430_v41 = vpop.eup %13429 }
 0x451   :  { %v13432_v15 = vpop.eup %13431  ;;  %v5481_v16 = vmul.f32 0.5, %v13430_v41 }
 0x452   :  { %v5485_v21 = vmul.f32 0.5, %v13432_v15  ;;  %v13434_v46 = vpop.eup %13433 }
 0x453   :  { %v5482_v32 = vadd.f32 0.5, %v5481_v16 }
 0x454   :  { %v5486_v60 = vadd.f32 0.5, %v5485_v21 }
 0x455   :  { %v5493_v39 = vmul.f32 %v13434_v46, %v5482_v32 }
 0x456   :  { %v5492_v8 = vmul.f32 %v5486_v60, %v14325_v38 }
 0x458   :  { %v14606_v63 = vadd.f32 %v5493_v39, %v5492_v8 }
 0x481   :  { %v5415_v51 = vpop.f32.mrb[44].mxu0  ;;  %v5456_v50 = vpop.f32.mrb[44].mxu1 }
 0x482   :  { %v5475_v28 = vadd.f32 %v16342_v10, %v5415_v51  ;;  %v5477_v57 = vadd.f32 %v16343_v22, %v5456_v50  ;;  %v5417_v11 = vpop.f32.mrb[45].mxu0  ;;  %v5458_v5 = vpop.f32.mrb[45].mxu1  ;;  %v16350_v50 = vld [vmem:[#allocation116_spill] sm:$0xff]  ;;  %v16359_v10 = vld [vmem:[#allocation125_spill] sm:$0xff]  ;;  %v16361_v22 = vld [vmem:[#allocation127_spill] sm:$0xff] }
 0x483   :  { %v5476_v42 = vadd.f32 %v16344_v55, %v5417_v11  ;;  %v5478_v58 = vadd.f32 %v16345_v43, %v5458_v5  ;;  %v5419_v49 = vpop.f32.mrb[46].mxu0  ;;  %v5460_v0 = vpop.f32.mrb[46].mxu1  ;;  %v16363_v11 = vld [vmem:[#allocation129_spill] sm:$0xff]  ;;  %v16364_v5 = vld [vmem:[#allocation130_spill] sm:$0xff]  ;;  %v16365_v55 = vld [vmem:[#allocation131_spill] sm:$0xff] }
 0x484   :  { %v5497_v23 = vmul.f32 0.5, %v5475_v28  ;;  %v5420_v59 = vpop.f32.mrb[47].mxu0  ;;  %v5461_v27 = vpop.f32.mrb[47].mxu1  ;;  %v16360_v28 = vld [vmem:[#allocation126_spill] sm:$0xff]  ;;  %v16367_v43 = vld [vmem:[#allocation133_spill] sm:$0xff]  ;;  %v16369_v49 = vld [vmem:[#allocation135_spill] sm:$0xff] }
 0x485   :  { %v5501_v38 = vmul.f32 0.5, %v5476_v42  ;;  %v5506_v26 = vmul.f32 0.5, %v5478_v58  ;;  %v16366_v42 = vld [vmem:[#allocation132_spill] sm:$0xff]  ;;  %v16368_v58 = vld [vmem:[#allocation134_spill] sm:$0xff]  ;;  %v16373_v27 = vld [vmem:[#allocation139_spill] sm:$0xff] }
 0x486   :  { %13435 = vtanh.f32 %v5497_v23  ;;  %v16370_v0 = vld [vmem:[#allocation136_spill] sm:$0xff]  ;;  %v16371_v23 = vld [vmem:[#allocation137_spill] sm:$0xff]  ;;  %v16372_v59 = vld [vmem:[#allocation138_spill] sm:$0xff] }
 0x487   :  { %13437 = vtanh.f32 %v5501_v38  ;;  %v16374_v38 = vld [vmem:[#allocation140_spill] sm:$0xff] }
 0x488   :  { %13439 = vtanh.f32 %v5477_v57  ;;  %v16362_v57 = vld [vmem:[#allocation128_spill] sm:$0xff] }
 0x489   :  { %13441 = vtanh.f32 %v5488_v20  ;;  %v16375_v20 = vld [vmem:[#allocation141_spill] sm:$0xff] }
 0x48a   :  { %13443 = vtanh.f32 %v5506_v26  ;;  %v16376_v26 = vld [vmem:[#allocation142_spill] sm:$0xff] }
 0x48b   :  { %13445 = vtanh.f32 %v14606_v63 }
 0x490   :  { %v13436_v2 = vpop.eup %13435 }
 0x491   :  { %v13438_v34 = vpop.eup %13437  ;;  %v5499_v6 = vmul.f32 0.5, %v13436_v2  ;;  %v16377_v2 = vld [vmem:[#allocation143_spill] sm:$0xff] }
 0x492   :  { %v5503_v12 = vmul.f32 0.5, %v13438_v34  ;;  %v13440_v29 = vpop.eup %13439  ;;  %v16378_v34 = vld [vmem:[#allocation144_spill] sm:$0xff] }
 0x493   :  { %v5500_v13 = vadd.f32 0.5, %v5499_v6  ;;  %v13442_v45 = vpop.eup %13441  ;;  %v16379_v6 = vld [vmem:[#allocation145_spill] sm:$0xff] }
 0x494   :  { %v5504_v9 = vadd.f32 0.5, %v5503_v12  ;;  %v13444_v41 = vpop.eup %13443  ;;  %v5490_v15 = vmul.f32 0.5, %v13442_v45  ;;  %v16380_v12 = vld [vmem:[#allocation146_spill] sm:$0xff]  ;;  %v16386_v45 = vld [vmem:[#allocation152_spill] sm:$0xff] }
 0x495   :  { %v5511_v36 = vmul.f32 %v13440_v29, %v5500_v13  ;;  %v5508_v16 = vmul.f32 0.5, %v13444_v41  ;;  %v13446_v21 = vpop.eup %13445  ;;  %v16381_v13 = vld [vmem:[#allocation147_spill] sm:$0xff]  ;;  %v16382_v29 = vld [vmem:[#allocation148_spill] sm:$0xff]  ;;  %v16387_v41 = vld [vmem:[#allocation153_spill] sm:$0xff] }
 0x496   :  { %v5510_v40 = vmul.f32 %v5504_v9, %v14336_v52  ;;  %v5491_v32 = vadd.f32 0.5, %v5490_v15  ;;  %v16383_v9 = vld [vmem:[#allocation149_spill] sm:$0xff] }
 0x497   :  { %v5509_v46 = vadd.f32 0.5, %v5508_v16  ;;  %v6520_v15 = vld [vmem:[#allocation10 + $0x68] sm:$0xff]  ;;  %v6523_v16 = vld [vmem:[#allocation10 + $0x80] sm:$0xff] }
 0x498   :  { %v14614_v62 = vadd.f32 %v5511_v36, %v5510_v40  ;;  %v14617_v39 = vmul.f32 %v13446_v21, %v5491_v32  ;;  %v16384_v36 = vld [vmem:[#allocation150_spill] sm:$0xff]  ;;  %v16385_v40 = vld [vmem:[#allocation151_spill] sm:$0xff]  ;;  %v6527_v32 = vld [vmem:[#allocation10 + $0xa0] sm:$0xff] }
 0x49a   :  { %13447 = vtanh.f32 %v14614_v62  ;;  %16346 = vst [vmem:[#allocation56_spill] sm:$0xff] %v14617_v39  ;;  %v14625_v51 = vpack.c.bf16 %v14617_v39, %v14617_v39  ;;  %v6616_v39 = vld [vmem:[#allocation10 + $0x368] sm:$0xff] }
 0x4a4   :  { %v13448_v60 = vpop.eup %13447 }
 0x4a5   :  { %v14619_v8 = vmul.f32 %v13448_v60, %v5509_v46  ;;  %v6524_v46 = vld [vmem:[#allocation10 + $0x88] sm:$0xff] }
 0x4a6   :  { %v6528_v60 = vld [vmem:[#allocation10 + $0xa8] sm:$0xff] }
 0x4a7   :  { %16347 = vst [vmem:[#allocation58_spill] sm:$0xff] %v14619_v8  ;;  %v5518_v52 = vpack.c.bf16 %v14619_v8, %v14619_v8  ;;  %v6623_v8 = vld [vmem:[#allocation10 + $0x3a0] sm:$0xff] }
 0x4a9   :  { %6319 = vmatprep.mubr.bf16.mxu0 %v5518_v52  ;;  %6360 = vmatprep.mubr.bf16.mxu1 %v5518_v52 }
 0x4aa   :  { %6320 = vmatmul.mubr.bf16.vlgmr.msra.gmra.mrb[48].mxu0 %v14625_v51  ;;  %6361 = vmatmul.mubr.bf16.vlgmr.msra.gmra.mrb[48].mxu1 %v14625_v51 }
 0x4ab   :  { %6370 = vmatpush1.bf16.msra.mxu0 %v14309_v17  ;;  %6411 = vmatpush1.bf16.msra.mxu1 %v14311_v24  ;;  %v16348_v17 = vld [vmem:[#allocation114_spill] sm:$0xff]  ;;  %v16349_v24 = vld [vmem:[#allocation115_spill] sm:$0xff] }
 0x4ac   :  { %6401 = vmatprep.mubr.bf16.mxu0 %v5518_v52  ;;  %6442 = vmatprep.mubr.bf16.mxu1 %v5518_v52 }
 0x4ad   :  { %6371 = vmatprep.subr.bf16.mxu0 %v14349_v3  ;;  %6412 = vmatprep.subr.bf16.mxu1 %v14351_v44  ;;  %v16351_v3 = vld [vmem:[#allocation117_spill] sm:$0xff]  ;;  %v16352_v44 = vld [vmem:[#allocation118_spill] sm:$0xff] }
 0x4af   :  { %6372 = vmatpush1.bf16.msra.mxu0 %v14357_v56  ;;  %6413 = vmatpush1.bf16.msra.mxu1 %v14359_v61  ;;  %v16353_v56 = vld [vmem:[#allocation119_spill] sm:$0xff]  ;;  %v16354_v61 = vld [vmem:[#allocation120_spill] sm:$0xff] }
 0x4b0   :  { %6373 = vmatprep.subr.bf16.mxu0 %v14361_v25  ;;  %6414 = vmatprep.subr.bf16.mxu1 %v14363_v30  ;;  %v16355_v25 = vld [vmem:[#allocation121_spill] sm:$0xff]  ;;  %v16356_v30 = vld [vmem:[#allocation122_spill] sm:$0xff] }
 0x4b3   :  { %6374 = vmatpush1.bf16.msra.mxu0 %v14369_v4  ;;  %6415 = vmatpush1.bf16.msra.mxu1 %v14371_v37  ;;  %v16357_v4 = vld [vmem:[#allocation123_spill] sm:$0xff]  ;;  %v16358_v37 = vld [vmem:[#allocation124_spill] sm:$0xff] }
 0x4b4   :  { %6375 = vmatprep.subr.bf16.mxu0 %v16348_v17  ;;  %6416 = vmatprep.subr.bf16.mxu1 %v16349_v24  ;;  %v14714_v17 = vcombine.high %v6523_v16, %v6527_v32  ;;  %v14717_v24 = vcombine.high %v6524_v46, %v6528_v60 }
 0x4b7   :  { %6376 = vmatpush1.bf16.msra.mxu0 %v16350_v50  ;;  %6417 = vmatpush1.bf16.msra.mxu1 %v16351_v3  ;;  %v6531_v50 = vld [vmem:[#allocation10 + $0xc0] sm:$0xff] }
 0x4b8   :  { %6377 = vmatprep.subr.bf16.mxu0 %v16352_v44  ;;  %6418 = vmatprep.subr.bf16.mxu1 %v16353_v56  ;;  %v6535_v3 = vld [vmem:[#allocation10 + $0xe0] sm:$0xff]  ;;  %v6532_v44 = vld [vmem:[#allocation10 + $0xc8] sm:$0xff] }
 0x4b9   :  { %v6536_v56 = vld [vmem:[#allocation10 + $0xe8] sm:$0xff] }
 0x4bb   :  { %6378 = vmatpush1.bf16.msra.mxu0 %v16354_v61  ;;  %6419 = vmatpush1.bf16.msra.mxu1 %v16355_v25  ;;  %v14720_v61 = vcombine.low %v6523_v16, %v6527_v32  ;;  %v14724_v25 = vcombine.low %v6524_v46, %v6528_v60  ;;  %v6576_v16 = vld [vmem:[#allocation10 + $0x228] sm:$0xff] }
 0x4bc   :  { %6379 = vmatprep.subr.bf16.mxu0 %v16356_v30  ;;  %6420 = vmatprep.subr.bf16.mxu1 %v16357_v4  ;;  %v14726_v30 = vcombine.high %v6531_v50, %v6535_v3  ;;  %v14729_v4 = vcombine.high %v6532_v44, %v6536_v56 }
 0x4bf   :  { %6380 = vmatpush1.bf16.msra.mxu0 %v16358_v37  ;;  %6421 = vmatpush1.bf16.msra.mxu1 %v16359_v10  ;;  %v6539_v37 = vld [vmem:[#allocation10 + $0x100] sm:$0xff] }
 0x4c0   :  { %6381 = vmatprep.subr.bf16.mxu0 %v16360_v28  ;;  %6422 = vmatprep.subr.bf16.mxu1 %v16361_v22  ;;  %v6543_v10 = vld [vmem:[#allocation10 + $0x120] sm:$0xff]  ;;  %v6540_v28 = vld [vmem:[#allocation10 + $0x108] sm:$0xff] }
 0x4c1   :  { %v6544_v22 = vld [vmem:[#allocation10 + $0x128] sm:$0xff] }
 0x4c3   :  { %6382 = vmatpush1.bf16.msra.mxu0 %v16362_v57  ;;  %6423 = vmatpush1.bf16.msra.mxu1 %v16363_v11  ;;  %v14732_v57 = vcombine.low %v6531_v50, %v6535_v3  ;;  %v14736_v11 = vcombine.low %v6532_v44, %v6536_v56  ;;  %v6579_v50 = vld [vmem:[#allocation10 + $0x240] sm:$0xff]  ;;  %v6580_v44 = vld [vmem:[#allocation10 + $0x248] sm:$0xff] }
 0x4c4   :  { %6383 = vmatprep.subr.bf16.mxu0 %v16364_v5  ;;  %6424 = vmatprep.subr.bf16.mxu1 %v16365_v55  ;;  %v14738_v5 = vcombine.high %v6539_v37, %v6543_v10  ;;  %v14741_v55 = vcombine.high %v6540_v28, %v6544_v22  ;;  %v6583_v3 = vld [vmem:[#allocation10 + $0x260] sm:$0xff] }
 0x4c5   :  { %v14801_v56 = vcombine.high %v6579_v50, %v6583_v3 }
 0x4c7   :  { %6384 = vmatpush1.bf16.msra.mxu0 %v16366_v42  ;;  %6425 = vmatpush1.bf16.msra.mxu1 %v16367_v43  ;;  %v6547_v42 = vld [vmem:[#allocation10 + $0x140] sm:$0xff] }
 0x4c8   :  { %6385 = vmatprep.subr.bf16.mxu0 %v16368_v58  ;;  %6426 = vmatprep.subr.bf16.mxu1 %v16369_v49  ;;  %v6551_v43 = vld [vmem:[#allocation10 + $0x160] sm:$0xff]  ;;  %v6548_v58 = vld [vmem:[#allocation10 + $0x148] sm:$0xff] }
 0x4c9   :  { %v6552_v49 = vld [vmem:[#allocation10 + $0x168] sm:$0xff] }
 0x4cb   :  { %6386 = vmatpush1.bf16.msra.mxu0 %v16370_v0  ;;  %6427 = vmatpush1.bf16.msra.mxu1 %v16371_v23  ;;  %v14744_v0 = vcombine.low %v6539_v37, %v6543_v10  ;;  %v14748_v23 = vcombine.low %v6540_v28, %v6544_v22  ;;  %v6584_v37 = vld [vmem:[#allocation10 + $0x268] sm:$0xff]  ;;  %v14803_v10 = vcombine.low %v6579_v50, %v6583_v3  ;;  %v6603_v50 = vld [vmem:[#allocation10 + $0x300] sm:$0xff] }
 0x4cc   :  { %6387 = vmatprep.subr.bf16.mxu0 %v16372_v59  ;;  %6428 = vmatprep.subr.bf16.mxu1 %v16373_v27  ;;  %v14750_v59 = vcombine.high %v6547_v42, %v6551_v43  ;;  %v14753_v27 = vcombine.high %v6548_v58, %v6552_v49  ;;  %v14805_v28 = vcombine.low %v6580_v44, %v6584_v37  ;;  %v6607_v3 = vld [vmem:[#allocation10 + $0x320] sm:$0xff] }
 0x4cd   :  { %16388 = vst [vmem:[#allocation61_spill] sm:$0xff] %v14803_v10  ;;  %v14807_v22 = vcombine.high %v6580_v44, %v6584_v37  ;;  %v6604_v44 = vld [vmem:[#allocation10 + $0x308] sm:$0xff]  ;;  %v14837_v37 = vcombine.high %v6603_v50, %v6607_v3 }
 0x4ce   :  { %16389 = vst [vmem:[#allocation59_spill] sm:$0xff] %v14805_v28 }
 0x4cf   :  { %6388 = vmatpush1.bf16.msra.mxu0 %v16374_v38  ;;  %6429 = vmatpush1.bf16.msra.mxu1 %v16375_v20  ;;  %v14756_v38 = vcombine.low %v6547_v42, %v6551_v43  ;;  %v14760_v20 = vcombine.low %v6548_v58, %v6552_v49  ;;  %v6587_v42 = vld [vmem:[#allocation10 + $0x280] sm:$0xff]  ;;  %v6588_v58 = vld [vmem:[#allocation10 + $0x288] sm:$0xff]  ;;  %16398 = vst [vmem:[#allocation76_spill] sm:$0xff] %v14837_v37 }
 0x4d0   :  { %6389 = vmatprep.subr.bf16.mxu0 %v16376_v26  ;;  %6430 = vmatprep.subr.bf16.mxu1 %v16377_v2  ;;  %v6555_v26 = vld [vmem:[#allocation10 + $0x180] sm:$0xff] }
 0x4d1   :  { %v6559_v2 = vld [vmem:[#allocation10 + $0x1a0] sm:$0xff] }
 0x4d2   :  { %v6591_v43 = vld [vmem:[#allocation10 + $0x2a0] sm:$0xff] }
 0x4d3   :  { %6390 = vmatpush1.bf16.msra.mxu0 %v16378_v34  ;;  %6431 = vmatpush1.bf16.msra.mxu1 %v16379_v6  ;;  %v6556_v34 = vld [vmem:[#allocation10 + $0x188] sm:$0xff]  ;;  %v14765_v6 = vcombine.high %v6555_v26, %v6559_v2  ;;  %v14813_v49 = vcombine.high %v6587_v42, %v6591_v43 }
 0x4d4   :  { %6391 = vmatprep.subr.bf16.mxu0 %v16380_v12  ;;  %6432 = vmatprep.subr.bf16.mxu1 %v16381_v13  ;;  %v6560_v12 = vld [vmem:[#allocation10 + $0x1a8] sm:$0xff]  ;;  %v14767_v13 = vcombine.low %v6555_v26, %v6559_v2  ;;  %v14815_v2 = vcombine.low %v6587_v42, %v6591_v43  ;;  %v14839_v43 = vcombine.low %v6603_v50, %v6607_v3 }
 0x4d5   :  { %16390 = vst [vmem:[#allocation60_spill] sm:$0xff] %v14813_v49  ;;  %v6592_v26 = vld [vmem:[#allocation10 + $0x2a8] sm:$0xff] }
 0x4d6   :  { %16391 = vst [vmem:[#allocation67_spill] sm:$0xff] %v14815_v2  ;;  %v6608_v42 = vld [vmem:[#allocation10 + $0x328] sm:$0xff]  ;;  %16399 = vst [vmem:[#allocation83_spill] sm:$0xff] %v14839_v43 }
 0x4d7   :  { %6392 = vmatpush1.bf16.msra.mxu0 %v16382_v29  ;;  %6433 = vmatpush1.bf16.msra.mxu1 %v16383_v9  ;;  %v14769_v29 = vcombine.low %v6556_v34, %v6560_v12  ;;  %v14771_v9 = vcombine.high %v6556_v34, %v6560_v12  ;;  %v14817_v34 = vcombine.low %v6588_v58, %v6592_v26 }
 0x4d8   :  { %6393 = vmatprep.subr.bf16.mxu0 %v16384_v36  ;;  %6434 = vmatprep.subr.bf16.mxu1 %v16385_v40  ;;  %v6563_v36 = vld [vmem:[#allocation10 + $0x1c0] sm:$0xff]  ;;  %v14819_v12 = vcombine.high %v6588_v58, %v6592_v26  ;;  %v14841_v58 = vcombine.low %v6604_v44, %v6608_v42  ;;  %v14843_v26 = vcombine.high %v6604_v44, %v6608_v42 }
 0x4d9   :  { %v6567_v40 = vld [vmem:[#allocation10 + $0x1e0] sm:$0xff]  ;;  %16392 = vst [vmem:[#allocation73_spill] sm:$0xff] %v14817_v34 }
 0x4da   :  { %16393 = vst [vmem:[#allocation70_spill] sm:$0xff] %v14819_v12  ;;  %16400 = vst [vmem:[#allocation89_spill] sm:$0xff] %v14841_v58  ;;  %v6619_v42 = vld [vmem:[#allocation10 + $0x380] sm:$0xff] }
 0x4db   :  { %6394 = vmatpush1.bf16.msra.mxu0 %v14489_v33  ;;  %6435 = vmatpush1.bf16.msra.mxu1 %v14491_v47  ;;  %v6507_v33 = vld [vmem:[#allocation10] sm:$0xff]  ;;  %16401 = vst [vmem:[#allocation86_spill] sm:$0xff] %v14843_v26 }
 0x4dc   :  { %6395 = vmatprep.subr.bf16.mxu0 %v14495_v48  ;;  %6436 = vmatprep.subr.bf16.mxu1 %v16386_v45  ;;  %v6511_v47 = vld [vmem:[#allocation10 + $0x20] sm:$0xff]  ;;  %v6508_v48 = vld [vmem:[#allocation10 + $0x8] sm:$0xff] }
 0x4dd   :  { %v6564_v45 = vld [vmem:[#allocation10 + $0x1c8] sm:$0xff] }
 0x4df   :  { %6396 = vmatpush1.bf16.msra.mxu0 %v16387_v41  ;;  %6437 = vmatpush1.bf16.msra.mxu1 %v14503_v14  ;;  %v14693_v14 = vcombine.low %v6507_v33, %v6511_v47  ;;  %v14777_v41 = vcombine.high %v6563_v36, %v6567_v40 }
 0x4e0   :  { %6397 = vmatprep.subr.bf16.mxu0 %v14507_v53  ;;  %6438 = vmatprep.subr.bf16.mxu1 %v14509_v7  ;;  %v14695_v53 = vcombine.high %v6507_v33, %v6511_v47  ;;  %v6512_v7 = vld [vmem:[#allocation10 + $0x28] sm:$0xff]  ;;  %v14779_v47 = vcombine.low %v6563_v36, %v6567_v40  ;;  %v6595_v36 = vld [vmem:[#allocation10 + $0x2c0] sm:$0xff] }
 0x4e1   :  { %v6568_v33 = vld [vmem:[#allocation10 + $0x1e8] sm:$0xff]  ;;  %v6599_v40 = vld [vmem:[#allocation10 + $0x2e0] sm:$0xff] }
 0x4e3   :  { %6398 = vmatpush1.bf16.msra.mxu0 %v14513_v1  ;;  %6439 = vmatpush1.bf16.msra.mxu1 %v14515_v31  ;;  %v6515_v1 = vld [vmem:[#allocation10 + $0x40] sm:$0xff] }
 0x4e4   :  { %6399 = vmatprep.subr.bf16.mxu0 %v14519_v18  ;;  %6440 = vmatprep.subr.bf16.mxu1 %v14521_v35  ;;  %v6519_v31 = vld [vmem:[#allocation10 + $0x60] sm:$0xff]  ;;  %v14697_v18 = vcombine.low %v6508_v48, %v6512_v7  ;;  %v14699_v35 = vcombine.high %v6508_v48, %v6512_v7  ;;  %v14781_v48 = vcombine.low %v6564_v45, %v6568_v33 }
 0x4e5   :  { %v14708_v52 = vcombine.low %v6515_v1, %v6519_v31  ;;  %v14783_v7 = vcombine.high %v6564_v45, %v6568_v33  ;;  %v6596_v45 = vld [vmem:[#allocation10 + $0x2c8] sm:$0xff]  ;;  %v14825_v33 = vcombine.high %v6595_v36, %v6599_v40 }
 0x4e7   :  { %6400 = vmatpush1.bf16.msra.mxu0 %v14525_v19  ;;  %6441 = vmatpush1.bf16.msra.mxu1 %v14527_v54  ;;  %v14701_v19 = vcombine.high %v6515_v1, %v6519_v31  ;;  %v6516_v54 = vld [vmem:[#allocation10 + $0x48] sm:$0xff]  ;;  %v6571_v1 = vld [vmem:[#allocation10 + $0x200] sm:$0xff]  ;;  %16394 = vst [vmem:[#allocation71_spill] sm:$0xff] %v14825_v33 }
 0x4e8   :  { %7275 = vmatprep.subr.bf16.mxu0 %v14695_v53  ;;  %v14704_v21 = vcombine.high %v6516_v54, %v6520_v15  ;;  %7316 = vmatprep.subr.bf16.mxu1 %v14699_v35  ;;  %v6575_v31 = vld [vmem:[#allocation10 + $0x220] sm:$0xff] }
 0x4e9   :  { %v14791_v32 = vcombine.low %v6571_v1, %v6575_v31 }
 0x4ea   :  { %6402 = vmatmul.mubr.bf16.vlgmr.msra.gmra.mrb[52].mxu0 %v14625_v51  ;;  %6443 = vmatmul.mubr.bf16.vlgmr.msra.gmra.mrb[52].mxu1 %v14625_v51  ;;  %v14712_v51 = vcombine.low %v6516_v54, %v6520_v15  ;;  %v6572_v54 = vld [vmem:[#allocation10 + $0x208] sm:$0xff]  ;;  %v14789_v15 = vcombine.high %v6571_v1, %v6575_v31  ;;  %v14827_v31 = vcombine.low %v6595_v36, %v6599_v40  ;;  %v6611_v36 = vld [vmem:[#allocation10 + $0x340] sm:$0xff] }
 0x4eb   :  { %7276 = vmatpush1.bf16.msra.mxu0 %v14693_v14  ;;  %7317 = vmatpush1.bf16.msra.mxu1 %v14697_v18  ;;  %v14793_v46 = vcombine.low %v6572_v54, %v6576_v16  ;;  %v14795_v60 = vcombine.high %v6572_v54, %v6576_v16  ;;  %v6600_v1 = vld [vmem:[#allocation10 + $0x2e8] sm:$0xff]  ;;  %v6615_v40 = vld [vmem:[#allocation10 + $0x360] sm:$0xff] }
 0x4ec   :  { %7277 = vmatprep.subr.bf16.mxu0 %v14701_v19  ;;  %7318 = vmatprep.subr.bf16.mxu1 %v14704_v21  ;;  %16395 = vst [vmem:[#allocation74_spill] sm:$0xff] %v14827_v31  ;;  %v14829_v54 = vcombine.low %v6596_v45, %v6600_v1  ;;  %v14831_v16 = vcombine.high %v6596_v45, %v6600_v1  ;;  %v6612_v45 = vld [vmem:[#allocation10 + $0x348] sm:$0xff] }
 0x4ed   :  { %v14849_v1 = vcombine.high %v6611_v36, %v6615_v40  ;;  %v14851_v50 = vcombine.low %v6611_v36, %v6615_v40  ;;  %v14853_v3 = vcombine.low %v6612_v45, %v6616_v39  ;;  %v14855_v44 = vcombine.high %v6612_v45, %v6616_v39  ;;  %v6627_v45 = vld [vmem:[#allocation10 + $0x3c0] sm:$0xff] }
 0x4ee   :  { %16396 = vst [vmem:[#allocation77_spill] sm:$0xff] %v14829_v54  ;;  %16397 = vst [vmem:[#allocation75_spill] sm:$0xff] %v14831_v16  ;;  %v14863_v36 = vcombine.low %v6619_v42, %v6623_v8 }
 0x4ef   :  { %7278 = vmatpush1.bf16.msra.mxu0 %v14708_v52  ;;  %7319 = vmatpush1.bf16.msra.mxu1 %v14712_v51  ;;  %16402 = vst [vmem:[#allocation87_spill] sm:$0xff] %v14849_v1  ;;  %16403 = vst [vmem:[#allocation90_spill] sm:$0xff] %v14851_v50 }
 0x4f0   :  { %7279 = vmatprep.subr.bf16.mxu0 %v14714_v17  ;;  %7320 = vmatprep.subr.bf16.mxu1 %v14717_v24  ;;  %16404 = vst [vmem:[#allocation93_spill] sm:$0xff] %v14853_v3  ;;  %16405 = vst [vmem:[#allocation91_spill] sm:$0xff] %v14855_v44 }
 0x4f1   :  { %16407 = vst [vmem:[#allocation98_spill] sm:$0xff] %v14863_v36 }
 0x4f3   :  { %7280 = vmatpush1.bf16.msra.mxu0 %v14720_v61  ;;  %7321 = vmatpush1.bf16.msra.mxu1 %v14724_v25 }
 0x4f4   :  { %7281 = vmatprep.subr.bf16.mxu0 %v14726_v30  ;;  %7322 = vmatprep.subr.bf16.mxu1 %v14729_v4 }
 0x4f7   :  { %7282 = vmatpush1.bf16.msra.mxu0 %v14732_v57  ;;  %7323 = vmatpush1.bf16.msra.mxu1 %v14736_v11 }
 0x4f8   :  { %7283 = vmatprep.subr.bf16.mxu0 %v14738_v5  ;;  %7324 = vmatprep.subr.bf16.mxu1 %v14741_v55 }
 0x4fb   :  { %7284 = vmatpush1.bf16.msra.mxu0 %v14744_v0  ;;  %7325 = vmatpush1.bf16.msra.mxu1 %v14748_v23 }
 0x4fc   :  { %7285 = vmatprep.subr.bf16.mxu0 %v14750_v59  ;;  %7326 = vmatprep.subr.bf16.mxu1 %v14753_v27 }
 0x4ff   :  { %7286 = vmatpush1.bf16.msra.mxu0 %v14756_v38  ;;  %7327 = vmatpush1.bf16.msra.mxu1 %v14760_v20 }
 0x500   :  { %7287 = vmatprep.subr.bf16.mxu0 %v14765_v6  ;;  %7328 = vmatprep.subr.bf16.mxu1 %v14771_v9 }
 0x503   :  { %7288 = vmatpush1.bf16.msra.mxu0 %v14767_v13  ;;  %7329 = vmatpush1.bf16.msra.mxu1 %v14769_v29 }
 0x504   :  { %7289 = vmatprep.subr.bf16.mxu0 %v14777_v41  ;;  %7330 = vmatprep.subr.bf16.mxu1 %v14783_v7 }
 0x507   :  { %7290 = vmatpush1.bf16.msra.mxu0 %v14779_v47  ;;  %7331 = vmatpush1.bf16.msra.mxu1 %v14781_v48 }
 0x508   :  { %7291 = vmatprep.subr.bf16.mxu0 %v14789_v15  ;;  %7332 = vmatprep.subr.bf16.mxu1 %v14795_v60 }
 0x50b   :  { %7292 = vmatpush1.bf16.msra.mxu0 %v14791_v32  ;;  %7333 = vmatpush1.bf16.msra.mxu1 %v14793_v46 }
 0x50c   :  { %7293 = vmatprep.subr.bf16.mxu0 %v14801_v56  ;;  %7334 = vmatprep.subr.bf16.mxu1 %v14807_v22 }
 0x50f   :  { %7294 = vmatpush1.bf16.msra.mxu0 %v14803_v10  ;;  %7335 = vmatpush1.bf16.msra.mxu1 %v14805_v28 }
 0x510   :  { %7295 = vmatprep.subr.bf16.mxu0 %v14813_v49  ;;  %7336 = vmatprep.subr.bf16.mxu1 %v14819_v12 }
 0x513   :  { %7296 = vmatpush1.bf16.msra.mxu0 %v14815_v2  ;;  %7337 = vmatpush1.bf16.msra.mxu1 %v14817_v34 }
 0x514   :  { %7297 = vmatprep.subr.bf16.mxu0 %v14825_v33  ;;  %7338 = vmatprep.subr.bf16.mxu1 %v14831_v16  ;;  %v16418_v16 = vld [vmem:[#allocation27_spill] sm:$0xff] }
 0x517   :  { %7298 = vmatpush1.bf16.msra.mxu0 %v14827_v31  ;;  %7339 = vmatpush1.bf16.msra.mxu1 %v14829_v54 }
 0x518   :  { %7299 = vmatprep.subr.bf16.mxu0 %v14837_v37  ;;  %7340 = vmatprep.subr.bf16.mxu1 %v14843_v26  ;;  %v6624_v26 = vld [vmem:[#allocation10 + $0x3a8] sm:$0xff]  ;;  %v16417_v37 = vld [vmem:[#allocation26_spill] sm:$0xff] }
 0x51b   :  { %7300 = vmatpush1.bf16.msra.mxu0 %v14839_v43  ;;  %7341 = vmatpush1.bf16.msra.mxu1 %v14841_v58  ;;  %v6620_v43 = vld [vmem:[#allocation10 + $0x388] sm:$0xff]  ;;  %v14861_v58 = vcombine.high %v6619_v42, %v6623_v8 }
 0x51c   :  { %7301 = vmatprep.subr.bf16.mxu0 %v14849_v1  ;;  %7342 = vmatprep.subr.bf16.mxu1 %v14855_v44  ;;  %v14865_v40 = vcombine.low %v6620_v43, %v6624_v26  ;;  %v14867_v39 = vcombine.high %v6620_v43, %v6624_v26  ;;  %v6628_v44 = vld [vmem:[#allocation10 + $0x3c8] sm:$0xff]  ;;  %v6509_v26 = vld [vmem:[#allocation10 + $0x10] sm:$0xff] }
 0x51d   :  { %16406 = vst [vmem:[#allocation92_spill] sm:$0xff] %v14861_v58  ;;  %v6632_v1 = vld [vmem:[#allocation10 + $0x3e8] sm:$0xff] }
 0x51e   :  { %16408 = vst [vmem:[#allocation101_spill] sm:$0xff] %v14865_v40  ;;  %16409 = vst [vmem:[#allocation99_spill] sm:$0xff] %v14867_v39  ;;  %v14877_v42 = vcombine.low %v6628_v44, %v6632_v1  ;;  %v14879_v43 = vcombine.high %v6628_v44, %v6632_v1 }
 0x51f   :  { %7302 = vmatpush1.bf16.msra.mxu0 %v14851_v50  ;;  %7343 = vmatpush1.bf16.msra.mxu1 %v14853_v3  ;;  %v6631_v50 = vld [vmem:[#allocation10 + $0x3e0] sm:$0xff] }
 0x520   :  { %7303 = vmatprep.subr.bf16.mxu0 %v14861_v58  ;;  %7344 = vmatprep.subr.bf16.mxu1 %v14867_v39  ;;  %v14873_v3 = vcombine.high %v6627_v45, %v6631_v50  ;;  %v14875_v8 = vcombine.low %v6627_v45, %v6631_v50  ;;  %16412 = vst [vmem:[#allocation105_spill] sm:$0xff] %v14877_v42  ;;  %16413 = vst [vmem:[#allocation103_spill] sm:$0xff] %v14879_v43  ;;  %v6510_v39 = vld [vmem:[#allocation10 + $0x18] sm:$0xff] }
 0x521   :  { %v6514_v58 = vld [vmem:[#allocation10 + $0x38] sm:$0xff] }
 0x522   :  { %16410 = vst [vmem:[#allocation100_spill] sm:$0xff] %v14873_v3  ;;  %16411 = vst [vmem:[#allocation102_spill] sm:$0xff] %v14875_v8  ;;  %v14889_v45 = vcombine.low %v6510_v39, %v6514_v58  ;;  %v14891_v1 = vcombine.high %v6510_v39, %v6514_v58 }
 0x523   :  { %7304 = vmatpush1.bf16.msra.mxu0 %v14863_v36  ;;  %7345 = vmatpush1.bf16.msra.mxu1 %v14865_v40  ;;  %v6513_v36 = vld [vmem:[#allocation10 + $0x30] sm:$0xff] }
 0x524   :  { %7305 = vmatprep.subr.bf16.mxu0 %v14873_v3  ;;  %7346 = vmatprep.subr.bf16.mxu1 %v14879_v43  ;;  %v14885_v40 = vcombine.high %v6509_v26, %v6513_v36  ;;  %v14887_v50 = vcombine.low %v6509_v26, %v6513_v36  ;;  %16415 = vst [vmem:[#allocation106_spill] sm:$0xff] %v14891_v1  ;;  %v16416_v43 = vld [vmem:[#allocation25_spill] sm:$0xff]  ;;  %v16419_v36 = vld [vmem:[#allocation28_spill] sm:$0xff] }
 0x526   :  { %16414 = vst [vmem:[#allocation104_spill] sm:$0xff] %v14885_v40 }
 0x527   :  { %7306 = vmatpush1.bf16.msra.mxu0 %v14875_v8  ;;  %7347 = vmatpush1.bf16.msra.mxu1 %v14877_v42 }
 0x528   :  { %7357 = vmatprep.subr.bf16.mxu0 %v14885_v40  ;;  %7398 = vmatprep.subr.bf16.mxu1 %v14891_v1 }
 0x57d   :  { %v6321_v44 = vpop.f32.mrb[48].mxu0  ;;  %v6362_v8 = vpop.f32.mrb[48].mxu1 }
 0x57e   :  { %v6455_v3 = vadd.f32 %v16416_v43, %v6321_v44  ;;  %v6457_v54 = vadd.f32 %v16417_v37, %v6362_v8  ;;  %v6323_v42 = vpop.f32.mrb[49].mxu0  ;;  %v6364_v31 = vpop.f32.mrb[49].mxu1 }
 0x57f   :  { %v6456_v33 = vadd.f32 %v16418_v16, %v6323_v42  ;;  %v6458_v26 = vadd.f32 %v16419_v36, %v6364_v31  ;;  %v6325_v34 = vpop.f32.mrb[50].mxu0  ;;  %v6366_v2 = vpop.f32.mrb[50].mxu1  ;;  %v16422_v36 = vld [vmem:[#allocation85_spill] sm:$0xff] }
 0x580   :  { %v6467_v58 = vmul.f32 0.5, %v6455_v3  ;;  %v6326_v39 = vpop.f32.mrb[51].mxu0  ;;  %v6367_v12 = vpop.f32.mrb[51].mxu1  ;;  %v16420_v3 = vld [vmem:[#allocation82_spill] sm:$0xff] }
 0x581   :  { %v6471_v40 = vmul.f32 0.5, %v6456_v33  ;;  %v16421_v33 = vld [vmem:[#allocation84_spill] sm:$0xff] }
 0x582   :  { %13449 = vtanh.f32 %v6467_v58 }
 0x583   :  { %13451 = vtanh.f32 %v6471_v40 }
 0x584   :  { %13453 = vtanh.f32 %v6457_v54 }
 0x58c   :  { %v13450_v1 = vpop.eup %13449 }
 0x58d   :  { %v13452_v49 = vpop.eup %13451  ;;  %v6469_v43 = vmul.f32 0.5, %v13450_v1  ;;  %v16423_v1 = vld [vmem:[#allocation88_spill] sm:$0xff] }
 0x58e   :  { %v6473_v44 = vmul.f32 0.5, %v13452_v49  ;;  %v13454_v8 = vpop.eup %13453 }
 0x58f   :  { %v6470_v37 = vadd.f32 0.5, %v6469_v43 }
 0x590   :  { %v6474_v28 = vadd.f32 0.5, %v6473_v44 }
 0x591   :  { %v6481_v10 = vmul.f32 %v13454_v8, %v6470_v37 }
 0x592   :  { %v6480_v16 = vmul.f32 %v6474_v28, %v14606_v63 }
 0x594   :  { %v14900_v31 = vadd.f32 %v6481_v10, %v6480_v16  ;;  %v6476_v10 = vmul.f32 0.5, %v6458_v26 }
 0x5bd   :  { %v6403_v2 = vpop.f32.mrb[52].mxu0  ;;  %v6444_v34 = vpop.f32.mrb[52].mxu1 }
 0x5be   :  { %v6463_v12 = vadd.f32 %v16420_v3, %v6403_v2  ;;  %v6465_v42 = vadd.f32 %v16421_v33, %v6444_v34  ;;  %v6405_v40 = vpop.f32.mrb[53].mxu0  ;;  %v6446_v54 = vpop.f32.mrb[53].mxu1 }
 0x5bf   :  { %v6464_v58 = vadd.f32 %v16422_v36, %v6405_v40  ;;  %v6466_v49 = vadd.f32 %v16423_v1, %v6446_v54  ;;  %v6407_v39 = vpop.f32.mrb[54].mxu0  ;;  %v6448_v43 = vpop.f32.mrb[54].mxu1 }
 0x5c0   :  { %v6485_v44 = vmul.f32 0.5, %v6463_v12  ;;  %v6408_v37 = vpop.f32.mrb[55].mxu0  ;;  %v6449_v8 = vpop.f32.mrb[55].mxu1 }
 0x5c1   :  { %v6489_v63 = vmul.f32 0.5, %v6464_v58  ;;  %v6494_v28 = vmul.f32 0.5, %v6466_v49 }
 0x5c2   :  { %13455 = vtanh.f32 %v6485_v44 }
 0x5c3   :  { %13457 = vtanh.f32 %v6489_v63 }
 0x5c4   :  { %13459 = vtanh.f32 %v6465_v42 }
 0x5c5   :  { %13461 = vtanh.f32 %v6476_v10  ;;  %v6517_v10 = vld [vmem:[#allocation10 + $0x50] sm:$0xff] }
 0x5c6   :  { %13463 = vtanh.f32 %v6494_v28  ;;  %v6518_v28 = vld [vmem:[#allocation10 + $0x58] sm:$0xff] }
 0x5c7   :  { %13465 = vtanh.f32 %v14900_v31 }
 0x5cc   :  { %v13456_v16 = vpop.eup %13455 }
 0x5cd   :  { %v13458_v2 = vpop.eup %13457  ;;  %v6487_v34 = vmul.f32 0.5, %v13456_v16  ;;  %v6522_v16 = vld [vmem:[#allocation10 + $0x78] sm:$0xff] }
 0x5ce   :  { %v6491_v3 = vmul.f32 0.5, %v13458_v2  ;;  %v13460_v40 = vpop.eup %13459 }
 0x5cf   :  { %v6488_v33 = vadd.f32 0.5, %v6487_v34  ;;  %v13462_v26 = vpop.eup %13461 }
 0x5d0   :  { %v6492_v54 = vadd.f32 0.5, %v6491_v3  ;;  %v13464_v42 = vpop.eup %13463  ;;  %v6478_v1 = vmul.f32 0.5, %v13462_v26  ;;  %v6525_v3 = vld [vmem:[#allocation10 + $0x90] sm:$0xff] }
 0x5d1   :  { %v6499_v36 = vmul.f32 %v13460_v40, %v6488_v33  ;;  %v6496_v49 = vmul.f32 0.5, %v13464_v42  ;;  %v13466_v39 = vpop.eup %13465  ;;  %v14923_v40 = vcombine.high %v6518_v28, %v6522_v16  ;;  %v14931_v42 = vcombine.low %v6518_v28, %v6522_v16 }
 0x5d2   :  { %v6498_v12 = vmul.f32 %v6492_v54, %v14614_v62  ;;  %v6479_v43 = vadd.f32 0.5, %v6478_v1  ;;  %v6521_v62 = vld [vmem:[#allocation10 + $0x70] sm:$0xff] }
 0x5d3   :  { %v6497_v44 = vadd.f32 0.5, %v6496_v49  ;;  %v14921_v33 = vcombine.high %v6517_v10, %v6521_v62  ;;  %16426 = vst [vmem:[#allocation108_spill] sm:$0xff] %v14923_v40  ;;  %v6529_v54 = vld [vmem:[#allocation10 + $0xb0] sm:$0xff]  ;;  %v14929_v26 = vcombine.low %v6517_v10, %v6521_v62  ;;  %16428 = vst [vmem:[#allocation111_spill] sm:$0xff] %v14931_v42 }
 0x5d4   :  { %v14908_v58 = vadd.f32 %v6499_v36, %v6498_v12  ;;  %v14911_v8 = vmul.f32 %v13466_v39, %v6479_v43  ;;  %v6526_v36 = vld [vmem:[#allocation10 + $0x98] sm:$0xff]  ;;  %v14933_v1 = vcombine.high %v6525_v3, %v6529_v54  ;;  %v6533_v39 = vld [vmem:[#allocation10 + $0xd0] sm:$0xff]  ;;  %v14941_v10 = vcombine.low %v6525_v3, %v6529_v54 }
 0x5d5   :  { %v6530_v12 = vld [vmem:[#allocation10 + $0xb8] sm:$0xff]  ;;  %16427 = vst [vmem:[#allocation110_spill] sm:$0xff] %v14929_v26  ;;  %v6537_v43 = vld [vmem:[#allocation10 + $0xf0] sm:$0xff] }
 0x5d6   :  { %13467 = vtanh.f32 %v14908_v58  ;;  %16424 = vst [vmem:[#allocation109_spill] sm:$0xff] %v14911_v8  ;;  %v14919_v34 = vpack.c.bf16 %v14911_v8, %v14911_v8  ;;  %16429 = vst [vmem:[#allocation21_spill] sm:$0xff] %v14933_v1  ;;  %v14935_v49 = vcombine.high %v6526_v36, %v6530_v12  ;;  %v14943_v62 = vcombine.low %v6526_v36, %v6530_v12  ;;  %v6545_v8 = vld [vmem:[#allocation10 + $0x130] sm:$0xff] }
 0x5d7   :  { %16431 = vst [vmem:[#allocation23_spill] sm:$0xff] %v14941_v10  ;;  %v14947_v28 = vcombine.high %v6533_v39, %v6537_v43  ;;  %v14953_v3 = vcombine.low %v6533_v39, %v6537_v43 }
 0x5d8   :  { %16430 = vst [vmem:[#allocation22_spill] sm:$0xff] %v14935_v49  ;;  %16432 = vst [vmem:[#allocation24_spill] sm:$0xff] %v14943_v62 }
 0x5d9   :  { %16433 = vst [vmem:[#allocation94_spill] sm:$0xff] %v14947_v28  ;;  %16435 = vst [vmem:[#allocation96_spill] sm:$0xff] %v14953_v3 }
 0x5e0   :  { %v13468_v37 = vpop.eup %13467 }
 0x5e1   :  { %v14913_v63 = vmul.f32 %v13468_v37, %v6497_v44  ;;  %v6534_v44 = vld [vmem:[#allocation10 + $0xd8] sm:$0xff] }
 0x5e2   :  { %v6538_v37 = vld [vmem:[#allocation10 + $0xf8] sm:$0xff] }
 0x5e3   :  { %16425 = vst [vmem:[#allocation107_spill] sm:$0xff] %v14913_v63  ;;  %v6506_v2 = vpack.c.bf16 %v14913_v63, %v14913_v63  ;;  %v14949_v16 = vcombine.high %v6534_v44, %v6538_v37  ;;  %v6542_v63 = vld [vmem:[#allocation10 + $0x118] sm:$0xff]  ;;  %v14955_v54 = vcombine.low %v6534_v44, %v6538_v37 }
 0x5e5   :  { %7307 = vmatprep.mubr.bf16.mxu0 %v6506_v2  ;;  %7348 = vmatprep.mubr.bf16.mxu1 %v6506_v2  ;;  %16434 = vst [vmem:[#allocation95_spill] sm:$0xff] %v14949_v16  ;;  %16436 = vst [vmem:[#allocation97_spill] sm:$0xff] %v14955_v54 }
 0x5e6   :  { %7308 = vmatmul.mubr.bf16.vlgmr.msra.gmra.mrb[56].mxu0 %v14919_v34  ;;  %7349 = vmatmul.mubr.bf16.vlgmr.msra.gmra.mrb[56].mxu1 %v14919_v34 }
 0x5e7   :  { %7358 = vmatpush1.bf16.msra.mxu0 %v14887_v50  ;;  %7399 = vmatpush1.bf16.msra.mxu1 %v14889_v45 }
 0x5e8   :  { %7389 = vmatprep.mubr.bf16.mxu0 %v6506_v2  ;;  %7430 = vmatprep.mubr.bf16.mxu1 %v6506_v2  ;;  %v6541_v2 = vld [vmem:[#allocation10 + $0x110] sm:$0xff] }
 0x5e9   :  { %7359 = vmatprep.subr.bf16.mxu0 %v14921_v33  ;;  %7400 = vmatprep.subr.bf16.mxu1 %v14923_v40  ;;  %v6546_v40 = vld [vmem:[#allocation10 + $0x138] sm:$0xff]  ;;  %v14959_v36 = vcombine.high %v6541_v2, %v6545_v8  ;;  %v14965_v39 = vcombine.low %v6541_v2, %v6545_v8 }
 0x5ea   :  { %v14961_v12 = vcombine.high %v6542_v63, %v6546_v40  ;;  %v14967_v43 = vcombine.low %v6542_v63, %v6546_v40 }
 0x5eb   :  { %7360 = vmatpush1.bf16.msra.mxu0 %v14929_v26  ;;  %7401 = vmatpush1.bf16.msra.mxu1 %v14931_v42  ;;  %16437 = vst [vmem:[#allocation114_spill] sm:$0xff] %v14959_v36  ;;  %v6550_v42 = vld [vmem:[#allocation10 + $0x158] sm:$0xff]  ;;  %16439 = vst [vmem:[#allocation116_spill] sm:$0xff] %v14965_v39 }
 0x5ec   :  { %7361 = vmatprep.subr.bf16.mxu0 %v14933_v1  ;;  %7402 = vmatprep.subr.bf16.mxu1 %v14935_v49  ;;  %16438 = vst [vmem:[#allocation115_spill] sm:$0xff] %v14961_v12  ;;  %v6549_v49 = vld [vmem:[#allocation10 + $0x150] sm:$0xff]  ;;  %v6554_v26 = vld [vmem:[#allocation10 + $0x178] sm:$0xff]  ;;  %16440 = vst [vmem:[#allocation117_spill] sm:$0xff] %v14967_v43 }
 0x5ed   :  { %v6553_v1 = vld [vmem:[#allocation10 + $0x170] sm:$0xff]  ;;  %v14973_v37 = vcombine.high %v6550_v42, %v6554_v26  ;;  %v14979_v63 = vcombine.low %v6550_v42, %v6554_v26 }
 0x5ee   :  { %v14971_v44 = vcombine.high %v6549_v49, %v6553_v1  ;;  %v14977_v8 = vcombine.low %v6549_v49, %v6553_v1 }
 0x5ef   :  { %7362 = vmatpush1.bf16.msra.mxu0 %v14941_v10  ;;  %7403 = vmatpush1.bf16.msra.mxu1 %v14943_v62  ;;  %16442 = vst [vmem:[#allocation119_spill] sm:$0xff] %v14973_v37  ;;  %v6558_v62 = vld [vmem:[#allocation10 + $0x198] sm:$0xff]  ;;  %16444 = vst [vmem:[#allocation121_spill] sm:$0xff] %v14979_v63 }
 0x5f0   :  { %7363 = vmatprep.subr.bf16.mxu0 %v14947_v28  ;;  %7404 = vmatprep.subr.bf16.mxu1 %v14949_v16  ;;  %16441 = vst [vmem:[#allocation118_spill] sm:$0xff] %v14971_v44  ;;  %v6557_v16 = vld [vmem:[#allocation10 + $0x190] sm:$0xff]  ;;  %v6562_v10 = vld [vmem:[#allocation10 + $0x1b8] sm:$0xff]  ;;  %16443 = vst [vmem:[#allocation120_spill] sm:$0xff] %v14977_v8 }
 0x5f1   :  { %v6561_v28 = vld [vmem:[#allocation10 + $0x1b0] sm:$0xff]  ;;  %v14985_v2 = vcombine.high %v6558_v62, %v6562_v10  ;;  %v14991_v26 = vcombine.low %v6558_v62, %v6562_v10 }
 0x5f2   :  { %v14983_v40 = vcombine.high %v6557_v16, %v6561_v28  ;;  %v14989_v1 = vcombine.low %v6557_v16, %v6561_v28 }
 0x5f3   :  { %7364 = vmatpush1.bf16.msra.mxu0 %v14953_v3  ;;  %7405 = vmatpush1.bf16.msra.mxu1 %v14955_v54  ;;  %16446 = vst [vmem:[#allocation123_spill] sm:$0xff] %v14985_v2  ;;  %v6566_v54 = vld [vmem:[#allocation10 + $0x1d8] sm:$0xff]  ;;  %16448 = vst [vmem:[#allocation125_spill] sm:$0xff] %v14991_v26 }
 0x5f4   :  { %7365 = vmatprep.subr.bf16.mxu0 %v14959_v36  ;;  %7406 = vmatprep.subr.bf16.mxu1 %v14961_v12  ;;  %16445 = vst [vmem:[#allocation122_spill] sm:$0xff] %v14983_v40  ;;  %v6565_v12 = vld [vmem:[#allocation10 + $0x1d0] sm:$0xff]  ;;  %v6570_v3 = vld [vmem:[#allocation10 + $0x1f8] sm:$0xff]  ;;  %16447 = vst [vmem:[#allocation124_spill] sm:$0xff] %v14989_v1 }
 0x5f5   :  { %v6569_v36 = vld [vmem:[#allocation10 + $0x1f0] sm:$0xff]  ;;  %v14997_v49 = vcombine.high %v6566_v54, %v6570_v3  ;;  %v15003_v10 = vcombine.low %v6566_v54, %v6570_v3 }
 0x5f6   :  { %v14995_v42 = vcombine.high %v6565_v12, %v6569_v36  ;;  %v15001_v28 = vcombine.low %v6565_v12, %v6569_v36 }
 0x5f7   :  { %7366 = vmatpush1.bf16.msra.mxu0 %v14965_v39  ;;  %7407 = vmatpush1.bf16.msra.mxu1 %v14967_v43  ;;  %16450 = vst [vmem:[#allocation127_spill] sm:$0xff] %v14997_v49  ;;  %v6574_v43 = vld [vmem:[#allocation10 + $0x218] sm:$0xff]  ;;  %16452 = vst [vmem:[#allocation129_spill] sm:$0xff] %v15003_v10 }
 0x5f8   :  { %7367 = vmatprep.subr.bf16.mxu0 %v14971_v44  ;;  %7408 = vmatprep.subr.bf16.mxu1 %v14973_v37  ;;  %16449 = vst [vmem:[#allocation126_spill] sm:$0xff] %v14995_v42  ;;  %v6573_v37 = vld [vmem:[#allocation10 + $0x210] sm:$0xff]  ;;  %v6578_v39 = vld [vmem:[#allocation10 + $0x238] sm:$0xff]  ;;  %16451 = vst [vmem:[#allocation128_spill] sm:$0xff] %v15001_v28 }
 0x5f9   :  { %v6577_v44 = vld [vmem:[#allocation10 + $0x230] sm:$0xff]  ;;  %v15009_v16 = vcombine.high %v6574_v43, %v6578_v39  ;;  %v15015_v3 = vcombine.low %v6574_v43, %v6578_v39 }
 0x5fa   :  { %v15007_v62 = vcombine.high %v6573_v37, %v6577_v44  ;;  %v15013_v36 = vcombine.low %v6573_v37, %v6577_v44 }
 0x5fb   :  { %7368 = vmatpush1.bf16.msra.mxu0 %v14977_v8  ;;  %7409 = vmatpush1.bf16.msra.mxu1 %v14979_v63  ;;  %16454 = vst [vmem:[#allocation131_spill] sm:$0xff] %v15009_v16  ;;  %v6582_v63 = vld [vmem:[#allocation10 + $0x258] sm:$0xff]  ;;  %16456 = vst [vmem:[#allocation133_spill] sm:$0xff] %v15015_v3 }
 0x5fc   :  { %7369 = vmatprep.subr.bf16.mxu0 %v14983_v40  ;;  %7410 = vmatprep.subr.bf16.mxu1 %v14985_v2  ;;  %16453 = vst [vmem:[#allocation130_spill] sm:$0xff] %v15007_v62  ;;  %v6581_v2 = vld [vmem:[#allocation10 + $0x250] sm:$0xff]  ;;  %v6586_v8 = vld [vmem:[#allocation10 + $0x278] sm:$0xff]  ;;  %16455 = vst [vmem:[#allocation132_spill] sm:$0xff] %v15013_v36 }
 0x5fd   :  { %v6585_v40 = vld [vmem:[#allocation10 + $0x270] sm:$0xff]  ;;  %v15021_v12 = vcombine.high %v6582_v63, %v6586_v8  ;;  %v15027_v39 = vcombine.low %v6582_v63, %v6586_v8 }
 0x5fe   :  { %v15019_v54 = vcombine.high %v6581_v2, %v6585_v40  ;;  %v15025_v44 = vcombine.low %v6581_v2, %v6585_v40 }
 0x5ff   :  { %7370 = vmatpush1.bf16.msra.mxu0 %v14989_v1  ;;  %7411 = vmatpush1.bf16.msra.mxu1 %v14991_v26  ;;  %16458 = vst [vmem:[#allocation135_spill] sm:$0xff] %v15021_v12  ;;  %v6590_v26 = vld [vmem:[#allocation10 + $0x298] sm:$0xff]  ;;  %16460 = vst [vmem:[#allocation137_spill] sm:$0xff] %v15027_v39 }
 0x600   :  { %7371 = vmatprep.subr.bf16.mxu0 %v14995_v42  ;;  %7412 = vmatprep.subr.bf16.mxu1 %v14997_v49  ;;  %16457 = vst [vmem:[#allocation134_spill] sm:$0xff] %v15019_v54  ;;  %v6589_v49 = vld [vmem:[#allocation10 + $0x290] sm:$0xff]  ;;  %v6594_v1 = vld [vmem:[#allocation10 + $0x2b8] sm:$0xff]  ;;  %16459 = vst [vmem:[#allocation136_spill] sm:$0xff] %v15025_v44 }
 0x601   :  { %v6593_v42 = vld [vmem:[#allocation10 + $0x2b0] sm:$0xff]  ;;  %v15033_v37 = vcombine.high %v6590_v26, %v6594_v1  ;;  %v15039_v8 = vcombine.low %v6590_v26, %v6594_v1 }
 0x602   :  { %v15031_v43 = vcombine.high %v6589_v49, %v6593_v42  ;;  %v15037_v40 = vcombine.low %v6589_v49, %v6593_v42 }
 0x603   :  { %7372 = vmatpush1.bf16.msra.mxu0 %v15001_v28  ;;  %7413 = vmatpush1.bf16.msra.mxu1 %v15003_v10  ;;  %16462 = vst [vmem:[#allocation139_spill] sm:$0xff] %v15033_v37  ;;  %v6598_v10 = vld [vmem:[#allocation10 + $0x2d8] sm:$0xff]  ;;  %16464 = vst [vmem:[#allocation141_spill] sm:$0xff] %v15039_v8 }
 0x604   :  { %7373 = vmatprep.subr.bf16.mxu0 %v15007_v62  ;;  %7414 = vmatprep.subr.bf16.mxu1 %v15009_v16  ;;  %16461 = vst [vmem:[#allocation138_spill] sm:$0xff] %v15031_v43  ;;  %v6597_v16 = vld [vmem:[#allocation10 + $0x2d0] sm:$0xff]  ;;  %v6602_v28 = vld [vmem:[#allocation10 + $0x2f8] sm:$0xff]  ;;  %16463 = vst [vmem:[#allocation140_spill] sm:$0xff] %v15037_v40 }
 0x605   :  { %v6601_v62 = vld [vmem:[#allocation10 + $0x2f0] sm:$0xff]  ;;  %v15045_v2 = vcombine.high %v6598_v10, %v6602_v28  ;;  %v15051_v1 = vcombine.low %v6598_v10, %v6602_v28 }
 0x606   :  { %v15043_v63 = vcombine.high %v6597_v16, %v6601_v62  ;;  %v15049_v42 = vcombine.low %v6597_v16, %v6601_v62 }
 0x607   :  { %7374 = vmatpush1.bf16.msra.mxu0 %v15013_v36  ;;  %7415 = vmatpush1.bf16.msra.mxu1 %v15015_v3  ;;  %16466 = vst [vmem:[#allocation143_spill] sm:$0xff] %v15045_v2  ;;  %v6606_v3 = vld [vmem:[#allocation10 + $0x318] sm:$0xff]  ;;  %16468 = vst [vmem:[#allocation145_spill] sm:$0xff] %v15051_v1 }
 0x608   :  { %7375 = vmatprep.subr.bf16.mxu0 %v15019_v54  ;;  %7416 = vmatprep.subr.bf16.mxu1 %v15021_v12  ;;  %16465 = vst [vmem:[#allocation142_spill] sm:$0xff] %v15043_v63  ;;  %v6605_v12 = vld [vmem:[#allocation10 + $0x310] sm:$0xff]  ;;  %v6610_v36 = vld [vmem:[#allocation10 + $0x338] sm:$0xff]  ;;  %16467 = vst [vmem:[#allocation144_spill] sm:$0xff] %v15049_v42 }
 0x609   :  { %v6609_v54 = vld [vmem:[#allocation10 + $0x330] sm:$0xff]  ;;  %v15057_v49 = vcombine.high %v6606_v3, %v6610_v36  ;;  %v15063_v28 = vcombine.low %v6606_v3, %v6610_v36 }
 0x60a   :  { %v15055_v26 = vcombine.high %v6605_v12, %v6609_v54  ;;  %v15061_v62 = vcombine.low %v6605_v12, %v6609_v54 }
 0x60b   :  { %7376 = vmatpush1.bf16.msra.mxu0 %v15025_v44  ;;  %7417 = vmatpush1.bf16.msra.mxu1 %v15027_v39  ;;  %16470 = vst [vmem:[#allocation147_spill] sm:$0xff] %v15057_v49  ;;  %v6614_v39 = vld [vmem:[#allocation10 + $0x358] sm:$0xff] }
 0x60c   :  { %7377 = vmatprep.subr.bf16.mxu0 %v15031_v43  ;;  %7418 = vmatprep.subr.bf16.mxu1 %v15033_v37  ;;  %16469 = vst [vmem:[#allocation146_spill] sm:$0xff] %v15055_v26  ;;  %v6613_v37 = vld [vmem:[#allocation10 + $0x350] sm:$0xff]  ;;  %v6618_v44 = vld [vmem:[#allocation10 + $0x378] sm:$0xff] }
 0x60d   :  { %v6617_v43 = vld [vmem:[#allocation10 + $0x370] sm:$0xff]  ;;  %v15069_v16 = vcombine.high %v6614_v39, %v6618_v44  ;;  %v15075_v36 = vcombine.low %v6614_v39, %v6618_v44 }
 0x60e   :  { %v15067_v10 = vcombine.high %v6613_v37, %v6617_v43  ;;  %v15073_v54 = vcombine.low %v6613_v37, %v6617_v43 }
 0x60f   :  { %7378 = vmatpush1.bf16.msra.mxu0 %v15037_v40  ;;  %7419 = vmatpush1.bf16.msra.mxu1 %v15039_v8  ;;  %16471 = vst [vmem:[#allocation148_spill] sm:$0xff] %v15069_v16  ;;  %v6622_v8 = vld [vmem:[#allocation10 + $0x398] sm:$0xff] }
 0x610   :  { %7379 = vmatprep.subr.bf16.mxu0 %v15043_v63  ;;  %7420 = vmatprep.subr.bf16.mxu1 %v15045_v2  ;;  %v6621_v2 = vld [vmem:[#allocation10 + $0x390] sm:$0xff]  ;;  %v6626_v40 = vld [vmem:[#allocation10 + $0x3b8] sm:$0xff]  ;;  %16472 = vst [vmem:[#allocation149_spill] sm:$0xff] %v15073_v54 }
 0x611   :  { %v6625_v63 = vld [vmem:[#allocation10 + $0x3b0] sm:$0xff]  ;;  %v15081_v12 = vcombine.high %v6622_v8, %v6626_v40  ;;  %v15087_v44 = vcombine.low %v6622_v8, %v6626_v40 }
 0x612   :  { %v15079_v3 = vcombine.high %v6621_v2, %v6625_v63  ;;  %v15085_v43 = vcombine.low %v6621_v2, %v6625_v63 }
 0x613   :  { %7380 = vmatpush1.bf16.msra.mxu0 %v15049_v42  ;;  %7421 = vmatpush1.bf16.msra.mxu1 %v15051_v1  ;;  %v6630_v1 = vld [vmem:[#allocation10 + $0x3d8] sm:$0xff] }
 0x614   :  { %7381 = vmatprep.subr.bf16.mxu0 %v15055_v26  ;;  %7422 = vmatprep.subr.bf16.mxu1 %v15057_v49  ;;  %v6629_v49 = vld [vmem:[#allocation10 + $0x3d0] sm:$0xff]  ;;  %v6634_v42 = vld [vmem:[#allocation10 + $0x3f8] sm:$0xff] }
 0x615   :  { %v6633_v26 = vld [vmem:[#allocation10 + $0x3f0] sm:$0xff]  ;;  %v15093_v37 = vcombine.high %v6630_v1, %v6634_v42 }
 0x616   :  { %v15091_v39 = vcombine.high %v6629_v49, %v6633_v26 }
 0x617   :  { %7382 = vmatpush1.bf16.msra.mxu0 %v15061_v62  ;;  %7423 = vmatpush1.bf16.msra.mxu1 %v15063_v28 }
 0x618   :  { %7383 = vmatprep.subr.bf16.mxu0 %v15067_v10  ;;  %7424 = vmatprep.subr.bf16.mxu1 %v15069_v16  ;;  %v15097_v16 = vcombine.low %v6629_v49, %v6633_v26 }
 0x61b   :  { %7384 = vmatpush1.bf16.msra.mxu0 %v15073_v54  ;;  %7425 = vmatpush1.bf16.msra.mxu1 %v15075_v36  ;;  %v15099_v54 = vcombine.low %v6630_v1, %v6634_v42 }
 0x61c   :  { %7385 = vmatprep.subr.bf16.mxu0 %v15079_v3  ;;  %7426 = vmatprep.subr.bf16.mxu1 %v15081_v12 }
 0x61f   :  { %7386 = vmatpush1.bf16.msra.mxu0 %v15085_v43  ;;  %7427 = vmatpush1.bf16.msra.mxu1 %v15087_v44 }
 0x620   :  { %7387 = vmatprep.subr.bf16.mxu0 %v15091_v39  ;;  %7428 = vmatprep.subr.bf16.mxu1 %v15093_v37 }
 0x623   :  { %7388 = vmatpush1.bf16.msra.mxu0 %v15097_v16  ;;  %7429 = vmatpush1.bf16.msra.mxu1 %v15099_v54 }
 0x624   :  { %8263 = vmatprep.subr.bf16.mxu0 %v14695_v53  ;;  %8304 = vmatprep.subr.bf16.mxu1 %v14699_v35  ;;  %v16474_v53 = vld [vmem:[#allocation59_spill] sm:$0xff]  ;;  %v16476_v35 = vld [vmem:[#allocation70_spill] sm:$0xff] }
 0x626   :  { %7390 = vmatmul.mubr.bf16.vlgmr.msra.gmra.mrb[60].mxu0 %v14919_v34  ;;  %7431 = vmatmul.mubr.bf16.vlgmr.msra.gmra.mrb[60].mxu1 %v14919_v34  ;;  %v16504_v34 = vld [vmem:[#allocation32_spill] sm:$0xff] }
 0x627   :  { %8264 = vmatpush1.bf16.msra.mxu0 %v14693_v14  ;;  %8305 = vmatpush1.bf16.msra.mxu1 %v14697_v18  ;;  %v16473_v14 = vld [vmem:[#allocation61_spill] sm:$0xff]  ;;  %v16475_v18 = vld [vmem:[#allocation60_spill] sm:$0xff] }
 0x628   :  { %8265 = vmatprep.subr.bf16.mxu0 %v14701_v19  ;;  %8306 = vmatprep.subr.bf16.mxu1 %v14704_v21  ;;  %v16477_v19 = vld [vmem:[#allocation67_spill] sm:$0xff]  ;;  %v16478_v21 = vld [vmem:[#allocation73_spill] sm:$0xff] }
 0x62b   :  { %8266 = vmatpush1.bf16.msra.mxu0 %v14708_v52  ;;  %8307 = vmatpush1.bf16.msra.mxu1 %v14712_v51  ;;  %v16479_v52 = vld [vmem:[#allocation71_spill] sm:$0xff] }
 0x62c   :  { %8267 = vmatprep.subr.bf16.mxu0 %v14714_v17  ;;  %8308 = vmatprep.subr.bf16.mxu1 %v14717_v24  ;;  %v16480_v51 = vld [vmem:[#allocation75_spill] sm:$0xff]  ;;  %v16481_v17 = vld [vmem:[#allocation74_spill] sm:$0xff]  ;;  %v16482_v24 = vld [vmem:[#allocation77_spill] sm:$0xff] }
 0x62f   :  { %8268 = vmatpush1.bf16.msra.mxu0 %v14720_v61  ;;  %8309 = vmatpush1.bf16.msra.mxu1 %v14724_v25  ;;  %v16483_v61 = vld [vmem:[#allocation76_spill] sm:$0xff]  ;;  %v16484_v25 = vld [vmem:[#allocation86_spill] sm:$0xff] }
 0x630   :  { %8269 = vmatprep.subr.bf16.mxu0 %v14726_v30  ;;  %8310 = vmatprep.subr.bf16.mxu1 %v14729_v4  ;;  %v16485_v30 = vld [vmem:[#allocation83_spill] sm:$0xff]  ;;  %v16486_v4 = vld [vmem:[#allocation89_spill] sm:$0xff] }
 0x633   :  { %8270 = vmatpush1.bf16.msra.mxu0 %v14732_v57  ;;  %8311 = vmatpush1.bf16.msra.mxu1 %v14736_v11  ;;  %v16487_v57 = vld [vmem:[#allocation87_spill] sm:$0xff] }
 0x634   :  { %8271 = vmatprep.subr.bf16.mxu0 %v14738_v5  ;;  %8312 = vmatprep.subr.bf16.mxu1 %v14741_v55  ;;  %v16488_v11 = vld [vmem:[#allocation91_spill] sm:$0xff]  ;;  %v16489_v5 = vld [vmem:[#allocation90_spill] sm:$0xff]  ;;  %v16490_v55 = vld [vmem:[#allocation93_spill] sm:$0xff] }
 0x637   :  { %8272 = vmatpush1.bf16.msra.mxu0 %v14744_v0  ;;  %8313 = vmatpush1.bf16.msra.mxu1 %v14748_v23  ;;  %v16491_v0 = vld [vmem:[#allocation92_spill] sm:$0xff]  ;;  %v16492_v23 = vld [vmem:[#allocation99_spill] sm:$0xff] }
 0x638   :  { %8273 = vmatprep.subr.bf16.mxu0 %v14750_v59  ;;  %8314 = vmatprep.subr.bf16.mxu1 %v14753_v27  ;;  %v16493_v59 = vld [vmem:[#allocation98_spill] sm:$0xff]  ;;  %v16494_v27 = vld [vmem:[#allocation101_spill] sm:$0xff] }
 0x63b   :  { %8274 = vmatpush1.bf16.msra.mxu0 %v14756_v38  ;;  %8315 = vmatpush1.bf16.msra.mxu1 %v14760_v20  ;;  %v16495_v38 = vld [vmem:[#allocation100_spill] sm:$0xff]  ;;  %v16496_v20 = vld [vmem:[#allocation103_spill] sm:$0xff] }
 0x63c   :  { %8275 = vmatprep.subr.bf16.mxu0 %v14765_v6  ;;  %8316 = vmatprep.subr.bf16.mxu1 %v14771_v9  ;;  %v16497_v6 = vld [vmem:[#allocation102_spill] sm:$0xff] }
 0x63d   :  { %v16500_v9 = vld [vmem:[#allocation106_spill] sm:$0xff] }
 0x63f   :  { %8276 = vmatpush1.bf16.msra.mxu0 %v14767_v13  ;;  %8317 = vmatpush1.bf16.msra.mxu1 %v14769_v29  ;;  %v16498_v13 = vld [vmem:[#allocation105_spill] sm:$0xff]  ;;  %v16499_v29 = vld [vmem:[#allocation104_spill] sm:$0xff] }
 0x640   :  { %8277 = vmatprep.subr.bf16.mxu0 %v14777_v41  ;;  %8318 = vmatprep.subr.bf16.mxu1 %v14783_v7 }
 0x643   :  { %8278 = vmatpush1.bf16.msra.mxu0 %v14779_v47  ;;  %8319 = vmatpush1.bf16.msra.mxu1 %v14781_v48  ;;  %v16501_v48 = vld [vmem:[#allocation29_spill] sm:$0xff] }
 0x644   :  { %8279 = vmatprep.subr.bf16.mxu0 %v14789_v15  ;;  %8320 = vmatprep.subr.bf16.mxu1 %v14795_v60  ;;  %v16502_v15 = vld [vmem:[#allocation30_spill] sm:$0xff] }
 0x647   :  { %8280 = vmatpush1.bf16.msra.mxu0 %v14791_v32  ;;  %8321 = vmatpush1.bf16.msra.mxu1 %v14793_v46 }
 0x648   :  { %8281 = vmatprep.subr.bf16.mxu0 %v14801_v56  ;;  %8322 = vmatprep.subr.bf16.mxu1 %v14807_v22  ;;  %v16503_v56 = vld [vmem:[#allocation31_spill] sm:$0xff] }
 0x64b   :  { %8282 = vmatpush1.bf16.msra.mxu0 %v16473_v14  ;;  %8323 = vmatpush1.bf16.msra.mxu1 %v16474_v53 }
 0x64c   :  { %8283 = vmatprep.subr.bf16.mxu0 %v16475_v18  ;;  %8324 = vmatprep.subr.bf16.mxu1 %v16476_v35 }
 0x64f   :  { %8284 = vmatpush1.bf16.msra.mxu0 %v16477_v19  ;;  %8325 = vmatpush1.bf16.msra.mxu1 %v16478_v21 }
 0x650   :  { %8285 = vmatprep.subr.bf16.mxu0 %v16479_v52  ;;  %8326 = vmatprep.subr.bf16.mxu1 %v16480_v51 }
 0x653   :  { %8286 = vmatpush1.bf16.msra.mxu0 %v16481_v17  ;;  %8327 = vmatpush1.bf16.msra.mxu1 %v16482_v24 }
 0x654   :  { %8287 = vmatprep.subr.bf16.mxu0 %v16483_v61  ;;  %8328 = vmatprep.subr.bf16.mxu1 %v16484_v25  ;;  %v16505_v25 = vld [vmem:[#allocation78_spill] sm:$0xff] }
 0x657   :  { %8288 = vmatpush1.bf16.msra.mxu0 %v16485_v30  ;;  %8329 = vmatpush1.bf16.msra.mxu1 %v16486_v4  ;;  %v16506_v4 = vld [vmem:[#allocation79_spill] sm:$0xff] }
 0x658   :  { %8289 = vmatprep.subr.bf16.mxu0 %v16487_v57  ;;  %8330 = vmatprep.subr.bf16.mxu1 %v16488_v11 }
 0x65b   :  { %8290 = vmatpush1.bf16.msra.mxu0 %v16489_v5  ;;  %8331 = vmatpush1.bf16.msra.mxu1 %v16490_v55  ;;  %v16507_v55 = vld [vmem:[#allocation80_spill] sm:$0xff] }
 0x65c   :  { %8291 = vmatprep.subr.bf16.mxu0 %v16491_v0  ;;  %8332 = vmatprep.subr.bf16.mxu1 %v16492_v23  ;;  %v16508_v23 = vld [vmem:[#allocation81_spill] sm:$0xff] }
 0x65f   :  { %8292 = vmatpush1.bf16.msra.mxu0 %v16493_v59  ;;  %8333 = vmatpush1.bf16.msra.mxu1 %v16494_v27 }
 0x660   :  { %8293 = vmatprep.subr.bf16.mxu0 %v16495_v38  ;;  %8334 = vmatprep.subr.bf16.mxu1 %v16496_v20 }
 0x663   :  { %8294 = vmatpush1.bf16.msra.mxu0 %v16497_v6  ;;  %8335 = vmatpush1.bf16.msra.mxu1 %v16498_v13 }
 0x664   :  { %8345 = vmatprep.subr.bf16.mxu0 %v16499_v29  ;;  %8386 = vmatprep.subr.bf16.mxu1 %v16500_v9 }
 0x6b9   :  { %v7309_v41 = vpop.f32.mrb[56].mxu0  ;;  %v7350_v47 = vpop.f32.mrb[56].mxu1 }
 0x6ba   :  { %v7443_v7 = vadd.f32 %v16501_v48, %v7309_v41  ;;  %v7445_v32 = vadd.f32 %v16502_v15, %v7350_v47  ;;  %v7311_v46 = vpop.f32.mrb[57].mxu0  ;;  %v7352_v60 = vpop.f32.mrb[57].mxu1 }
 0x6bb   :  { %v7444_v22 = vadd.f32 %v16503_v56, %v7311_v46  ;;  %v7446_v40 = vadd.f32 %v16504_v34, %v7352_v60  ;;  %v7313_v8 = vpop.f32.mrb[58].mxu0  ;;  %v7354_v63 = vpop.f32.mrb[58].mxu1 }
 0x6bc   :  { %v7455_v2 = vmul.f32 0.5, %v7443_v7  ;;  %v7314_v42 = vpop.f32.mrb[59].mxu0  ;;  %v7355_v1 = vpop.f32.mrb[59].mxu1 }
 0x6bd   :  { %v7459_v26 = vmul.f32 0.5, %v7444_v22  ;;  %v7464_v29 = vmul.f32 0.5, %v7446_v40 }
 0x6be   :  { %13469 = vtanh.f32 %v7455_v2 }
 0x6bf   :  { %13471 = vtanh.f32 %v7459_v26 }
 0x6c0   :  { %13473 = vtanh.f32 %v7445_v32 }
 0x6c8   :  { %v13470_v49 = vpop.eup %13469 }
 0x6c9   :  { %v13472_v14 = vpop.eup %13471  ;;  %v7457_v53 = vmul.f32 0.5, %v13470_v49 }
 0x6ca   :  { %v7461_v18 = vmul.f32 0.5, %v13472_v14  ;;  %v13474_v19 = vpop.eup %13473 }
 0x6cb   :  { %v7458_v35 = vadd.f32 0.5, %v7457_v53 }
 0x6cc   :  { %v7462_v21 = vadd.f32 0.5, %v7461_v18  ;;  %v16511_v18 = vld [vmem:[#allocation108_spill] sm:$0xff] }
 0x6cd   :  { %v7469_v52 = vmul.f32 %v13474_v19, %v7458_v35  ;;  %v16512_v35 = vld [vmem:[#allocation110_spill] sm:$0xff]  ;;  %v16513_v19 = vld [vmem:[#allocation111_spill] sm:$0xff] }
 0x6ce   :  { %v7468_v51 = vmul.f32 %v7462_v21, %v14900_v31  ;;  %v16514_v21 = vld [vmem:[#allocation21_spill] sm:$0xff] }
 0x6d0   :  { %v15178_v17 = vadd.f32 %v7469_v52, %v7468_v51  ;;  %v16515_v52 = vld [vmem:[#allocation22_spill] sm:$0xff]  ;;  %v16516_v51 = vld [vmem:[#allocation23_spill] sm:$0xff] }
 0x6f9   :  { %v7391_v24 = vpop.f32.mrb[60].mxu0  ;;  %v7432_v61 = vpop.f32.mrb[60].mxu1 }
 0x6fa   :  { %v7451_v30 = vadd.f32 %v16505_v25, %v7391_v24  ;;  %v7453_v57 = vadd.f32 %v16506_v4, %v7432_v61  ;;  %v7393_v11 = vpop.f32.mrb[61].mxu0  ;;  %v7434_v5 = vpop.f32.mrb[61].mxu1  ;;  %v16517_v24 = vld [vmem:[#allocation24_spill] sm:$0xff]  ;;  %v16522_v25 = vld [vmem:[#allocation114_spill] sm:$0xff] }
 0x6fb   :  { %v7452_v0 = vadd.f32 %v16507_v55, %v7393_v11  ;;  %v7454_v59 = vadd.f32 %v16508_v23, %v7434_v5  ;;  %v7395_v27 = vpop.f32.mrb[62].mxu0  ;;  %v7436_v38 = vpop.f32.mrb[62].mxu1  ;;  %v16520_v61 = vld [vmem:[#allocation96_spill] sm:$0xff]  ;;  %v16526_v11 = vld [vmem:[#allocation118_spill] sm:$0xff]  ;;  %v16527_v5 = vld [vmem:[#allocation119_spill] sm:$0xff] }
 0x6fc   :  { %v7473_v20 = vmul.f32 0.5, %v7451_v30  ;;  %v7396_v6 = vpop.f32.mrb[63].mxu0  ;;  %v7437_v13 = vpop.f32.mrb[63].mxu1  ;;  %v16523_v30 = vld [vmem:[#allocation115_spill] sm:$0xff]  ;;  %v16524_v4 = vld [vmem:[#allocation116_spill] sm:$0xff]  ;;  %v16530_v23 = vld [vmem:[#allocation122_spill] sm:$0xff] }
 0x6fd   :  { %v7477_v31 = vmul.f32 0.5, %v7452_v0  ;;  %v7482_v9 = vmul.f32 0.5, %v7454_v59  ;;  %v16528_v55 = vld [vmem:[#allocation120_spill] sm:$0xff]  ;;  %v16529_v0 = vld [vmem:[#allocation121_spill] sm:$0xff]  ;;  %v16531_v59 = vld [vmem:[#allocation123_spill] sm:$0xff] }
 0x6fe   :  { %13475 = vtanh.f32 %v7473_v20  ;;  %v16532_v27 = vld [vmem:[#allocation124_spill] sm:$0xff]  ;;  %v16533_v38 = vld [vmem:[#allocation125_spill] sm:$0xff]  ;;  %v16534_v20 = vld [vmem:[#allocation126_spill] sm:$0xff] }
 0x6ff   :  { %13477 = vtanh.f32 %v7477_v31  ;;  %v16535_v6 = vld [vmem:[#allocation127_spill] sm:$0xff]  ;;  %v16536_v13 = vld [vmem:[#allocation128_spill] sm:$0xff]  ;;  %v16537_v31 = vld [vmem:[#allocation129_spill] sm:$0xff] }
 0x700   :  { %13479 = vtanh.f32 %v7453_v57  ;;  %v16525_v57 = vld [vmem:[#allocation117_spill] sm:$0xff] }
 0x701   :  { %13481 = vtanh.f32 %v7464_v29  ;;  %v16538_v29 = vld [vmem:[#allocation130_spill] sm:$0xff] }
 0x702   :  { %13483 = vtanh.f32 %v7482_v9  ;;  %v16539_v9 = vld [vmem:[#allocation131_spill] sm:$0xff] }
 0x703   :  { %13485 = vtanh.f32 %v15178_v17 }
 0x708   :  { %v13476_v41 = vpop.eup %13475 }
 0x709   :  { %v13478_v47 = vpop.eup %13477  ;;  %v7475_v48 = vmul.f32 0.5, %v13476_v41  ;;  %v16540_v41 = vld [vmem:[#allocation132_spill] sm:$0xff] }
 0x70a   :  { %v7479_v7 = vmul.f32 0.5, %v13478_v47  ;;  %v13480_v32 = vpop.eup %13479  ;;  %v16541_v47 = vld [vmem:[#allocation133_spill] sm:$0xff] }
 0x70b   :  { %v7476_v15 = vadd.f32 0.5, %v7475_v48  ;;  %v13482_v34 = vpop.eup %13481  ;;  %v16542_v48 = vld [vmem:[#allocation134_spill] sm:$0xff] }
 0x70c   :  { %v7480_v46 = vadd.f32 0.5, %v7479_v7  ;;  %v13484_v40 = vpop.eup %13483  ;;  %v7466_v8 = vmul.f32 0.5, %v13482_v34  ;;  %v16543_v7 = vld [vmem:[#allocation135_spill] sm:$0xff]  ;;  %v16549_v34 = vld [vmem:[#allocation141_spill] sm:$0xff] }
 0x70d   :  { %v7487_v60 = vmul.f32 %v13480_v32, %v7476_v15  ;;  %v7484_v63 = vmul.f32 0.5, %v13484_v40  ;;  %v13486_v2 = vpop.eup %13485  ;;  %v16544_v15 = vld [vmem:[#allocation136_spill] sm:$0xff]  ;;  %v16545_v32 = vld [vmem:[#allocation137_spill] sm:$0xff]  ;;  %v16550_v40 = vld [vmem:[#allocation142_spill] sm:$0xff] }
 0x70e   :  { %v7486_v56 = vmul.f32 %v7480_v46, %v14908_v58  ;;  %v7467_v42 = vadd.f32 0.5, %v7466_v8  ;;  %v16546_v46 = vld [vmem:[#allocation138_spill] sm:$0xff]  ;;  %v16551_v8 = vld [vmem:[#allocation143_spill] sm:$0xff] }
 0x70f   :  { %v7485_v1 = vadd.f32 0.5, %v7484_v63  ;;  %v16552_v63 = vld [vmem:[#allocation144_spill] sm:$0xff] }
 0x710   :  { %v15186_v22 = vadd.f32 %v7487_v60, %v7486_v56  ;;  %v15189_v49 = vmul.f32 %v13486_v2, %v7467_v42  ;;  %v16547_v60 = vld [vmem:[#allocation139_spill] sm:$0xff]  ;;  %v16548_v56 = vld [vmem:[#allocation140_spill] sm:$0xff]  ;;  %v16553_v2 = vld [vmem:[#allocation145_spill] sm:$0xff] }
 0x711   :  { %v16554_v42 = vld [vmem:[#allocation146_spill] sm:$0xff] }
 0x712   :  { %13487 = vtanh.f32 %v15186_v22  ;;  %16509 = vst [vmem:[#allocation150_spill] sm:$0xff] %v15189_v49  ;;  %v15197_v53 = vpack.c.bf16 %v15189_v49, %v15189_v49  ;;  %v8592_v49 = vld [vmem:[#allocation10 + $0x368] sm:$0xff] }
 0x71c   :  { %v13488_v26 = vpop.eup %13487 }
 0x71d   :  { %v15191_v14 = vmul.f32 %v13488_v26, %v7485_v1  ;;  %v16555_v1 = vld [vmem:[#allocation147_spill] sm:$0xff]  ;;  %v16556_v26 = vld [vmem:[#allocation148_spill] sm:$0xff] }
 0x71f   :  { %16510 = vst [vmem:[#allocation151_spill] sm:$0xff] %v15191_v14  ;;  %v7494_v58 = vpack.c.bf16 %v15191_v14, %v15191_v14  ;;  %v8599_v14 = vld [vmem:[#allocation10 + $0x3a0] sm:$0xff] }
 0x721   :  { %8295 = vmatprep.mubr.bf16.mxu0 %v7494_v58  ;;  %8336 = vmatprep.mubr.bf16.mxu1 %v7494_v58 }
 0x722   :  { %8296 = vmatmul.mubr.bf16.vlgmr.msra.gmra.mrb[64].mxu0 %v15197_v53  ;;  %8337 = vmatmul.mubr.bf16.vlgmr.msra.gmra.mrb[64].mxu1 %v15197_v53 }
 0x723   :  { %8346 = vmatpush1.bf16.msra.mxu0 %v14887_v50  ;;  %8387 = vmatpush1.bf16.msra.mxu1 %v14889_v45  ;;  %v16518_v50 = vld [vmem:[#allocation94_spill] sm:$0xff]  ;;  %v16519_v45 = vld [vmem:[#allocation95_spill] sm:$0xff] }
 0x724   :  { %8377 = vmatprep.mubr.bf16.mxu0 %v7494_v58  ;;  %8418 = vmatprep.mubr.bf16.mxu1 %v7494_v58  ;;  %v16557_v58 = vld [vmem:[#allocation149_spill] sm:$0xff] }
 0x725   :  { %8347 = vmatprep.subr.bf16.mxu0 %v14921_v33  ;;  %8388 = vmatprep.subr.bf16.mxu1 %v16511_v18  ;;  %v16521_v33 = vld [vmem:[#allocation97_spill] sm:$0xff] }
 0x726   :  { %v8496_v18 = vld [vmem:[#allocation10 + $0x68] sm:$0xff] }
 0x727   :  { %8348 = vmatpush1.bf16.msra.mxu0 %v16512_v35  ;;  %8389 = vmatpush1.bf16.msra.mxu1 %v16513_v19  ;;  %v8499_v35 = vld [vmem:[#allocation10 + $0x80] sm:$0xff] }
 0x728   :  { %8349 = vmatprep.subr.bf16.mxu0 %v16514_v21  ;;  %8390 = vmatprep.subr.bf16.mxu1 %v16515_v52  ;;  %v8503_v19 = vld [vmem:[#allocation10 + $0xa0] sm:$0xff]  ;;  %v8500_v21 = vld [vmem:[#allocation10 + $0x88] sm:$0xff] }
 0x729   :  { %v8504_v52 = vld [vmem:[#allocation10 + $0xa8] sm:$0xff] }
 0x72b   :  { %8350 = vmatpush1.bf16.msra.mxu0 %v16516_v51  ;;  %8391 = vmatpush1.bf16.msra.mxu1 %v16517_v24 }
 0x72c   :  { %8351 = vmatprep.subr.bf16.mxu0 %v16518_v50  ;;  %8392 = vmatprep.subr.bf16.mxu1 %v16519_v45  ;;  %v15286_v50 = vcombine.high %v8499_v35, %v8503_v19  ;;  %v15289_v45 = vcombine.high %v8500_v21, %v8504_v52 }
 0x72f   :  { %8352 = vmatpush1.bf16.msra.mxu0 %v16520_v61  ;;  %8393 = vmatpush1.bf16.msra.mxu1 %v16521_v33  ;;  %v8507_v61 = vld [vmem:[#allocation10 + $0xc0] sm:$0xff] }
 0x730   :  { %8353 = vmatprep.subr.bf16.mxu0 %v16522_v25  ;;  %8394 = vmatprep.subr.bf16.mxu1 %v16523_v30  ;;  %v8511_v33 = vld [vmem:[#allocation10 + $0xe0] sm:$0xff]  ;;  %v8508_v25 = vld [vmem:[#allocation10 + $0xc8] sm:$0xff] }
 0x731   :  { %v8512_v30 = vld [vmem:[#allocation10 + $0xe8] sm:$0xff] }
 0x733   :  { %8354 = vmatpush1.bf16.msra.mxu0 %v16524_v4  ;;  %8395 = vmatpush1.bf16.msra.mxu1 %v16525_v57  ;;  %v15292_v4 = vcombine.low %v8499_v35, %v8503_v19  ;;  %v15296_v57 = vcombine.low %v8500_v21, %v8504_v52  ;;  %v8552_v35 = vld [vmem:[#allocation10 + $0x228] sm:$0xff] }
 0x734   :  { %8355 = vmatprep.subr.bf16.mxu0 %v16526_v11  ;;  %8396 = vmatprep.subr.bf16.mxu1 %v16527_v5  ;;  %v15298_v11 = vcombine.high %v8507_v61, %v8511_v33  ;;  %v15301_v5 = vcombine.high %v8508_v25, %v8512_v30 }
 0x737   :  { %8356 = vmatpush1.bf16.msra.mxu0 %v16528_v55  ;;  %8397 = vmatpush1.bf16.msra.mxu1 %v16529_v0  ;;  %v8515_v55 = vld [vmem:[#allocation10 + $0x100] sm:$0xff] }
 0x738   :  { %8357 = vmatprep.subr.bf16.mxu0 %v16530_v23  ;;  %8398 = vmatprep.subr.bf16.mxu1 %v16531_v59  ;;  %v8519_v0 = vld [vmem:[#allocation10 + $0x120] sm:$0xff]  ;;  %v8516_v23 = vld [vmem:[#allocation10 + $0x108] sm:$0xff] }
 0x739   :  { %v8520_v59 = vld [vmem:[#allocation10 + $0x128] sm:$0xff] }
 0x73b   :  { %8358 = vmatpush1.bf16.msra.mxu0 %v16532_v27  ;;  %8399 = vmatpush1.bf16.msra.mxu1 %v16533_v38  ;;  %v15304_v27 = vcombine.low %v8507_v61, %v8511_v33  ;;  %v15308_v38 = vcombine.low %v8508_v25, %v8512_v30  ;;  %v8555_v61 = vld [vmem:[#allocation10 + $0x240] sm:$0xff]  ;;  %v8556_v25 = vld [vmem:[#allocation10 + $0x248] sm:$0xff] }
 0x73c   :  { %8359 = vmatprep.subr.bf16.mxu0 %v16534_v20  ;;  %8400 = vmatprep.subr.bf16.mxu1 %v16535_v6  ;;  %v15310_v20 = vcombine.high %v8515_v55, %v8519_v0  ;;  %v15313_v6 = vcombine.high %v8516_v23, %v8520_v59  ;;  %v8559_v33 = vld [vmem:[#allocation10 + $0x260] sm:$0xff] }
 0x73d   :  { %v15373_v30 = vcombine.high %v8555_v61, %v8559_v33 }
 0x73f   :  { %8360 = vmatpush1.bf16.msra.mxu0 %v16536_v13  ;;  %8401 = vmatpush1.bf16.msra.mxu1 %v16537_v31  ;;  %v8523_v13 = vld [vmem:[#allocation10 + $0x140] sm:$0xff] }
 0x740   :  { %8361 = vmatprep.subr.bf16.mxu0 %v16538_v29  ;;  %8402 = vmatprep.subr.bf16.mxu1 %v16539_v9  ;;  %v8527_v31 = vld [vmem:[#allocation10 + $0x160] sm:$0xff]  ;;  %v8524_v29 = vld [vmem:[#allocation10 + $0x148] sm:$0xff] }
 0x741   :  { %v8528_v9 = vld [vmem:[#allocation10 + $0x168] sm:$0xff] }
 0x743   :  { %8362 = vmatpush1.bf16.msra.mxu0 %v16540_v41  ;;  %8403 = vmatpush1.bf16.msra.mxu1 %v16541_v47  ;;  %v15316_v41 = vcombine.low %v8515_v55, %v8519_v0  ;;  %v15320_v47 = vcombine.low %v8516_v23, %v8520_v59  ;;  %v8560_v55 = vld [vmem:[#allocation10 + $0x268] sm:$0xff]  ;;  %v15375_v0 = vcombine.low %v8555_v61, %v8559_v33  ;;  %v8579_v61 = vld [vmem:[#allocation10 + $0x300] sm:$0xff] }
 0x744   :  { %8363 = vmatprep.subr.bf16.mxu0 %v16542_v48  ;;  %8404 = vmatprep.subr.bf16.mxu1 %v16543_v7  ;;  %v15322_v48 = vcombine.high %v8523_v13, %v8527_v31  ;;  %v15325_v7 = vcombine.high %v8524_v29, %v8528_v9  ;;  %v15377_v23 = vcombine.low %v8556_v25, %v8560_v55  ;;  %v8583_v33 = vld [vmem:[#allocation10 + $0x320] sm:$0xff] }
 0x745   :  { %16558 = vst [vmem:[#allocation152_spill] sm:$0xff] %v15375_v0  ;;  %v15379_v59 = vcombine.high %v8556_v25, %v8560_v55  ;;  %v8580_v25 = vld [vmem:[#allocation10 + $0x308] sm:$0xff]  ;;  %v15409_v55 = vcombine.high %v8579_v61, %v8583_v33 }
 0x746   :  { %16559 = vst [vmem:[#allocation153_spill] sm:$0xff] %v15377_v23 }
 0x747   :  { %8364 = vmatpush1.bf16.msra.mxu0 %v16544_v15  ;;  %8405 = vmatpush1.bf16.msra.mxu1 %v16545_v32  ;;  %v15328_v15 = vcombine.low %v8523_v13, %v8527_v31  ;;  %v15332_v32 = vcombine.low %v8524_v29, %v8528_v9  ;;  %v8563_v13 = vld [vmem:[#allocation10 + $0x280] sm:$0xff]  ;;  %v8564_v29 = vld [vmem:[#allocation10 + $0x288] sm:$0xff]  ;;  %16568 = vst [vmem:[#allocation61_spill] sm:$0xff] %v15409_v55 }
 0x748   :  { %8365 = vmatprep.subr.bf16.mxu0 %v16546_v46  ;;  %8406 = vmatprep.subr.bf16.mxu1 %v16547_v60  ;;  %v8531_v46 = vld [vmem:[#allocation10 + $0x180] sm:$0xff] }
 0x749   :  { %v8535_v60 = vld [vmem:[#allocation10 + $0x1a0] sm:$0xff] }
 0x74a   :  { %v8567_v31 = vld [vmem:[#allocation10 + $0x2a0] sm:$0xff] }
 0x74b   :  { %8366 = vmatpush1.bf16.msra.mxu0 %v16548_v56  ;;  %8407 = vmatpush1.bf16.msra.mxu1 %v16549_v34  ;;  %v8532_v56 = vld [vmem:[#allocation10 + $0x188] sm:$0xff]  ;;  %v15337_v34 = vcombine.high %v8531_v46, %v8535_v60  ;;  %v15385_v9 = vcombine.high %v8563_v13, %v8567_v31 }
 0x74c   :  { %8367 = vmatprep.subr.bf16.mxu0 %v16550_v40  ;;  %8408 = vmatprep.subr.bf16.mxu1 %v16551_v8  ;;  %v8536_v40 = vld [vmem:[#allocation10 + $0x1a8] sm:$0xff]  ;;  %v15339_v8 = vcombine.low %v8531_v46, %v8535_v60  ;;  %v15387_v60 = vcombine.low %v8563_v13, %v8567_v31  ;;  %v15411_v31 = vcombine.low %v8579_v61, %v8583_v33 }
 0x74d   :  { %16560 = vst [vmem:[#allocation25_spill] sm:$0xff] %v15385_v9  ;;  %v8568_v46 = vld [vmem:[#allocation10 + $0x2a8] sm:$0xff] }
 0x74e   :  { %16561 = vst [vmem:[#allocation26_spill] sm:$0xff] %v15387_v60  ;;  %v8584_v13 = vld [vmem:[#allocation10 + $0x328] sm:$0xff]  ;;  %16569 = vst [vmem:[#allocation59_spill] sm:$0xff] %v15411_v31 }
 0x74f   :  { %8368 = vmatpush1.bf16.msra.mxu0 %v16552_v63  ;;  %8409 = vmatpush1.bf16.msra.mxu1 %v16553_v2  ;;  %v15341_v63 = vcombine.low %v8532_v56, %v8536_v40  ;;  %v15343_v2 = vcombine.high %v8532_v56, %v8536_v40  ;;  %v15389_v56 = vcombine.low %v8564_v29, %v8568_v46 }
 0x750   :  { %8369 = vmatprep.subr.bf16.mxu0 %v16554_v42  ;;  %8410 = vmatprep.subr.bf16.mxu1 %v16555_v1  ;;  %v8539_v42 = vld [vmem:[#allocation10 + $0x1c0] sm:$0xff]  ;;  %v15391_v40 = vcombine.high %v8564_v29, %v8568_v46  ;;  %v15413_v29 = vcombine.low %v8580_v25, %v8584_v13  ;;  %v15415_v46 = vcombine.high %v8580_v25, %v8584_v13 }
 0x751   :  { %v8543_v1 = vld [vmem:[#allocation10 + $0x1e0] sm:$0xff]  ;;  %16562 = vst [vmem:[#allocation27_spill] sm:$0xff] %v15389_v56 }
 0x752   :  { %16563 = vst [vmem:[#allocation28_spill] sm:$0xff] %v15391_v40  ;;  %16570 = vst [vmem:[#allocation60_spill] sm:$0xff] %v15413_v29  ;;  %v8595_v13 = vld [vmem:[#allocation10 + $0x380] sm:$0xff] }
 0x753   :  { %8370 = vmatpush1.bf16.msra.mxu0 %v15061_v62  ;;  %8411 = vmatpush1.bf16.msra.mxu1 %v15063_v28  ;;  %v8483_v62 = vld [vmem:[#allocation10] sm:$0xff]  ;;  %16571 = vst [vmem:[#allocation70_spill] sm:$0xff] %v15415_v46 }
 0x754   :  { %8371 = vmatprep.subr.bf16.mxu0 %v15067_v10  ;;  %8412 = vmatprep.subr.bf16.mxu1 %v16556_v26  ;;  %v8487_v28 = vld [vmem:[#allocation10 + $0x20] sm:$0xff]  ;;  %v8484_v10 = vld [vmem:[#allocation10 + $0x8] sm:$0xff] }
 0x755   :  { %v8540_v26 = vld [vmem:[#allocation10 + $0x1c8] sm:$0xff] }
 0x757   :  { %8372 = vmatpush1.bf16.msra.mxu0 %v16557_v58  ;;  %8413 = vmatpush1.bf16.msra.mxu1 %v15075_v36  ;;  %v15265_v36 = vcombine.low %v8483_v62, %v8487_v28  ;;  %v15349_v58 = vcombine.high %v8539_v42, %v8543_v1 }
 0x758   :  { %8373 = vmatprep.subr.bf16.mxu0 %v15079_v3  ;;  %8414 = vmatprep.subr.bf16.mxu1 %v15081_v12  ;;  %v15267_v3 = vcombine.high %v8483_v62, %v8487_v28  ;;  %v8488_v12 = vld [vmem:[#allocation10 + $0x28] sm:$0xff]  ;;  %v15351_v28 = vcombine.low %v8539_v42, %v8543_v1  ;;  %v8571_v42 = vld [vmem:[#allocation10 + $0x2c0] sm:$0xff] }
 0x759   :  { %v8544_v62 = vld [vmem:[#allocation10 + $0x1e8] sm:$0xff]  ;;  %v8575_v1 = vld [vmem:[#allocation10 + $0x2e0] sm:$0xff] }
 0x75b   :  { %8374 = vmatpush1.bf16.msra.mxu0 %v15085_v43  ;;  %8415 = vmatpush1.bf16.msra.mxu1 %v15087_v44  ;;  %v8491_v43 = vld [vmem:[#allocation10 + $0x40] sm:$0xff] }
 0x75c   :  { %8375 = vmatprep.subr.bf16.mxu0 %v15091_v39  ;;  %8416 = vmatprep.subr.bf16.mxu1 %v15093_v37  ;;  %v8495_v44 = vld [vmem:[#allocation10 + $0x60] sm:$0xff]  ;;  %v15269_v39 = vcombine.low %v8484_v10, %v8488_v12  ;;  %v15271_v37 = vcombine.high %v8484_v10, %v8488_v12  ;;  %v15353_v10 = vcombine.low %v8540_v26, %v8544_v62 }
 0x75d   :  { %v15280_v51 = vcombine.low %v8491_v43, %v8495_v44  ;;  %v15355_v12 = vcombine.high %v8540_v26, %v8544_v62  ;;  %v8572_v26 = vld [vmem:[#allocation10 + $0x2c8] sm:$0xff]  ;;  %v15397_v62 = vcombine.high %v8571_v42, %v8575_v1 }
 0x75f   :  { %8376 = vmatpush1.bf16.msra.mxu0 %v15097_v16  ;;  %8417 = vmatpush1.bf16.msra.mxu1 %v15099_v54  ;;  %v15273_v16 = vcombine.high %v8491_v43, %v8495_v44  ;;  %v8492_v54 = vld [vmem:[#allocation10 + $0x48] sm:$0xff]  ;;  %v8547_v43 = vld [vmem:[#allocation10 + $0x200] sm:$0xff]  ;;  %16564 = vst [vmem:[#allocation82_spill] sm:$0xff] %v15397_v62 }
 0x760   :  { %9251 = vmatprep.subr.bf16.mxu0 %v15267_v3  ;;  %9292 = vmatprep.subr.bf16.mxu1 %v15271_v37  ;;  %v15284_v24 = vcombine.low %v8492_v54, %v8496_v18  ;;  %v8551_v44 = vld [vmem:[#allocation10 + $0x220] sm:$0xff] }
 0x761   :  { %v15363_v19 = vcombine.low %v8547_v43, %v8551_v44 }
 0x762   :  { %8378 = vmatmul.mubr.bf16.vlgmr.msra.gmra.mrb[68].mxu0 %v15197_v53  ;;  %8419 = vmatmul.mubr.bf16.vlgmr.msra.gmra.mrb[68].mxu1 %v15197_v53  ;;  %v15276_v53 = vcombine.high %v8492_v54, %v8496_v18  ;;  %v8548_v54 = vld [vmem:[#allocation10 + $0x208] sm:$0xff]  ;;  %v15361_v18 = vcombine.high %v8547_v43, %v8551_v44  ;;  %v15399_v44 = vcombine.low %v8571_v42, %v8575_v1  ;;  %v8587_v42 = vld [vmem:[#allocation10 + $0x340] sm:$0xff] }
 0x763   :  { %9252 = vmatpush1.bf16.msra.mxu0 %v15265_v36  ;;  %9293 = vmatpush1.bf16.msra.mxu1 %v15269_v39  ;;  %v15365_v21 = vcombine.low %v8548_v54, %v8552_v35  ;;  %v15367_v52 = vcombine.high %v8548_v54, %v8552_v35  ;;  %v8576_v43 = vld [vmem:[#allocation10 + $0x2e8] sm:$0xff]  ;;  %v8591_v1 = vld [vmem:[#allocation10 + $0x360] sm:$0xff] }
 0x764   :  { %9253 = vmatprep.subr.bf16.mxu0 %v15273_v16  ;;  %9294 = vmatprep.subr.bf16.mxu1 %v15276_v53  ;;  %16565 = vst [vmem:[#allocation84_spill] sm:$0xff] %v15399_v44  ;;  %v15401_v54 = vcombine.low %v8572_v26, %v8576_v43  ;;  %v15403_v35 = vcombine.high %v8572_v26, %v8576_v43  ;;  %v8588_v26 = vld [vmem:[#allocation10 + $0x348] sm:$0xff] }
 0x765   :  { %v15421_v43 = vcombine.high %v8587_v42, %v8591_v1  ;;  %v15423_v61 = vcombine.low %v8587_v42, %v8591_v1  ;;  %v15425_v33 = vcombine.low %v8588_v26, %v8592_v49  ;;  %v15427_v25 = vcombine.high %v8588_v26, %v8592_v49  ;;  %v8603_v26 = vld [vmem:[#allocation10 + $0x3c0] sm:$0xff] }
 0x766   :  { %16566 = vst [vmem:[#allocation85_spill] sm:$0xff] %v15401_v54  ;;  %16567 = vst [vmem:[#allocation88_spill] sm:$0xff] %v15403_v35  ;;  %v15435_v42 = vcombine.low %v8595_v13, %v8599_v14 }
 0x767   :  { %9254 = vmatpush1.bf16.msra.mxu0 %v15280_v51  ;;  %9295 = vmatpush1.bf16.msra.mxu1 %v15284_v24  ;;  %16572 = vst [vmem:[#allocation67_spill] sm:$0xff] %v15421_v43  ;;  %16573 = vst [vmem:[#allocation73_spill] sm:$0xff] %v15423_v61 }
 0x768   :  { %9255 = vmatprep.subr.bf16.mxu0 %v15286_v50  ;;  %9296 = vmatprep.subr.bf16.mxu1 %v15289_v45  ;;  %16574 = vst [vmem:[#allocation71_spill] sm:$0xff] %v15425_v33  ;;  %16575 = vst [vmem:[#allocation75_spill] sm:$0xff] %v15427_v25 }
 0x769   :  { %16577 = vst [vmem:[#allocation77_spill] sm:$0xff] %v15435_v42 }
 0x76b   :  { %9256 = vmatpush1.bf16.msra.mxu0 %v15292_v4  ;;  %9297 = vmatpush1.bf16.msra.mxu1 %v15296_v57 }
 0x76c   :  { %9257 = vmatprep.subr.bf16.mxu0 %v15298_v11  ;;  %9298 = vmatprep.subr.bf16.mxu1 %v15301_v5 }
 0x76f   :  { %9258 = vmatpush1.bf16.msra.mxu0 %v15304_v27  ;;  %9299 = vmatpush1.bf16.msra.mxu1 %v15308_v38 }
 0x770   :  { %9259 = vmatprep.subr.bf16.mxu0 %v15310_v20  ;;  %9300 = vmatprep.subr.bf16.mxu1 %v15313_v6 }
 0x773   :  { %9260 = vmatpush1.bf16.msra.mxu0 %v15316_v41  ;;  %9301 = vmatpush1.bf16.msra.mxu1 %v15320_v47 }
 0x774   :  { %9261 = vmatprep.subr.bf16.mxu0 %v15322_v48  ;;  %9302 = vmatprep.subr.bf16.mxu1 %v15325_v7 }
 0x777   :  { %9262 = vmatpush1.bf16.msra.mxu0 %v15328_v15  ;;  %9303 = vmatpush1.bf16.msra.mxu1 %v15332_v32 }
 0x778   :  { %9263 = vmatprep.subr.bf16.mxu0 %v15337_v34  ;;  %9304 = vmatprep.subr.bf16.mxu1 %v15343_v2 }
 0x77b   :  { %9264 = vmatpush1.bf16.msra.mxu0 %v15339_v8  ;;  %9305 = vmatpush1.bf16.msra.mxu1 %v15341_v63 }
 0x77c   :  { %9265 = vmatprep.subr.bf16.mxu0 %v15349_v58  ;;  %9306 = vmatprep.subr.bf16.mxu1 %v15355_v12 }
 0x77f   :  { %9266 = vmatpush1.bf16.msra.mxu0 %v15351_v28  ;;  %9307 = vmatpush1.bf16.msra.mxu1 %v15353_v10 }
 0x780   :  { %9267 = vmatprep.subr.bf16.mxu0 %v15361_v18  ;;  %9308 = vmatprep.subr.bf16.mxu1 %v15367_v52 }
 0x783   :  { %9268 = vmatpush1.bf16.msra.mxu0 %v15363_v19  ;;  %9309 = vmatpush1.bf16.msra.mxu1 %v15365_v21 }
 0x784   :  { %9269 = vmatprep.subr.bf16.mxu0 %v15373_v30  ;;  %9310 = vmatprep.subr.bf16.mxu1 %v15379_v59 }
 0x787   :  { %9270 = vmatpush1.bf16.msra.mxu0 %v15375_v0  ;;  %9311 = vmatpush1.bf16.msra.mxu1 %v15377_v23 }
 0x788   :  { %9271 = vmatprep.subr.bf16.mxu0 %v15385_v9  ;;  %9312 = vmatprep.subr.bf16.mxu1 %v15391_v40 }
 0x78b   :  { %9272 = vmatpush1.bf16.msra.mxu0 %v15387_v60  ;;  %9313 = vmatpush1.bf16.msra.mxu1 %v15389_v56 }
 0x78c   :  { %9273 = vmatprep.subr.bf16.mxu0 %v15397_v62  ;;  %9314 = vmatprep.subr.bf16.mxu1 %v15403_v35  ;;  %v16588_v35 = vld [vmem:[#allocation35_spill] sm:$0xff] }
 0x78f   :  { %9274 = vmatpush1.bf16.msra.mxu0 %v15399_v44  ;;  %9315 = vmatpush1.bf16.msra.mxu1 %v15401_v54 }
 0x790   :  { %9275 = vmatprep.subr.bf16.mxu0 %v15409_v55  ;;  %9316 = vmatprep.subr.bf16.mxu1 %v15415_v46  ;;  %v8600_v46 = vld [vmem:[#allocation10 + $0x3a8] sm:$0xff]  ;;  %v16587_v55 = vld [vmem:[#allocation34_spill] sm:$0xff] }
 0x793   :  { %9276 = vmatpush1.bf16.msra.mxu0 %v15411_v31  ;;  %9317 = vmatpush1.bf16.msra.mxu1 %v15413_v29  ;;  %v8596_v31 = vld [vmem:[#allocation10 + $0x388] sm:$0xff]  ;;  %v15433_v29 = vcombine.high %v8595_v13, %v8599_v14 }
 0x794   :  { %9277 = vmatprep.subr.bf16.mxu0 %v15421_v43  ;;  %9318 = vmatprep.subr.bf16.mxu1 %v15427_v25  ;;  %v15437_v1 = vcombine.low %v8596_v31, %v8600_v46  ;;  %v15439_v49 = vcombine.high %v8596_v31, %v8600_v46  ;;  %v8604_v25 = vld [vmem:[#allocation10 + $0x3c8] sm:$0xff]  ;;  %v8485_v46 = vld [vmem:[#allocation10 + $0x10] sm:$0xff] }
 0x795   :  { %16576 = vst [vmem:[#allocation74_spill] sm:$0xff] %v15433_v29  ;;  %v8608_v43 = vld [vmem:[#allocation10 + $0x3e8] sm:$0xff] }
 0x796   :  { %16578 = vst [vmem:[#allocation76_spill] sm:$0xff] %v15437_v1  ;;  %16579 = vst [vmem:[#allocation86_spill] sm:$0xff] %v15439_v49  ;;  %v15449_v13 = vcombine.low %v8604_v25, %v8608_v43  ;;  %v15451_v31 = vcombine.high %v8604_v25, %v8608_v43 }
 0x797   :  { %9278 = vmatpush1.bf16.msra.mxu0 %v15423_v61  ;;  %9319 = vmatpush1.bf16.msra.mxu1 %v15425_v33  ;;  %v8607_v61 = vld [vmem:[#allocation10 + $0x3e0] sm:$0xff] }
 0x798   :  { %9279 = vmatprep.subr.bf16.mxu0 %v15433_v29  ;;  %9320 = vmatprep.subr.bf16.mxu1 %v15439_v49  ;;  %v15445_v33 = vcombine.high %v8603_v26, %v8607_v61  ;;  %v15447_v14 = vcombine.low %v8603_v26, %v8607_v61  ;;  %16582 = vst [vmem:[#allocation87_spill] sm:$0xff] %v15449_v13  ;;  %16583 = vst [vmem:[#allocation91_spill] sm:$0xff] %v15451_v31  ;;  %v8486_v49 = vld [vmem:[#allocation10 + $0x18] sm:$0xff] }
 0x799   :  { %v8490_v29 = vld [vmem:[#allocation10 + $0x38] sm:$0xff] }
 0x79a   :  { %16580 = vst [vmem:[#allocation83_spill] sm:$0xff] %v15445_v33  ;;  %16581 = vst [vmem:[#allocation89_spill] sm:$0xff] %v15447_v14  ;;  %v15461_v26 = vcombine.low %v8486_v49, %v8490_v29  ;;  %v15463_v43 = vcombine.high %v8486_v49, %v8490_v29 }
 0x79b   :  { %9280 = vmatpush1.bf16.msra.mxu0 %v15435_v42  ;;  %9321 = vmatpush1.bf16.msra.mxu1 %v15437_v1  ;;  %v8489_v42 = vld [vmem:[#allocation10 + $0x30] sm:$0xff] }
 0x79c   :  { %9281 = vmatprep.subr.bf16.mxu0 %v15445_v33  ;;  %9322 = vmatprep.subr.bf16.mxu1 %v15451_v31  ;;  %v15457_v1 = vcombine.high %v8485_v46, %v8489_v42  ;;  %v15459_v61 = vcombine.low %v8485_v46, %v8489_v42  ;;  %16585 = vst [vmem:[#allocation93_spill] sm:$0xff] %v15463_v43  ;;  %v16586_v31 = vld [vmem:[#allocation33_spill] sm:$0xff]  ;;  %v16589_v42 = vld [vmem:[#allocation36_spill] sm:$0xff] }
 0x79e   :  { %16584 = vst [vmem:[#allocation90_spill] sm:$0xff] %v15457_v1 }
 0x79f   :  { %9282 = vmatpush1.bf16.msra.mxu0 %v15447_v14  ;;  %9323 = vmatpush1.bf16.msra.mxu1 %v15449_v13 }
 0x7a0   :  { %9333 = vmatprep.subr.bf16.mxu0 %v15457_v1  ;;  %9374 = vmatprep.subr.bf16.mxu1 %v15463_v43 }
 0x7f5   :  { %v8297_v25 = vpop.f32.mrb[64].mxu0  ;;  %v8338_v14 = vpop.f32.mrb[64].mxu1 }
 0x7f6   :  { %v8431_v33 = vadd.f32 %v16586_v31, %v8297_v25  ;;  %v8433_v54 = vadd.f32 %v16587_v55, %v8338_v14  ;;  %v8299_v13 = vpop.f32.mrb[65].mxu0  ;;  %v8340_v44 = vpop.f32.mrb[65].mxu1 }
 0x7f7   :  { %v8432_v62 = vadd.f32 %v16588_v35, %v8299_v13  ;;  %v8434_v46 = vadd.f32 %v16589_v42, %v8340_v44  ;;  %v8301_v56 = vpop.f32.mrb[66].mxu0  ;;  %v8342_v60 = vpop.f32.mrb[66].mxu1  ;;  %v16592_v42 = vld [vmem:[#allocation69_spill] sm:$0xff] }
 0x7f8   :  { %v8443_v29 = vmul.f32 0.5, %v8431_v33  ;;  %v8302_v49 = vpop.f32.mrb[67].mxu0  ;;  %v8343_v40 = vpop.f32.mrb[67].mxu1  ;;  %v16590_v33 = vld [vmem:[#allocation66_spill] sm:$0xff] }
 0x7f9   :  { %v8447_v1 = vmul.f32 0.5, %v8432_v62  ;;  %v16591_v62 = vld [vmem:[#allocation68_spill] sm:$0xff] }
 0x7fa   :  { %13489 = vtanh.f32 %v8443_v29 }
 0x7fb   :  { %13491 = vtanh.f32 %v8447_v1 }
 0x7fc   :  { %13493 = vtanh.f32 %v8433_v54 }
 0x804   :  { %v13490_v43 = vpop.eup %13489 }
 0x805   :  { %v13492_v9 = vpop.eup %13491  ;;  %v8445_v31 = vmul.f32 0.5, %v13490_v43  ;;  %v16593_v43 = vld [vmem:[#allocation72_spill] sm:$0xff] }
 0x806   :  { %v8449_v25 = vmul.f32 0.5, %v13492_v9  ;;  %v13494_v14 = vpop.eup %13493 }
 0x807   :  { %v8446_v55 = vadd.f32 0.5, %v8445_v31 }
 0x808   :  { %v8450_v23 = vadd.f32 0.5, %v8449_v25 }
 0x809   :  { %v8457_v0 = vmul.f32 %v13494_v14, %v8446_v55 }
 0x80a   :  { %v8456_v35 = vmul.f32 %v8450_v23, %v15178_v17 }
 0x80c   :  { %v15472_v44 = vadd.f32 %v8457_v0, %v8456_v35  ;;  %v8452_v0 = vmul.f32 0.5, %v8434_v46 }
 0x835   :  { %v8379_v60 = vpop.f32.mrb[68].mxu0  ;;  %v8420_v56 = vpop.f32.mrb[68].mxu1 }
 0x836   :  { %v8439_v40 = vadd.f32 %v16590_v33, %v8379_v60  ;;  %v8441_v13 = vadd.f32 %v16591_v62, %v8420_v56  ;;  %v8381_v1 = vpop.f32.mrb[69].mxu0  ;;  %v8422_v54 = vpop.f32.mrb[69].mxu1 }
 0x837   :  { %v8440_v29 = vadd.f32 %v16592_v42, %v8381_v1  ;;  %v8442_v9 = vadd.f32 %v16593_v43, %v8422_v54  ;;  %v8383_v49 = vpop.f32.mrb[70].mxu0  ;;  %v8424_v31 = vpop.f32.mrb[70].mxu1 }
 0x838   :  { %v8461_v25 = vmul.f32 0.5, %v8439_v40  ;;  %v8384_v55 = vpop.f32.mrb[71].mxu0  ;;  %v8425_v14 = vpop.f32.mrb[71].mxu1 }
 0x839   :  { %v8465_v17 = vmul.f32 0.5, %v8440_v29  ;;  %v8470_v23 = vmul.f32 0.5, %v8442_v9 }
 0x83a   :  { %13495 = vtanh.f32 %v8461_v25 }
 0x83b   :  { %13497 = vtanh.f32 %v8465_v17 }
 0x83c   :  { %13499 = vtanh.f32 %v8441_v13 }
 0x83d   :  { %13501 = vtanh.f32 %v8452_v0  ;;  %v8493_v0 = vld [vmem:[#allocation10 + $0x50] sm:$0xff] }
 0x83e   :  { %13503 = vtanh.f32 %v8470_v23  ;;  %v8494_v23 = vld [vmem:[#allocation10 + $0x58] sm:$0xff] }
 0x83f   :  { %13505 = vtanh.f32 %v15472_v44 }
 0x844   :  { %v13496_v35 = vpop.eup %13495 }
 0x845   :  { %v13498_v60 = vpop.eup %13497  ;;  %v8463_v56 = vmul.f32 0.5, %v13496_v35  ;;  %v8498_v35 = vld [vmem:[#allocation10 + $0x78] sm:$0xff] }
 0x846   :  { %v8467_v33 = vmul.f32 0.5, %v13498_v60  ;;  %v13500_v1 = vpop.eup %13499 }
 0x847   :  { %v8464_v62 = vadd.f32 0.5, %v8463_v56  ;;  %v13502_v46 = vpop.eup %13501 }
 0x848   :  { %v8468_v54 = vadd.f32 0.5, %v8467_v33  ;;  %v13504_v13 = vpop.eup %13503  ;;  %v8454_v43 = vmul.f32 0.5, %v13502_v46  ;;  %v8501_v33 = vld [vmem:[#allocation10 + $0x90] sm:$0xff] }
 0x849   :  { %v8475_v42 = vmul.f32 %v13500_v1, %v8464_v62  ;;  %v8472_v9 = vmul.f32 0.5, %v13504_v13  ;;  %v13506_v49 = vpop.eup %13505  ;;  %v15495_v1 = vcombine.high %v8494_v23, %v8498_v35  ;;  %v15503_v13 = vcombine.low %v8494_v23, %v8498_v35 }
 0x84a   :  { %v8474_v40 = vmul.f32 %v8468_v54, %v15186_v22  ;;  %v8455_v31 = vadd.f32 0.5, %v8454_v43  ;;  %v8497_v22 = vld [vmem:[#allocation10 + $0x70] sm:$0xff] }
 0x84b   :  { %v8473_v25 = vadd.f32 0.5, %v8472_v9  ;;  %v15493_v62 = vcombine.high %v8493_v0, %v8497_v22  ;;  %16596 = vst [vmem:[#allocation98_spill] sm:$0xff] %v15495_v1  ;;  %v8505_v54 = vld [vmem:[#allocation10 + $0xb0] sm:$0xff]  ;;  %v15501_v46 = vcombine.low %v8493_v0, %v8497_v22  ;;  %16598 = vst [vmem:[#allocation100_spill] sm:$0xff] %v15503_v13 }
 0x84c   :  { %v15480_v29 = vadd.f32 %v8475_v42, %v8474_v40  ;;  %v15483_v14 = vmul.f32 %v13506_v49, %v8455_v31  ;;  %v8502_v42 = vld [vmem:[#allocation10 + $0x98] sm:$0xff]  ;;  %v15505_v43 = vcombine.high %v8501_v33, %v8505_v54  ;;  %v8509_v49 = vld [vmem:[#allocation10 + $0xd0] sm:$0xff]  ;;  %v15513_v0 = vcombine.low %v8501_v33, %v8505_v54 }
 0x84d   :  { %v8506_v40 = vld [vmem:[#allocation10 + $0xb8] sm:$0xff]  ;;  %16597 = vst [vmem:[#allocation101_spill] sm:$0xff] %v15501_v46  ;;  %v8513_v31 = vld [vmem:[#allocation10 + $0xf0] sm:$0xff] }
 0x84e   :  { %13507 = vtanh.f32 %v15480_v29  ;;  %16594 = vst [vmem:[#allocation92_spill] sm:$0xff] %v15483_v14  ;;  %v15491_v56 = vpack.c.bf16 %v15483_v14, %v15483_v14  ;;  %16599 = vst [vmem:[#allocation103_spill] sm:$0xff] %v15505_v43  ;;  %v15507_v9 = vcombine.high %v8502_v42, %v8506_v40  ;;  %v15515_v22 = vcombine.low %v8502_v42, %v8506_v40  ;;  %v8518_v14 = vld [vmem:[#allocation10 + $0x118] sm:$0xff] }
 0x84f   :  { %16601 = vst [vmem:[#allocation105_spill] sm:$0xff] %v15513_v0  ;;  %v15519_v23 = vcombine.high %v8509_v49, %v8513_v31  ;;  %v15525_v33 = vcombine.low %v8509_v49, %v8513_v31 }
 0x850   :  { %16600 = vst [vmem:[#allocation102_spill] sm:$0xff] %v15507_v9  ;;  %16602 = vst [vmem:[#allocation104_spill] sm:$0xff] %v15515_v22 }
 0x851   :  { %16603 = vst [vmem:[#allocation106_spill] sm:$0xff] %v15519_v23  ;;  %16605 = vst [vmem:[#allocation30_spill] sm:$0xff] %v15525_v33 }
 0x858   :  { %v13508_v55 = vpop.eup %13507 }
 0x859   :  { %v15485_v17 = vmul.f32 %v13508_v55, %v8473_v25  ;;  %v8510_v25 = vld [vmem:[#allocation10 + $0xd8] sm:$0xff] }
 0x85a   :  { %v8514_v55 = vld [vmem:[#allocation10 + $0xf8] sm:$0xff] }
 0x85b   :  { %16595 = vst [vmem:[#allocation99_spill] sm:$0xff] %v15485_v17  ;;  %v8482_v60 = vpack.c.bf16 %v15485_v17, %v15485_v17  ;;  %v15521_v35 = vcombine.high %v8510_v25, %v8514_v55  ;;  %v8521_v17 = vld [vmem:[#allocation10 + $0x130] sm:$0xff]  ;;  %v15527_v54 = vcombine.low %v8510_v25, %v8514_v55 }
 0x85d   :  { %9283 = vmatprep.mubr.bf16.mxu0 %v8482_v60  ;;  %9324 = vmatprep.mubr.bf16.mxu1 %v8482_v60  ;;  %16604 = vst [vmem:[#allocation29_spill] sm:$0xff] %v15521_v35  ;;  %16606 = vst [vmem:[#allocation31_spill] sm:$0xff] %v15527_v54 }
 0x85e   :  { %9284 = vmatmul.mubr.bf16.vlgmr.msra.gmra.mrb[72].mxu0 %v15491_v56  ;;  %9325 = vmatmul.mubr.bf16.vlgmr.msra.gmra.mrb[72].mxu1 %v15491_v56 }
 0x85f   :  { %9334 = vmatpush1.bf16.msra.mxu0 %v15459_v61  ;;  %9375 = vmatpush1.bf16.msra.mxu1 %v15461_v26 }
 0x860   :  { %9365 = vmatprep.mubr.bf16.mxu0 %v8482_v60  ;;  %9406 = vmatprep.mubr.bf16.mxu1 %v8482_v60  ;;  %v8517_v60 = vld [vmem:[#allocation10 + $0x110] sm:$0xff] }
 0x861   :  { %9335 = vmatprep.subr.bf16.mxu0 %v15493_v62  ;;  %9376 = vmatprep.subr.bf16.mxu1 %v15495_v1  ;;  %v8522_v1 = vld [vmem:[#allocation10 + $0x138] sm:$0xff]  ;;  %v15531_v42 = vcombine.high %v8517_v60, %v8521_v17  ;;  %v15537_v49 = vcombine.low %v8517_v60, %v8521_v17 }
 0x862   :  { %v15533_v40 = vcombine.high %v8518_v14, %v8522_v1  ;;  %v15539_v31 = vcombine.low %v8518_v14, %v8522_v1 }
 0x863   :  { %9336 = vmatpush1.bf16.msra.mxu0 %v15501_v46  ;;  %9377 = vmatpush1.bf16.msra.mxu1 %v15503_v13  ;;  %16607 = vst [vmem:[#allocation32_spill] sm:$0xff] %v15531_v42  ;;  %v8526_v13 = vld [vmem:[#allocation10 + $0x158] sm:$0xff]  ;;  %16609 = vst [vmem:[#allocation79_spill] sm:$0xff] %v15537_v49 }
 0x864   :  { %9337 = vmatprep.subr.bf16.mxu0 %v15505_v43  ;;  %9378 = vmatprep.subr.bf16.mxu1 %v15507_v9  ;;  %16608 = vst [vmem:[#allocation78_spill] sm:$0xff] %v15533_v40  ;;  %v8525_v9 = vld [vmem:[#allocation10 + $0x150] sm:$0xff]  ;;  %v8530_v46 = vld [vmem:[#allocation10 + $0x178] sm:$0xff]  ;;  %16610 = vst [vmem:[#allocation80_spill] sm:$0xff] %v15539_v31 }
 0x865   :  { %v8529_v43 = vld [vmem:[#allocation10 + $0x170] sm:$0xff]  ;;  %v15545_v55 = vcombine.high %v8526_v13, %v8530_v46  ;;  %v15551_v14 = vcombine.low %v8526_v13, %v8530_v46 }
 0x866   :  { %v15543_v25 = vcombine.high %v8525_v9, %v8529_v43  ;;  %v15549_v17 = vcombine.low %v8525_v9, %v8529_v43 }
 0x867   :  { %9338 = vmatpush1.bf16.msra.mxu0 %v15513_v0  ;;  %9379 = vmatpush1.bf16.msra.mxu1 %v15515_v22  ;;  %16612 = vst [vmem:[#allocation108_spill] sm:$0xff] %v15545_v55  ;;  %v8534_v22 = vld [vmem:[#allocation10 + $0x198] sm:$0xff]  ;;  %16614 = vst [vmem:[#allocation111_spill] sm:$0xff] %v15551_v14 }
 0x868   :  { %9339 = vmatprep.subr.bf16.mxu0 %v15519_v23  ;;  %9380 = vmatprep.subr.bf16.mxu1 %v15521_v35  ;;  %16611 = vst [vmem:[#allocation81_spill] sm:$0xff] %v15543_v25  ;;  %v8533_v35 = vld [vmem:[#allocation10 + $0x190] sm:$0xff]  ;;  %v8538_v0 = vld [vmem:[#allocation10 + $0x1b8] sm:$0xff]  ;;  %16613 = vst [vmem:[#allocation110_spill] sm:$0xff] %v15549_v17 }
 0x869   :  { %v8537_v23 = vld [vmem:[#allocation10 + $0x1b0] sm:$0xff]  ;;  %v15557_v60 = vcombine.high %v8534_v22, %v8538_v0  ;;  %v15563_v46 = vcombine.low %v8534_v22, %v8538_v0 }
 0x86a   :  { %v15555_v1 = vcombine.high %v8533_v35, %v8537_v23  ;;  %v15561_v43 = vcombine.low %v8533_v35, %v8537_v23 }
 0x86b   :  { %9340 = vmatpush1.bf16.msra.mxu0 %v15525_v33  ;;  %9381 = vmatpush1.bf16.msra.mxu1 %v15527_v54  ;;  %16616 = vst [vmem:[#allocation22_spill] sm:$0xff] %v15557_v60  ;;  %v8542_v54 = vld [vmem:[#allocation10 + $0x1d8] sm:$0xff]  ;;  %16618 = vst [vmem:[#allocation24_spill] sm:$0xff] %v15563_v46 }
 0x86c   :  { %9341 = vmatprep.subr.bf16.mxu0 %v15531_v42  ;;  %9382 = vmatprep.subr.bf16.mxu1 %v15533_v40  ;;  %16615 = vst [vmem:[#allocation21_spill] sm:$0xff] %v15555_v1  ;;  %v8541_v40 = vld [vmem:[#allocation10 + $0x1d0] sm:$0xff]  ;;  %v8546_v33 = vld [vmem:[#allocation10 + $0x1f8] sm:$0xff]  ;;  %16617 = vst [vmem:[#allocation23_spill] sm:$0xff] %v15561_v43 }
 0x86d   :  { %v8545_v42 = vld [vmem:[#allocation10 + $0x1f0] sm:$0xff]  ;;  %v15569_v9 = vcombine.high %v8542_v54, %v8546_v33  ;;  %v15575_v0 = vcombine.low %v8542_v54, %v8546_v33 }
 0x86e   :  { %v15567_v13 = vcombine.high %v8541_v40, %v8545_v42  ;;  %v15573_v23 = vcombine.low %v8541_v40, %v8545_v42 }
 0x86f   :  { %9342 = vmatpush1.bf16.msra.mxu0 %v15537_v49  ;;  %9383 = vmatpush1.bf16.msra.mxu1 %v15539_v31  ;;  %16620 = vst [vmem:[#allocation95_spill] sm:$0xff] %v15569_v9  ;;  %v8550_v31 = vld [vmem:[#allocation10 + $0x218] sm:$0xff]  ;;  %16622 = vst [vmem:[#allocation97_spill] sm:$0xff] %v15575_v0 }
 0x870   :  { %9343 = vmatprep.subr.bf16.mxu0 %v15543_v25  ;;  %9384 = vmatprep.subr.bf16.mxu1 %v15545_v55  ;;  %16619 = vst [vmem:[#allocation94_spill] sm:$0xff] %v15567_v13  ;;  %v8549_v55 = vld [vmem:[#allocation10 + $0x210] sm:$0xff]  ;;  %v8554_v49 = vld [vmem:[#allocation10 + $0x238] sm:$0xff]  ;;  %16621 = vst [vmem:[#allocation96_spill] sm:$0xff] %v15573_v23 }
 0x871   :  { %v8553_v25 = vld [vmem:[#allocation10 + $0x230] sm:$0xff]  ;;  %v15581_v35 = vcombine.high %v8550_v31, %v8554_v49  ;;  %v15587_v33 = vcombine.low %v8550_v31, %v8554_v49 }
 0x872   :  { %v15579_v22 = vcombine.high %v8549_v55, %v8553_v25  ;;  %v15585_v42 = vcombine.low %v8549_v55, %v8553_v25 }
 0x873   :  { %9344 = vmatpush1.bf16.msra.mxu0 %v15549_v17  ;;  %9385 = vmatpush1.bf16.msra.mxu1 %v15551_v14  ;;  %16624 = vst [vmem:[#allocation115_spill] sm:$0xff] %v15581_v35  ;;  %v8558_v14 = vld [vmem:[#allocation10 + $0x258] sm:$0xff]  ;;  %16626 = vst [vmem:[#allocation117_spill] sm:$0xff] %v15587_v33 }
 0x874   :  { %9345 = vmatprep.subr.bf16.mxu0 %v15555_v1  ;;  %9386 = vmatprep.subr.bf16.mxu1 %v15557_v60  ;;  %16623 = vst [vmem:[#allocation114_spill] sm:$0xff] %v15579_v22  ;;  %v8557_v60 = vld [vmem:[#allocation10 + $0x250] sm:$0xff]  ;;  %v8562_v17 = vld [vmem:[#allocation10 + $0x278] sm:$0xff]  ;;  %16625 = vst [vmem:[#allocation116_spill] sm:$0xff] %v15585_v42 }
 0x875   :  { %v8561_v1 = vld [vmem:[#allocation10 + $0x270] sm:$0xff]  ;;  %v15593_v40 = vcombine.high %v8558_v14, %v8562_v17  ;;  %v15599_v49 = vcombine.low %v8558_v14, %v8562_v17 }
 0x876   :  { %v15591_v54 = vcombine.high %v8557_v60, %v8561_v1  ;;  %v15597_v25 = vcombine.low %v8557_v60, %v8561_v1 }
 0x877   :  { %9346 = vmatpush1.bf16.msra.mxu0 %v15561_v43  ;;  %9387 = vmatpush1.bf16.msra.mxu1 %v15563_v46  ;;  %16628 = vst [vmem:[#allocation119_spill] sm:$0xff] %v15593_v40  ;;  %v8566_v46 = vld [vmem:[#allocation10 + $0x298] sm:$0xff]  ;;  %16630 = vst [vmem:[#allocation121_spill] sm:$0xff] %v15599_v49 }
 0x878   :  { %9347 = vmatprep.subr.bf16.mxu0 %v15567_v13  ;;  %9388 = vmatprep.subr.bf16.mxu1 %v15569_v9  ;;  %16627 = vst [vmem:[#allocation118_spill] sm:$0xff] %v15591_v54  ;;  %v8565_v9 = vld [vmem:[#allocation10 + $0x290] sm:$0xff]  ;;  %v8570_v43 = vld [vmem:[#allocation10 + $0x2b8] sm:$0xff]  ;;  %16629 = vst [vmem:[#allocation120_spill] sm:$0xff] %v15597_v25 }
 0x879   :  { %v8569_v13 = vld [vmem:[#allocation10 + $0x2b0] sm:$0xff]  ;;  %v15605_v55 = vcombine.high %v8566_v46, %v8570_v43  ;;  %v15611_v17 = vcombine.low %v8566_v46, %v8570_v43 }
 0x87a   :  { %v15603_v31 = vcombine.high %v8565_v9, %v8569_v13  ;;  %v15609_v1 = vcombine.low %v8565_v9, %v8569_v13 }
 0x87b   :  { %9348 = vmatpush1.bf16.msra.mxu0 %v15573_v23  ;;  %9389 = vmatpush1.bf16.msra.mxu1 %v15575_v0  ;;  %16632 = vst [vmem:[#allocation123_spill] sm:$0xff] %v15605_v55  ;;  %v8574_v0 = vld [vmem:[#allocation10 + $0x2d8] sm:$0xff]  ;;  %16634 = vst [vmem:[#allocation125_spill] sm:$0xff] %v15611_v17 }
 0x87c   :  { %9349 = vmatprep.subr.bf16.mxu0 %v15579_v22  ;;  %9390 = vmatprep.subr.bf16.mxu1 %v15581_v35  ;;  %16631 = vst [vmem:[#allocation122_spill] sm:$0xff] %v15603_v31  ;;  %v8573_v35 = vld [vmem:[#allocation10 + $0x2d0] sm:$0xff]  ;;  %v8578_v23 = vld [vmem:[#allocation10 + $0x2f8] sm:$0xff]  ;;  %16633 = vst [vmem:[#allocation124_spill] sm:$0xff] %v15609_v1 }
 0x87d   :  { %v8577_v22 = vld [vmem:[#allocation10 + $0x2f0] sm:$0xff]  ;;  %v15617_v60 = vcombine.high %v8574_v0, %v8578_v23  ;;  %v15623_v43 = vcombine.low %v8574_v0, %v8578_v23 }
 0x87e   :  { %v15615_v14 = vcombine.high %v8573_v35, %v8577_v22  ;;  %v15621_v13 = vcombine.low %v8573_v35, %v8577_v22 }
 0x87f   :  { %9350 = vmatpush1.bf16.msra.mxu0 %v15585_v42  ;;  %9391 = vmatpush1.bf16.msra.mxu1 %v15587_v33  ;;  %16636 = vst [vmem:[#allocation127_spill] sm:$0xff] %v15617_v60  ;;  %v8582_v33 = vld [vmem:[#allocation10 + $0x318] sm:$0xff]  ;;  %16638 = vst [vmem:[#allocation129_spill] sm:$0xff] %v15623_v43 }
 0x880   :  { %9351 = vmatprep.subr.bf16.mxu0 %v15591_v54  ;;  %9392 = vmatprep.subr.bf16.mxu1 %v15593_v40  ;;  %16635 = vst [vmem:[#allocation126_spill] sm:$0xff] %v15615_v14  ;;  %v8581_v40 = vld [vmem:[#allocation10 + $0x310] sm:$0xff]  ;;  %v8586_v42 = vld [vmem:[#allocation10 + $0x338] sm:$0xff]  ;;  %16637 = vst [vmem:[#allocation128_spill] sm:$0xff] %v15621_v13 }
 0x881   :  { %v8585_v54 = vld [vmem:[#allocation10 + $0x330] sm:$0xff]  ;;  %v15629_v9 = vcombine.high %v8582_v33, %v8586_v42  ;;  %v15635_v23 = vcombine.low %v8582_v33, %v8586_v42 }
 0x882   :  { %v15627_v46 = vcombine.high %v8581_v40, %v8585_v54  ;;  %v15633_v22 = vcombine.low %v8581_v40, %v8585_v54 }
 0x883   :  { %9352 = vmatpush1.bf16.msra.mxu0 %v15597_v25  ;;  %9393 = vmatpush1.bf16.msra.mxu1 %v15599_v49  ;;  %16640 = vst [vmem:[#allocation131_spill] sm:$0xff] %v15629_v9  ;;  %v8590_v49 = vld [vmem:[#allocation10 + $0x358] sm:$0xff] }
 0x884   :  { %9353 = vmatprep.subr.bf16.mxu0 %v15603_v31  ;;  %9394 = vmatprep.subr.bf16.mxu1 %v15605_v55  ;;  %16639 = vst [vmem:[#allocation130_spill] sm:$0xff] %v15627_v46  ;;  %v8589_v55 = vld [vmem:[#allocation10 + $0x350] sm:$0xff]  ;;  %v8594_v25 = vld [vmem:[#allocation10 + $0x378] sm:$0xff] }
 0x885   :  { %v8593_v31 = vld [vmem:[#allocation10 + $0x370] sm:$0xff]  ;;  %v15641_v35 = vcombine.high %v8590_v49, %v8594_v25  ;;  %v15647_v42 = vcombine.low %v8590_v49, %v8594_v25 }
 0x886   :  { %v15639_v0 = vcombine.high %v8589_v55, %v8593_v31  ;;  %v15645_v54 = vcombine.low %v8589_v55, %v8593_v31 }
 0x887   :  { %9354 = vmatpush1.bf16.msra.mxu0 %v15609_v1  ;;  %9395 = vmatpush1.bf16.msra.mxu1 %v15611_v17  ;;  %16641 = vst [vmem:[#allocation132_spill] sm:$0xff] %v15641_v35  ;;  %v8598_v17 = vld [vmem:[#allocation10 + $0x398] sm:$0xff] }
 0x888   :  { %9355 = vmatprep.subr.bf16.mxu0 %v15615_v14  ;;  %9396 = vmatprep.subr.bf16.mxu1 %v15617_v60  ;;  %v8597_v60 = vld [vmem:[#allocation10 + $0x390] sm:$0xff]  ;;  %v8602_v1 = vld [vmem:[#allocation10 + $0x3b8] sm:$0xff]  ;;  %16642 = vst [vmem:[#allocation133_spill] sm:$0xff] %v15645_v54 }
 0x889   :  { %v8601_v14 = vld [vmem:[#allocation10 + $0x3b0] sm:$0xff]  ;;  %v15653_v40 = vcombine.high %v8598_v17, %v8602_v1  ;;  %v15659_v25 = vcombine.low %v8598_v17, %v8602_v1 }
 0x88a   :  { %v15651_v33 = vcombine.high %v8597_v60, %v8601_v14  ;;  %v15657_v31 = vcombine.low %v8597_v60, %v8601_v14 }
 0x88b   :  { %9356 = vmatpush1.bf16.msra.mxu0 %v15621_v13  ;;  %9397 = vmatpush1.bf16.msra.mxu1 %v15623_v43  ;;  %v8606_v43 = vld [vmem:[#allocation10 + $0x3d8] sm:$0xff] }
 0x88c   :  { %9357 = vmatprep.subr.bf16.mxu0 %v15627_v46  ;;  %9398 = vmatprep.subr.bf16.mxu1 %v15629_v9  ;;  %v8605_v9 = vld [vmem:[#allocation10 + $0x3d0] sm:$0xff]  ;;  %v8610_v13 = vld [vmem:[#allocation10 + $0x3f8] sm:$0xff] }
 0x88d   :  { %v8609_v46 = vld [vmem:[#allocation10 + $0x3f0] sm:$0xff]  ;;  %v15665_v55 = vcombine.high %v8606_v43, %v8610_v13 }
 0x88e   :  { %v15663_v49 = vcombine.high %v8605_v9, %v8609_v46 }
 0x88f   :  { %9358 = vmatpush1.bf16.msra.mxu0 %v15633_v22  ;;  %9399 = vmatpush1.bf16.msra.mxu1 %v15635_v23 }
 0x890   :  { %9359 = vmatprep.subr.bf16.mxu0 %v15639_v0  ;;  %9400 = vmatprep.subr.bf16.mxu1 %v15641_v35  ;;  %v15669_v35 = vcombine.low %v8605_v9, %v8609_v46 }
 0x893   :  { %9360 = vmatpush1.bf16.msra.mxu0 %v15645_v54  ;;  %9401 = vmatpush1.bf16.msra.mxu1 %v15647_v42  ;;  %v15671_v54 = vcombine.low %v8606_v43, %v8610_v13 }
 0x894   :  { %9361 = vmatprep.subr.bf16.mxu0 %v15651_v33  ;;  %9402 = vmatprep.subr.bf16.mxu1 %v15653_v40 }
 0x897   :  { %9362 = vmatpush1.bf16.msra.mxu0 %v15657_v31  ;;  %9403 = vmatpush1.bf16.msra.mxu1 %v15659_v25 }
 0x898   :  { %9363 = vmatprep.subr.bf16.mxu0 %v15663_v49  ;;  %9404 = vmatprep.subr.bf16.mxu1 %v15665_v55 }
 0x89b   :  { %9364 = vmatpush1.bf16.msra.mxu0 %v15669_v35  ;;  %9405 = vmatpush1.bf16.msra.mxu1 %v15671_v54 }
 0x89c   :  { %10239 = vmatprep.subr.bf16.mxu0 %v15267_v3  ;;  %10280 = vmatprep.subr.bf16.mxu1 %v15271_v37  ;;  %v16644_v3 = vld [vmem:[#allocation153_spill] sm:$0xff]  ;;  %v16646_v37 = vld [vmem:[#allocation28_spill] sm:$0xff] }
 0x89e   :  { %9366 = vmatmul.mubr.bf16.vlgmr.msra.gmra.mrb[76].mxu0 %v15491_v56  ;;  %9407 = vmatmul.mubr.bf16.vlgmr.msra.gmra.mrb[76].mxu1 %v15491_v56  ;;  %v16674_v56 = vld [vmem:[#allocation40_spill] sm:$0xff] }
 0x89f   :  { %10240 = vmatpush1.bf16.msra.mxu0 %v15265_v36  ;;  %10281 = vmatpush1.bf16.msra.mxu1 %v15269_v39  ;;  %v16643_v36 = vld [vmem:[#allocation152_spill] sm:$0xff]  ;;  %v16645_v39 = vld [vmem:[#allocation25_spill] sm:$0xff] }
 0x8a0   :  { %10241 = vmatprep.subr.bf16.mxu0 %v15273_v16  ;;  %10282 = vmatprep.subr.bf16.mxu1 %v15276_v53  ;;  %v16647_v16 = vld [vmem:[#allocation26_spill] sm:$0xff]  ;;  %v16648_v53 = vld [vmem:[#allocation27_spill] sm:$0xff] }
 0x8a3   :  { %10242 = vmatpush1.bf16.msra.mxu0 %v15280_v51  ;;  %10283 = vmatpush1.bf16.msra.mxu1 %v15284_v24  ;;  %v16649_v51 = vld [vmem:[#allocation82_spill] sm:$0xff]  ;;  %v16650_v24 = vld [vmem:[#allocation88_spill] sm:$0xff] }
 0x8a4   :  { %10243 = vmatprep.subr.bf16.mxu0 %v15286_v50  ;;  %10284 = vmatprep.subr.bf16.mxu1 %v15289_v45  ;;  %v16651_v50 = vld [vmem:[#allocation84_spill] sm:$0xff]  ;;  %v16652_v45 = vld [vmem:[#allocation85_spill] sm:$0xff] }
 0x8a7   :  { %10244 = vmatpush1.bf16.msra.mxu0 %v15292_v4  ;;  %10285 = vmatpush1.bf16.msra.mxu1 %v15296_v57  ;;  %v16653_v4 = vld [vmem:[#allocation61_spill] sm:$0xff]  ;;  %v16654_v57 = vld [vmem:[#allocation70_spill] sm:$0xff] }
 0x8a8   :  { %10245 = vmatprep.subr.bf16.mxu0 %v15298_v11  ;;  %10286 = vmatprep.subr.bf16.mxu1 %v15301_v5  ;;  %v16655_v11 = vld [vmem:[#allocation59_spill] sm:$0xff]  ;;  %v16656_v5 = vld [vmem:[#allocation60_spill] sm:$0xff] }
 0x8ab   :  { %10246 = vmatpush1.bf16.msra.mxu0 %v15304_v27  ;;  %10287 = vmatpush1.bf16.msra.mxu1 %v15308_v38  ;;  %v16657_v27 = vld [vmem:[#allocation67_spill] sm:$0xff] }
 0x8ac   :  { %10247 = vmatprep.subr.bf16.mxu0 %v15310_v20  ;;  %10288 = vmatprep.subr.bf16.mxu1 %v15313_v6  ;;  %v16658_v38 = vld [vmem:[#allocation75_spill] sm:$0xff]  ;;  %v16659_v20 = vld [vmem:[#allocation73_spill] sm:$0xff] }
 0x8ad   :  { %v16660_v6 = vld [vmem:[#allocation71_spill] sm:$0xff] }
 0x8af   :  { %10248 = vmatpush1.bf16.msra.mxu0 %v15316_v41  ;;  %10289 = vmatpush1.bf16.msra.mxu1 %v15320_v47  ;;  %v16661_v41 = vld [vmem:[#allocation74_spill] sm:$0xff] }
 0x8b0   :  { %10249 = vmatprep.subr.bf16.mxu0 %v15322_v48  ;;  %10290 = vmatprep.subr.bf16.mxu1 %v15325_v7  ;;  %v16662_v47 = vld [vmem:[#allocation86_spill] sm:$0xff]  ;;  %v16663_v48 = vld [vmem:[#allocation77_spill] sm:$0xff]  ;;  %v16664_v7 = vld [vmem:[#allocation76_spill] sm:$0xff] }
 0x8b3   :  { %10250 = vmatpush1.bf16.msra.mxu0 %v15328_v15  ;;  %10291 = vmatpush1.bf16.msra.mxu1 %v15332_v32  ;;  %v16665_v15 = vld [vmem:[#allocation83_spill] sm:$0xff] }
 0x8b4   :  { %10251 = vmatprep.subr.bf16.mxu0 %v15337_v34  ;;  %10292 = vmatprep.subr.bf16.mxu1 %v15343_v2  ;;  %v16666_v32 = vld [vmem:[#allocation91_spill] sm:$0xff]  ;;  %v16667_v34 = vld [vmem:[#allocation89_spill] sm:$0xff] }
 0x8b5   :  { %v16670_v2 = vld [vmem:[#allocation93_spill] sm:$0xff] }
 0x8b7   :  { %10252 = vmatpush1.bf16.msra.mxu0 %v15339_v8  ;;  %10293 = vmatpush1.bf16.msra.mxu1 %v15341_v63  ;;  %v16668_v8 = vld [vmem:[#allocation87_spill] sm:$0xff]  ;;  %v16669_v63 = vld [vmem:[#allocation90_spill] sm:$0xff] }
 0x8b8   :  { %10253 = vmatprep.subr.bf16.mxu0 %v15349_v58  ;;  %10294 = vmatprep.subr.bf16.mxu1 %v15355_v12 }
 0x8bb   :  { %10254 = vmatpush1.bf16.msra.mxu0 %v15351_v28  ;;  %10295 = vmatpush1.bf16.msra.mxu1 %v15353_v10  ;;  %v16671_v10 = vld [vmem:[#allocation37_spill] sm:$0xff] }
 0x8bc   :  { %10255 = vmatprep.subr.bf16.mxu0 %v15361_v18  ;;  %10296 = vmatprep.subr.bf16.mxu1 %v15367_v52  ;;  %v16672_v18 = vld [vmem:[#allocation38_spill] sm:$0xff] }
 0x8bf   :  { %10256 = vmatpush1.bf16.msra.mxu0 %v15363_v19  ;;  %10297 = vmatpush1.bf16.msra.mxu1 %v15365_v21 }
 0x8c0   :  { %10257 = vmatprep.subr.bf16.mxu0 %v15373_v30  ;;  %10298 = vmatprep.subr.bf16.mxu1 %v15379_v59  ;;  %v16673_v30 = vld [vmem:[#allocation39_spill] sm:$0xff] }
 0x8c3   :  { %10258 = vmatpush1.bf16.msra.mxu0 %v16643_v36  ;;  %10299 = vmatpush1.bf16.msra.mxu1 %v16644_v3 }
 0x8c4   :  { %10259 = vmatprep.subr.bf16.mxu0 %v16645_v39  ;;  %10300 = vmatprep.subr.bf16.mxu1 %v16646_v37 }
 0x8c7   :  { %10260 = vmatpush1.bf16.msra.mxu0 %v16647_v16  ;;  %10301 = vmatpush1.bf16.msra.mxu1 %v16648_v53 }
 0x8c8   :  { %10261 = vmatprep.subr.bf16.mxu0 %v16649_v51  ;;  %10302 = vmatprep.subr.bf16.mxu1 %v16650_v24 }
 0x8cb   :  { %10262 = vmatpush1.bf16.msra.mxu0 %v16651_v50  ;;  %10303 = vmatpush1.bf16.msra.mxu1 %v16652_v45 }
 0x8cc   :  { %10263 = vmatprep.subr.bf16.mxu0 %v16653_v4  ;;  %10304 = vmatprep.subr.bf16.mxu1 %v16654_v57  ;;  %v16675_v57 = vld [vmem:[#allocation62_spill] sm:$0xff] }
 0x8cf   :  { %10264 = vmatpush1.bf16.msra.mxu0 %v16655_v11  ;;  %10305 = vmatpush1.bf16.msra.mxu1 %v16656_v5  ;;  %v16676_v5 = vld [vmem:[#allocation63_spill] sm:$0xff] }
 0x8d0   :  { %10265 = vmatprep.subr.bf16.mxu0 %v16657_v27  ;;  %10306 = vmatprep.subr.bf16.mxu1 %v16658_v38 }
 0x8d3   :  { %10266 = vmatpush1.bf16.msra.mxu0 %v16659_v20  ;;  %10307 = vmatpush1.bf16.msra.mxu1 %v16660_v6  ;;  %v16677_v6 = vld [vmem:[#allocation64_spill] sm:$0xff] }
 0x8d4   :  { %10267 = vmatprep.subr.bf16.mxu0 %v16661_v41  ;;  %10308 = vmatprep.subr.bf16.mxu1 %v16662_v47  ;;  %v16678_v47 = vld [vmem:[#allocation65_spill] sm:$0xff] }
 0x8d7   :  { %10268 = vmatpush1.bf16.msra.mxu0 %v16663_v48  ;;  %10309 = vmatpush1.bf16.msra.mxu1 %v16664_v7 }
 0x8d8   :  { %10269 = vmatprep.subr.bf16.mxu0 %v16665_v15  ;;  %10310 = vmatprep.subr.bf16.mxu1 %v16666_v32 }
 0x8db   :  { %10270 = vmatpush1.bf16.msra.mxu0 %v16667_v34  ;;  %10311 = vmatpush1.bf16.msra.mxu1 %v16668_v8 }
 0x8dc   :  { %10321 = vmatprep.subr.bf16.mxu0 %v16669_v63  ;;  %10362 = vmatprep.subr.bf16.mxu1 %v16670_v2 }
 0x931   :  { %v9285_v58 = vpop.f32.mrb[72].mxu0  ;;  %v9326_v28 = vpop.f32.mrb[72].mxu1 }
 0x932   :  { %v9419_v12 = vadd.f32 %v16671_v10, %v9285_v58  ;;  %v9421_v19 = vadd.f32 %v16672_v18, %v9326_v28  ;;  %v9287_v21 = vpop.f32.mrb[73].mxu0  ;;  %v9328_v52 = vpop.f32.mrb[73].mxu1 }
 0x933   :  { %v9420_v59 = vadd.f32 %v16673_v30, %v9287_v21  ;;  %v9422_v1 = vadd.f32 %v16674_v56, %v9328_v52  ;;  %v9289_v17 = vpop.f32.mrb[74].mxu0  ;;  %v9330_v14 = vpop.f32.mrb[74].mxu1 }
 0x934   :  { %v9431_v60 = vmul.f32 0.5, %v9419_v12  ;;  %v9290_v13 = vpop.f32.mrb[75].mxu0  ;;  %v9331_v43 = vpop.f32.mrb[75].mxu1 }
 0x935   :  { %v9435_v46 = vmul.f32 0.5, %v9420_v59  ;;  %v9440_v63 = vmul.f32 0.5, %v9422_v1 }
 0x936   :  { %13509 = vtanh.f32 %v9431_v60 }
 0x937   :  { %13511 = vtanh.f32 %v9435_v46 }
 0x938   :  { %13513 = vtanh.f32 %v9421_v19 }
 0x940   :  { %v13510_v9 = vpop.eup %13509 }
 0x941   :  { %v13512_v36 = vpop.eup %13511  ;;  %v9433_v3 = vmul.f32 0.5, %v13510_v9 }
 0x942   :  { %v9437_v39 = vmul.f32 0.5, %v13512_v36  ;;  %v13514_v16 = vpop.eup %13513 }
 0x943   :  { %v9434_v37 = vadd.f32 0.5, %v9433_v3 }
 0x944   :  { %v9438_v53 = vadd.f32 0.5, %v9437_v39  ;;  %v16679_v39 = vld [vmem:[#allocation98_spill] sm:$0xff] }
 0x945   :  { %v9445_v51 = vmul.f32 %v13514_v16, %v9434_v37  ;;  %v16680_v37 = vld [vmem:[#allocation101_spill] sm:$0xff]  ;;  %v16681_v16 = vld [vmem:[#allocation100_spill] sm:$0xff] }
 0x946   :  { %v9444_v24 = vmul.f32 %v9438_v53, %v15472_v44  ;;  %v16682_v53 = vld [vmem:[#allocation103_spill] sm:$0xff] }
 0x948   :  { %v15750_v50 = vadd.f32 %v9445_v51, %v9444_v24  ;;  %v16683_v51 = vld [vmem:[#allocation102_spill] sm:$0xff]  ;;  %v16684_v24 = vld [vmem:[#allocation105_spill] sm:$0xff] }
 0x971   :  { %v9367_v45 = vpop.f32.mrb[76].mxu0  ;;  %v9408_v4 = vpop.f32.mrb[76].mxu1 }
 0x972   :  { %v9427_v11 = vadd.f32 %v16675_v57, %v9367_v45  ;;  %v9429_v27 = vadd.f32 %v16676_v5, %v9408_v4  ;;  %v9369_v38 = vpop.f32.mrb[77].mxu0  ;;  %v9410_v20 = vpop.f32.mrb[77].mxu1  ;;  %v16685_v45 = vld [vmem:[#allocation104_spill] sm:$0xff]  ;;  %v16688_v4 = vld [vmem:[#allocation30_spill] sm:$0xff]  ;;  %v16692_v5 = vld [vmem:[#allocation79_spill] sm:$0xff] }
 0x973   :  { %v9428_v41 = vadd.f32 %v16677_v6, %v9369_v38  ;;  %v9430_v48 = vadd.f32 %v16678_v47, %v9410_v20  ;;  %v9371_v7 = vpop.f32.mrb[78].mxu0  ;;  %v9412_v15 = vpop.f32.mrb[78].mxu1  ;;  %v16690_v57 = vld [vmem:[#allocation32_spill] sm:$0xff]  ;;  %v16694_v38 = vld [vmem:[#allocation81_spill] sm:$0xff]  ;;  %v16696_v6 = vld [vmem:[#allocation110_spill] sm:$0xff] }
 0x974   :  { %v9449_v32 = vmul.f32 0.5, %v9427_v11  ;;  %v9372_v34 = vpop.f32.mrb[79].mxu0  ;;  %v9413_v8 = vpop.f32.mrb[79].mxu1  ;;  %v16691_v11 = vld [vmem:[#allocation78_spill] sm:$0xff]  ;;  %v16695_v20 = vld [vmem:[#allocation108_spill] sm:$0xff]  ;;  %v16698_v47 = vld [vmem:[#allocation21_spill] sm:$0xff] }
 0x975   :  { %v9453_v44 = vmul.f32 0.5, %v9428_v41  ;;  %v9458_v2 = vmul.f32 0.5, %v9430_v48  ;;  %v16697_v41 = vld [vmem:[#allocation111_spill] sm:$0xff]  ;;  %v16699_v48 = vld [vmem:[#allocation22_spill] sm:$0xff]  ;;  %v16701_v15 = vld [vmem:[#allocation24_spill] sm:$0xff] }
 0x976   :  { %13515 = vtanh.f32 %v9449_v32  ;;  %v16700_v7 = vld [vmem:[#allocation23_spill] sm:$0xff]  ;;  %v16702_v32 = vld [vmem:[#allocation94_spill] sm:$0xff]  ;;  %v16704_v8 = vld [vmem:[#allocation96_spill] sm:$0xff] }
 0x977   :  { %13517 = vtanh.f32 %v9453_v44  ;;  %v16703_v34 = vld [vmem:[#allocation95_spill] sm:$0xff]  ;;  %v16705_v44 = vld [vmem:[#allocation97_spill] sm:$0xff] }
 0x978   :  { %13519 = vtanh.f32 %v9429_v27  ;;  %v16693_v27 = vld [vmem:[#allocation80_spill] sm:$0xff] }
 0x979   :  { %13521 = vtanh.f32 %v9440_v63  ;;  %v16706_v63 = vld [vmem:[#allocation114_spill] sm:$0xff] }
 0x97a   :  { %13523 = vtanh.f32 %v9458_v2  ;;  %v16707_v2 = vld [vmem:[#allocation115_spill] sm:$0xff] }
 0x97b   :  { %13525 = vtanh.f32 %v15750_v50 }
 0x980   :  { %v13516_v58 = vpop.eup %13515 }
 0x981   :  { %v13518_v28 = vpop.eup %13517  ;;  %v9451_v10 = vmul.f32 0.5, %v13516_v58  ;;  %v16708_v58 = vld [vmem:[#allocation116_spill] sm:$0xff] }
 0x982   :  { %v9455_v12 = vmul.f32 0.5, %v13518_v28  ;;  %v13520_v19 = vpop.eup %13519  ;;  %v16709_v28 = vld [vmem:[#allocation117_spill] sm:$0xff] }
 0x983   :  { %v9452_v18 = vadd.f32 0.5, %v9451_v10  ;;  %v13522_v56 = vpop.eup %13521  ;;  %v16710_v10 = vld [vmem:[#allocation118_spill] sm:$0xff] }
 0x984   :  { %v9456_v21 = vadd.f32 0.5, %v9455_v12  ;;  %v13524_v1 = vpop.eup %13523  ;;  %v9442_v17 = vmul.f32 0.5, %v13522_v56  ;;  %v16711_v12 = vld [vmem:[#allocation119_spill] sm:$0xff]  ;;  %v16717_v56 = vld [vmem:[#allocation125_spill] sm:$0xff] }
 0x985   :  { %v9463_v52 = vmul.f32 %v13520_v19, %v9452_v18  ;;  %v9460_v14 = vmul.f32 0.5, %v13524_v1  ;;  %v13526_v60 = vpop.eup %13525  ;;  %v16712_v18 = vld [vmem:[#allocation120_spill] sm:$0xff]  ;;  %v16713_v19 = vld [vmem:[#allocation121_spill] sm:$0xff]  ;;  %v16718_v1 = vld [vmem:[#allocation126_spill] sm:$0xff] }
 0x986   :  { %v9462_v30 = vmul.f32 %v9456_v21, %v15480_v29  ;;  %v9443_v13 = vadd.f32 0.5, %v9442_v17  ;;  %v16714_v21 = vld [vmem:[#allocation122_spill] sm:$0xff]  ;;  %v16719_v17 = vld [vmem:[#allocation127_spill] sm:$0xff] }
 0x987   :  { %v9461_v43 = vadd.f32 0.5, %v9460_v14  ;;  %v16720_v14 = vld [vmem:[#allocation128_spill] sm:$0xff] }
 0x988   :  { %v15758_v59 = vadd.f32 %v9463_v52, %v9462_v30  ;;  %v15761_v9 = vmul.f32 %v13526_v60, %v9443_v13  ;;  %v16715_v52 = vld [vmem:[#allocation123_spill] sm:$0xff]  ;;  %v16716_v30 = vld [vmem:[#allocation124_spill] sm:$0xff]  ;;  %v16721_v60 = vld [vmem:[#allocation129_spill] sm:$0xff] }
 0x989   :  { %v16722_v13 = vld [vmem:[#allocation130_spill] sm:$0xff] }
 0x98a   :  { %13527 = vtanh.f32 %v15758_v59  ;;  %v15769_v3 = vpack.c.bf16 %v15761_v9, %v15761_v9 }
 0x994   :  { %v13528_v46 = vpop.eup %13527 }
 0x995   :  { %v15763_v36 = vmul.f32 %v13528_v46, %v9461_v43  ;;  %v16723_v43 = vld [vmem:[#allocation131_spill] sm:$0xff]  ;;  %v16724_v46 = vld [vmem:[#allocation132_spill] sm:$0xff] }
 0x997   :  { %v9470_v29 = vpack.c.bf16 %v15763_v36, %v15763_v36 }
 0x999   :  { %10271 = vmatprep.mubr.bf16.mxu0 %v9470_v29  ;;  %10312 = vmatprep.mubr.bf16.mxu1 %v9470_v29 }
 0x99a   :  { %10272 = vmatmul.mubr.bf16.vlgmr.msra.gmra.mrb[80].mxu0 %v15769_v3  ;;  %10313 = vmatmul.mubr.bf16.vlgmr.msra.gmra.mrb[80].mxu1 %v15769_v3 }
 0x99b   :  { %10322 = vmatpush1.bf16.msra.mxu0 %v15459_v61  ;;  %10363 = vmatpush1.bf16.msra.mxu1 %v15461_v26  ;;  %v16686_v61 = vld [vmem:[#allocation106_spill] sm:$0xff]  ;;  %v16687_v26 = vld [vmem:[#allocation29_spill] sm:$0xff] }
 0x99c   :  { %10353 = vmatprep.mubr.bf16.mxu0 %v9470_v29  ;;  %10394 = vmatprep.mubr.bf16.mxu1 %v9470_v29  ;;  %v16725_v29 = vld [vmem:[#allocation133_spill] sm:$0xff] }
 0x99d   :  { %10323 = vmatprep.subr.bf16.mxu0 %v15493_v62  ;;  %10364 = vmatprep.subr.bf16.mxu1 %v16679_v39  ;;  %v16689_v62 = vld [vmem:[#allocation31_spill] sm:$0xff] }
 0x99f   :  { %10324 = vmatpush1.bf16.msra.mxu0 %v16680_v37  ;;  %10365 = vmatpush1.bf16.msra.mxu1 %v16681_v16  ;;  %v10472_v16 = vld [vmem:[#allocation10 + $0x68] sm:$0xff] }
 0x9a0   :  { %10325 = vmatprep.subr.bf16.mxu0 %v16682_v53  ;;  %10366 = vmatprep.subr.bf16.mxu1 %v16683_v51  ;;  %v10479_v53 = vld [vmem:[#allocation10 + $0xa0] sm:$0xff]  ;;  %v10476_v51 = vld [vmem:[#allocation10 + $0x88] sm:$0xff] }
 0x9a3   :  { %10326 = vmatpush1.bf16.msra.mxu0 %v16684_v24  ;;  %10367 = vmatpush1.bf16.msra.mxu1 %v16685_v45  ;;  %v10480_v24 = vld [vmem:[#allocation10 + $0xa8] sm:$0xff] }
 0x9a4   :  { %10327 = vmatprep.subr.bf16.mxu0 %v16686_v61  ;;  %10368 = vmatprep.subr.bf16.mxu1 %v16687_v26  ;;  %v12954_v26 = vcombine.high %v10476_v51, %v10480_v24 }
 0x9a7   :  { %10328 = vmatpush1.bf16.msra.mxu0 %v16688_v4  ;;  %10369 = vmatpush1.bf16.msra.mxu1 %v16689_v62  ;;  %v10483_v4 = vld [vmem:[#allocation10 + $0xc0] sm:$0xff] }
 0x9a8   :  { %10329 = vmatprep.subr.bf16.mxu0 %v16690_v57  ;;  %10370 = vmatprep.subr.bf16.mxu1 %v16691_v11  ;;  %v10487_v62 = vld [vmem:[#allocation10 + $0xe0] sm:$0xff]  ;;  %v10484_v57 = vld [vmem:[#allocation10 + $0xc8] sm:$0xff] }
 0x9a9   :  { %v10488_v11 = vld [vmem:[#allocation10 + $0xe8] sm:$0xff] }
 0x9ab   :  { %10330 = vmatpush1.bf16.msra.mxu0 %v16692_v5  ;;  %10371 = vmatpush1.bf16.msra.mxu1 %v16693_v27  ;;  %v12953_v27 = vcombine.low %v10476_v51, %v10480_v24  ;;  %v10536_v51 = vld [vmem:[#allocation10 + $0x268] sm:$0xff] }
 0x9ac   :  { %10331 = vmatprep.subr.bf16.mxu0 %v16694_v38  ;;  %10372 = vmatprep.subr.bf16.mxu1 %v16695_v20  ;;  %v12960_v38 = vcombine.high %v10483_v4, %v10487_v62  ;;  %v12962_v20 = vcombine.high %v10484_v57, %v10488_v11 }
 0x9af   :  { %10332 = vmatpush1.bf16.msra.mxu0 %v16696_v6  ;;  %10373 = vmatpush1.bf16.msra.mxu1 %v16697_v41  ;;  %v10491_v6 = vld [vmem:[#allocation10 + $0x100] sm:$0xff] }
 0x9b0   :  { %10333 = vmatprep.subr.bf16.mxu0 %v16698_v47  ;;  %10374 = vmatprep.subr.bf16.mxu1 %v16699_v48  ;;  %v10495_v41 = vld [vmem:[#allocation10 + $0x120] sm:$0xff]  ;;  %v10492_v47 = vld [vmem:[#allocation10 + $0x108] sm:$0xff] }
 0x9b1   :  { %v10496_v48 = vld [vmem:[#allocation10 + $0x128] sm:$0xff] }
 0x9b3   :  { %10334 = vmatpush1.bf16.msra.mxu0 %v16700_v7  ;;  %10375 = vmatpush1.bf16.msra.mxu1 %v16701_v15  ;;  %v12959_v7 = vcombine.low %v10483_v4, %v10487_v62  ;;  %v12961_v15 = vcombine.low %v10484_v57, %v10488_v11  ;;  %v10540_v4 = vld [vmem:[#allocation10 + $0x288] sm:$0xff] }
 0x9b4   :  { %10335 = vmatprep.subr.bf16.mxu0 %v16702_v32  ;;  %10376 = vmatprep.subr.bf16.mxu1 %v16703_v34  ;;  %v12968_v32 = vcombine.high %v10491_v6, %v10495_v41  ;;  %v12970_v34 = vcombine.high %v10492_v47, %v10496_v48  ;;  %v10544_v57 = vld [vmem:[#allocation10 + $0x2a8] sm:$0xff] }
 0x9b7   :  { %10336 = vmatpush1.bf16.msra.mxu0 %v16704_v8  ;;  %10377 = vmatpush1.bf16.msra.mxu1 %v16705_v44  ;;  %v10499_v8 = vld [vmem:[#allocation10 + $0x140] sm:$0xff] }
 0x9b8   :  { %10337 = vmatprep.subr.bf16.mxu0 %v16706_v63  ;;  %10378 = vmatprep.subr.bf16.mxu1 %v16707_v2  ;;  %v10503_v44 = vld [vmem:[#allocation10 + $0x160] sm:$0xff]  ;;  %v10500_v63 = vld [vmem:[#allocation10 + $0x148] sm:$0xff] }
 0x9b9   :  { %v10504_v2 = vld [vmem:[#allocation10 + $0x168] sm:$0xff] }
 0x9bb   :  { %10338 = vmatpush1.bf16.msra.mxu0 %v16708_v58  ;;  %10379 = vmatpush1.bf16.msra.mxu1 %v16709_v28  ;;  %v12967_v58 = vcombine.low %v10491_v6, %v10495_v41  ;;  %v12969_v28 = vcombine.low %v10492_v47, %v10496_v48  ;;  %v10548_v6 = vld [vmem:[#allocation10 + $0x2c8] sm:$0xff] }
 0x9bc   :  { %10339 = vmatprep.subr.bf16.mxu0 %v16710_v10  ;;  %10380 = vmatprep.subr.bf16.mxu1 %v16711_v12  ;;  %v12976_v10 = vcombine.high %v10499_v8, %v10503_v44  ;;  %v12978_v12 = vcombine.high %v10500_v63, %v10504_v2  ;;  %v10552_v47 = vld [vmem:[#allocation10 + $0x2e8] sm:$0xff] }
 0x9bf   :  { %10340 = vmatpush1.bf16.msra.mxu0 %v16712_v18  ;;  %10381 = vmatpush1.bf16.msra.mxu1 %v16713_v19  ;;  %v12975_v18 = vcombine.low %v10499_v8, %v10503_v44  ;;  %v12977_v19 = vcombine.low %v10500_v63, %v10504_v2  ;;  %v10556_v8 = vld [vmem:[#allocation10 + $0x308] sm:$0xff] }
 0x9c0   :  { %10341 = vmatprep.subr.bf16.mxu0 %v16714_v21  ;;  %10382 = vmatprep.subr.bf16.mxu1 %v16715_v52  ;;  %v10507_v21 = vld [vmem:[#allocation10 + $0x180] sm:$0xff]  ;;  %v10560_v63 = vld [vmem:[#allocation10 + $0x328] sm:$0xff] }
 0x9c1   :  { %v10511_v52 = vld [vmem:[#allocation10 + $0x1a0] sm:$0xff] }
 0x9c3   :  { %10342 = vmatpush1.bf16.msra.mxu0 %v16716_v30  ;;  %10383 = vmatpush1.bf16.msra.mxu1 %v16717_v56  ;;  %v10508_v30 = vld [vmem:[#allocation10 + $0x188] sm:$0xff]  ;;  %v12984_v56 = vcombine.high %v10507_v21, %v10511_v52 }
 0x9c4   :  { %10343 = vmatprep.subr.bf16.mxu0 %v16718_v1  ;;  %10384 = vmatprep.subr.bf16.mxu1 %v16719_v17  ;;  %v10512_v1 = vld [vmem:[#allocation10 + $0x1a8] sm:$0xff]  ;;  %v12983_v17 = vcombine.low %v10507_v21, %v10511_v52 }
 0x9c5   :  { %v10568_v21 = vld [vmem:[#allocation10 + $0x368] sm:$0xff] }
 0x9c7   :  { %10344 = vmatpush1.bf16.msra.mxu0 %v16720_v14  ;;  %10385 = vmatpush1.bf16.msra.mxu1 %v16721_v60  ;;  %v12985_v14 = vcombine.low %v10508_v30, %v10512_v1  ;;  %v12986_v60 = vcombine.high %v10508_v30, %v10512_v1  ;;  %v10571_v1 = vld [vmem:[#allocation10 + $0x380] sm:$0xff] }
 0x9c8   :  { %10345 = vmatprep.subr.bf16.mxu0 %v16722_v13  ;;  %10386 = vmatprep.subr.bf16.mxu1 %v16723_v43  ;;  %v10515_v13 = vld [vmem:[#allocation10 + $0x1c0] sm:$0xff] }
 0x9c9   :  { %v10519_v43 = vld [vmem:[#allocation10 + $0x1e0] sm:$0xff] }
 0x9cb   :  { %10346 = vmatpush1.bf16.msra.mxu0 %v15633_v22  ;;  %10387 = vmatpush1.bf16.msra.mxu1 %v15635_v23  ;;  %v10459_v22 = vld [vmem:[#allocation10] sm:$0xff] }
 0x9cc   :  { %10347 = vmatprep.subr.bf16.mxu0 %v15639_v0  ;;  %10388 = vmatprep.subr.bf16.mxu1 %v16724_v46  ;;  %v10463_v23 = vld [vmem:[#allocation10 + $0x20] sm:$0xff]  ;;  %v10460_v0 = vld [vmem:[#allocation10 + $0x8] sm:$0xff] }
 0x9cd   :  { %v10516_v46 = vld [vmem:[#allocation10 + $0x1c8] sm:$0xff] }
 0x9cf   :  { %10348 = vmatpush1.bf16.msra.mxu0 %v16725_v29  ;;  %10389 = vmatpush1.bf16.msra.mxu1 %v15647_v42  ;;  %v12935_v42 = vcombine.low %v10459_v22, %v10463_v23  ;;  %v12992_v29 = vcombine.high %v10515_v13, %v10519_v43 }
 0x9d0   :  { %10349 = vmatprep.subr.bf16.mxu0 %v15651_v33  ;;  %10390 = vmatprep.subr.bf16.mxu1 %v15653_v40  ;;  %v12936_v33 = vcombine.high %v10459_v22, %v10463_v23  ;;  %v10464_v40 = vld [vmem:[#allocation10 + $0x28] sm:$0xff]  ;;  %v12991_v23 = vcombine.low %v10515_v13, %v10519_v43 }
 0x9d1   :  { %v12937_v39 = vcombine.low %v10460_v0, %v10464_v40  ;;  %v10520_v22 = vld [vmem:[#allocation10 + $0x1e8] sm:$0xff] }
 0x9d2   :  { %v10576_v13 = vld [vmem:[#allocation10 + $0x3a8] sm:$0xff] }
 0x9d3   :  { %10350 = vmatpush1.bf16.msra.mxu0 %v15657_v31  ;;  %10391 = vmatpush1.bf16.msra.mxu1 %v15659_v25  ;;  %v10467_v31 = vld [vmem:[#allocation10 + $0x40] sm:$0xff] }
 0x9d4   :  { %10351 = vmatprep.subr.bf16.mxu0 %v15663_v49  ;;  %10392 = vmatprep.subr.bf16.mxu1 %v15665_v55  ;;  %v10471_v25 = vld [vmem:[#allocation10 + $0x60] sm:$0xff]  ;;  %v12938_v49 = vcombine.high %v10460_v0, %v10464_v40  ;;  %v10468_v55 = vld [vmem:[#allocation10 + $0x48] sm:$0xff]  ;;  %v12993_v0 = vcombine.low %v10516_v46, %v10520_v22 }
 0x9d5   :  { %v12944_v37 = vcombine.high %v10467_v31, %v10471_v25  ;;  %v12945_v45 = vcombine.low %v10468_v55, %v10472_v16  ;;  %v10527_v40 = vld [vmem:[#allocation10 + $0x220] sm:$0xff] }
 0x9d7   :  { %10352 = vmatpush1.bf16.msra.mxu0 %v15669_v35  ;;  %10393 = vmatpush1.bf16.msra.mxu1 %v15671_v54  ;;  %v10475_v35 = vld [vmem:[#allocation10 + $0x80] sm:$0xff]  ;;  %v12946_v54 = vcombine.high %v10468_v55, %v10472_v16 }
 0x9d8   :  { %11227 = vmatprep.subr.bf16.mxu0 %v12936_v33  ;;  %11268 = vmatprep.subr.bf16.mxu1 %v12938_v49  ;;  %v12952_v61 = vcombine.high %v10475_v35, %v10479_v53  ;;  %v12951_v5 = vcombine.low %v10475_v35, %v10479_v53  ;;  %v10523_v33 = vld [vmem:[#allocation10 + $0x200] sm:$0xff] }
 0x9d9   :  { %v12999_v49 = vcombine.low %v10523_v33, %v10527_v40  ;;  %v10531_v16 = vld [vmem:[#allocation10 + $0x240] sm:$0xff] }
 0x9da   :  { %10354 = vmatmul.mubr.bf16.vlgmr.msra.gmra.mrb[84].mxu0 %v15769_v3  ;;  %10395 = vmatmul.mubr.bf16.vlgmr.msra.gmra.mrb[84].mxu1 %v15769_v3  ;;  %v12943_v3 = vcombine.low %v10467_v31, %v10471_v25  ;;  %v10524_v31 = vld [vmem:[#allocation10 + $0x208] sm:$0xff]  ;;  %v13000_v25 = vcombine.high %v10523_v33, %v10527_v40  ;;  %v10535_v35 = vld [vmem:[#allocation10 + $0x260] sm:$0xff] }
 0x9db   :  { %11228 = vmatpush1.bf16.msra.mxu0 %v12935_v42  ;;  %11269 = vmatpush1.bf16.msra.mxu1 %v12937_v39  ;;  %v12994_v42 = vcombine.high %v10516_v46, %v10520_v22  ;;  %v10528_v39 = vld [vmem:[#allocation10 + $0x228] sm:$0xff]  ;;  %v13008_v53 = vcombine.high %v10531_v16, %v10535_v35  ;;  %v13007_v24 = vcombine.low %v10531_v16, %v10535_v35  ;;  %v10579_v22 = vld [vmem:[#allocation10 + $0x3c0] sm:$0xff]  ;;  %v15845_v16 = vld [vmem:[#allocation10 + $0x38] sm:$0xff] }
 0x9dc   :  { %11229 = vmatprep.subr.bf16.mxu0 %v12944_v37  ;;  %11270 = vmatprep.subr.bf16.mxu1 %v12946_v54  ;;  %v13001_v37 = vcombine.low %v10524_v31, %v10528_v39  ;;  %v13002_v55 = vcombine.high %v10524_v31, %v10528_v39  ;;  %v10532_v54 = vld [vmem:[#allocation10 + $0x248] sm:$0xff]  ;;  %v15837_v39 = vld [vmem:[#allocation10 + $0x10] sm:$0xff] }
 0x9dd   :  { %v10584_v33 = vld [vmem:[#allocation10 + $0x3e8] sm:$0xff] }
 0x9df   :  { %11230 = vmatpush1.bf16.msra.mxu0 %v12943_v3  ;;  %11271 = vmatpush1.bf16.msra.mxu1 %v12945_v45  ;;  %v13009_v3 = vcombine.low %v10532_v54, %v10536_v51  ;;  %v13010_v45 = vcombine.high %v10532_v54, %v10536_v51 }
 0x9e0   :  { %11231 = vmatprep.subr.bf16.mxu0 %v12952_v61  ;;  %11272 = vmatprep.subr.bf16.mxu1 %v12954_v26  ;;  %v10539_v61 = vld [vmem:[#allocation10 + $0x280] sm:$0xff] }
 0x9e1   :  { %v10543_v26 = vld [vmem:[#allocation10 + $0x2a0] sm:$0xff] }
 0x9e2   :  { %v13016_v62 = vcombine.high %v10539_v61, %v10543_v26  ;;  %v13015_v11 = vcombine.low %v10539_v61, %v10543_v26  ;;  %v16727_v61 = vld [vmem:[#allocation42_spill] sm:$0xff] }
 0x9e3   :  { %11232 = vmatpush1.bf16.msra.mxu0 %v12951_v5  ;;  %11273 = vmatpush1.bf16.msra.mxu1 %v12953_v27  ;;  %v13017_v5 = vcombine.low %v10540_v4, %v10544_v57  ;;  %v13018_v27 = vcombine.high %v10540_v4, %v10544_v57  ;;  %v16728_v57 = vld [vmem:[#allocation43_spill] sm:$0xff] }
 0x9e4   :  { %11233 = vmatprep.subr.bf16.mxu0 %v12960_v38  ;;  %11274 = vmatprep.subr.bf16.mxu1 %v12962_v20  ;;  %v10547_v38 = vld [vmem:[#allocation10 + $0x2c0] sm:$0xff] }
 0x9e5   :  { %v10551_v20 = vld [vmem:[#allocation10 + $0x2e0] sm:$0xff] }
 0x9e6   :  { %v13024_v41 = vcombine.high %v10547_v38, %v10551_v20  ;;  %v13023_v48 = vcombine.low %v10547_v38, %v10551_v20 }
 0x9e7   :  { %11234 = vmatpush1.bf16.msra.mxu0 %v12959_v7  ;;  %11275 = vmatpush1.bf16.msra.mxu1 %v12961_v15  ;;  %v13025_v7 = vcombine.low %v10548_v6, %v10552_v47  ;;  %v13026_v15 = vcombine.high %v10548_v6, %v10552_v47 }
 0x9e8   :  { %11235 = vmatprep.subr.bf16.mxu0 %v12968_v32  ;;  %11276 = vmatprep.subr.bf16.mxu1 %v12970_v34  ;;  %v10555_v32 = vld [vmem:[#allocation10 + $0x300] sm:$0xff] }
 0x9e9   :  { %v10559_v34 = vld [vmem:[#allocation10 + $0x320] sm:$0xff] }
 0x9ea   :  { %v13032_v44 = vcombine.high %v10555_v32, %v10559_v34  ;;  %v13031_v2 = vcombine.low %v10555_v32, %v10559_v34 }
 0x9eb   :  { %11236 = vmatpush1.bf16.msra.mxu0 %v12967_v58  ;;  %11277 = vmatpush1.bf16.msra.mxu1 %v12969_v28  ;;  %v13033_v58 = vcombine.low %v10556_v8, %v10560_v63  ;;  %v13034_v28 = vcombine.high %v10556_v8, %v10560_v63 }
 0x9ec   :  { %11237 = vmatprep.subr.bf16.mxu0 %v12976_v10  ;;  %11278 = vmatprep.subr.bf16.mxu1 %v12978_v12  ;;  %v10563_v10 = vld [vmem:[#allocation10 + $0x340] sm:$0xff] }
 0x9ed   :  { %v10567_v12 = vld [vmem:[#allocation10 + $0x360] sm:$0xff] }
 0x9ee   :  { %v13039_v52 = vcombine.low %v10563_v10, %v10567_v12 }
 0x9ef   :  { %11238 = vmatpush1.bf16.msra.mxu0 %v12975_v18  ;;  %11279 = vmatpush1.bf16.msra.mxu1 %v12977_v19  ;;  %v10564_v18 = vld [vmem:[#allocation10 + $0x348] sm:$0xff]  ;;  %v13040_v19 = vcombine.high %v10563_v10, %v10567_v12 }
 0x9f0   :  { %11239 = vmatprep.subr.bf16.mxu0 %v12984_v56  ;;  %11280 = vmatprep.subr.bf16.mxu1 %v12986_v60  ;;  %v13041_v30 = vcombine.low %v10564_v18, %v10568_v21  ;;  %v13042_v56 = vcombine.high %v10564_v18, %v10568_v21  ;;  %v16730_v18 = vld [vmem:[#allocation53_spill] sm:$0xff]  ;;  %v16731_v21 = vld [vmem:[#allocation54_spill] sm:$0xff] }
 0x9f3   :  { %11240 = vmatpush1.bf16.msra.mxu0 %v12983_v17  ;;  %11281 = vmatpush1.bf16.msra.mxu1 %v12985_v14  ;;  %v10575_v17 = vld [vmem:[#allocation10 + $0x3a0] sm:$0xff]  ;;  %v10572_v14 = vld [vmem:[#allocation10 + $0x388] sm:$0xff] }
 0x9f4   :  { %11241 = vmatprep.subr.bf16.mxu0 %v12992_v29  ;;  %11282 = vmatprep.subr.bf16.mxu1 %v12994_v42  ;;  %v13048_v60 = vcombine.high %v10571_v1, %v10575_v17  ;;  %v13047_v43 = vcombine.low %v10571_v1, %v10575_v17  ;;  %v13049_v46 = vcombine.low %v10572_v14, %v10576_v13  ;;  %v16732_v1 = vld [vmem:[#allocation55_spill] sm:$0xff] }
 0x9f5   :  { %v13050_v29 = vcombine.high %v10572_v14, %v10576_v13  ;;  %v16733_v14 = vld [vmem:[#allocation57_spill] sm:$0xff] }
 0x9f7   :  { %11242 = vmatpush1.bf16.msra.mxu0 %v12991_v23  ;;  %11283 = vmatpush1.bf16.msra.mxu1 %v12993_v0  ;;  %v10583_v23 = vld [vmem:[#allocation10 + $0x3e0] sm:$0xff]  ;;  %v10580_v0 = vld [vmem:[#allocation10 + $0x3c8] sm:$0xff] }
 0x9f8   :  { %11243 = vmatprep.subr.bf16.mxu0 %v13000_v25  ;;  %11284 = vmatprep.subr.bf16.mxu1 %v13002_v55  ;;  %v13056_v42 = vcombine.high %v10579_v22, %v10583_v23  ;;  %v13055_v40 = vcombine.low %v10579_v22, %v10583_v23  ;;  %v13057_v31 = vcombine.low %v10580_v0, %v10584_v33 }
 0x9f9   :  { %v13058_v25 = vcombine.high %v10580_v0, %v10584_v33 }
 0x9fb   :  { %11244 = vmatpush1.bf16.msra.mxu0 %v12999_v49  ;;  %11285 = vmatpush1.bf16.msra.mxu1 %v13001_v37  ;;  %v15839_v49 = vld [vmem:[#allocation10 + $0x30] sm:$0xff]  ;;  %v15841_v37 = vld [vmem:[#allocation10 + $0x18] sm:$0xff] }
 0x9fc   :  { %11245 = vmatprep.subr.bf16.mxu0 %v13008_v53  ;;  %11286 = vmatprep.subr.bf16.mxu1 %v13010_v45  ;;  %v12940_v55 = vcombine.high %v15837_v39, %v15839_v49  ;;  %v12939_v35 = vcombine.low %v15837_v39, %v15839_v49  ;;  %v12941_v54 = vcombine.low %v15841_v37, %v15845_v16 }
 0x9fd   :  { %v12942_v53 = vcombine.high %v15841_v37, %v15845_v16 }
 0x9ff   :  { %11246 = vmatpush1.bf16.msra.mxu0 %v13007_v24  ;;  %11287 = vmatpush1.bf16.msra.mxu1 %v13009_v3  ;;  %v16726_v3 = vld [vmem:[#allocation41_spill] sm:$0xff] }
 0xa00   :  { %11247 = vmatprep.subr.bf16.mxu0 %v13016_v62  ;;  %11288 = vmatprep.subr.bf16.mxu1 %v13018_v27 }
 0xa03   :  { %11248 = vmatpush1.bf16.msra.mxu0 %v13015_v11  ;;  %11289 = vmatpush1.bf16.msra.mxu1 %v13017_v5  ;;  %v16729_v5 = vld [vmem:[#allocation44_spill] sm:$0xff] }
 0xa04   :  { %11249 = vmatprep.subr.bf16.mxu0 %v13024_v41  ;;  %11290 = vmatprep.subr.bf16.mxu1 %v13026_v15 }
 0xa07   :  { %11250 = vmatpush1.bf16.msra.mxu0 %v13023_v48  ;;  %11291 = vmatpush1.bf16.msra.mxu1 %v13025_v7 }
 0xa08   :  { %11251 = vmatprep.subr.bf16.mxu0 %v13032_v44  ;;  %11292 = vmatprep.subr.bf16.mxu1 %v13034_v28 }
 0xa0b   :  { %11252 = vmatpush1.bf16.msra.mxu0 %v13031_v2  ;;  %11293 = vmatpush1.bf16.msra.mxu1 %v13033_v58 }
 0xa0c   :  { %11253 = vmatprep.subr.bf16.mxu0 %v13040_v19  ;;  %11294 = vmatprep.subr.bf16.mxu1 %v13042_v56 }
 0xa0f   :  { %11254 = vmatpush1.bf16.msra.mxu0 %v13039_v52  ;;  %11295 = vmatpush1.bf16.msra.mxu1 %v13041_v30 }
 0xa10   :  { %11255 = vmatprep.subr.bf16.mxu0 %v13048_v60  ;;  %11296 = vmatprep.subr.bf16.mxu1 %v13050_v29 }
 0xa13   :  { %11256 = vmatpush1.bf16.msra.mxu0 %v13047_v43  ;;  %11297 = vmatpush1.bf16.msra.mxu1 %v13049_v46 }
 0xa14   :  { %11257 = vmatprep.subr.bf16.mxu0 %v13056_v42  ;;  %11298 = vmatprep.subr.bf16.mxu1 %v13058_v25 }
 0xa17   :  { %11258 = vmatpush1.bf16.msra.mxu0 %v13055_v40  ;;  %11299 = vmatpush1.bf16.msra.mxu1 %v13057_v31 }
 0xa18   :  { %11309 = vmatprep.subr.bf16.mxu0 %v12940_v55  ;;  %11350 = vmatprep.subr.bf16.mxu1 %v12942_v53 }
 0xa6d   :  { %v10273_v51 = vpop.f32.mrb[80].mxu0  ;;  %v10314_v24 = vpop.f32.mrb[80].mxu1 }
 0xa6e   :  { %v10407_v45 = vadd.f32 %v16726_v3, %v10273_v51  ;;  %v10409_v26 = vadd.f32 %v16727_v61, %v10314_v24  ;;  %v10275_v4 = vpop.f32.mrb[81].mxu0  ;;  %v10316_v62 = vpop.f32.mrb[81].mxu1 }
 0xa6f   :  { %v10408_v11 = vadd.f32 %v16728_v57, %v10275_v4  ;;  %v10410_v27 = vadd.f32 %v16729_v5, %v10316_v62  ;;  %v10277_v38 = vpop.f32.mrb[82].mxu0  ;;  %v10318_v20 = vpop.f32.mrb[82].mxu1 }
 0xa70   :  { %v10419_v6 = vmul.f32 0.5, %v10407_v45  ;;  %v10278_v41 = vpop.f32.mrb[83].mxu0  ;;  %v10319_v47 = vpop.f32.mrb[83].mxu1  ;;  %v10469_v20 = vld [vmem:[#allocation10 + $0x50] sm:$0xff] }
 0xa71   :  { %v10423_v48 = vmul.f32 0.5, %v10408_v11  ;;  %v10428_v23 = vmul.f32 0.5, %v10410_v27  ;;  %v10474_v41 = vld [vmem:[#allocation10 + $0x78] sm:$0xff] }
 0xa72   :  { %13529 = vtanh.f32 %v10419_v6  ;;  %v10470_v6 = vld [vmem:[#allocation10 + $0x58] sm:$0xff] }
 0xa73   :  { %13531 = vtanh.f32 %v10423_v48 }
 0xa74   :  { %13533 = vtanh.f32 %v10409_v26 }
 0xa7c   :  { %v13530_v7 = vpop.eup %13529 }
 0xa7d   :  { %v13532_v15 = vpop.eup %13531  ;;  %v10421_v32 = vmul.f32 0.5, %v13530_v7  ;;  %v10477_v7 = vld [vmem:[#allocation10 + $0x90] sm:$0xff] }
 0xa7e   :  { %v10425_v34 = vmul.f32 0.5, %v13532_v15  ;;  %v13534_v44 = vpop.eup %13533 }
 0xa7f   :  { %v10422_v8 = vadd.f32 0.5, %v10421_v32  ;;  %v12950_v32 = vcombine.high %v10470_v6, %v10474_v41 }
 0xa80   :  { %v10426_v63 = vadd.f32 0.5, %v10425_v34  ;;  %v10481_v34 = vld [vmem:[#allocation10 + $0xb0] sm:$0xff] }
 0xa81   :  { %v10433_v2 = vmul.f32 %v13534_v44, %v10422_v8  ;;  %v10478_v8 = vld [vmem:[#allocation10 + $0x98] sm:$0xff]  ;;  %v12955_v39 = vcombine.low %v10477_v7, %v10481_v34 }
 0xa82   :  { %v10432_v58 = vmul.f32 %v10426_v63, %v15750_v50  ;;  %v10482_v44 = vld [vmem:[#allocation10 + $0xb8] sm:$0xff] }
 0xa83   :  { %v12957_v49 = vcombine.low %v10478_v8, %v10482_v44 }
 0xa84   :  { %v15858_v28 = vadd.f32 %v10433_v2, %v10432_v58  ;;  %v12949_v2 = vcombine.low %v10470_v6, %v10474_v41  ;;  %v12956_v58 = vcombine.high %v10477_v7, %v10481_v34  ;;  %v10534_v34 = vld [vmem:[#allocation10 + $0x258] sm:$0xff] }
 0xaad   :  { %v10355_v10 = vpop.f32.mrb[84].mxu0  ;;  %v10396_v12 = vpop.f32.mrb[84].mxu1 }
 0xaae   :  { %v10415_v19 = vadd.f32 %v16730_v18, %v10355_v10  ;;  %v10417_v52 = vadd.f32 %v16731_v21, %v10396_v12  ;;  %v10357_v30 = vpop.f32.mrb[85].mxu0  ;;  %v10398_v56 = vpop.f32.mrb[85].mxu1  ;;  %v12958_v10 = vcombine.high %v10478_v8, %v10482_v44  ;;  %v10485_v12 = vld [vmem:[#allocation10 + $0xd0] sm:$0xff]  ;;  %v10490_v21 = vld [vmem:[#allocation10 + $0xf8] sm:$0xff] }
 0xaaf   :  { %v10416_v17 = vadd.f32 %v16732_v1, %v10357_v30  ;;  %v10418_v60 = vadd.f32 %v16733_v14, %v10398_v56  ;;  %v10359_v13 = vpop.f32.mrb[86].mxu0  ;;  %v10400_v43 = vpop.f32.mrb[86].mxu1  ;;  %v10489_v18 = vld [vmem:[#allocation10 + $0xf0] sm:$0xff]  ;;  %v10498_v30 = vld [vmem:[#allocation10 + $0x138] sm:$0xff] }
 0xab0   :  { %v10437_v46 = vmul.f32 0.5, %v10415_v19  ;;  %v10360_v29 = vpop.f32.mrb[87].mxu0  ;;  %v10401_v22 = vpop.f32.mrb[87].mxu1  ;;  %v10486_v19 = vld [vmem:[#allocation10 + $0xd8] sm:$0xff]  ;;  %v12964_v37 = vcombine.high %v10485_v12, %v10489_v18  ;;  %v12963_v56 = vcombine.low %v10485_v12, %v10489_v18  ;;  %v10505_v13 = vld [vmem:[#allocation10 + $0x170] sm:$0xff] }
 0xab1   :  { %v10441_v50 = vmul.f32 0.5, %v10416_v17  ;;  %v10446_v0 = vmul.f32 0.5, %v10418_v60  ;;  %v12966_v16 = vcombine.high %v10486_v19, %v10490_v21  ;;  %v12965_v1 = vcombine.low %v10486_v19, %v10490_v21  ;;  %v10501_v60 = vld [vmem:[#allocation10 + $0x150] sm:$0xff]  ;;  %v10502_v43 = vld [vmem:[#allocation10 + $0x158] sm:$0xff] }
 0xab2   :  { %13535 = vtanh.f32 %v10437_v46  ;;  %v10506_v46 = vld [vmem:[#allocation10 + $0x178] sm:$0xff]  ;;  %v10545_v12 = vld [vmem:[#allocation10 + $0x2b0] sm:$0xff] }
 0xab3   :  { %13537 = vtanh.f32 %v10441_v50  ;;  %v12980_v50 = vcombine.high %v10501_v60, %v10505_v13  ;;  %v10538_v8 = vld [vmem:[#allocation10 + $0x278] sm:$0xff] }
 0xab4   :  { %13539 = vtanh.f32 %v10417_v52  ;;  %v10494_v52 = vld [vmem:[#allocation10 + $0x118] sm:$0xff] }
 0xab5   :  { %13541 = vtanh.f32 %v10428_v23  ;;  %v12974_v14 = vcombine.high %v10494_v52, %v10498_v30  ;;  %v12973_v22 = vcombine.low %v10494_v52, %v10498_v30  ;;  %v12982_v23 = vcombine.high %v10502_v43, %v10506_v46  ;;  %v10542_v18 = vld [vmem:[#allocation10 + $0x298] sm:$0xff] }
 0xab6   :  { %13543 = vtanh.f32 %v10446_v0  ;;  %v10509_v0 = vld [vmem:[#allocation10 + $0x190] sm:$0xff]  ;;  %v10546_v19 = vld [vmem:[#allocation10 + $0x2b8] sm:$0xff] }
 0xab7   :  { %13545 = vtanh.f32 %v15858_v28  ;;  %v10554_v52 = vld [vmem:[#allocation10 + $0x2f8] sm:$0xff] }
 0xabc   :  { %v13536_v42 = vpop.eup %13535 }
 0xabd   :  { %v13538_v33 = vpop.eup %13537  ;;  %v10439_v40 = vmul.f32 0.5, %v13536_v42  ;;  %v10513_v42 = vld [vmem:[#allocation10 + $0x1b0] sm:$0xff] }
 0xabe   :  { %v10443_v31 = vmul.f32 0.5, %v13538_v33  ;;  %v13540_v55 = vpop.eup %13539  ;;  %v10510_v33 = vld [vmem:[#allocation10 + $0x198] sm:$0xff] }
 0xabf   :  { %v10440_v25 = vadd.f32 0.5, %v10439_v40  ;;  %v13542_v45 = vpop.eup %13541  ;;  %v10514_v40 = vld [vmem:[#allocation10 + $0x1b8] sm:$0xff] }
 0xac0   :  { %v10444_v53 = vadd.f32 0.5, %v10443_v31  ;;  %v13544_v61 = vpop.eup %13543  ;;  %v10430_v26 = vmul.f32 0.5, %v13542_v45  ;;  %v12979_v31 = vcombine.low %v10501_v60, %v10505_v13  ;;  %v10518_v45 = vld [vmem:[#allocation10 + $0x1d8] sm:$0xff]  ;;  %v10561_v60 = vld [vmem:[#allocation10 + $0x330] sm:$0xff] }
 0xac1   :  { %v10451_v51 = vmul.f32 %v13540_v55, %v10440_v25  ;;  %v10448_v4 = vmul.f32 0.5, %v13544_v61  ;;  %v13546_v62 = vpop.eup %13545  ;;  %v12981_v25 = vcombine.low %v10502_v43, %v10506_v46  ;;  %v12988_v55 = vcombine.high %v10509_v0, %v10513_v42  ;;  %v10522_v61 = vld [vmem:[#allocation10 + $0x1f8] sm:$0xff] }
 0xac2   :  { %v10450_v24 = vmul.f32 %v10444_v53, %v15758_v59  ;;  %v10431_v57 = vadd.f32 0.5, %v10430_v26  ;;  %v10473_v59 = vld [vmem:[#allocation10 + $0x70] sm:$0xff]  ;;  %v12990_v53 = vcombine.high %v10510_v33, %v10514_v40  ;;  %v12987_v26 = vcombine.low %v10509_v0, %v10513_v42  ;;  %v10558_v13 = vld [vmem:[#allocation10 + $0x318] sm:$0xff] }
 0xac3   :  { %v10449_v11 = vadd.f32 0.5, %v10448_v4  ;;  %v12948_v15 = vcombine.high %v10469_v20, %v10473_v59  ;;  %v12947_v63 = vcombine.low %v10469_v20, %v10473_v59  ;;  %v12989_v4 = vcombine.low %v10510_v33, %v10514_v40  ;;  %v10526_v20 = vld [vmem:[#allocation10 + $0x218] sm:$0xff]  ;;  %v10569_v0 = vld [vmem:[#allocation10 + $0x370] sm:$0xff] }
 0xac4   :  { %v15866_v3 = vadd.f32 %v10451_v51, %v10450_v24  ;;  %v15869_v27 = vmul.f32 %v13546_v62, %v10431_v57  ;;  %v10517_v51 = vld [vmem:[#allocation10 + $0x1d0] sm:$0xff]  ;;  %v12998_v57 = vcombine.high %v10518_v45, %v10522_v61  ;;  %v10530_v59 = vld [vmem:[#allocation10 + $0x238] sm:$0xff]  ;;  %v12997_v41 = vcombine.low %v10518_v45, %v10522_v61 }
 0xac5   :  { %v10521_v24 = vld [vmem:[#allocation10 + $0x1f0] sm:$0xff]  ;;  %v13006_v7 = vcombine.high %v10526_v20, %v10530_v59  ;;  %v10562_v43 = vld [vmem:[#allocation10 + $0x338] sm:$0xff] }
 0xac6   :  { %13547 = vtanh.f32 %v15866_v3  ;;  %v15877_v48 = vpack.c.bf16 %v15869_v27, %v15869_v27  ;;  %v12996_v62 = vcombine.high %v10517_v51, %v10521_v24  ;;  %v12995_v6 = vcombine.low %v10517_v51, %v10521_v24  ;;  %v10566_v42 = vld [vmem:[#allocation10 + $0x358] sm:$0xff]  ;;  %v10577_v51 = vld [vmem:[#allocation10 + $0x3b0] sm:$0xff] }
 0xac7   :  { %v10570_v33 = vld [vmem:[#allocation10 + $0x378] sm:$0xff] }
 0xac8   :  { %v10574_v24 = vld [vmem:[#allocation10 + $0x398] sm:$0xff] }
 0xac9   :  { %v10578_v45 = vld [vmem:[#allocation10 + $0x3b8] sm:$0xff] }
 0xad0   :  { %v13548_v5 = vpop.eup %13547 }
 0xad1   :  { %v15871_v38 = vmul.f32 %v13548_v5, %v10449_v11  ;;  %v10525_v11 = vld [vmem:[#allocation10 + $0x210] sm:$0xff] }
 0xad2   :  { %v10529_v5 = vld [vmem:[#allocation10 + $0x230] sm:$0xff] }
 0xad3   :  { %v10458_v47 = vpack.c.bf16 %v15871_v38, %v15871_v38  ;;  %v13003_v44 = vcombine.low %v10525_v11, %v10529_v5 }
 0xad5   :  { %11259 = vmatprep.mubr.bf16.mxu0 %v10458_v47  ;;  %11300 = vmatprep.mubr.bf16.mxu1 %v10458_v47 }
 0xad6   :  { %11260 = vmatmul.mubr.bf16.vlgmr.msra.gmra.mrb[88].mxu0 %v15877_v48  ;;  %11301 = vmatmul.mubr.bf16.vlgmr.msra.gmra.mrb[88].mxu1 %v15877_v48 }
 0xad7   :  { %11310 = vmatpush1.bf16.msra.mxu0 %v12939_v35  ;;  %11351 = vmatpush1.bf16.msra.mxu1 %v12941_v54  ;;  %v10493_v35 = vld [vmem:[#allocation10 + $0x110] sm:$0xff] }
 0xad8   :  { %11341 = vmatprep.mubr.bf16.mxu0 %v10458_v47  ;;  %11382 = vmatprep.mubr.bf16.mxu1 %v10458_v47  ;;  %v10497_v54 = vld [vmem:[#allocation10 + $0x130] sm:$0xff]  ;;  %v13004_v47 = vcombine.high %v10525_v11, %v10529_v5  ;;  %v10582_v5 = vld [vmem:[#allocation10 + $0x3d8] sm:$0xff] }
 0xad9   :  { %11311 = vmatprep.subr.bf16.mxu0 %v12948_v15  ;;  %11352 = vmatprep.subr.bf16.mxu1 %v12950_v32  ;;  %v12972_v17 = vcombine.high %v10493_v35, %v10497_v54  ;;  %v12971_v29 = vcombine.low %v10493_v35, %v10497_v54  ;;  %v10533_v15 = vld [vmem:[#allocation10 + $0x250] sm:$0xff]  ;;  %v10550_v54 = vld [vmem:[#allocation10 + $0x2d8] sm:$0xff] }
 0xada   :  { %v10537_v32 = vld [vmem:[#allocation10 + $0x270] sm:$0xff] }
 0xadb   :  { %11312 = vmatpush1.bf16.msra.mxu0 %v12947_v63  ;;  %11353 = vmatpush1.bf16.msra.mxu1 %v12949_v2  ;;  %v13005_v63 = vcombine.low %v10526_v20, %v10530_v59  ;;  %v13012_v2 = vcombine.high %v10533_v15, %v10537_v32  ;;  %v13011_v21 = vcombine.low %v10533_v15, %v10537_v32  ;;  %v10553_v35 = vld [vmem:[#allocation10 + $0x2f0] sm:$0xff]  ;;  %v10586_v20 = vld [vmem:[#allocation10 + $0x3f8] sm:$0xff]  ;;  %v11478_v15 = vld [vmem:[#allocation13 + $0x88] sm:$0xff] }
 0xadc   :  { %11313 = vmatprep.subr.bf16.mxu0 %v12956_v58  ;;  %11354 = vmatprep.subr.bf16.mxu1 %v12958_v10  ;;  %v13014_v58 = vcombine.high %v10534_v34, %v10538_v8  ;;  %v10541_v10 = vld [vmem:[#allocation10 + $0x290] sm:$0xff] }
 0xadd   :  { %v13019_v30 = vcombine.low %v10541_v10, %v10545_v12  ;;  %v10585_v11 = vld [vmem:[#allocation10 + $0x3f0] sm:$0xff] }
 0xadf   :  { %11314 = vmatpush1.bf16.msra.mxu0 %v12955_v39  ;;  %11355 = vmatpush1.bf16.msra.mxu1 %v12957_v49  ;;  %v13013_v39 = vcombine.low %v10534_v34, %v10538_v8  ;;  %v13020_v49 = vcombine.high %v10541_v10, %v10545_v12  ;;  %v13061_v34 = vcombine.low %v10582_v5, %v10586_v20 }
 0xae0   :  { %11315 = vmatprep.subr.bf16.mxu0 %v12964_v37  ;;  %11356 = vmatprep.subr.bf16.mxu1 %v12966_v16  ;;  %v13022_v37 = vcombine.high %v10542_v18, %v10546_v19  ;;  %v10549_v16 = vld [vmem:[#allocation10 + $0x2d0] sm:$0xff] }
 0xae1   :  { %v13027_v46 = vcombine.low %v10549_v16, %v10553_v35 }
 0xae3   :  { %11316 = vmatpush1.bf16.msra.mxu0 %v12963_v56  ;;  %11357 = vmatpush1.bf16.msra.mxu1 %v12965_v1  ;;  %v13021_v56 = vcombine.low %v10542_v18, %v10546_v19  ;;  %v13028_v1 = vcombine.high %v10549_v16, %v10553_v35  ;;  %v11463_v18 = vld [vmem:[#allocation13 + $0x10] sm:$0xff]  ;;  %v11464_v19 = vld [vmem:[#allocation13 + $0x18] sm:$0xff]  ;;  %v11465_v35 = vld [vmem:[#allocation13 + $0x20] sm:$0xff] }
 0xae4   :  { %11317 = vmatprep.subr.bf16.mxu0 %v12972_v17  ;;  %11358 = vmatprep.subr.bf16.mxu1 %v12974_v14  ;;  %v13030_v17 = vcombine.high %v10550_v54, %v10554_v52  ;;  %v10557_v14 = vld [vmem:[#allocation10 + $0x310] sm:$0xff] }
 0xae5   :  { %v13035_v40 = vcombine.low %v10557_v14, %v10561_v60 }
 0xae7   :  { %11318 = vmatpush1.bf16.msra.mxu0 %v12971_v29  ;;  %11359 = vmatpush1.bf16.msra.mxu1 %v12973_v22  ;;  %v13029_v29 = vcombine.low %v10550_v54, %v10554_v52  ;;  %v13036_v22 = vcombine.high %v10557_v14, %v10561_v60  ;;  %v11466_v54 = vld [vmem:[#allocation13 + $0x28] sm:$0xff]  ;;  %v11483_v52 = vld [vmem:[#allocation13 + $0xb0] sm:$0xff]  ;;  %v11468_v14 = vld [vmem:[#allocation13 + $0x38] sm:$0xff] }
 0xae8   :  { %11319 = vmatprep.subr.bf16.mxu0 %v12980_v50  ;;  %11360 = vmatprep.subr.bf16.mxu1 %v12982_v23  ;;  %v13038_v50 = vcombine.high %v10558_v13, %v10562_v43  ;;  %v10565_v23 = vld [vmem:[#allocation10 + $0x350] sm:$0xff]  ;;  %v11486_v60 = vld [vmem:[#allocation13 + $0xc8] sm:$0xff] }
 0xae9   :  { %v13043_v61 = vcombine.low %v10565_v23, %v10569_v0 }
 0xaeb   :  { %11320 = vmatpush1.bf16.msra.mxu0 %v12979_v31  ;;  %11361 = vmatpush1.bf16.msra.mxu1 %v12981_v25  ;;  %v13037_v31 = vcombine.low %v10558_v13, %v10562_v43  ;;  %v13044_v25 = vcombine.high %v10565_v23, %v10569_v0 }
 0xaec   :  { %11321 = vmatprep.subr.bf16.mxu0 %v12988_v55  ;;  %11362 = vmatprep.subr.bf16.mxu1 %v12990_v53  ;;  %v13046_v55 = vcombine.high %v10566_v42, %v10570_v33  ;;  %v10573_v53 = vld [vmem:[#allocation10 + $0x390] sm:$0xff] }
 0xaed   :  { %v13051_v59 = vcombine.low %v10573_v53, %v10577_v51 }
 0xaef   :  { %11322 = vmatpush1.bf16.msra.mxu0 %v12987_v26  ;;  %11363 = vmatpush1.bf16.msra.mxu1 %v12989_v4  ;;  %v13045_v26 = vcombine.low %v10566_v42, %v10570_v33  ;;  %v13052_v4 = vcombine.high %v10573_v53, %v10577_v51  ;;  %v11471_v42 = vld [vmem:[#allocation13 + $0x50] sm:$0xff]  ;;  %v11472_v33 = vld [vmem:[#allocation13 + $0x58] sm:$0xff]  ;;  %v11473_v53 = vld [vmem:[#allocation13 + $0x60] sm:$0xff] }
 0xaf0   :  { %11323 = vmatprep.subr.bf16.mxu0 %v12996_v62  ;;  %11364 = vmatprep.subr.bf16.mxu1 %v12998_v57  ;;  %v13054_v62 = vcombine.high %v10574_v24, %v10578_v45  ;;  %v10581_v57 = vld [vmem:[#allocation10 + $0x3d0] sm:$0xff]  ;;  %v11474_v51 = vld [vmem:[#allocation13 + $0x68] sm:$0xff] }
 0xaf1   :  { %v13059_v32 = vcombine.low %v10581_v57, %v10585_v11 }
 0xaf3   :  { %11324 = vmatpush1.bf16.msra.mxu0 %v12995_v6  ;;  %11365 = vmatpush1.bf16.msra.mxu1 %v12997_v41  ;;  %v13053_v6 = vcombine.low %v10574_v24, %v10578_v45  ;;  %v13060_v41 = vcombine.high %v10581_v57, %v10585_v11  ;;  %v11491_v24 = vld [vmem:[#allocation13 + $0xf0] sm:$0xff]  ;;  %v11492_v45 = vld [vmem:[#allocation13 + $0xf8] sm:$0xff]  ;;  %v16735_v11 = vld [vmem:[#allocation92_spill] sm:$0xff] }
 0xaf4   :  { %11325 = vmatprep.subr.bf16.mxu0 %v13004_v47  ;;  %11366 = vmatprep.subr.bf16.mxu1 %v13006_v7  ;;  %v13062_v47 = vcombine.high %v10582_v5, %v10586_v20  ;;  %v11477_v7 = vld [vmem:[#allocation13 + $0x80] sm:$0xff]  ;;  %v16736_v5 = vld [vmem:[#allocation107_spill] sm:$0xff]  ;;  %v16737_v20 = vld [vmem:[#allocation58_spill] sm:$0xff] }
 0xaf5   :  { %v13120_v8 = vpack.c.bf16 %v11478_v15, %v11477_v7  ;;  %v16740_v15 = vld [vmem:[#allocation46_spill] sm:$0xff] }
 0xaf7   :  { %11326 = vmatpush1.bf16.msra.mxu0 %v13003_v44  ;;  %11367 = vmatpush1.bf16.msra.mxu1 %v13005_v63  ;;  %v11461_v44 = vld [vmem:[#allocation13] sm:$0xff]  ;;  %v11462_v63 = vld [vmem:[#allocation13 + $0x8] sm:$0xff] }
 0xaf8   :  { %11327 = vmatprep.subr.bf16.mxu0 %v13012_v2  ;;  %11368 = vmatprep.subr.bf16.mxu1 %v13014_v58  ;;  %v11479_v2 = vld [vmem:[#allocation13 + $0x90] sm:$0xff]  ;;  %v11480_v58 = vld [vmem:[#allocation13 + $0x98] sm:$0xff]  ;;  %v13122_v10 = vpack.c.bf16 %v11462_v63, %v11461_v44 }
 0xaf9   :  { %v13124_v12 = vpack.c.bf16 %v11480_v58, %v11479_v2  ;;  %v16741_v44 = vld [vmem:[#allocation47_spill] sm:$0xff]  ;;  %v16742_v2 = vld [vmem:[#allocation48_spill] sm:$0xff] }
 0xafb   :  { %11328 = vmatpush1.bf16.msra.mxu0 %v13011_v21  ;;  %11369 = vmatpush1.bf16.msra.mxu1 %v13013_v39  ;;  %v11481_v21 = vld [vmem:[#allocation13 + $0xa0] sm:$0xff]  ;;  %v11482_v39 = vld [vmem:[#allocation13 + $0xa8] sm:$0xff] }
 0xafc   :  { %11329 = vmatprep.subr.bf16.mxu0 %v13020_v49  ;;  %11370 = vmatprep.subr.bf16.mxu1 %v13022_v37  ;;  %v16734_v49 = vld [vmem:[#allocation151_spill] sm:$0xff]  ;;  %v13126_v37 = vpack.c.bf16 %v11464_v19, %v11463_v18  ;;  %v13128_v16 = vpack.c.bf16 %v11482_v39, %v11481_v21 }
 0xaff   :  { %11330 = vmatpush1.bf16.msra.mxu0 %v13019_v30  ;;  %11371 = vmatpush1.bf16.msra.mxu1 %v13021_v56  ;;  %v11484_v30 = vld [vmem:[#allocation13 + $0xb8] sm:$0xff]  ;;  %v13130_v56 = vpack.c.bf16 %v11466_v54, %v11465_v35 }
 0xb00   :  { %11331 = vmatprep.subr.bf16.mxu0 %v13028_v1  ;;  %11372 = vmatprep.subr.bf16.mxu1 %v13030_v17  ;;  %v13132_v1 = vpack.c.bf16 %v11484_v30, %v11483_v52  ;;  %v11467_v17 = vld [vmem:[#allocation13 + $0x30] sm:$0xff] }
 0xb01   :  { %v13134_v13 = vpack.c.bf16 %v11468_v14, %v11467_v17 }
 0xb03   :  { %11332 = vmatpush1.bf16.msra.mxu0 %v13027_v46  ;;  %11373 = vmatpush1.bf16.msra.mxu1 %v13029_v29  ;;  %v11469_v46 = vld [vmem:[#allocation13 + $0x40] sm:$0xff]  ;;  %v11470_v29 = vld [vmem:[#allocation13 + $0x48] sm:$0xff] }
 0xb04   :  { %11333 = vmatprep.subr.bf16.mxu0 %v13036_v22  ;;  %11374 = vmatprep.subr.bf16.mxu1 %v13038_v50  ;;  %v11487_v22 = vld [vmem:[#allocation13 + $0xd0] sm:$0xff]  ;;  %v11488_v50 = vld [vmem:[#allocation13 + $0xd8] sm:$0xff]  ;;  %v13138_v23 = vpack.c.bf16 %v11470_v29, %v11469_v46  ;;  %v16743_v29 = vld [vmem:[#allocation49_spill] sm:$0xff] }
 0xb05   :  { %v13140_v0 = vpack.c.bf16 %v11488_v50, %v11487_v22  ;;  %v16744_v50 = vld [vmem:[#allocation50_spill] sm:$0xff] }
 0xb07   :  { %11334 = vmatpush1.bf16.msra.mxu0 %v13035_v40  ;;  %11375 = vmatpush1.bf16.msra.mxu1 %v13037_v31  ;;  %v11489_v40 = vld [vmem:[#allocation13 + $0xe0] sm:$0xff]  ;;  %v11490_v31 = vld [vmem:[#allocation13 + $0xe8] sm:$0xff] }
 0xb08   :  { %11335 = vmatprep.subr.bf16.mxu0 %v13044_v25  ;;  %11376 = vmatprep.subr.bf16.mxu1 %v13046_v55  ;;  %v13142_v25 = vpack.c.bf16 %v11472_v33, %v11471_v42  ;;  %v13144_v55 = vpack.c.bf16 %v11490_v31, %v11489_v40  ;;  %v16745_v33 = vld [vmem:[#allocation51_spill] sm:$0xff]  ;;  %v16746_v31 = vld [vmem:[#allocation52_spill] sm:$0xff] }
 0xb0b   :  { %11336 = vmatpush1.bf16.msra.mxu0 %v13043_v61  ;;  %11377 = vmatpush1.bf16.msra.mxu1 %v13045_v26  ;;  %v13146_v61 = vpack.c.bf16 %v11474_v51, %v11473_v53  ;;  %v13148_v26 = vpack.c.bf16 %v11492_v45, %v11491_v24 }
 0xb0c   :  { %11337 = vmatprep.subr.bf16.mxu0 %v13052_v4  ;;  %11378 = vmatprep.subr.bf16.mxu1 %v13054_v62  ;;  %v11475_v4 = vld [vmem:[#allocation13 + $0x70] sm:$0xff]  ;;  %v11476_v62 = vld [vmem:[#allocation13 + $0x78] sm:$0xff] }
 0xb0d   :  { %v13150_v57 = vpack.c.bf16 %v11476_v62, %v11475_v4 }
 0xb0f   :  { %11338 = vmatpush1.bf16.msra.mxu0 %v13051_v59  ;;  %11379 = vmatpush1.bf16.msra.mxu1 %v13053_v6  ;;  %v16738_v59 = vld [vmem:[#allocation113_spill] sm:$0xff] }
 0xb10   :  { %11339 = vmatprep.subr.bf16.mxu0 %v13060_v41  ;;  %11380 = vmatprep.subr.bf16.mxu1 %v13062_v47  ;;  %v16739_v47 = vld [vmem:[#allocation45_spill] sm:$0xff] }
 0xb13   :  { %11340 = vmatpush1.bf16.msra.mxu0 %v13059_v32  ;;  %11381 = vmatpush1.bf16.msra.mxu1 %v13061_v34 }
 0xb14   :  { %13152 = vmatprep.subr.bf16.mxu1 %v13120_v8  ;;  %13121 = vmatprep.subr.bf16.mxu0 %v13120_v8 }
 0xb16   :  { %11342 = vmatmul.mubr.bf16.vlgmr.msra.gmra.mrb[92].mxu0 %v15877_v48  ;;  %11383 = vmatmul.mubr.bf16.vlgmr.msra.gmra.mrb[92].mxu1 %v15877_v48  ;;  %v11485_v48 = vld [vmem:[#allocation13 + $0xc0] sm:$0xff] }
 0xb17   :  { %13160 = vmatpush3.bf16.msra.mxu1 %v13122_v10  ;;  %11582 = vmatprep.mubr.f32.mxu1 %v16734_v49  ;;  %v13136_v43 = vpack.c.bf16 %v11486_v60, %v11485_v48 }
 0xb18   :  { %13153 = vmatprep.subr.bf16.mxu1 %v13124_v12  ;;  %13123 = vmatpush3.bf16.msra.mxu0 %v13122_v10 }
 0xb19   :  { %13125 = vmatprep.subr.bf16.mxu0 %v13124_v12 }
 0xb1b   :  { %13161 = vmatpush3.bf16.msra.mxu1 %v13126_v37 }
 0xb1c   :  { %13154 = vmatprep.subr.bf16.mxu1 %v13128_v16  ;;  %13127 = vmatpush3.bf16.msra.mxu0 %v13126_v37 }
 0xb1d   :  { %13129 = vmatprep.subr.bf16.mxu0 %v13128_v16 }
 0xb1f   :  { %13162 = vmatpush3.bf16.msra.mxu1 %v13130_v56 }
 0xb20   :  { %13155 = vmatprep.subr.bf16.mxu1 %v13132_v1  ;;  %13131 = vmatpush3.bf16.msra.mxu0 %v13130_v56 }
 0xb21   :  { %13133 = vmatprep.subr.bf16.mxu0 %v13132_v1 }
 0xb23   :  { %13163 = vmatpush3.bf16.msra.mxu1 %v13134_v13 }
 0xb24   :  { %13156 = vmatprep.subr.bf16.mxu1 %v13136_v43  ;;  %13135 = vmatpush3.bf16.msra.mxu0 %v13134_v13 }
 0xb25   :  { %13137 = vmatprep.subr.bf16.mxu0 %v13136_v43 }
 0xb27   :  { %13164 = vmatpush3.bf16.msra.mxu1 %v13138_v23 }
 0xb28   :  { %13157 = vmatprep.subr.bf16.mxu1 %v13140_v0  ;;  %13139 = vmatpush3.bf16.msra.mxu0 %v13138_v23 }
 0xb29   :  { %13141 = vmatprep.subr.bf16.mxu0 %v13140_v0 }
 0xb2b   :  { %13165 = vmatpush3.bf16.msra.mxu1 %v13142_v25 }
 0xb2c   :  { %13158 = vmatprep.subr.bf16.mxu1 %v13144_v55  ;;  %13143 = vmatpush3.bf16.msra.mxu0 %v13142_v25 }
 0xb2d   :  { %13145 = vmatprep.subr.bf16.mxu0 %v13144_v55 }
 0xb2f   :  { %13166 = vmatpush3.bf16.msra.mxu1 %v13146_v61 }
 0xb30   :  { %13159 = vmatprep.subr.bf16.mxu1 %v13148_v26  ;;  %13147 = vmatpush3.bf16.msra.mxu0 %v13146_v61 }
 0xb31   :  { %13149 = vmatprep.subr.bf16.mxu0 %v13148_v26 }
 0xb33   :  { %13167 = vmatpush3.bf16.msra.mxu1 %v13150_v57 }
 0xb34   :  { %13151 = vmatpush3.bf16.msra.mxu0 %v13150_v57 }
 0xb36   :  { %11583 = vmatmul.mubr.f32.vlgmr.msra.gmra.mrb[96].mxu1 %v16735_v11 }
 0xb37   :  { %11587 = vmatprep.mubr.f32.mxu1 %v16736_v5 }
 0xb3a   :  { %11588 = vmatmul.mubr.f32.gmra.mrb[98].mxu1 %v15761_v9 }
 0xb3b   :  { %11592 = vmatprep.mubr.f32.mxu1 %v16737_v20 }
 0xb3e   :  { %11593 = vmatmul.mubr.f32.gmra.mrb[100].mxu1 %v15869_v27 }
 0xb3f   :  { %11597 = vmatprep.mubr.f32.mxu1 %v16738_v59 }
 0xba9   :  { %v11261_v6 = vpop.f32.mrb[88].mxu0  ;;  %v11302_v41 = vpop.f32.mrb[88].mxu1 }
 0xbaa   :  { %v11395_v7 = vadd.f32 %v16739_v47, %v11261_v6  ;;  %v11397_v32 = vadd.f32 %v16740_v15, %v11302_v41  ;;  %v11263_v34 = vpop.f32.mrb[89].mxu0  ;;  %v11304_v8 = vpop.f32.mrb[89].mxu1 }
 0xbab   :  { %v11396_v63 = vadd.f32 %v16741_v44, %v11263_v34  ;;  %v11398_v58 = vadd.f32 %v16742_v2, %v11304_v8  ;;  %v11265_v10 = vpop.f32.mrb[90].mxu0  ;;  %v11306_v9 = vpop.f32.mrb[90].mxu1 }
 0xbac   :  { %v11407_v12 = vmul.f32 0.5, %v11395_v7  ;;  %v11266_v18 = vpop.f32.mrb[91].mxu0  ;;  %v11307_v19 = vpop.f32.mrb[91].mxu1 }
 0xbad   :  { %v11411_v27 = vmul.f32 0.5, %v11396_v63  ;;  %v11416_v21 = vmul.f32 0.5, %v11398_v58  ;;  %v16747_v18 = vld [vmem:[#allocation112_spill] sm:$0xff] }
 0xbae   :  { %13549 = vtanh.f32 %v11407_v12 }
 0xbaf   :  { %13551 = vtanh.f32 %v11411_v27 }
 0xbb0   :  { %13553 = vtanh.f32 %v11397_v32  ;;  %v13063_v32 = vld [vmem:[#allocation13 + $0x100] ss:$0 sm:$0xff] }
 0xbb1   :  { %13555 = vtanh.f32 %v11416_v21 }
 0xbb8   :  { %v13550_v39 = vpop.eup %13549 }
 0xbb9   :  { %v13552_v49 = vpop.eup %13551  ;;  %v11409_v37 = vmul.f32 0.5, %v13550_v39  ;;  %v16748_v39 = vld [vmem:[#allocation56_spill] sm:$0xff] }
 0xbba   :  { %v11413_v16 = vmul.f32 0.5, %v13552_v49  ;;  %v13554_v54 = vpop.eup %13553 }
 0xbbb   :  { %v11410_v35 = vadd.f32 0.5, %v11409_v37  ;;  %v13556_v17 = vpop.eup %13555  ;;  %v16749_v37 = vld [vmem:[#allocation109_spill] sm:$0xff] }
 0xbbc   :  { %v11414_v52 = vadd.f32 0.5, %v11413_v16  ;;  %v11418_v14 = vmul.f32 0.5, %v13556_v17  ;;  %v16750_v16 = vld [vmem:[#allocation99_spill] sm:$0xff] }
 0xbbd   :  { %v11421_v30 = vmul.f32 %v13554_v54, %v11410_v35  ;;  %v16751_v35 = vld [vmem:[#allocation150_spill] sm:$0xff] }
 0xbbe   :  { %v11420_v56 = vmul.f32 %v11414_v52, %v15858_v28  ;;  %v11419_v48 = vadd.f32 0.5, %v11418_v14 }
 0xbc0   :  { %v11422_v1 = vadd.f32 %v11421_v30, %v11420_v56 }
 0xbc2   :  { %13557 = vtanh.f32 %v11422_v1 }
 0xbcc   :  { %v13558_v60 = vpop.eup %13557 }
 0xbcd   :  { %v11424_v13 = vmul.f32 %v13558_v60, %v11419_v48 }
 0xbcf   :  { %11598 = vmatmul.mubr.f32.gmra.mrb[102].mxu1 %v11424_v13 }
 0xbe9   :  { %v11343_v43 = vpop.f32.mrb[92].mxu0  ;;  %v11384_v46 = vpop.f32.mrb[92].mxu1 }
 0xbea   :  { %v11403_v22 = vadd.f32 %v16743_v29, %v11343_v43  ;;  %v11405_v23 = vadd.f32 %v16744_v50, %v11384_v46  ;;  %v11345_v0 = vpop.f32.mrb[93].mxu0  ;;  %v11386_v42 = vpop.f32.mrb[93].mxu1 }
 0xbeb   :  { %v11404_v40 = vadd.f32 %v16745_v33, %v11345_v0  ;;  %v11406_v28 = vadd.f32 %v16746_v31, %v11386_v42  ;;  %v11347_v25 = vpop.f32.mrb[94].mxu0  ;;  %v11388_v55 = vpop.f32.mrb[94].mxu1 }
 0xbec   :  { %v11425_v53 = vmul.f32 0.5, %v11403_v22  ;;  %v11348_v51 = vpop.f32.mrb[95].mxu0  ;;  %v11389_v24 = vpop.f32.mrb[95].mxu1 }
 0xbed   :  { %v11429_v45 = vmul.f32 0.5, %v11404_v40  ;;  %v11434_v61 = vmul.f32 0.5, %v11406_v28 }
 0xbee   :  { %13559 = vtanh.f32 %v11425_v53 }
 0xbef   :  { %13561 = vtanh.f32 %v11429_v45 }
 0xbf0   :  { %13563 = vtanh.f32 %v11405_v23 }
 0xbf1   :  { %13565 = vtanh.f32 %v11434_v61 }
 0xbf8   :  { %v13560_v26 = vpop.eup %13559 }
 0xbf9   :  { %v13562_v4 = vpop.eup %13561  ;;  %v11427_v62 = vmul.f32 0.5, %v13560_v26 }
 0xbfa   :  { %v11431_v57 = vmul.f32 0.5, %v13562_v4  ;;  %v13564_v5 = vpop.eup %13563 }
 0xbfb   :  { %v11428_v11 = vadd.f32 0.5, %v11427_v62  ;;  %v13566_v47 = vpop.eup %13565 }
 0xbfc   :  { %v11432_v20 = vadd.f32 0.5, %v11431_v57  ;;  %v11436_v7 = vmul.f32 0.5, %v13566_v47 }
 0xbfd   :  { %v11439_v59 = vmul.f32 %v13564_v5, %v11428_v11 }
 0xbfe   :  { %v11438_v6 = vmul.f32 %v11432_v20, %v15866_v3  ;;  %v11437_v8 = vadd.f32 0.5, %v11436_v7 }
 0xc00   :  { %v11440_v41 = vadd.f32 %v11439_v59, %v11438_v6 }
 0xc02   :  { %13567 = vtanh.f32 %v11440_v41 }
 0xc09   :  { %v13108_v15 = vpop.f32.mrb[96].mxu1 }
 0xc0a   :  { %v13109_v34 = vpop.f32.mrb[97].mxu1 }
 0xc0b   :  { %v13110_v44 = vadd.f32 %v13109_v34, %v13108_v15 }
 0xc0c   :  { %v13568_v63 = vpop.eup %13567 }
 0xc0d   :  { %v11585_v2 = vadd.f32 %v13110_v44, %v13063_v32  ;;  %v13111_v58 = vpop.f32.mrb[98].mxu1  ;;  %v11442_v10 = vmul.f32 %v13568_v63, %v11437_v8 }
 0xc0e   :  { %v13112_v9 = vpop.f32.mrb[99].mxu1 }
 0xc0f   :  { %11607 = vst [vmem:[#allocation15 + $0x20] sm:$0xff] %v11585_v2  ;;  %v13113_v12 = vadd.f32 %v13112_v9, %v13111_v58  ;;  %11562 = vmatprep.mubr.f32.mxu0 %v11442_v10 }
 0xc10   :  { %11563 = vmatmul.mubr.f32.vlgmr.msra.gmra.mrb[96].mxu0 %v16747_v18 }
 0xc11   :  { %v11590_v3 = vadd.f32 %v13113_v12, %v13063_v32  ;;  %11567 = vmatprep.mubr.f32.mxu0 %v15871_v38  ;;  %v13114_v19 = vpop.f32.mrb[100].mxu1 }
 0xc12   :  { %v13115_v27 = vpop.f32.mrb[101].mxu1 }
 0xc13   :  { %11608 = vst [vmem:[#allocation15 + $0x28] sm:$0xff] %v11590_v3  ;;  %v13116_v21 = vadd.f32 %v13115_v27, %v13114_v19 }
 0xc14   :  { %11568 = vmatmul.mubr.f32.gmra.mrb[98].mxu0 %v16748_v39 }
 0xc15   :  { %v11595_v49 = vadd.f32 %v13116_v21, %v13063_v32  ;;  %11572 = vmatprep.mubr.f32.mxu0 %v15763_v36 }
 0xc17   :  { %11609 = vst [vmem:[#allocation15 + $0x30] sm:$0xff] %v11595_v49 }
 0xc18   :  { %11573 = vmatmul.mubr.f32.gmra.mrb[100].mxu0 %v16749_v37 }
 0xc19   :  { %11577 = vmatprep.mubr.f32.mxu0 %v16750_v16 }
 0xc1c   :  { %11578 = vmatmul.mubr.f32.gmra.mrb[102].mxu0 %v16751_v35 }
 0xca2   :  { %v13117_v54 = vpop.f32.mrb[102].mxu1 }
 0xca3   :  { %v13118_v52 = vpop.f32.mrb[103].mxu1 }
 0xca4   :  { %v13119_v30 = vadd.f32 %v13118_v52, %v13117_v54 }
 0xca6   :  { %v11600_v38 = vadd.f32 %v13119_v30, %v13063_v32 }
 0xca8   :  { %11610 = vst [vmem:[#allocation15 + $0x38] sm:$0xff] %v11600_v38 }
 0xce3   :  { %v13096_v56 = vpop.f32.mrb[96].mxu0 }
 0xce4   :  { %v13097_v1 = vpop.f32.mrb[97].mxu0 }
 0xce5   :  { %v13098_v17 = vadd.f32 %v13097_v1, %v13096_v56 }
 0xce7   :  { %v11565_v14 = vadd.f32 %v13098_v17, %v13063_v32  ;;  %v13099_v48 = vpop.f32.mrb[98].mxu0 }
 0xce8   :  { %v13100_v60 = vpop.f32.mrb[99].mxu0 }
 0xce9   :  { %11603 = vst [vmem:[#allocation15] sm:$0xff] %v11565_v14  ;;  %v13101_v36 = vadd.f32 %v13100_v60, %v13099_v48 }
 0xceb   :  { %v11570_v13 = vadd.f32 %v13101_v36, %v13063_v32  ;;  %v13102_v43 = vpop.f32.mrb[100].mxu0 }
 0xcec   :  { %v13103_v46 = vpop.f32.mrb[101].mxu0 }
 0xced   :  { %11604 = vst [vmem:[#allocation15 + $0x8] sm:$0xff] %v11570_v13  ;;  %v13104_v29 = vadd.f32 %v13103_v46, %v13102_v43 }
 0xcef   :  { %v11575_v22 = vadd.f32 %v13104_v29, %v13063_v32  ;;  %v13105_v50 = vpop.f32.mrb[102].mxu0 }
 0xcf0   :  { %v13106_v23 = vpop.f32.mrb[103].mxu0 }
 0xcf1   :  { %11605 = vst [vmem:[#allocation15 + $0x10] sm:$0xff] %v11575_v22  ;;  %v13107_v0 = vadd.f32 %v13106_v23, %v13105_v50 }
 0xcf3   :  { %v11580_v42 = vadd.f32 %v13107_v0, %v13063_v32 }
 0xcf5   :  { %11606 = vst [vmem:[#allocation15 + $0x18] sm:$0xff] %v11580_v42 }
 0xcf6   :  { %13736 = shalt.err (!%p13733_p10)
}
 0xcf7   :  { %s13737_s22 = scalar_lea.hbm %s15934_s6, 1024 }
 0xcf8   :  { %p13738_p11 = scmp.ne.s32.totalorder %s15934_s6, %s13737_s22  ;;  %p13741_p12 = scmp.lt.u32.totalorder %s13737_s22, %s15934_s6 }
 0xcfa   :  { %p13743_p13 = pnand %p13741_p12, %p13738_p11 }
 0xcfc   :  { %13746 = shalt.err (!%p13743_p13)
}
 0xcfd   :  { %11622 = dma.vmem_to_hbm [thread:$0]  %s11617_s21, 1024, %s15934_s6, [#allocation6], %s13766_s2, %s13766_s2, %s13767_s9  }
 0xcfe   :  { %13755 = dma.done.wait [#allocation6], 1024  }
 0xcff   :  { %13756 = vsyncadd [#allocation6], 4294966272 }
 0xd00   :  { %11626 = vsyncpa [#allocation5], 1 }
 0xd01   :  { %11627 = vsyncpa [#allocation8], 1 }
 0xd02   :  { %11628 = vsyncpa [#allocation11], 1 }
 0xd03   :  { %11629 = vsyncpa [#allocation14], 1 }
 0xd04   :  { %11630 = vsyncpa [#allocation6], 1 }

</bundles_post_ra>
